<compile_context>
chip_gen: v7x
topology: tpu7x:2x2x1
jax: 0.10.0
libtpu: 0.0.40
codegen_flags: <defaults>
</compile_context>

<pallas_src>
import functools
import math

import jax
import jax.numpy as jnp
from jax.experimental import pallas as pl
from jax.experimental.pallas import tpu as pltpu

BN_EPS = 1e-5
IN_EPS = 1e-5


# ----------------------------- Pallas kernels ------------------------------ #
def conv_mm_kernel(a_ref, b_ref, scale_ref, shift_ref, o_ref, acc_ref, *, act):
    """Tiled matmul (im2col conv) + fused scale/shift (bias+BN) + activation.

    a_ref/b_ref are bf16 tiles (MXU-native); accumulation is f32 in VMEM.
    """
    k = pl.program_id(2)

    @pl.when(k == 0)
    def _():
        acc_ref[...] = jnp.zeros_like(acc_ref)

    acc_ref[...] += jnp.dot(a_ref[...], b_ref[...],
                            preferred_element_type=jnp.float32)

    @pl.when(k == pl.num_programs(2) - 1)
    def _():
        y = acc_ref[...] * scale_ref[...] + shift_ref[...]
        if act == "relu":
            y = jnp.maximum(y, 0.0)
        elif act == "tanh":
            y = jnp.tanh(y)
        o_ref[...] = y.astype(o_ref.dtype)


def instnorm_relu_kernel(h_ref, o_ref, *, eps):
    """Fused InstanceNorm2d(affine=False) + ReLU over one batch element."""
    h = h_ref[0].astype(jnp.float32)                 # [H*W, C]
    mean = jnp.mean(h, axis=0, keepdims=True)
    d = h - mean
    var = jnp.mean(d * d, axis=0, keepdims=True)     # biased, like PyTorch
    y = d * jax.lax.rsqrt(var + eps)
    o_ref[0] = jnp.maximum(y, 0.0).astype(o_ref.dtype)


def instnorm_add_kernel(h_ref, x_ref, o_ref, *, eps):
    """Fused InstanceNorm2d(affine=False) + residual add over one batch elem."""
    h = h_ref[0].astype(jnp.float32)                 # [H*W, C]
    mean = jnp.mean(h, axis=0, keepdims=True)
    d = h - mean
    var = jnp.mean(d * d, axis=0, keepdims=True)
    y = d * jax.lax.rsqrt(var + eps)
    o_ref[0] = (x_ref[0].astype(jnp.float32) + y).astype(o_ref.dtype)


# ----------------------------- tiling helpers ------------------------------ #
def _round_up(x, m):
    return (x + m - 1) // m * m


def _pick_tile(dim, cap):
    """Largest multiple-of-128 divisor of `dim` that is <= cap."""
    best = 128
    t = 128
    limit = min(dim, cap)
    while t <= limit:
        if dim % t == 0:
            best = t
        t += 128
    return best


def _choose_tiles(Mp, Kp, Np):
    tm_cap = 1024
    if Mp >= 256:
        # Keep >=2 blocks along the parallel M axis so both v7x TCs get work.
        tm_cap = min(tm_cap, Mp // 2)
    tm = _pick_tile(Mp, tm_cap)
    tn = _pick_tile(Np, 256)       # full MXU width on v6e/v7x where possible
    tk = _pick_tile(Kp, 2048)      # long K runs, few grid steps
    return tm, tn, tk


def _vmem_limit_bytes(tm, tk, tn, out_bytes):
    """VMEM limit derived from the actual (double-buffered) tile footprint."""
    need = (2 * tm * tk * 2        # A stream, bf16, 2 buffers
            + 2 * tk * tn * 2      # B stream
            + 2 * tm * tn * out_bytes
            + 4 * 2 * tn * 4       # scale + shift rows
            + tm * tn * 4)         # f32 accumulator scratch
    limit = int(need) * 2 + (4 << 20)          # 2x margin + headroom
    return max(16 << 20, min(limit, 64 << 20))  # safe on v7x's 64 MiB VMEM


# ---------------------------- matmul wrapper -------------------------------- #
def matmul_scale_shift_act(a, wmat, scale, shift, *, act, out_dtype, n_valid):
    """out[m, c] = act((sum_k a[m,k]*wmat[k,c]) * scale[c] + shift[c]).

    a: [M, K] bf16 im2col patches; wmat: [Kp, Np] pre-padded bf16 weights.
    """
    M, K = a.shape
    Kp, Np = wmat.shape
    Mp = _round_up(M, 128)
    if Mp != M or Kp != K:
        a = jnp.pad(a, ((0, Mp - M), (0, Kp - K)))

    tm, tn, tk = _choose_tiles(Mp, Kp, Np)
    out_bytes = jnp.dtype(out_dtype).itemsize
    kernel = functools.partial(conv_mm_kernel, act=act)

    out = pl.pallas_call(
        kernel,
        out_shape=jax.ShapeDtypeStruct((Mp, Np), out_dtype),
        grid_spec=pltpu.PrefetchScalarGridSpec(
            num_scalar_prefetch=0,
            grid=(Mp // tm, Np // tn, Kp // tk),
            in_specs=[
                pl.BlockSpec((tm, tk), lambda i, j, k: (i, k)),
                pl.BlockSpec((tk, tn), lambda i, j, k: (k, j)),
                pl.BlockSpec((1, tn), lambda i, j, k: (0, j)),
                pl.BlockSpec((1, tn), lambda i, j, k: (0, j)),
            ],
            out_specs=pl.BlockSpec((tm, tn), lambda i, j, k: (i, j)),
            scratch_shapes=[pltpu.VMEM((tm, tn), jnp.float32)],
        ),
        compiler_params=pltpu.CompilerParams(
            dimension_semantics=("parallel", "parallel", "arbitrary"),
            vmem_limit_bytes=_vmem_limit_bytes(tm, tk, tn, out_bytes)),
    )(a, wmat, scale, shift)

    return out[:M, :n_valid]


# ------------------------------ JAX glue ----------------------------------- #
def extract_patches(x_nhwc, ksize, stride, pad):
    """im2col: [N*Ho*Wo, ksize*ksize*C] with (kh, kw, c) ordering."""
    N, H, W, C = x_nhwc.shape
    if pad:
        x_nhwc = jnp.pad(x_nhwc, ((0, 0), (pad, pad), (pad, pad), (0, 0)))
    Ho = (H + 2 * pad - ksize) // stride + 1
    Wo = (W + 2 * pad - ksize) // stride + 1
    cols = []
    for di in range(ksize):
        for dj in range(ksize):
            cols.append(x_nhwc[:, di:di + stride * Ho:stride,
                               dj:dj + stride * Wo:stride, :])
    patches = jnp.concatenate(cols, axis=-1)               # [N, Ho, Wo, k*k*C]
    return patches.reshape(N * Ho * Wo, ksize * ksize * C), (N, Ho, Wo)


def conv2d(x_nhwc, wmat, scale, shift, *, ksize, stride, pad, cout, act,
           out_dtype=jnp.bfloat16):
    """Conv2d as an im2col MXU matmul; weights are pre-packed [Kp, Np] bf16."""
    patches, (N, Ho, Wo) = extract_patches(
        x_nhwc.astype(jnp.bfloat16), ksize, stride, pad)
    y = matmul_scale_shift_act(patches, wmat, scale, shift,
                               act=act, out_dtype=out_dtype, n_valid=cout)
    return y.reshape(N, Ho, Wo, cout)


def conv_transpose2d(x_nhwc, p, cout, act, out_dtype):
    """ConvTranspose2d(k=4, s=2, p=1, bias=False) via the sub-pixel trick.

    One stride-1 3x3 conv whose output channels are (phase, cout); the four
    2x2 stride-phase sub-kernels live inside the 3x3 weight matrix.  Finishes
    with a depth-to-space interleave.  No zero-inserted buffer, 4x fewer
    useful-FLOP-equivalents than zero dilation.
    """
    N, H, W, _ = x_nhwc.shape
    y = conv2d(x_nhwc, p["wmat"], p["scale"], p["shift"], ksize=3, stride=1,
               pad=1, cout=4 * cout, act=act, out_dtype=out_dtype)
    y = y.reshape(N, H, W, 2, 2, cout)                     # (n, h, w, a, b, c)
    y = jnp.transpose(y, (0, 1, 3, 2, 4, 5)).reshape(N, 2 * H, 2 * W, cout)
    return y


def instance_norm_relu(h_nhwc, eps=IN_EPS):
    N, H, W, C = h_nhwc.shape
    h = h_nhwc.reshape(N, H * W, C)
    out = pl.pallas_call(
        functools.partial(instnorm_relu_kernel, eps=eps),
        out_shape=jax.ShapeDtypeStruct((N, H * W, C), jnp.bfloat16),
        grid_spec=pltpu.PrefetchScalarGridSpec(
            num_scalar_prefetch=0, grid=(N,),
            in_specs=[pl.BlockSpec((1, H * W, C), lambda n: (n, 0, 0))],
            out_specs=pl.BlockSpec((1, H * W, C), lambda n: (n, 0, 0))),
        compiler_params=pltpu.CompilerParams(
            dimension_semantics=("parallel",)),
    )(h)
    return out.reshape(N, H, W, C)


def instance_norm_add(h_nhwc, x_nhwc, eps=IN_EPS):
    N, H, W, C = h_nhwc.shape
    h = h_nhwc.reshape(N, H * W, C)
    x = x_nhwc.reshape(N, H * W, C)
    out = pl.pallas_call(
        functools.partial(instnorm_add_kernel, eps=eps),
        out_shape=jax.ShapeDtypeStruct((N, H * W, C), jnp.bfloat16),
        grid_spec=pltpu.PrefetchScalarGridSpec(
            num_scalar_prefetch=0, grid=(N,),
            in_specs=[pl.BlockSpec((1, H * W, C), lambda n: (n, 0, 0)),
                      pl.BlockSpec((1, H * W, C), lambda n: (n, 0, 0))],
            out_specs=pl.BlockSpec((1, H * W, C), lambda n: (n, 0, 0))),
        compiler_params=pltpu.CompilerParams(
            dimension_semantics=("parallel",)),
    )(h, x)
    return out.reshape(N, H, W, C)


def residual_block(x, p):
    N, H, W, C = x.shape
    h = jnp.pad(x, ((0, 0), (1, 1), (1, 1), (0, 0)), mode="reflect")
    h = conv2d(h, p["wmat1"], p["scale"], p["shift"], ksize=3, stride=1,
               pad=0, cout=C, act="none")
    h = instance_norm_relu(h)
    h = jnp.pad(h, ((0, 0), (1, 1), (1, 1), (0, 0)), mode="reflect")
    h = conv2d(h, p["wmat2"], p["scale"], p["shift"], ksize=3, stride=1,
               pad=0, cout=C, act="none")
    return instance_norm_add(h, x)


# --------------------------- parameter init -------------------------------- #
def init_params(key, input_nc=3, output_nc=3, filter_size=64):
    """Torch-layout parameters with the module's weights_init distribution."""
    fs = filter_size
    kit = iter(jax.random.split(key, 64))

    def conv(cin, cout, k):
        # weights_init: Conv* weights ~ N(0, 0.02); bias keeps torch default
        # U(-1/sqrt(fan_in), 1/sqrt(fan_in)).
        w = 0.02 * jax.random.normal(next(kit), (cout, cin, k, k), jnp.float32)
        bound = 1.0 / math.sqrt(cin * k * k)
        b = jax.random.uniform(next(kit), (cout,), jnp.float32, -bound, bound)
        return w, b

    def convT(cin, cout, k):
        # ConvTranspose2d weight layout [Cin, Cout, Kh, Kw]; bias=False.
        return 0.02 * jax.random.normal(next(kit), (cin, cout, k, k),
                                        jnp.float32)

    def bn(c):
        # weights_init: BN gamma ~ N(1, 0.02), beta = 0.
        gamma = 1.0 + 0.02 * jax.random.normal(next(kit), (c,), jnp.float32)
        return gamma, jnp.zeros((c,), jnp.float32)

    params = {}
    chans = [(input_nc, fs), (fs, 2 * fs), (2 * fs, 4 * fs), (4 * fs, 8 * fs)]
    for li, (cin, cout) in enumerate(chans, start=1):
        w, b = conv(cin, cout, 4)
        gamma, beta = bn(cout)
        params[f"conv{li}"] = dict(w=w, b=b, gamma=gamma, beta=beta)

    for ri in range(1, 8):
        w1, b1 = conv(8 * fs, 8 * fs, 3)
        w2, b2 = conv(8 * fs, 8 * fs, 3)
        params[f"res{ri}"] = dict(w1=w1, b1=b1, w2=w2, b2=b2)

    up_chans = [(8 * fs, 4 * fs), (4 * fs, 2 * fs), (2 * fs, fs),
                (fs, output_nc)]
    for li, (cin, cout) in enumerate(up_chans, start=1):
        entry = dict(w=convT(cin, cout, 4))
        if li < 4:
            gamma, beta = bn(cout)
            entry.update(gamma=gamma, beta=beta)
        params[f"upconv{li}"] = entry
    return params


# --------------------- one-time weight preparation -------------------------- #
def prepare_params(params):
    """Pack weights into padded bf16 matmul operands; fold bias/BN; split the
    transposed convs into their stride-phase form.  Runs once, outside jit."""
    prep, cfg = {}, {}
    inv_std = 1.0 / jnp.sqrt(1.0 + BN_EPS)   # fresh eval-mode running stats

    def conv_w_to_mat(w_oihw):
        cout, cin, kh, kw = w_oihw.shape
        return jnp.transpose(w_oihw, (2, 3, 1, 0)).reshape(kh * kw * cin, cout)

    def convT_w_to_phase_mat(w_iohw):
        # ConvTranspose2d(k=4,s=2,p=1): out[2m+a, 2n+b] is a 2x2 window of the
        # input with taps ky in {3,1} (a=0) / {2,0} (a=1), same for kx.  Place
        # those taps inside a 3x3 window so one stride-1 conv covers all four
        # phases, with output channel order (phase, cout).
        cin, cout, _, _ = w_iohw.shape
        taps = {0: {0: 3, 1: 1}, 1: {1: 2, 2: 0}}   # phase -> {window: ktap}
        m = jnp.zeros((3, 3, cin, 4 * cout), jnp.float32)
        for a in (0, 1):
            for b in (0, 1):
                ph = 2 * a + b
                for dy, ky in taps[a].items():
                    for dx, kx in taps[b].items():
                        m = m.at[dy, dx, :, ph * cout:(ph + 1) * cout].set(
                            w_iohw[:, :, ky, kx])
        return m.reshape(9 * cin, 4 * cout)

    def pack(wmat, scale, shift):
        K, C = wmat.shape
        Kp, Np = _round_up(K, 128), _round_up(C, 128)
        wmat = jnp.pad(wmat, ((0, Kp - K), (0, Np - C))).astype(jnp.bfloat16)
        scale = jnp.pad(scale.astype(jnp.float32), (0, Np - C)).reshape(1, Np)
        shift = jnp.pad(shift.astype(jnp.float32), (0, Np - C)).reshape(1, Np)
        return wmat, scale, shift

    for li in range(1, 5):
        p = params[f"conv{li}"]
        cout = p["w"].shape[0]
        scale = p["gamma"] * inv_std
        shift = p["b"] * scale + p["beta"]        # conv bias folded into BN
        wm, sc, sh = pack(conv_w_to_mat(p["w"]), scale, shift)
        prep[f"conv{li}"] = dict(wmat=wm, scale=sc, shift=sh)
        cfg[f"conv{li}"] = cout

    for ri in range(1, 8):
        p = params[f"res{ri}"]
        C = p["w1"].shape[0]
        ones = jnp.ones((C,), jnp.float32)
        zeros = jnp.zeros((C,), jnp.float32)
        # Conv bias dropped: a per-channel constant is exactly cancelled by
        # the following non-affine InstanceNorm (mean subtraction).
        wm1, sc, sh = pack(conv_w_to_mat(p["w1"]), ones, zeros)
        wm2, _, _ = pack(conv_w_to_mat(p["w2"]), ones, zeros)
        prep[f"res{ri}"] = dict(wmat1=wm1, wmat2=wm2, scale=sc, shift=sh)

    for li in range(1, 5):
        p = params[f"upconv{li}"]
        cout = p["w"].shape[1]
        if li < 4:
            scale = jnp.tile(p["gamma"] * inv_std, 4)   # per (phase, cout)
            shift = jnp.tile(p["beta"], 4)
        else:
            scale = jnp.ones((4 * cout,), jnp.float32)
            shift = jnp.zeros((4 * cout,), jnp.float32)
        wm, sc, sh = pack(convT_w_to_phase_mat(p["w"]), scale, shift)
        prep[f"upconv{li}"] = dict(wmat=wm, scale=sc, shift=sh)
        cfg[f"upconv{li}"] = cout

    return prep, cfg


# ------------------------------ forward ------------------------------------ #
def generator_forward(prep, x_nchw, *, cfg):
    # NCHW -> NHWC, bf16 activations throughout (final output f32).
    x = jnp.transpose(x_nchw, (0, 2, 3, 1)).astype(jnp.bfloat16)

    # encoder: Conv(k4,s2,p1) + BN + ReLU (+ Dropout2d identity in eval)
    skips = []
    for li in range(1, 5):
        p = prep[f"conv{li}"]
        x = conv2d(x, p["wmat"], p["scale"], p["shift"], ksize=4, stride=2,
                   pad=1, cout=cfg[f"conv{li}"], act="relu")
        skips.append(x)
    x1, x2, x3, x4 = skips

    # 7 residual blocks (conv -> fused IN+ReLU -> conv -> fused IN+add)
    for ri in range(1, 8):
        x4 = residual_block(x4, prep[f"res{ri}"])

    # decoder with skip adds (adds fuse with the next layer's im2col in XLA)
    y1 = conv_transpose2d(x4, prep["upconv1"], cfg["upconv1"], "relu",
                          jnp.bfloat16)
    y2 = conv_transpose2d(y1 + x3, prep["upconv2"], cfg["upconv2"], "relu",
                          jnp.bfloat16)
    y3 = conv_transpose2d(y2 + x2, prep["upconv3"], cfg["upconv3"], "relu",
                          jnp.bfloat16)
    y4 = conv_transpose2d(y3 + x1, prep["upconv4"], cfg["upconv4"], "tanh",
                          jnp.float32)

    return jnp.transpose(y4, (0, 3, 1, 2))  # NHWC -> NCHW


if __name__ == "__main__":
    key = jax.random.PRNGKey(0)
    pkey, xkey = jax.random.split(key)

    # Small-but-valid config: 64x64 input keeps the residual blocks at 4x4
    # spatial (ReflectionPad(1) needs spatial >= 2); filter_size=16 keeps the
    # channel stack at 16/32/64/128.
    filter_size = 16
    raw_params = init_params(pkey, input_nc=3, output_nc=3,
                             filter_size=filter_size)
    prep, cfg = prepare_params(raw_params)   # one-time weight prep (hoisted)
    x = jax.random.normal(xkey, (2, 3, 64, 64), jnp.float32)

    fwd = jax.jit(functools.partial(generator_forward, cfg=cfg))
    out = jax.block_until_ready(fwd(prep, x))

    assert out.shape == (2, 3, 64, 64), out.shape
    assert bool(jnp.all(jnp.isfinite(out)))
    assert bool(jnp.all(jnp.abs(out) <= 1.0))   # Tanh output range
    print("KERNEL_OK")
</pallas_src>

<mosaic_0001>
module attributes {stable_mosaic.version = 11 : i64} {
  func.func @conv_mm_kernel(%arg0: i32, %arg1: i32, %arg2: i32, %arg3: memref<1024x128xbf16, #tpu.memory_space<vmem>>, %arg4: memref<128x128xbf16, #tpu.memory_space<vmem>>, %arg5: memref<1x128xf32, #tpu.memory_space<vmem>>, %arg6: memref<1x128xf32, #tpu.memory_space<vmem>>, %arg7: memref<1024x128xbf16, #tpu.memory_space<vmem>>, %arg8: memref<1024x128xf32, #tpu.memory_space<vmem>>) attributes {dimension_semantics = [#tpu.dimension_semantics<parallel>, #tpu.dimension_semantics<parallel>, #tpu.dimension_semantics<arbitrary>], iteration_bounds = array<i64: 2, 1, 1>, scalar_prefetch = 0 : i64, scratch_operands = 1 : i64, tpu.core_type = #tpu.core_type<tc>, window_params = [{transform_indices = @transform_0, window_bounds = array<i64: 1024, 128>}, {transform_indices = @transform_1, window_bounds = array<i64: 128, 128>}, {transform_indices = @transform_2, window_bounds = array<i64: 1, 128>}, {transform_indices = @transform_3, window_bounds = array<i64: 1, 128>}, {transform_indices = @transform_4, window_bounds = array<i64: 1024, 128>}]} {
    %c0_i32 = arith.constant 0 : i32
    %0 = arith.cmpi eq, %arg2, %c0_i32 : i32
    %1 = arith.extui %0 : i1 to i32
    %c0_i32_0 = arith.constant 0 : i32
    %2 = arith.cmpi ne, %1, %c0_i32_0 : i32
    scf.if %2 {
      %cst_10 = arith.constant 0.000000e+00 : f32
      %12 = vector.broadcast %cst_10 : f32 to vector<1024x128xf32>
      %c0_11 = arith.constant 0 : index
      %c0_12 = arith.constant 0 : index
      %13 = vector.load %arg8[%c0_11, %c0_12] : memref<1024x128xf32, #tpu.memory_space<vmem>>, vector<1024x128xf32>
      tpu.vector_store %arg8[%c0_11, %c0_12], %12 {strides = array<i32>} : memref<1024x128xf32, #tpu.memory_space<vmem>>, vector<1024x128xf32>,
    } else {
    }
    %c0 = arith.constant 0 : index
    %c0_1 = arith.constant 0 : index
    %3 = vector.load %arg8[%c0, %c0_1] : memref<1024x128xf32, #tpu.memory_space<vmem>>, vector<1024x128xf32>
    %c0_2 = arith.constant 0 : index
    %c0_3 = arith.constant 0 : index
    %4 = vector.load %arg3[%c0_2, %c0_3] : memref<1024x128xbf16, #tpu.memory_space<vmem>>, vector<1024x128xbf16>
    %c0_4 = arith.constant 0 : index
    %c0_5 = arith.constant 0 : index
    %5 = vector.load %arg4[%c0_4, %c0_5] : memref<128x128xbf16, #tpu.memory_space<vmem>>, vector<128x128xbf16>
    %cst = arith.constant dense<0.000000e+00> : vector<1024x128xf32>
    %6 = tpu.matmul %4, %5, %cst {dimension_numbers = #tpu.dot_dimension_numbers<[1], [0], [0], [1], [0, 0, 1, 1], [], []>} : vector<1024x128xbf16>, vector<128x128xbf16>, vector<1024x128xf32> -> vector<1024x128xf32>
    %7 = arith.addf %3, %6 : vector<1024x128xf32>
    %c0_6 = arith.constant 0 : index
    %c0_7 = arith.constant 0 : index
    %8 = vector.load %arg8[%c0_6, %c0_7] : memref<1024x128xf32, #tpu.memory_space<vmem>>, vector<1024x128xf32>
    tpu.vector_store %arg8[%c0_6, %c0_7], %7 {strides = array<i32>} : memref<1024x128xf32, #tpu.memory_space<vmem>>, vector<1024x128xf32>,
    %c0_i32_8 = arith.constant 0 : i32
    %9 = arith.cmpi eq, %arg2, %c0_i32_8 : i32
    %10 = arith.extui %9 : i1 to i32
    %c0_i32_9 = arith.constant 0 : i32
    %11 = arith.cmpi ne, %10, %c0_i32_9 : i32
    scf.if %11 {
      %c0_10 = arith.constant 0 : index
      %c0_11 = arith.constant 0 : index
      %12 = vector.load %arg8[%c0_10, %c0_11] : memref<1024x128xf32, #tpu.memory_space<vmem>>, vector<1024x128xf32>
      %c0_12 = arith.constant 0 : index
      %c0_13 = arith.constant 0 : index
      %13 = vector.load %arg5[%c0_12, %c0_13] : memref<1x128xf32, #tpu.memory_space<vmem>>, vector<1x128xf32>
      %14 = vector.broadcast %13 : vector<1x128xf32> to vector<1024x128xf32>
      %15 = arith.mulf %12, %14 : vector<1024x128xf32>
      %c0_14 = arith.constant 0 : index
      %c0_15 = arith.constant 0 : index
      %16 = vector.load %arg6[%c0_14, %c0_15] : memref<1x128xf32, #tpu.memory_space<vmem>>, vector<1x128xf32>
      %17 = vector.broadcast %16 : vector<1x128xf32> to vector<1024x128xf32>
      %18 = arith.addf %15, %17 : vector<1024x128xf32>
      %cst_16 = arith.constant 0.000000e+00 : f32
      %19 = vector.broadcast %cst_16 : f32 to vector<1024x128xf32>
      %20 = arith.maximumf %18, %19 : vector<1024x128xf32>
      %21 = arith.truncf %20 : vector<1024x128xf32> to vector<1024x128xbf16>
      %c0_17 = arith.constant 0 : index
      %c0_18 = arith.constant 0 : index
      %22 = vector.load %arg7[%c0_17, %c0_18] : memref<1024x128xbf16, #tpu.memory_space<vmem>>, vector<1024x128xbf16>
      tpu.vector_store %arg7[%c0_17, %c0_18], %21 {strides = array<i32>} : memref<1024x128xbf16, #tpu.memory_space<vmem>>, vector<1024x128xbf16>,
    } else {
    }
    return
  }
  func.func @transform_0(%arg0: i32, %arg1: i32, %arg2: i32) -> (i32, i32) {
    %c0_i32 = arith.constant 0 : i32
    return %arg0, %arg2 : i32, i32
  }
  func.func @transform_1(%arg0: i32, %arg1: i32, %arg2: i32) -> (i32, i32) {
    %c0_i32 = arith.constant 0 : i32
    return %arg2, %arg1 : i32, i32
  }
  func.func @transform_2(%arg0: i32, %arg1: i32, %arg2: i32) -> (i32, i32) {
    %c0_i32 = arith.constant 0 : i32
    %c0_i32_0 = arith.constant 0 : i32
    return %c0_i32, %arg1 : i32, i32
  }
  func.func @transform_3(%arg0: i32, %arg1: i32, %arg2: i32) -> (i32, i32) {
    %c0_i32 = arith.constant 0 : i32
    %c0_i32_0 = arith.constant 0 : i32
    return %c0_i32, %arg1 : i32, i32
  }
  func.func @transform_4(%arg0: i32, %arg1: i32, %arg2: i32) -> (i32, i32) {
    %c0_i32 = arith.constant 0 : i32
    return %arg0, %arg1 : i32, i32
  }
}

module attributes {stable_mosaic.version = 11 : i64} {
  func.func @conv_mm_kernel(%arg0: i32, %arg1: i32, %arg2: i32, %arg3: memref<256x256xbf16, #tpu.memory_space<vmem>>, %arg4: memref<256x128xbf16, #tpu.memory_space<vmem>>, %arg5: memref<1x128xf32, #tpu.memory_space<vmem>>, %arg6: memref<1x128xf32, #tpu.memory_space<vmem>>, %arg7: memref<256x128xbf16, #tpu.memory_space<vmem>>, %arg8: memref<256x128xf32, #tpu.memory_space<vmem>>) attributes {dimension_semantics = [#tpu.dimension_semantics<parallel>, #tpu.dimension_semantics<parallel>, #tpu.dimension_semantics<arbitrary>], iteration_bounds = array<i64: 2, 1, 1>, scalar_prefetch = 0 : i64, scratch_operands = 1 : i64, tpu.core_type = #tpu.core_type<tc>, window_params = [{transform_indices = @transform_0, window_bounds = array<i64: 256, 256>}, {transform_indices = @transform_1, window_bounds = array<i64: 256, 128>}, {transform_indices = @transform_2, window_bounds = array<i64: 1, 128>}, {transform_indices = @transform_3, window_bounds = array<i64: 1, 128>}, {transform_indices = @transform_4, window_bounds = array<i64: 256, 128>}]} {
    %c0_i32 = arith.constant 0 : i32
    %0 = arith.cmpi eq, %arg2, %c0_i32 : i32
    %1 = arith.extui %0 : i1 to i32
    %c0_i32_0 = arith.constant 0 : i32
    %2 = arith.cmpi ne, %1, %c0_i32_0 : i32
    scf.if %2 {
      %cst_10 = arith.constant 0.000000e+00 : f32
      %12 = vector.broadcast %cst_10 : f32 to vector<256x128xf32>
      %c0_11 = arith.constant 0 : index
      %c0_12 = arith.constant 0 : index
      %13 = vector.load %arg8[%c0_11, %c0_12] : memref<256x128xf32, #tpu.memory_space<vmem>>, vector<256x128xf32>
      tpu.vector_store %arg8[%c0_11, %c0_12], %12 {strides = array<i32>} : memref<256x128xf32, #tpu.memory_space<vmem>>, vector<256x128xf32>,
    } else {
    }
    %c0 = arith.constant 0 : index
    %c0_1 = arith.constant 0 : index
    %3 = vector.load %arg8[%c0, %c0_1] : memref<256x128xf32, #tpu.memory_space<vmem>>, vector<256x128xf32>
    %c0_2 = arith.constant 0 : index
    %c0_3 = arith.constant 0 : index
    %4 = vector.load %arg3[%c0_2, %c0_3] : memref<256x256xbf16, #tpu.memory_space<vmem>>, vector<256x256xbf16>
    %c0_4 = arith.constant 0 : index
    %c0_5 = arith.constant 0 : index
    %5 = vector.load %arg4[%c0_4, %c0_5] : memref<256x128xbf16, #tpu.memory_space<vmem>>, vector<256x128xbf16>
    %cst = arith.constant dense<0.000000e+00> : vector<256x128xf32>
    %6 = tpu.matmul %4, %5, %cst {dimension_numbers = #tpu.dot_dimension_numbers<[1], [0], [0], [1], [0, 0, 1, 1], [], []>} : vector<256x256xbf16>, vector<256x128xbf16>, vector<256x128xf32> -> vector<256x128xf32>
    %7 = arith.addf %3, %6 : vector<256x128xf32>
    %c0_6 = arith.constant 0 : index
    %c0_7 = arith.constant 0 : index
    %8 = vector.load %arg8[%c0_6, %c0_7] : memref<256x128xf32, #tpu.memory_space<vmem>>, vector<256x128xf32>
    tpu.vector_store %arg8[%c0_6, %c0_7], %7 {strides = array<i32>} : memref<256x128xf32, #tpu.memory_space<vmem>>, vector<256x128xf32>,
    %c0_i32_8 = arith.constant 0 : i32
    %9 = arith.cmpi eq, %arg2, %c0_i32_8 : i32
    %10 = arith.extui %9 : i1 to i32
    %c0_i32_9 = arith.constant 0 : i32
    %11 = arith.cmpi ne, %10, %c0_i32_9 : i32
    scf.if %11 {
      %c0_10 = arith.constant 0 : index
      %c0_11 = arith.constant 0 : index
      %12 = vector.load %arg8[%c0_10, %c0_11] : memref<256x128xf32, #tpu.memory_space<vmem>>, vector<256x128xf32>
      %c0_12 = arith.constant 0 : index
      %c0_13 = arith.constant 0 : index
      %13 = vector.load %arg5[%c0_12, %c0_13] : memref<1x128xf32, #tpu.memory_space<vmem>>, vector<1x128xf32>
      %14 = vector.broadcast %13 : vector<1x128xf32> to vector<256x128xf32>
      %15 = arith.mulf %12, %14 : vector<256x128xf32>
      %c0_14 = arith.constant 0 : index
      %c0_15 = arith.constant 0 : index
      %16 = vector.load %arg6[%c0_14, %c0_15] : memref<1x128xf32, #tpu.memory_space<vmem>>, vector<1x128xf32>
      %17 = vector.broadcast %16 : vector<1x128xf32> to vector<256x128xf32>
      %18 = arith.addf %15, %17 : vector<256x128xf32>
      %cst_16 = arith.constant 0.000000e+00 : f32
      %19 = vector.broadcast %cst_16 : f32 to vector<256x128xf32>
      %20 = arith.maximumf %18, %19 : vector<256x128xf32>
      %21 = arith.truncf %20 : vector<256x128xf32> to vector<256x128xbf16>
      %c0_17 = arith.constant 0 : index
      %c0_18 = arith.constant 0 : index
      %22 = vector.load %arg7[%c0_17, %c0_18] : memref<256x128xbf16, #tpu.memory_space<vmem>>, vector<256x128xbf16>
      tpu.vector_store %arg7[%c0_17, %c0_18], %21 {strides = array<i32>} : memref<256x128xbf16, #tpu.memory_space<vmem>>, vector<256x128xbf16>,
    } else {
    }
    return
  }
  func.func @transform_0(%arg0: i32, %arg1: i32, %arg2: i32) -> (i32, i32) {
    %c0_i32 = arith.constant 0 : i32
    return %arg0, %arg2 : i32, i32
  }
  func.func @transform_1(%arg0: i32, %arg1: i32, %arg2: i32) -> (i32, i32) {
    %c0_i32 = arith.constant 0 : i32
    return %arg2, %arg1 : i32, i32
  }
  func.func @transform_2(%arg0: i32, %arg1: i32, %arg2: i32) -> (i32, i32) {
    %c0_i32 = arith.constant 0 : i32
    %c0_i32_0 = arith.constant 0 : i32
    return %c0_i32, %arg1 : i32, i32
  }
  func.func @transform_3(%arg0: i32, %arg1: i32, %arg2: i32) -> (i32, i32) {
    %c0_i32 = arith.constant 0 : i32
    %c0_i32_0 = arith.constant 0 : i32
    return %c0_i32, %arg1 : i32, i32
  }
  func.func @transform_4(%arg0: i32, %arg1: i32, %arg2: i32) -> (i32, i32) {
    %c0_i32 = arith.constant 0 : i32
    return %arg0, %arg1 : i32, i32
  }
}

module attributes {stable_mosaic.version = 11 : i64} {
  func.func @conv_mm_kernel(%arg0: i32, %arg1: i32, %arg2: i32, %arg3: memref<128x512xbf16, #tpu.memory_space<vmem>>, %arg4: memref<512x128xbf16, #tpu.memory_space<vmem>>, %arg5: memref<1x128xf32, #tpu.memory_space<vmem>>, %arg6: memref<1x128xf32, #tpu.memory_space<vmem>>, %arg7: memref<128x128xbf16, #tpu.memory_space<vmem>>, %arg8: memref<128x128xf32, #tpu.memory_space<vmem>>) attributes {dimension_semantics = [#tpu.dimension_semantics<parallel>, #tpu.dimension_semantics<parallel>, #tpu.dimension_semantics<arbitrary>], iteration_bounds = array<i64: 1, 1, 1>, scalar_prefetch = 0 : i64, scratch_operands = 1 : i64, tpu.core_type = #tpu.core_type<tc>, window_params = [{transform_indices = @transform_0, window_bounds = array<i64: 128, 512>}, {transform_indices = @transform_1, window_bounds = array<i64: 512, 128>}, {transform_indices = @transform_2, window_bounds = array<i64: 1, 128>}, {transform_indices = @transform_3, window_bounds = array<i64: 1, 128>}, {transform_indices = @transform_4, window_bounds = array<i64: 128, 128>}]} {
    %c0_i32 = arith.constant 0 : i32
    %0 = arith.cmpi eq, %arg2, %c0_i32 : i32
    %1 = arith.extui %0 : i1 to i32
    %c0_i32_0 = arith.constant 0 : i32
    %2 = arith.cmpi ne, %1, %c0_i32_0 : i32
    scf.if %2 {
      %cst_10 = arith.constant 0.000000e+00 : f32
      %12 = vector.broadcast %cst_10 : f32 to vector<128x128xf32>
      %c0_11 = arith.constant 0 : index
      %c0_12 = arith.constant 0 : index
      %13 = vector.load %arg8[%c0_11, %c0_12] : memref<128x128xf32, #tpu.memory_space<vmem>>, vector<128x128xf32>
      tpu.vector_store %arg8[%c0_11, %c0_12], %12 {strides = array<i32>} : memref<128x128xf32, #tpu.memory_space<vmem>>, vector<128x128xf32>,
    } else {
    }
    %c0 = arith.constant 0 : index
    %c0_1 = arith.constant 0 : index
    %3 = vector.load %arg8[%c0, %c0_1] : memref<128x128xf32, #tpu.memory_space<vmem>>, vector<128x128xf32>
    %c0_2 = arith.constant 0 : index
    %c0_3 = arith.constant 0 : index
    %4 = vector.load %arg3[%c0_2, %c0_3] : memref<128x512xbf16, #tpu.memory_space<vmem>>, vector<128x512xbf16>
    %c0_4 = arith.constant 0 : index
    %c0_5 = arith.constant 0 : index
    %5 = vector.load %arg4[%c0_4, %c0_5] : memref<512x128xbf16, #tpu.memory_space<vmem>>, vector<512x128xbf16>
    %cst = arith.constant dense<0.000000e+00> : vector<128x128xf32>
    %6 = tpu.matmul %4, %5, %cst {dimension_numbers = #tpu.dot_dimension_numbers<[1], [0], [0], [1], [0, 0, 1, 1], [], []>} : vector<128x512xbf16>, vector<512x128xbf16>, vector<128x128xf32> -> vector<128x128xf32>
    %7 = arith.addf %3, %6 : vector<128x128xf32>
    %c0_6 = arith.constant 0 : index
    %c0_7 = arith.constant 0 : index
    %8 = vector.load %arg8[%c0_6, %c0_7] : memref<128x128xf32, #tpu.memory_space<vmem>>, vector<128x128xf32>
    tpu.vector_store %arg8[%c0_6, %c0_7], %7 {strides = array<i32>} : memref<128x128xf32, #tpu.memory_space<vmem>>, vector<128x128xf32>,
    %c0_i32_8 = arith.constant 0 : i32
    %9 = arith.cmpi eq, %arg2, %c0_i32_8 : i32
    %10 = arith.extui %9 : i1 to i32
    %c0_i32_9 = arith.constant 0 : i32
    %11 = arith.cmpi ne, %10, %c0_i32_9 : i32
    scf.if %11 {
      %c0_10 = arith.constant 0 : index
      %c0_11 = arith.constant 0 : index
      %12 = vector.load %arg8[%c0_10, %c0_11] : memref<128x128xf32, #tpu.memory_space<vmem>>, vector<128x128xf32>
      %c0_12 = arith.constant 0 : index
      %c0_13 = arith.constant 0 : index
      %13 = vector.load %arg5[%c0_12, %c0_13] : memref<1x128xf32, #tpu.memory_space<vmem>>, vector<1x128xf32>
      %14 = vector.broadcast %13 : vector<1x128xf32> to vector<128x128xf32>
      %15 = arith.mulf %12, %14 : vector<128x128xf32>
      %c0_14 = arith.constant 0 : index
      %c0_15 = arith.constant 0 : index
      %16 = vector.load %arg6[%c0_14, %c0_15] : memref<1x128xf32, #tpu.memory_space<vmem>>, vector<1x128xf32>
      %17 = vector.broadcast %16 : vector<1x128xf32> to vector<128x128xf32>
      %18 = arith.addf %15, %17 : vector<128x128xf32>
      %cst_16 = arith.constant 0.000000e+00 : f32
      %19 = vector.broadcast %cst_16 : f32 to vector<128x128xf32>
      %20 = arith.maximumf %18, %19 : vector<128x128xf32>
      %21 = arith.truncf %20 : vector<128x128xf32> to vector<128x128xbf16>
      %c0_17 = arith.constant 0 : index
      %c0_18 = arith.constant 0 : index
      %22 = vector.load %arg7[%c0_17, %c0_18] : memref<128x128xbf16, #tpu.memory_space<vmem>>, vector<128x128xbf16>
      tpu.vector_store %arg7[%c0_17, %c0_18], %21 {strides = array<i32>} : memref<128x128xbf16, #tpu.memory_space<vmem>>, vector<128x128xbf16>,
    } else {
    }
    return
  }
  func.func @transform_0(%arg0: i32, %arg1: i32, %arg2: i32) -> (i32, i32) {
    %c0_i32 = arith.constant 0 : i32
    return %arg0, %arg2 : i32, i32
  }
  func.func @transform_1(%arg0: i32, %arg1: i32, %arg2: i32) -> (i32, i32) {
    %c0_i32 = arith.constant 0 : i32
    return %arg2, %arg1 : i32, i32
  }
  func.func @transform_2(%arg0: i32, %arg1: i32, %arg2: i32) -> (i32, i32) {
    %c0_i32 = arith.constant 0 : i32
    %c0_i32_0 = arith.constant 0 : i32
    return %c0_i32, %arg1 : i32, i32
  }
  func.func @transform_3(%arg0: i32, %arg1: i32, %arg2: i32) -> (i32, i32) {
    %c0_i32 = arith.constant 0 : i32
    %c0_i32_0 = arith.constant 0 : i32
    return %c0_i32, %arg1 : i32, i32
  }
  func.func @transform_4(%arg0: i32, %arg1: i32, %arg2: i32) -> (i32, i32) {
    %c0_i32 = arith.constant 0 : i32
    return %arg0, %arg1 : i32, i32
  }
}

module attributes {stable_mosaic.version = 11 : i64} {
  func.func @conv_mm_kernel(%arg0: i32, %arg1: i32, %arg2: i32, %arg3: memref<128x1024xbf16, #tpu.memory_space<vmem>>, %arg4: memref<1024x128xbf16, #tpu.memory_space<vmem>>, %arg5: memref<1x128xf32, #tpu.memory_space<vmem>>, %arg6: memref<1x128xf32, #tpu.memory_space<vmem>>, %arg7: memref<128x128xbf16, #tpu.memory_space<vmem>>, %arg8: memref<128x128xf32, #tpu.memory_space<vmem>>) attributes {dimension_semantics = [#tpu.dimension_semantics<parallel>, #tpu.dimension_semantics<parallel>, #tpu.dimension_semantics<arbitrary>], iteration_bounds = array<i64: 1, 1, 1>, scalar_prefetch = 0 : i64, scratch_operands = 1 : i64, tpu.core_type = #tpu.core_type<tc>, window_params = [{transform_indices = @transform_0, window_bounds = array<i64: 128, 1024>}, {transform_indices = @transform_1, window_bounds = array<i64: 1024, 128>}, {transform_indices = @transform_2, window_bounds = array<i64: 1, 128>}, {transform_indices = @transform_3, window_bounds = array<i64: 1, 128>}, {transform_indices = @transform_4, window_bounds = array<i64: 128, 128>}]} {
    %c0_i32 = arith.constant 0 : i32
    %0 = arith.cmpi eq, %arg2, %c0_i32 : i32
    %1 = arith.extui %0 : i1 to i32
    %c0_i32_0 = arith.constant 0 : i32
    %2 = arith.cmpi ne, %1, %c0_i32_0 : i32
    scf.if %2 {
      %cst_10 = arith.constant 0.000000e+00 : f32
      %12 = vector.broadcast %cst_10 : f32 to vector<128x128xf32>
      %c0_11 = arith.constant 0 : index
      %c0_12 = arith.constant 0 : index
      %13 = vector.load %arg8[%c0_11, %c0_12] : memref<128x128xf32, #tpu.memory_space<vmem>>, vector<128x128xf32>
      tpu.vector_store %arg8[%c0_11, %c0_12], %12 {strides = array<i32>} : memref<128x128xf32, #tpu.memory_space<vmem>>, vector<128x128xf32>,
    } else {
    }
    %c0 = arith.constant 0 : index
    %c0_1 = arith.constant 0 : index
    %3 = vector.load %arg8[%c0, %c0_1] : memref<128x128xf32, #tpu.memory_space<vmem>>, vector<128x128xf32>
    %c0_2 = arith.constant 0 : index
    %c0_3 = arith.constant 0 : index
    %4 = vector.load %arg3[%c0_2, %c0_3] : memref<128x1024xbf16, #tpu.memory_space<vmem>>, vector<128x1024xbf16>
    %c0_4 = arith.constant 0 : index
    %c0_5 = arith.constant 0 : index
    %5 = vector.load %arg4[%c0_4, %c0_5] : memref<1024x128xbf16, #tpu.memory_space<vmem>>, vector<1024x128xbf16>
    %cst = arith.constant dense<0.000000e+00> : vector<128x128xf32>
    %6 = tpu.matmul %4, %5, %cst {dimension_numbers = #tpu.dot_dimension_numbers<[1], [0], [0], [1], [0, 0, 1, 1], [], []>} : vector<128x1024xbf16>, vector<1024x128xbf16>, vector<128x128xf32> -> vector<128x128xf32>
    %7 = arith.addf %3, %6 : vector<128x128xf32>
    %c0_6 = arith.constant 0 : index
    %c0_7 = arith.constant 0 : index
    %8 = vector.load %arg8[%c0_6, %c0_7] : memref<128x128xf32, #tpu.memory_space<vmem>>, vector<128x128xf32>
    tpu.vector_store %arg8[%c0_6, %c0_7], %7 {strides = array<i32>} : memref<128x128xf32, #tpu.memory_space<vmem>>, vector<128x128xf32>,
    %c0_i32_8 = arith.constant 0 : i32
    %9 = arith.cmpi eq, %arg2, %c0_i32_8 : i32
    %10 = arith.extui %9 : i1 to i32
    %c0_i32_9 = arith.constant 0 : i32
    %11 = arith.cmpi ne, %10, %c0_i32_9 : i32
    scf.if %11 {
      %c0_10 = arith.constant 0 : index
      %c0_11 = arith.constant 0 : index
      %12 = vector.load %arg8[%c0_10, %c0_11] : memref<128x128xf32, #tpu.memory_space<vmem>>, vector<128x128xf32>
      %c0_12 = arith.constant 0 : index
      %c0_13 = arith.constant 0 : index
      %13 = vector.load %arg5[%c0_12, %c0_13] : memref<1x128xf32, #tpu.memory_space<vmem>>, vector<1x128xf32>
      %14 = vector.broadcast %13 : vector<1x128xf32> to vector<128x128xf32>
      %15 = arith.mulf %12, %14 : vector<128x128xf32>
      %c0_14 = arith.constant 0 : index
      %c0_15 = arith.constant 0 : index
      %16 = vector.load %arg6[%c0_14, %c0_15] : memref<1x128xf32, #tpu.memory_space<vmem>>, vector<1x128xf32>
      %17 = vector.broadcast %16 : vector<1x128xf32> to vector<128x128xf32>
      %18 = arith.addf %15, %17 : vector<128x128xf32>
      %cst_16 = arith.constant 0.000000e+00 : f32
      %19 = vector.broadcast %cst_16 : f32 to vector<128x128xf32>
      %20 = arith.maximumf %18, %19 : vector<128x128xf32>
      %21 = arith.truncf %20 : vector<128x128xf32> to vector<128x128xbf16>
      %c0_17 = arith.constant 0 : index
      %c0_18 = arith.constant 0 : index
      %22 = vector.load %arg7[%c0_17, %c0_18] : memref<128x128xbf16, #tpu.memory_space<vmem>>, vector<128x128xbf16>
      tpu.vector_store %arg7[%c0_17, %c0_18], %21 {strides = array<i32>} : memref<128x128xbf16, #tpu.memory_space<vmem>>, vector<128x128xbf16>,
    } else {
    }
    return
  }
  func.func @transform_0(%arg0: i32, %arg1: i32, %arg2: i32) -> (i32, i32) {
    %c0_i32 = arith.constant 0 : i32
    return %arg0, %arg2 : i32, i32
  }
  func.func @transform_1(%arg0: i32, %arg1: i32, %arg2: i32) -> (i32, i32) {
    %c0_i32 = arith.constant 0 : i32
    return %arg2, %arg1 : i32, i32
  }
  func.func @transform_2(%arg0: i32, %arg1: i32, %arg2: i32) -> (i32, i32) {
    %c0_i32 = arith.constant 0 : i32
    %c0_i32_0 = arith.constant 0 : i32
    return %c0_i32, %arg1 : i32, i32
  }
  func.func @transform_3(%arg0: i32, %arg1: i32, %arg2: i32) -> (i32, i32) {
    %c0_i32 = arith.constant 0 : i32
    %c0_i32_0 = arith.constant 0 : i32
    return %c0_i32, %arg1 : i32, i32
  }
  func.func @transform_4(%arg0: i32, %arg1: i32, %arg2: i32) -> (i32, i32) {
    %c0_i32 = arith.constant 0 : i32
    return %arg0, %arg1 : i32, i32
  }
}

module attributes {stable_mosaic.version = 11 : i64} {
  func.func @conv_mm_kernel(%arg0: i32, %arg1: i32, %arg2: i32, %arg3: memref<128x1152xbf16, #tpu.memory_space<vmem>>, %arg4: memref<1152x128xbf16, #tpu.memory_space<vmem>>, %arg5: memref<1x128xf32, #tpu.memory_space<vmem>>, %arg6: memref<1x128xf32, #tpu.memory_space<vmem>>, %arg7: memref<128x128xbf16, #tpu.memory_space<vmem>>, %arg8: memref<128x128xf32, #tpu.memory_space<vmem>>) attributes {dimension_semantics = [#tpu.dimension_semantics<parallel>, #tpu.dimension_semantics<parallel>, #tpu.dimension_semantics<arbitrary>], iteration_bounds = array<i64: 1, 1, 1>, scalar_prefetch = 0 : i64, scratch_operands = 1 : i64, tpu.core_type = #tpu.core_type<tc>, window_params = [{transform_indices = @transform_0, window_bounds = array<i64: 128, 1152>}, {transform_indices = @transform_1, window_bounds = array<i64: 1152, 128>}, {transform_indices = @transform_2, window_bounds = array<i64: 1, 128>}, {transform_indices = @transform_3, window_bounds = array<i64: 1, 128>}, {transform_indices = @transform_4, window_bounds = array<i64: 128, 128>}]} {
    %c0_i32 = arith.constant 0 : i32
    %0 = arith.cmpi eq, %arg2, %c0_i32 : i32
    %1 = arith.extui %0 : i1 to i32
    %c0_i32_0 = arith.constant 0 : i32
    %2 = arith.cmpi ne, %1, %c0_i32_0 : i32
    scf.if %2 {
      %cst_10 = arith.constant 0.000000e+00 : f32
      %12 = vector.broadcast %cst_10 : f32 to vector<128x128xf32>
      %c0_11 = arith.constant 0 : index
      %c0_12 = arith.constant 0 : index
      %13 = vector.load %arg8[%c0_11, %c0_12] : memref<128x128xf32, #tpu.memory_space<vmem>>, vector<128x128xf32>
      tpu.vector_store %arg8[%c0_11, %c0_12], %12 {strides = array<i32>} : memref<128x128xf32, #tpu.memory_space<vmem>>, vector<128x128xf32>,
    } else {
    }
    %c0 = arith.constant 0 : index
    %c0_1 = arith.constant 0 : index
    %3 = vector.load %arg8[%c0, %c0_1] : memref<128x128xf32, #tpu.memory_space<vmem>>, vector<128x128xf32>
    %c0_2 = arith.constant 0 : index
    %c0_3 = arith.constant 0 : index
    %4 = vector.load %arg3[%c0_2, %c0_3] : memref<128x1152xbf16, #tpu.memory_space<vmem>>, vector<128x1152xbf16>
    %c0_4 = arith.constant 0 : index
    %c0_5 = arith.constant 0 : index
    %5 = vector.load %arg4[%c0_4, %c0_5] : memref<1152x128xbf16, #tpu.memory_space<vmem>>, vector<1152x128xbf16>
    %cst = arith.constant dense<0.000000e+00> : vector<128x128xf32>
    %6 = tpu.matmul %4, %5, %cst {dimension_numbers = #tpu.dot_dimension_numbers<[1], [0], [0], [1], [0, 0, 1, 1], [], []>} : vector<128x1152xbf16>, vector<1152x128xbf16>, vector<128x128xf32> -> vector<128x128xf32>
    %7 = arith.addf %3, %6 : vector<128x128xf32>
    %c0_6 = arith.constant 0 : index
    %c0_7 = arith.constant 0 : index
    %8 = vector.load %arg8[%c0_6, %c0_7] : memref<128x128xf32, #tpu.memory_space<vmem>>, vector<128x128xf32>
    tpu.vector_store %arg8[%c0_6, %c0_7], %7 {strides = array<i32>} : memref<128x128xf32, #tpu.memory_space<vmem>>, vector<128x128xf32>,
    %c0_i32_8 = arith.constant 0 : i32
    %9 = arith.cmpi eq, %arg2, %c0_i32_8 : i32
    %10 = arith.extui %9 : i1 to i32
    %c0_i32_9 = arith.constant 0 : i32
    %11 = arith.cmpi ne, %10, %c0_i32_9 : i32
    scf.if %11 {
      %c0_10 = arith.constant 0 : index
      %c0_11 = arith.constant 0 : index
      %12 = vector.load %arg8[%c0_10, %c0_11] : memref<128x128xf32, #tpu.memory_space<vmem>>, vector<128x128xf32>
      %c0_12 = arith.constant 0 : index
      %c0_13 = arith.constant 0 : index
      %13 = vector.load %arg5[%c0_12, %c0_13] : memref<1x128xf32, #tpu.memory_space<vmem>>, vector<1x128xf32>
      %14 = vector.broadcast %13 : vector<1x128xf32> to vector<128x128xf32>
      %15 = arith.mulf %12, %14 : vector<128x128xf32>
      %c0_14 = arith.constant 0 : index
      %c0_15 = arith.constant 0 : index
      %16 = vector.load %arg6[%c0_14, %c0_15] : memref<1x128xf32, #tpu.memory_space<vmem>>, vector<1x128xf32>
      %17 = vector.broadcast %16 : vector<1x128xf32> to vector<128x128xf32>
      %18 = arith.addf %15, %17 : vector<128x128xf32>
      %19 = arith.truncf %18 : vector<128x128xf32> to vector<128x128xbf16>
      %c0_16 = arith.constant 0 : index
      %c0_17 = arith.constant 0 : index
      %20 = vector.load %arg7[%c0_16, %c0_17] : memref<128x128xbf16, #tpu.memory_space<vmem>>, vector<128x128xbf16>
      tpu.vector_store %arg7[%c0_16, %c0_17], %19 {strides = array<i32>} : memref<128x128xbf16, #tpu.memory_space<vmem>>, vector<128x128xbf16>,
    } else {
    }
    return
  }
  func.func @transform_0(%arg0: i32, %arg1: i32, %arg2: i32) -> (i32, i32) {
    %c0_i32 = arith.constant 0 : i32
    return %arg0, %arg2 : i32, i32
  }
  func.func @transform_1(%arg0: i32, %arg1: i32, %arg2: i32) -> (i32, i32) {
    %c0_i32 = arith.constant 0 : i32
    return %arg2, %arg1 : i32, i32
  }
  func.func @transform_2(%arg0: i32, %arg1: i32, %arg2: i32) -> (i32, i32) {
    %c0_i32 = arith.constant 0 : i32
    %c0_i32_0 = arith.constant 0 : i32
    return %c0_i32, %arg1 : i32, i32
  }
  func.func @transform_3(%arg0: i32, %arg1: i32, %arg2: i32) -> (i32, i32) {
    %c0_i32 = arith.constant 0 : i32
    %c0_i32_0 = arith.constant 0 : i32
    return %c0_i32, %arg1 : i32, i32
  }
  func.func @transform_4(%arg0: i32, %arg1: i32, %arg2: i32) -> (i32, i32) {
    %c0_i32 = arith.constant 0 : i32
    return %arg0, %arg1 : i32, i32
  }
}

module attributes {stable_mosaic.version = 11 : i64} {
  func.func @instnorm_relu_kernel(%arg0: i32, %arg1: memref<1x16x128xbf16, #tpu.memory_space<vmem>>, %arg2: memref<1x16x128xbf16, #tpu.memory_space<vmem>>) attributes {dimension_semantics = [#tpu.dimension_semantics<parallel>], iteration_bounds = array<i64: 2>, scalar_prefetch = 0 : i64, scratch_operands = 0 : i64, tpu.core_type = #tpu.core_type<tc>, window_params = [{transform_indices = @transform_0, window_bounds = array<i64: 1, 16, 128>}, {transform_indices = @transform_1, window_bounds = array<i64: 1, 16, 128>}]} {
    %c0 = arith.constant 0 : index
    %c0_0 = arith.constant 0 : index
    %c0_1 = arith.constant 0 : index
    %0 = vector.load %arg1[%c0, %c0_0, %c0_1] : memref<1x16x128xbf16, #tpu.memory_space<vmem>>, vector<1x16x128xbf16>
    %1 = vector.shape_cast %0 : vector<1x16x128xbf16> to vector<16x128xbf16>
    %2 = arith.extf %1 : vector<16x128xbf16> to vector<16x128xf32>
    %cst = arith.constant dense<0.000000e+00> : vector<128xf32>
    %3 = vector.multi_reduction <add>, %2, %cst [0] : vector<16x128xf32> to vector<128xf32>
    %4 = vector.shape_cast %3 : vector<128xf32> to vector<1x128xf32>
    %cst_2 = arith.constant 1.600000e+01 : f32
    %5 = vector.broadcast %cst_2 : f32 to vector<1x128xf32>
    %6 = arith.divf %4, %5 : vector<1x128xf32>
    %7 = vector.broadcast %6 : vector<1x128xf32> to vector<16x128xf32>
    %8 = arith.subf %2, %7 : vector<16x128xf32>
    %9 = arith.mulf %8, %8 : vector<16x128xf32>
    %cst_3 = arith.constant dense<0.000000e+00> : vector<128xf32>
    %10 = vector.multi_reduction <add>, %9, %cst_3 [0] : vector<16x128xf32> to vector<128xf32>
    %11 = vector.shape_cast %10 : vector<128xf32> to vector<1x128xf32>
    %cst_4 = arith.constant 1.600000e+01 : f32
    %12 = vector.broadcast %cst_4 : f32 to vector<1x128xf32>
    %13 = arith.divf %11, %12 : vector<1x128xf32>
    %cst_5 = arith.constant 9.99999974E-6 : f32
    %14 = vector.broadcast %cst_5 : f32 to vector<1x128xf32>
    %15 = arith.addf %13, %14 : vector<1x128xf32>
    %16 = math.rsqrt %15 : vector<1x128xf32>
    %17 = vector.broadcast %16 : vector<1x128xf32> to vector<16x128xf32>
    %18 = arith.mulf %8, %17 : vector<16x128xf32>
    %cst_6 = arith.constant 0.000000e+00 : f32
    %19 = vector.broadcast %cst_6 : f32 to vector<16x128xf32>
    %20 = arith.maximumf %18, %19 : vector<16x128xf32>
    %21 = arith.truncf %20 : vector<16x128xf32> to vector<16x128xbf16>
    %c0_7 = arith.constant 0 : index
    %c0_8 = arith.constant 0 : index
    %c0_9 = arith.constant 0 : index
    %22 = vector.load %arg2[%c0_7, %c0_8, %c0_9] : memref<1x16x128xbf16, #tpu.memory_space<vmem>>, vector<1x16x128xbf16>
    %23 = vector.shape_cast %22 : vector<1x16x128xbf16> to vector<16x128xbf16>
    %24 = vector.shape_cast %21 : vector<16x128xbf16> to vector<1x16x128xbf16>
    tpu.vector_store %arg2[%c0_7, %c0_8, %c0_9], %24 {strides = array<i32>} : memref<1x16x128xbf16, #tpu.memory_space<vmem>>, vector<1x16x128xbf16>,
    return
  }
  func.func @transform_0(%arg0: i32) -> (i32, i32, i32) {
    %c0_i32 = arith.constant 0 : i32
    %c0_i32_0 = arith.constant 0 : i32
    %c0_i32_1 = arith.constant 0 : i32
    return %arg0, %c0_i32, %c0_i32_0 : i32, i32, i32
  }
  func.func @transform_1(%arg0: i32) -> (i32, i32, i32) {
    %c0_i32 = arith.constant 0 : i32
    %c0_i32_0 = arith.constant 0 : i32
    %c0_i32_1 = arith.constant 0 : i32
    return %arg0, %c0_i32, %c0_i32_0 : i32, i32, i32
  }
}

module attributes {stable_mosaic.version = 11 : i64} {
  func.func @instnorm_add_kernel(%arg0: i32, %arg1: memref<1x16x128xbf16, #tpu.memory_space<vmem>>, %arg2: memref<1x16x128xbf16, #tpu.memory_space<vmem>>, %arg3: memref<1x16x128xbf16, #tpu.memory_space<vmem>>) attributes {dimension_semantics = [#tpu.dimension_semantics<parallel>], iteration_bounds = array<i64: 2>, scalar_prefetch = 0 : i64, scratch_operands = 0 : i64, tpu.core_type = #tpu.core_type<tc>, window_params = [{transform_indices = @transform_0, window_bounds = array<i64: 1, 16, 128>}, {transform_indices = @transform_1, window_bounds = array<i64: 1, 16, 128>}, {transform_indices = @transform_2, window_bounds = array<i64: 1, 16, 128>}]} {
    %c0 = arith.constant 0 : index
    %c0_0 = arith.constant 0 : index
    %c0_1 = arith.constant 0 : index
    %0 = vector.load %arg1[%c0, %c0_0, %c0_1] : memref<1x16x128xbf16, #tpu.memory_space<vmem>>, vector<1x16x128xbf16>
    %1 = vector.shape_cast %0 : vector<1x16x128xbf16> to vector<16x128xbf16>
    %2 = arith.extf %1 : vector<16x128xbf16> to vector<16x128xf32>
    %cst = arith.constant dense<0.000000e+00> : vector<128xf32>
    %3 = vector.multi_reduction <add>, %2, %cst [0] : vector<16x128xf32> to vector<128xf32>
    %4 = vector.shape_cast %3 : vector<128xf32> to vector<1x128xf32>
    %cst_2 = arith.constant 1.600000e+01 : f32
    %5 = vector.broadcast %cst_2 : f32 to vector<1x128xf32>
    %6 = arith.divf %4, %5 : vector<1x128xf32>
    %7 = vector.broadcast %6 : vector<1x128xf32> to vector<16x128xf32>
    %8 = arith.subf %2, %7 : vector<16x128xf32>
    %9 = arith.mulf %8, %8 : vector<16x128xf32>
    %cst_3 = arith.constant dense<0.000000e+00> : vector<128xf32>
    %10 = vector.multi_reduction <add>, %9, %cst_3 [0] : vector<16x128xf32> to vector<128xf32>
    %11 = vector.shape_cast %10 : vector<128xf32> to vector<1x128xf32>
    %cst_4 = arith.constant 1.600000e+01 : f32
    %12 = vector.broadcast %cst_4 : f32 to vector<1x128xf32>
    %13 = arith.divf %11, %12 : vector<1x128xf32>
    %cst_5 = arith.constant 9.99999974E-6 : f32
    %14 = vector.broadcast %cst_5 : f32 to vector<1x128xf32>
    %15 = arith.addf %13, %14 : vector<1x128xf32>
    %16 = math.rsqrt %15 : vector<1x128xf32>
    %17 = vector.broadcast %16 : vector<1x128xf32> to vector<16x128xf32>
    %18 = arith.mulf %8, %17 : vector<16x128xf32>
    %c0_6 = arith.constant 0 : index
    %c0_7 = arith.constant 0 : index
    %c0_8 = arith.constant 0 : index
    %19 = vector.load %arg2[%c0_6, %c0_7, %c0_8] : memref<1x16x128xbf16, #tpu.memory_space<vmem>>, vector<1x16x128xbf16>
    %20 = vector.shape_cast %19 : vector<1x16x128xbf16> to vector<16x128xbf16>
    %21 = arith.extf %20 : vector<16x128xbf16> to vector<16x128xf32>
    %22 = arith.addf %21, %18 : vector<16x128xf32>
    %23 = arith.truncf %22 : vector<16x128xf32> to vector<16x128xbf16>
    %c0_9 = arith.constant 0 : index
    %c0_10 = arith.constant 0 : index
    %c0_11 = arith.constant 0 : index
    %24 = vector.load %arg3[%c0_9, %c0_10, %c0_11] : memref<1x16x128xbf16, #tpu.memory_space<vmem>>, vector<1x16x128xbf16>
    %25 = vector.shape_cast %24 : vector<1x16x128xbf16> to vector<16x128xbf16>
    %26 = vector.shape_cast %23 : vector<16x128xbf16> to vector<1x16x128xbf16>
    tpu.vector_store %arg3[%c0_9, %c0_10, %c0_11], %26 {strides = array<i32>} : memref<1x16x128xbf16, #tpu.memory_space<vmem>>, vector<1x16x128xbf16>,
    return
  }
  func.func @transform_0(%arg0: i32) -> (i32, i32, i32) {
    %c0_i32 = arith.constant 0 : i32
    %c0_i32_0 = arith.constant 0 : i32
    %c0_i32_1 = arith.constant 0 : i32
    return %arg0, %c0_i32, %c0_i32_0 : i32, i32, i32
  }
  func.func @transform_1(%arg0: i32) -> (i32, i32, i32) {
    %c0_i32 = arith.constant 0 : i32
    %c0_i32_0 = arith.constant 0 : i32
    %c0_i32_1 = arith.constant 0 : i32
    return %arg0, %c0_i32, %c0_i32_0 : i32, i32, i32
  }
  func.func @transform_2(%arg0: i32) -> (i32, i32, i32) {
    %c0_i32 = arith.constant 0 : i32
    %c0_i32_0 = arith.constant 0 : i32
    %c0_i32_1 = arith.constant 0 : i32
    return %arg0, %c0_i32, %c0_i32_0 : i32, i32, i32
  }
}

module attributes {stable_mosaic.version = 11 : i64} {
  func.func @conv_mm_kernel(%arg0: i32, %arg1: i32, %arg2: i32, %arg3: memref<128x1152xbf16, #tpu.memory_space<vmem>>, %arg4: memref<1152x256xbf16, #tpu.memory_space<vmem>>, %arg5: memref<1x256xf32, #tpu.memory_space<vmem>>, %arg6: memref<1x256xf32, #tpu.memory_space<vmem>>, %arg7: memref<128x256xbf16, #tpu.memory_space<vmem>>, %arg8: memref<128x256xf32, #tpu.memory_space<vmem>>) attributes {dimension_semantics = [#tpu.dimension_semantics<parallel>, #tpu.dimension_semantics<parallel>, #tpu.dimension_semantics<arbitrary>], iteration_bounds = array<i64: 1, 1, 1>, scalar_prefetch = 0 : i64, scratch_operands = 1 : i64, tpu.core_type = #tpu.core_type<tc>, window_params = [{transform_indices = @transform_0, window_bounds = array<i64: 128, 1152>}, {transform_indices = @transform_1, window_bounds = array<i64: 1152, 256>}, {transform_indices = @transform_2, window_bounds = array<i64: 1, 256>}, {transform_indices = @transform_3, window_bounds = array<i64: 1, 256>}, {transform_indices = @transform_4, window_bounds = array<i64: 128, 256>}]} {
    %c0_i32 = arith.constant 0 : i32
    %0 = arith.cmpi eq, %arg2, %c0_i32 : i32
    %1 = arith.extui %0 : i1 to i32
    %c0_i32_0 = arith.constant 0 : i32
    %2 = arith.cmpi ne, %1, %c0_i32_0 : i32
    scf.if %2 {
      %cst_10 = arith.constant 0.000000e+00 : f32
      %12 = vector.broadcast %cst_10 : f32 to vector<128x256xf32>
      %c0_11 = arith.constant 0 : index
      %c0_12 = arith.constant 0 : index
      %13 = vector.load %arg8[%c0_11, %c0_12] : memref<128x256xf32, #tpu.memory_space<vmem>>, vector<128x256xf32>
      tpu.vector_store %arg8[%c0_11, %c0_12], %12 {strides = array<i32>} : memref<128x256xf32, #tpu.memory_space<vmem>>, vector<128x256xf32>,
    } else {
    }
    %c0 = arith.constant 0 : index
    %c0_1 = arith.constant 0 : index
    %3 = vector.load %arg8[%c0, %c0_1] : memref<128x256xf32, #tpu.memory_space<vmem>>, vector<128x256xf32>
    %c0_2 = arith.constant 0 : index
    %c0_3 = arith.constant 0 : index
    %4 = vector.load %arg3[%c0_2, %c0_3] : memref<128x1152xbf16, #tpu.memory_space<vmem>>, vector<128x1152xbf16>
    %c0_4 = arith.constant 0 : index
    %c0_5 = arith.constant 0 : index
    %5 = vector.load %arg4[%c0_4, %c0_5] : memref<1152x256xbf16, #tpu.memory_space<vmem>>, vector<1152x256xbf16>
    %cst = arith.constant dense<0.000000e+00> : vector<128x256xf32>
    %6 = tpu.matmul %4, %5, %cst {dimension_numbers = #tpu.dot_dimension_numbers<[1], [0], [0], [1], [0, 0, 1, 1], [], []>} : vector<128x1152xbf16>, vector<1152x256xbf16>, vector<128x256xf32> -> vector<128x256xf32>
    %7 = arith.addf %3, %6 : vector<128x256xf32>
    %c0_6 = arith.constant 0 : index
    %c0_7 = arith.constant 0 : index
    %8 = vector.load %arg8[%c0_6, %c0_7] : memref<128x256xf32, #tpu.memory_space<vmem>>, vector<128x256xf32>
    tpu.vector_store %arg8[%c0_6, %c0_7], %7 {strides = array<i32>} : memref<128x256xf32, #tpu.memory_space<vmem>>, vector<128x256xf32>,
    %c0_i32_8 = arith.constant 0 : i32
    %9 = arith.cmpi eq, %arg2, %c0_i32_8 : i32
    %10 = arith.extui %9 : i1 to i32
    %c0_i32_9 = arith.constant 0 : i32
    %11 = arith.cmpi ne, %10, %c0_i32_9 : i32
    scf.if %11 {
      %c0_10 = arith.constant 0 : index
      %c0_11 = arith.constant 0 : index
      %12 = vector.load %arg8[%c0_10, %c0_11] : memref<128x256xf32, #tpu.memory_space<vmem>>, vector<128x256xf32>
      %c0_12 = arith.constant 0 : index
      %c0_13 = arith.constant 0 : index
      %13 = vector.load %arg5[%c0_12, %c0_13] : memref<1x256xf32, #tpu.memory_space<vmem>>, vector<1x256xf32>
      %14 = vector.broadcast %13 : vector<1x256xf32> to vector<128x256xf32>
      %15 = arith.mulf %12, %14 : vector<128x256xf32>
      %c0_14 = arith.constant 0 : index
      %c0_15 = arith.constant 0 : index
      %16 = vector.load %arg6[%c0_14, %c0_15] : memref<1x256xf32, #tpu.memory_space<vmem>>, vector<1x256xf32>
      %17 = vector.broadcast %16 : vector<1x256xf32> to vector<128x256xf32>
      %18 = arith.addf %15, %17 : vector<128x256xf32>
      %cst_16 = arith.constant 0.000000e+00 : f32
      %19 = vector.broadcast %cst_16 : f32 to vector<128x256xf32>
      %20 = arith.maximumf %18, %19 : vector<128x256xf32>
      %21 = arith.truncf %20 : vector<128x256xf32> to vector<128x256xbf16>
      %c0_17 = arith.constant 0 : index
      %c0_18 = arith.constant 0 : index
      %22 = vector.load %arg7[%c0_17, %c0_18] : memref<128x256xbf16, #tpu.memory_space<vmem>>, vector<128x256xbf16>
      tpu.vector_store %arg7[%c0_17, %c0_18], %21 {strides = array<i32>} : memref<128x256xbf16, #tpu.memory_space<vmem>>, vector<128x256xbf16>,
    } else {
    }
    return
  }
  func.func @transform_0(%arg0: i32, %arg1: i32, %arg2: i32) -> (i32, i32) {
    %c0_i32 = arith.constant 0 : i32
    return %arg0, %arg2 : i32, i32
  }
  func.func @transform_1(%arg0: i32, %arg1: i32, %arg2: i32) -> (i32, i32) {
    %c0_i32 = arith.constant 0 : i32
    return %arg2, %arg1 : i32, i32
  }
  func.func @transform_2(%arg0: i32, %arg1: i32, %arg2: i32) -> (i32, i32) {
    %c0_i32 = arith.constant 0 : i32
    %c0_i32_0 = arith.constant 0 : i32
    return %c0_i32, %arg1 : i32, i32
  }
  func.func @transform_3(%arg0: i32, %arg1: i32, %arg2: i32) -> (i32, i32) {
    %c0_i32 = arith.constant 0 : i32
    %c0_i32_0 = arith.constant 0 : i32
    return %c0_i32, %arg1 : i32, i32
  }
  func.func @transform_4(%arg0: i32, %arg1: i32, %arg2: i32) -> (i32, i32) {
    %c0_i32 = arith.constant 0 : i32
    return %arg0, %arg1 : i32, i32
  }
}

module attributes {stable_mosaic.version = 11 : i64} {
  func.func @conv_mm_kernel(%arg0: i32, %arg1: i32, %arg2: i32, %arg3: memref<128x640xbf16, #tpu.memory_space<vmem>>, %arg4: memref<640x128xbf16, #tpu.memory_space<vmem>>, %arg5: memref<1x128xf32, #tpu.memory_space<vmem>>, %arg6: memref<1x128xf32, #tpu.memory_space<vmem>>, %arg7: memref<128x128xbf16, #tpu.memory_space<vmem>>, %arg8: memref<128x128xf32, #tpu.memory_space<vmem>>) attributes {dimension_semantics = [#tpu.dimension_semantics<parallel>, #tpu.dimension_semantics<parallel>, #tpu.dimension_semantics<arbitrary>], iteration_bounds = array<i64: 1, 1, 1>, scalar_prefetch = 0 : i64, scratch_operands = 1 : i64, tpu.core_type = #tpu.core_type<tc>, window_params = [{transform_indices = @transform_0, window_bounds = array<i64: 128, 640>}, {transform_indices = @transform_1, window_bounds = array<i64: 640, 128>}, {transform_indices = @transform_2, window_bounds = array<i64: 1, 128>}, {transform_indices = @transform_3, window_bounds = array<i64: 1, 128>}, {transform_indices = @transform_4, window_bounds = array<i64: 128, 128>}]} {
    %c0_i32 = arith.constant 0 : i32
    %0 = arith.cmpi eq, %arg2, %c0_i32 : i32
    %1 = arith.extui %0 : i1 to i32
    %c0_i32_0 = arith.constant 0 : i32
    %2 = arith.cmpi ne, %1, %c0_i32_0 : i32
    scf.if %2 {
      %cst_10 = arith.constant 0.000000e+00 : f32
      %12 = vector.broadcast %cst_10 : f32 to vector<128x128xf32>
      %c0_11 = arith.constant 0 : index
      %c0_12 = arith.constant 0 : index
      %13 = vector.load %arg8[%c0_11, %c0_12] : memref<128x128xf32, #tpu.memory_space<vmem>>, vector<128x128xf32>
      tpu.vector_store %arg8[%c0_11, %c0_12], %12 {strides = array<i32>} : memref<128x128xf32, #tpu.memory_space<vmem>>, vector<128x128xf32>,
    } else {
    }
    %c0 = arith.constant 0 : index
    %c0_1 = arith.constant 0 : index
    %3 = vector.load %arg8[%c0, %c0_1] : memref<128x128xf32, #tpu.memory_space<vmem>>, vector<128x128xf32>
    %c0_2 = arith.constant 0 : index
    %c0_3 = arith.constant 0 : index
    %4 = vector.load %arg3[%c0_2, %c0_3] : memref<128x640xbf16, #tpu.memory_space<vmem>>, vector<128x640xbf16>
    %c0_4 = arith.constant 0 : index
    %c0_5 = arith.constant 0 : index
    %5 = vector.load %arg4[%c0_4, %c0_5] : memref<640x128xbf16, #tpu.memory_space<vmem>>, vector<640x128xbf16>
    %cst = arith.constant dense<0.000000e+00> : vector<128x128xf32>
    %6 = tpu.matmul %4, %5, %cst {dimension_numbers = #tpu.dot_dimension_numbers<[1], [0], [0], [1], [0, 0, 1, 1], [], []>} : vector<128x640xbf16>, vector<640x128xbf16>, vector<128x128xf32> -> vector<128x128xf32>
    %7 = arith.addf %3, %6 : vector<128x128xf32>
    %c0_6 = arith.constant 0 : index
    %c0_7 = arith.constant 0 : index
    %8 = vector.load %arg8[%c0_6, %c0_7] : memref<128x128xf32, #tpu.memory_space<vmem>>, vector<128x128xf32>
    tpu.vector_store %arg8[%c0_6, %c0_7], %7 {strides = array<i32>} : memref<128x128xf32, #tpu.memory_space<vmem>>, vector<128x128xf32>,
    %c0_i32_8 = arith.constant 0 : i32
    %9 = arith.cmpi eq, %arg2, %c0_i32_8 : i32
    %10 = arith.extui %9 : i1 to i32
    %c0_i32_9 = arith.constant 0 : i32
    %11 = arith.cmpi ne, %10, %c0_i32_9 : i32
    scf.if %11 {
      %c0_10 = arith.constant 0 : index
      %c0_11 = arith.constant 0 : index
      %12 = vector.load %arg8[%c0_10, %c0_11] : memref<128x128xf32, #tpu.memory_space<vmem>>, vector<128x128xf32>
      %c0_12 = arith.constant 0 : index
      %c0_13 = arith.constant 0 : index
      %13 = vector.load %arg5[%c0_12, %c0_13] : memref<1x128xf32, #tpu.memory_space<vmem>>, vector<1x128xf32>
      %14 = vector.broadcast %13 : vector<1x128xf32> to vector<128x128xf32>
      %15 = arith.mulf %12, %14 : vector<128x128xf32>
      %c0_14 = arith.constant 0 : index
      %c0_15 = arith.constant 0 : index
      %16 = vector.load %arg6[%c0_14, %c0_15] : memref<1x128xf32, #tpu.memory_space<vmem>>, vector<1x128xf32>
      %17 = vector.broadcast %16 : vector<1x128xf32> to vector<128x128xf32>
      %18 = arith.addf %15, %17 : vector<128x128xf32>
      %cst_16 = arith.constant 0.000000e+00 : f32
      %19 = vector.broadcast %cst_16 : f32 to vector<128x128xf32>
      %20 = arith.maximumf %18, %19 : vector<128x128xf32>
      %21 = arith.truncf %20 : vector<128x128xf32> to vector<128x128xbf16>
      %c0_17 = arith.constant 0 : index
      %c0_18 = arith.constant 0 : index
      %22 = vector.load %arg7[%c0_17, %c0_18] : memref<128x128xbf16, #tpu.memory_space<vmem>>, vector<128x128xbf16>
      tpu.vector_store %arg7[%c0_17, %c0_18], %21 {strides = array<i32>} : memref<128x128xbf16, #tpu.memory_space<vmem>>, vector<128x128xbf16>,
    } else {
    }
    return
  }
  func.func @transform_0(%arg0: i32, %arg1: i32, %arg2: i32) -> (i32, i32) {
    %c0_i32 = arith.constant 0 : i32
    return %arg0, %arg2 : i32, i32
  }
  func.func @transform_1(%arg0: i32, %arg1: i32, %arg2: i32) -> (i32, i32) {
    %c0_i32 = arith.constant 0 : i32
    return %arg2, %arg1 : i32, i32
  }
  func.func @transform_2(%arg0: i32, %arg1: i32, %arg2: i32) -> (i32, i32) {
    %c0_i32 = arith.constant 0 : i32
    %c0_i32_0 = arith.constant 0 : i32
    return %c0_i32, %arg1 : i32, i32
  }
  func.func @transform_3(%arg0: i32, %arg1: i32, %arg2: i32) -> (i32, i32) {
    %c0_i32 = arith.constant 0 : i32
    %c0_i32_0 = arith.constant 0 : i32
    return %c0_i32, %arg1 : i32, i32
  }
  func.func @transform_4(%arg0: i32, %arg1: i32, %arg2: i32) -> (i32, i32) {
    %c0_i32 = arith.constant 0 : i32
    return %arg0, %arg1 : i32, i32
  }
}

module attributes {stable_mosaic.version = 11 : i64} {
  func.func @conv_mm_kernel(%arg0: i32, %arg1: i32, %arg2: i32, %arg3: memref<256x384xbf16, #tpu.memory_space<vmem>>, %arg4: memref<384x128xbf16, #tpu.memory_space<vmem>>, %arg5: memref<1x128xf32, #tpu.memory_space<vmem>>, %arg6: memref<1x128xf32, #tpu.memory_space<vmem>>, %arg7: memref<256x128xbf16, #tpu.memory_space<vmem>>, %arg8: memref<256x128xf32, #tpu.memory_space<vmem>>) attributes {dimension_semantics = [#tpu.dimension_semantics<parallel>, #tpu.dimension_semantics<parallel>, #tpu.dimension_semantics<arbitrary>], iteration_bounds = array<i64: 2, 1, 1>, scalar_prefetch = 0 : i64, scratch_operands = 1 : i64, tpu.core_type = #tpu.core_type<tc>, window_params = [{transform_indices = @transform_0, window_bounds = array<i64: 256, 384>}, {transform_indices = @transform_1, window_bounds = array<i64: 384, 128>}, {transform_indices = @transform_2, window_bounds = array<i64: 1, 128>}, {transform_indices = @transform_3, window_bounds = array<i64: 1, 128>}, {transform_indices = @transform_4, window_bounds = array<i64: 256, 128>}]} {
    %c0_i32 = arith.constant 0 : i32
    %0 = arith.cmpi eq, %arg2, %c0_i32 : i32
    %1 = arith.extui %0 : i1 to i32
    %c0_i32_0 = arith.constant 0 : i32
    %2 = arith.cmpi ne, %1, %c0_i32_0 : i32
    scf.if %2 {
      %cst_10 = arith.constant 0.000000e+00 : f32
      %12 = vector.broadcast %cst_10 : f32 to vector<256x128xf32>
      %c0_11 = arith.constant 0 : index
      %c0_12 = arith.constant 0 : index
      %13 = vector.load %arg8[%c0_11, %c0_12] : memref<256x128xf32, #tpu.memory_space<vmem>>, vector<256x128xf32>
      tpu.vector_store %arg8[%c0_11, %c0_12], %12 {strides = array<i32>} : memref<256x128xf32, #tpu.memory_space<vmem>>, vector<256x128xf32>,
    } else {
    }
    %c0 = arith.constant 0 : index
    %c0_1 = arith.constant 0 : index
    %3 = vector.load %arg8[%c0, %c0_1] : memref<256x128xf32, #tpu.memory_space<vmem>>, vector<256x128xf32>
    %c0_2 = arith.constant 0 : index
    %c0_3 = arith.constant 0 : index
    %4 = vector.load %arg3[%c0_2, %c0_3] : memref<256x384xbf16, #tpu.memory_space<vmem>>, vector<256x384xbf16>
    %c0_4 = arith.constant 0 : index
    %c0_5 = arith.constant 0 : index
    %5 = vector.load %arg4[%c0_4, %c0_5] : memref<384x128xbf16, #tpu.memory_space<vmem>>, vector<384x128xbf16>
    %cst = arith.constant dense<0.000000e+00> : vector<256x128xf32>
    %6 = tpu.matmul %4, %5, %cst {dimension_numbers = #tpu.dot_dimension_numbers<[1], [0], [0], [1], [0, 0, 1, 1], [], []>} : vector<256x384xbf16>, vector<384x128xbf16>, vector<256x128xf32> -> vector<256x128xf32>
    %7 = arith.addf %3, %6 : vector<256x128xf32>
    %c0_6 = arith.constant 0 : index
    %c0_7 = arith.constant 0 : index
    %8 = vector.load %arg8[%c0_6, %c0_7] : memref<256x128xf32, #tpu.memory_space<vmem>>, vector<256x128xf32>
    tpu.vector_store %arg8[%c0_6, %c0_7], %7 {strides = array<i32>} : memref<256x128xf32, #tpu.memory_space<vmem>>, vector<256x128xf32>,
    %c0_i32_8 = arith.constant 0 : i32
    %9 = arith.cmpi eq, %arg2, %c0_i32_8 : i32
    %10 = arith.extui %9 : i1 to i32
    %c0_i32_9 = arith.constant 0 : i32
    %11 = arith.cmpi ne, %10, %c0_i32_9 : i32
    scf.if %11 {
      %c0_10 = arith.constant 0 : index
      %c0_11 = arith.constant 0 : index
      %12 = vector.load %arg8[%c0_10, %c0_11] : memref<256x128xf32, #tpu.memory_space<vmem>>, vector<256x128xf32>
      %c0_12 = arith.constant 0 : index
      %c0_13 = arith.constant 0 : index
      %13 = vector.load %arg5[%c0_12, %c0_13] : memref<1x128xf32, #tpu.memory_space<vmem>>, vector<1x128xf32>
      %14 = vector.broadcast %13 : vector<1x128xf32> to vector<256x128xf32>
      %15 = arith.mulf %12, %14 : vector<256x128xf32>
      %c0_14 = arith.constant 0 : index
      %c0_15 = arith.constant 0 : index
      %16 = vector.load %arg6[%c0_14, %c0_15] : memref<1x128xf32, #tpu.memory_space<vmem>>, vector<1x128xf32>
      %17 = vector.broadcast %16 : vector<1x128xf32> to vector<256x128xf32>
      %18 = arith.addf %15, %17 : vector<256x128xf32>
      %cst_16 = arith.constant 0.000000e+00 : f32
      %19 = vector.broadcast %cst_16 : f32 to vector<256x128xf32>
      %20 = arith.maximumf %18, %19 : vector<256x128xf32>
      %21 = arith.truncf %20 : vector<256x128xf32> to vector<256x128xbf16>
      %c0_17 = arith.constant 0 : index
      %c0_18 = arith.constant 0 : index
      %22 = vector.load %arg7[%c0_17, %c0_18] : memref<256x128xbf16, #tpu.memory_space<vmem>>, vector<256x128xbf16>
      tpu.vector_store %arg7[%c0_17, %c0_18], %21 {strides = array<i32>} : memref<256x128xbf16, #tpu.memory_space<vmem>>, vector<256x128xbf16>,
    } else {
    }
    return
  }
  func.func @transform_0(%arg0: i32, %arg1: i32, %arg2: i32) -> (i32, i32) {
    %c0_i32 = arith.constant 0 : i32
    return %arg0, %arg2 : i32, i32
  }
  func.func @transform_1(%arg0: i32, %arg1: i32, %arg2: i32) -> (i32, i32) {
    %c0_i32 = arith.constant 0 : i32
    return %arg2, %arg1 : i32, i32
  }
  func.func @transform_2(%arg0: i32, %arg1: i32, %arg2: i32) -> (i32, i32) {
    %c0_i32 = arith.constant 0 : i32
    %c0_i32_0 = arith.constant 0 : i32
    return %c0_i32, %arg1 : i32, i32
  }
  func.func @transform_3(%arg0: i32, %arg1: i32, %arg2: i32) -> (i32, i32) {
    %c0_i32 = arith.constant 0 : i32
    %c0_i32_0 = arith.constant 0 : i32
    return %c0_i32, %arg1 : i32, i32
  }
  func.func @transform_4(%arg0: i32, %arg1: i32, %arg2: i32) -> (i32, i32) {
    %c0_i32 = arith.constant 0 : i32
    return %arg0, %arg1 : i32, i32
  }
}

module attributes {stable_mosaic.version = 11 : i64} {
  func.func @conv_mm_kernel(%arg0: i32, %arg1: i32, %arg2: i32, %arg3: memref<1024x256xbf16, #tpu.memory_space<vmem>>, %arg4: memref<256x128xbf16, #tpu.memory_space<vmem>>, %arg5: memref<1x128xf32, #tpu.memory_space<vmem>>, %arg6: memref<1x128xf32, #tpu.memory_space<vmem>>, %arg7: memref<1024x128xf32, #tpu.memory_space<vmem>>, %arg8: memref<1024x128xf32, #tpu.memory_space<vmem>>) attributes {dimension_semantics = [#tpu.dimension_semantics<parallel>, #tpu.dimension_semantics<parallel>, #tpu.dimension_semantics<arbitrary>], iteration_bounds = array<i64: 2, 1, 1>, scalar_prefetch = 0 : i64, scratch_operands = 1 : i64, tpu.core_type = #tpu.core_type<tc>, window_params = [{transform_indices = @transform_0, window_bounds = array<i64: 1024, 256>}, {transform_indices = @transform_1, window_bounds = array<i64: 256, 128>}, {transform_indices = @transform_2, window_bounds = array<i64: 1, 128>}, {transform_indices = @transform_3, window_bounds = array<i64: 1, 128>}, {transform_indices = @transform_4, window_bounds = array<i64: 1024, 128>}]} {
    %c0_i32 = arith.constant 0 : i32
    %0 = arith.cmpi eq, %arg2, %c0_i32 : i32
    %1 = arith.extui %0 : i1 to i32
    %c0_i32_0 = arith.constant 0 : i32
    %2 = arith.cmpi ne, %1, %c0_i32_0 : i32
    scf.if %2 {
      %cst_10 = arith.constant 0.000000e+00 : f32
      %12 = vector.broadcast %cst_10 : f32 to vector<1024x128xf32>
      %c0_11 = arith.constant 0 : index
      %c0_12 = arith.constant 0 : index
      %13 = vector.load %arg8[%c0_11, %c0_12] : memref<1024x128xf32, #tpu.memory_space<vmem>>, vector<1024x128xf32>
      tpu.vector_store %arg8[%c0_11, %c0_12], %12 {strides = array<i32>} : memref<1024x128xf32, #tpu.memory_space<vmem>>, vector<1024x128xf32>,
    } else {
    }
    %c0 = arith.constant 0 : index
    %c0_1 = arith.constant 0 : index
    %3 = vector.load %arg8[%c0, %c0_1] : memref<1024x128xf32, #tpu.memory_space<vmem>>, vector<1024x128xf32>
    %c0_2 = arith.constant 0 : index
    %c0_3 = arith.constant 0 : index
    %4 = vector.load %arg3[%c0_2, %c0_3] : memref<1024x256xbf16, #tpu.memory_space<vmem>>, vector<1024x256xbf16>
    %c0_4 = arith.constant 0 : index
    %c0_5 = arith.constant 0 : index
    %5 = vector.load %arg4[%c0_4, %c0_5] : memref<256x128xbf16, #tpu.memory_space<vmem>>, vector<256x128xbf16>
    %cst = arith.constant dense<0.000000e+00> : vector<1024x128xf32>
    %6 = tpu.matmul %4, %5, %cst {dimension_numbers = #tpu.dot_dimension_numbers<[1], [0], [0], [1], [0, 0, 1, 1], [], []>} : vector<1024x256xbf16>, vector<256x128xbf16>, vector<1024x128xf32> -> vector<1024x128xf32>
    %7 = arith.addf %3, %6 : vector<1024x128xf32>
    %c0_6 = arith.constant 0 : index
    %c0_7 = arith.constant 0 : index
    %8 = vector.load %arg8[%c0_6, %c0_7] : memref<1024x128xf32, #tpu.memory_space<vmem>>, vector<1024x128xf32>
    tpu.vector_store %arg8[%c0_6, %c0_7], %7 {strides = array<i32>} : memref<1024x128xf32, #tpu.memory_space<vmem>>, vector<1024x128xf32>,
    %c0_i32_8 = arith.constant 0 : i32
    %9 = arith.cmpi eq, %arg2, %c0_i32_8 : i32
    %10 = arith.extui %9 : i1 to i32
    %c0_i32_9 = arith.constant 0 : i32
    %11 = arith.cmpi ne, %10, %c0_i32_9 : i32
    scf.if %11 {
      %c0_10 = arith.constant 0 : index
      %c0_11 = arith.constant 0 : index
      %12 = vector.load %arg8[%c0_10, %c0_11] : memref<1024x128xf32, #tpu.memory_space<vmem>>, vector<1024x128xf32>
      %c0_12 = arith.constant 0 : index
      %c0_13 = arith.constant 0 : index
      %13 = vector.load %arg5[%c0_12, %c0_13] : memref<1x128xf32, #tpu.memory_space<vmem>>, vector<1x128xf32>
      %14 = vector.broadcast %13 : vector<1x128xf32> to vector<1024x128xf32>
      %15 = arith.mulf %12, %14 : vector<1024x128xf32>
      %c0_14 = arith.constant 0 : index
      %c0_15 = arith.constant 0 : index
      %16 = vector.load %arg6[%c0_14, %c0_15] : memref<1x128xf32, #tpu.memory_space<vmem>>, vector<1x128xf32>
      %17 = vector.broadcast %16 : vector<1x128xf32> to vector<1024x128xf32>
      %18 = arith.addf %15, %17 : vector<1024x128xf32>
      %19 = math.tanh %18 : vector<1024x128xf32>
      %c0_16 = arith.constant 0 : index
      %c0_17 = arith.constant 0 : index
      %20 = vector.load %arg7[%c0_16, %c0_17] : memref<1024x128xf32, #tpu.memory_space<vmem>>, vector<1024x128xf32>
      tpu.vector_store %arg7[%c0_16, %c0_17], %19 {strides = array<i32>} : memref<1024x128xf32, #tpu.memory_space<vmem>>, vector<1024x128xf32>,
    } else {
    }
    return
  }
  func.func @transform_0(%arg0: i32, %arg1: i32, %arg2: i32) -> (i32, i32) {
    %c0_i32 = arith.constant 0 : i32
    return %arg0, %arg2 : i32, i32
  }
  func.func @transform_1(%arg0: i32, %arg1: i32, %arg2: i32) -> (i32, i32) {
    %c0_i32 = arith.constant 0 : i32
    return %arg2, %arg1 : i32, i32
  }
  func.func @transform_2(%arg0: i32, %arg1: i32, %arg2: i32) -> (i32, i32) {
    %c0_i32 = arith.constant 0 : i32
    %c0_i32_0 = arith.constant 0 : i32
    return %c0_i32, %arg1 : i32, i32
  }
  func.func @transform_3(%arg0: i32, %arg1: i32, %arg2: i32) -> (i32, i32) {
    %c0_i32 = arith.constant 0 : i32
    %c0_i32_0 = arith.constant 0 : i32
    return %c0_i32, %arg1 : i32, i32
  }
  func.func @transform_4(%arg0: i32, %arg1: i32, %arg2: i32) -> (i32, i32) {
    %c0_i32 = arith.constant 0 : i32
    return %arg0, %arg1 : i32, i32
  }
}

</mosaic_0001>

<bundles_post_ra>
// kernel: generator_forward.36
= control target key start
LH: loop header
LB: loop body
LE: loop exit
PB: predicated region body
PF: predicated region fallthrough
CT: control target
= control target key end

     0   :  { %9 = vsyncpa [#allocation4], 0  ;;  %s5010_s0 = inlined_call_operand.vmem [shape: bf16[2048,128], index: 0, kind: input, shape index: {}]   ;;  %s5011_s1 = inlined_call_operand.hbm [shape: bf16[128,128], index: 1, kind: input, shape index: {}]   ;;  %s5012_s2 = inlined_call_operand.hbm [shape: f32[1,128], index: 2, kind: input, shape index: {}]   ;;  %s5013_s3 = inlined_call_operand.hbm [shape: f32[1,128], index: 3, kind: input, shape index: {}]   ;;  %s5014_s4 = inlined_call_operand.vmem [shape: bf16[2048,128], index: 4, kind: output, shape index: {}]  }
   0x1   :  { %10 = vsyncpa [#allocation6], 0  ;;  %s4471_s15 = smov 0   ;;  %s4473_s16 = smov 0  }
   0x2   :  { %s4475_s17 = smov 0  }
   0x3 LB: > { %s4441_s18 = smov [#allocation5]   ;;  %s3232_s20 = sadd.s32 4294967295, %s4439_s17   ;;  %s4439_s17 = sphi %s4475_s17, %s16_s17   ;;  %s4435_s16 = sphi %s4473_s16, %s5027_s16   ;;  %s4431_s15 = sphi %s4471_s15, %s5026_s15  }
   0x4   : > { %s208_s19 = sshll.u32 %s4441_s18, 4  ;;  %p3234_p0 = scmp.ge.s32.totalorder %s4439_s17, 1  ;;  %s209_s19 = int_to_ptr.vmem [resolvable:$true] %s208_s19 }
   0x5   : > { %p176_p1 = scmp.lt.s32.totalorder %s4439_s17, 3  ;;  %p4489_p2 = scmp.eq.s32.totalorder %s3232_s20, 0 }
   0x6   : > { %s35_s23 = sadd.s32 1, %s4435_s16  ;;  %s4442_s26 = smov [#allocation3]  }
   0x7   : > { %s5018_s21 = scalar_select %p4489_p2, 1, 0 }
   0x8   : > { %p4493_p3 = pnand %p3234_p0, %p176_p1  ;;  %p4506_p6 = scmp.ge.s32.totalorder %s35_s23, 2 }
   0x9   : > { %s192_s27 = sshll.u32 %s4442_s26, 4  ;;  %s4325_s30 = scalar_lea.hbm %s5012_s2, 16  ;;  %s4510_s27 = int_to_ptr.vmem [resolvable:$true] %s192_s27 }
   0xa   : > { %s5019_s22 = scalar_select %p4493_p3, 1, 0 }
   0xb   : > { %p4206_p4 = pneg %p4493_p3  ;;  %p4326_p7 = scmp.ne.s32.totalorder %s5012_s2, %s4325_s30 }
   0xc   : > { %s5021_s25 = scalar_select %p4506_p6, 1, 0 }
   0xd   : > { %p4502_p5 = pnand %p4489_p2, %p4206_p4  ;;  %p4332_p11 = scmp.lt.u32.totalorder %s4325_s30, %s5012_s2 }
   0xf   : > { %p4520_p8 = pneg %p4502_p5 }
  0x11   : > { %p4328_p9 = pnand %p4520_p8, %p4326_p7 }
  0x13   : > { %p4329_p10 = pneg %p4328_p9 }
  0x15   : > { %p4334_p12 = pnand %p4332_p11, %p4329_p10 }
  0x17   : > { %4337 = shalt.err (!%p4334_p12)
}
  0x18   : > { %s4338_s10 = scalar_lea.vmem %s209_s19, 16  ;;  %s4345_s11 = scalar_lea.vmem %s209_s19, 32 }
  0x19   : > { %p4339_p13 = scmp.ne.s32.totalorder %s209_s19, %s4338_s10  ;;  %p4346_p4 = scmp.lt.s32.totalorder %s209_s19, %s209_s19 }
  0x1a   : > { %p4347_p2 = scmp.lt.s32.totalorder %s4345_s11, %s4338_s10 }
  0x1b   : > { %p4341_p0 = pnand %p4339_p13, %p4520_p8 }
  0x1c   : > { %p4348_p3 = por %p4347_p2, %p4346_p4 }
  0x1d   : > { %p4342_p1 = pneg %p4341_p0 }
  0x1f   : > { %p4349_p6 = pnand %p4348_p3, %p4342_p1 }
  0x21   : > { %4352 = shalt.err (!%p4349_p6)
}
  0x22   : > { %4212 = dma.hbm_to_vmem [thread:$0]  (!%p4502_p5), %s5012_s2, 16, %s209_s19, [#allocation6]  }
  0x23   : > { %p5023_p7 = scmp.ne.s32.totalorder %s5021_s25, 0  ;;  %s4353_s20 = scalar_lea.hbm %s5011_s1, 1024 }
  0x24   : > { %p4354_p2 = scmp.ne.s32.totalorder %s5011_s1, %s4353_s20  ;;  %p4360_p9 = scmp.lt.u32.totalorder %s4353_s20, %s5011_s1 }
  0x25   : > { %s5029_s23 = smov (%p5023_p7, %s35_s23), 0 }
  0x26   : > { %p4356_p3 = pnand %p4354_p2, %p4520_p8 }
  0x28   : > { %p4357_p6 = pneg %p4356_p3 }
  0x2a   : > { %p4362_p10 = pnand %p4360_p9, %p4357_p6 }
  0x2c   : > { %4365 = shalt.err (!%p4362_p10)
}
  0x2d   : > { %s4366_s19 = scalar_lea.vmem %s4510_s27, 1024  ;;  %p4374_p0 = scmp.lt.s32.totalorder %s4510_s27, %s4510_s27 }
  0x2e   : > { %p4367_p11 = scmp.ne.s32.totalorder %s4510_s27, %s4366_s19  ;;  %p4375_p1 = scmp.lt.s32.totalorder %s4366_s19, %s4366_s19 }
  0x30   : > { %p4369_p12 = pnand %p4367_p11, %p4520_p8  ;;  %p4376_p4 = por %p4375_p1, %p4374_p0 }
  0x32   : > { %p4370_p13 = pneg %p4369_p12 }
  0x34   : > { %p4377_p7 = pnand %p4376_p4, %p4370_p13 }
  0x36   : > { %4380 = shalt.err (!%p4377_p7)
}
  0x37   : > { %s4443_s25 = smov 64   ;;  %s4444_s5 = smov 4  }
  0x38   : > { %4209 = dma.hbm_to_vmem [thread:$0]  (!%p4502_p5), %s5011_s1, 1024, %s4510_s27, [#allocation4], %s4443_s25, %s4443_s25, %s4444_s5  }
  0x39   : > { %s4445_s9 = smov [#allocation7]   ;;  %s4381_s13 = scalar_lea.hbm %s5013_s3, 16 }
  0x3a   : > { %s221_s10 = sshll.u32 %s4445_s9, 4  ;;  %p4382_p2 = scmp.ne.s32.totalorder %s5013_s3, %s4381_s13  ;;  %s222_s10 = int_to_ptr.vmem [resolvable:$true] %s221_s10 }
  0x3b   : > { %p4388_p9 = scmp.lt.u32.totalorder %s4381_s13, %s5013_s3 }
  0x3c   : > { %p4384_p3 = pnand %p4382_p2, %p4520_p8 }
  0x3e   : > { %p4385_p6 = pneg %p4384_p3 }
  0x40   : > { %p4390_p10 = pnand %p4388_p9, %p4385_p6 }
  0x42   : > { %4393 = shalt.err (!%p4390_p10)
}
  0x43   : > { %s4394_s27 = scalar_lea.vmem %s222_s10, 16  ;;  %s4401_s28 = scalar_lea.vmem %s222_s10, 32 }
  0x44   : > { %p4395_p11 = scmp.ne.s32.totalorder %s222_s10, %s4394_s27  ;;  %p4402_p0 = scmp.lt.s32.totalorder %s222_s10, %s222_s10 }
  0x45   : > { %p4403_p1 = scmp.lt.s32.totalorder %s4401_s28, %s4394_s27 }
  0x46   : > { %p4397_p12 = pnand %p4395_p11, %p4520_p8 }
  0x47   : > { %p4404_p4 = por %p4403_p1, %p4402_p0 }
  0x48   : > { %p4398_p13 = pneg %p4397_p12 }
  0x4a   : > { %p4405_p7 = pnand %p4404_p4, %p4398_p13 }
  0x4c   : > { %4408 = shalt.err (!%p4405_p7)
}
  0x4d   : > { %4215 = dma.hbm_to_vmem [thread:$0]  (!%p4502_p5), %s5013_s3, 16, %s222_s10, [#allocation6]  }
  0x4e   : > { %p5024_p2 = scmp.ne.s32.totalorder %s5019_s22, 0 }
  0x4f   : > { %p5025_p3 = scmp.ne.s32.totalorder (!%p5024_p2), %s5018_s21, 0 }
  0x50   : > { %246 = sbr.rel (%p5024_p2) target bundleno = 468 (0x1d4), region = 36 }
  0x57   : > { %4422 = dma.done.wait (%p5025_p3), [#allocation4], 1024  }
  0x58   : > { %4424 = vsyncadd (%p5025_p3), [#allocation4], 4294966272 }
  0x59   : > { %4426 = dma.done.wait (%p5025_p3), [#allocation6], 32  }
  0x5a   : > { %4428 = vsyncadd (%p5025_p3), [#allocation6], 4294967264  ;;  %s3243_s24 = sshll.u32 %s4431_s15, 7  ;;  %v4251_v0 = vld [vmem:[#allocation3] sm:$0xff]   ;;  %v4252_v1 = vld [vmem:[#allocation3 + $0x8] sm:$0xff]  }
  0x5b   : > { %p287_p8 = scmp.lt.s32.totalorder %s3243_s24, 255  ;;  %4034 = vmatprep.subr.bf16.mxu0 %v4251_v0  ;;  %4178 = vmatprep.subr.bf16.mxu1 %v4251_v0  ;;  %v4253_v2 = vld [vmem:[#allocation3 + $0x10] sm:$0xff]   ;;  %v4254_v3 = vld [vmem:[#allocation3 + $0x18] sm:$0xff]   ;;  %v4255_v6 = vld [vmem:[#allocation3 + $0x20] sm:$0xff]  }
  0x5c   : > { %4035 = vmatpush3.bf16.msra.mxu0 %v4251_v0  ;;  %4186 = vmatpush3.bf16.msra.mxu1 %v4251_v0  ;;  %v4256_v7 = vld [vmem:[#allocation3 + $0x28] sm:$0xff]   ;;  %v4257_v8 = vld [vmem:[#allocation3 + $0x30] sm:$0xff]   ;;  %v4258_v9 = vld [vmem:[#allocation3 + $0x38] sm:$0xff]  }
  0x5d   : > { %s5031_s24 = smov (!%p287_p8, %s3243_s24), 255  ;;  %4036 = vmatprep.subr.bf16.mxu0 %v4252_v1  ;;  %4179 = vmatprep.subr.bf16.mxu1 %v4252_v1 }
  0x5e   : > { %s3244_s22 = sshll.u32 %s5031_s24, 2 }
  0x5f   : > { %s4600_s15 = scalar_lea.vmem %s5010_s0, %s3244_s22  ;;  %s4691_s5 = scalar_lea.vmem %s5014_s4, %s3244_s22 }
  0x60   : > { %4037 = vmatpush3.bf16.msra.mxu0 %v4252_v1  ;;  %4187 = vmatpush3.bf16.msra.mxu1 %v4252_v1  ;;  %v4259_v4 = vld [vmem:[%s4600_s15] sm:$0xff]   ;;  %v4261_v10 = vld [vmem:[%s4600_s15 + $0x8] sm:$0xff]   ;;  %v4263_v12 = vld [vmem:[%s4600_s15 + $0x10] sm:$0xff]  }
  0x61   : > { %4038 = vmatprep.subr.bf16.mxu0 %v4253_v2  ;;  %4180 = vmatprep.subr.bf16.mxu1 %v4253_v2  ;;  %v4260_v5 = vld [vmem:[%s4600_s15 + $0x100] sm:$0xff]   ;;  %v4262_v11 = vld [vmem:[%s4600_s15 + $0x108] sm:$0xff]   ;;  %v4264_v13 = vld [vmem:[%s4600_s15 + $0x110] sm:$0xff]  }
  0x62   : > { %4050 = vmatprep.mubr.bf16.mxu0 %v4259_v4  ;;  %4114 = vmatprep.mubr.bf16.mxu1 %v4260_v5  ;;  %v4265_v14 = vld [vmem:[%s4600_s15 + $0x18] sm:$0xff]   ;;  %v4267_v16 = vld [vmem:[%s4600_s15 + $0x20] sm:$0xff]   ;;  %v4269_v18 = vld [vmem:[%s4600_s15 + $0x28] sm:$0xff]  }
  0x63   : > { %v4266_v15 = vld [vmem:[%s4600_s15 + $0x118] sm:$0xff]   ;;  %v4268_v17 = vld [vmem:[%s4600_s15 + $0x120] sm:$0xff]   ;;  %v4270_v19 = vld [vmem:[%s4600_s15 + $0x128] sm:$0xff]  }
  0x64   : > { %4039 = vmatpush3.bf16.msra.mxu0 %v4253_v2  ;;  %4188 = vmatpush3.bf16.msra.mxu1 %v4253_v2  ;;  %v4271_v20 = vld [vmem:[%s4600_s15 + $0x30] sm:$0xff]   ;;  %v4273_v22 = vld [vmem:[%s4600_s15 + $0x38] sm:$0xff]   ;;  %v4275_v24 = vld [vmem:[%s4600_s15 + $0x40] sm:$0xff]  }
  0x65   : > { %4040 = vmatprep.subr.bf16.mxu0 %v4254_v3  ;;  %4181 = vmatprep.subr.bf16.mxu1 %v4254_v3  ;;  %v4272_v21 = vld [vmem:[%s4600_s15 + $0x130] sm:$0xff]   ;;  %v4274_v23 = vld [vmem:[%s4600_s15 + $0x138] sm:$0xff]   ;;  %v4276_v25 = vld [vmem:[%s4600_s15 + $0x140] sm:$0xff]  }
  0x66   : > { %v4277_v26 = vld [vmem:[%s4600_s15 + $0x48] sm:$0xff]   ;;  %v4279_v28 = vld [vmem:[%s4600_s15 + $0x50] sm:$0xff]   ;;  %v4281_v30 = vld [vmem:[%s4600_s15 + $0x58] sm:$0xff]  }
  0x67   : > { %v4278_v27 = vld [vmem:[%s4600_s15 + $0x148] sm:$0xff]   ;;  %v4280_v29 = vld [vmem:[%s4600_s15 + $0x150] sm:$0xff]   ;;  %v4282_v31 = vld [vmem:[%s4600_s15 + $0x158] sm:$0xff]  }
  0x68   : > { %4041 = vmatpush3.bf16.msra.mxu0 %v4254_v3  ;;  %4189 = vmatpush3.bf16.msra.mxu1 %v4254_v3  ;;  %v4283_v32 = vld [vmem:[%s4600_s15 + $0x60] sm:$0xff]   ;;  %v4285_v34 = vld [vmem:[%s4600_s15 + $0x68] sm:$0xff]   ;;  %v4287_v36 = vld [vmem:[%s4600_s15 + $0x70] sm:$0xff]  }
  0x69   : > { %4042 = vmatprep.subr.bf16.mxu0 %v4255_v6  ;;  %4182 = vmatprep.subr.bf16.mxu1 %v4255_v6  ;;  %v4284_v33 = vld [vmem:[%s4600_s15 + $0x160] sm:$0xff]   ;;  %v4286_v35 = vld [vmem:[%s4600_s15 + $0x168] sm:$0xff]   ;;  %v4288_v37 = vld [vmem:[%s4600_s15 + $0x170] sm:$0xff]  }
  0x6a   : > { %v4289_v38 = vld [vmem:[%s4600_s15 + $0x78] sm:$0xff]   ;;  %v4291_v40 = vld [vmem:[%s4600_s15 + $0x80] sm:$0xff]   ;;  %v4293_v42 = vld [vmem:[%s4600_s15 + $0x88] sm:$0xff]  }
  0x6b   : > { %v4290_v39 = vld [vmem:[%s4600_s15 + $0x178] sm:$0xff]   ;;  %v4292_v41 = vld [vmem:[%s4600_s15 + $0x180] sm:$0xff]   ;;  %v4294_v43 = vld [vmem:[%s4600_s15 + $0x188] sm:$0xff]  }
  0x6c   : > { %4043 = vmatpush3.bf16.msra.mxu0 %v4255_v6  ;;  %4190 = vmatpush3.bf16.msra.mxu1 %v4255_v6  ;;  %v4295_v44 = vld [vmem:[%s4600_s15 + $0x90] sm:$0xff]   ;;  %v4297_v46 = vld [vmem:[%s4600_s15 + $0x98] sm:$0xff]   ;;  %v4299_v48 = vld [vmem:[%s4600_s15 + $0xa0] sm:$0xff]  }
  0x6d   : > { %4044 = vmatprep.subr.bf16.mxu0 %v4256_v7  ;;  %4183 = vmatprep.subr.bf16.mxu1 %v4256_v7  ;;  %v4296_v45 = vld [vmem:[%s4600_s15 + $0x190] sm:$0xff]   ;;  %v4298_v47 = vld [vmem:[%s4600_s15 + $0x198] sm:$0xff]   ;;  %v4300_v49 = vld [vmem:[%s4600_s15 + $0x1a0] sm:$0xff]  }
  0x6e   : > { %v4301_v50 = vld [vmem:[%s4600_s15 + $0xa8] sm:$0xff]   ;;  %v4303_v52 = vld [vmem:[%s4600_s15 + $0xb0] sm:$0xff]   ;;  %v4305_v54 = vld [vmem:[%s4600_s15 + $0xb8] sm:$0xff]  }
  0x6f   : > { %v4302_v51 = vld [vmem:[%s4600_s15 + $0x1a8] sm:$0xff]   ;;  %v4304_v53 = vld [vmem:[%s4600_s15 + $0x1b0] sm:$0xff]   ;;  %v4306_v55 = vld [vmem:[%s4600_s15 + $0x1b8] sm:$0xff]  }
  0x70   : > { %4045 = vmatpush3.bf16.msra.mxu0 %v4256_v7  ;;  %4191 = vmatpush3.bf16.msra.mxu1 %v4256_v7  ;;  %v4307_v56 = vld [vmem:[%s4600_s15 + $0xc0] sm:$0xff]   ;;  %v4309_v58 = vld [vmem:[%s4600_s15 + $0xc8] sm:$0xff]   ;;  %v4311_v60 = vld [vmem:[%s4600_s15 + $0xd0] sm:$0xff]  }
  0x71   : > { %4046 = vmatprep.subr.bf16.mxu0 %v4257_v8  ;;  %4184 = vmatprep.subr.bf16.mxu1 %v4257_v8  ;;  %v4308_v57 = vld [vmem:[%s4600_s15 + $0x1c0] sm:$0xff]   ;;  %v4310_v59 = vld [vmem:[%s4600_s15 + $0x1c8] sm:$0xff]   ;;  %v4312_v61 = vld [vmem:[%s4600_s15 + $0x1d0] sm:$0xff]  }
  0x72   : > { %v4313_v62 = vld [vmem:[%s4600_s15 + $0xd8] sm:$0xff]   ;;  %v4315_v0 = vld [vmem:[%s4600_s15 + $0xe0] sm:$0xff]   ;;  %v4317_v2 = vld [vmem:[%s4600_s15 + $0xe8] sm:$0xff]  }
  0x73   : > { %v4314_v63 = vld [vmem:[%s4600_s15 + $0x1d8] sm:$0xff]   ;;  %v4316_v1 = vld [vmem:[%s4600_s15 + $0x1e0] sm:$0xff]   ;;  %v4318_v3 = vld [vmem:[%s4600_s15 + $0x1e8] sm:$0xff]  }
  0x74   : > { %4047 = vmatpush3.bf16.msra.mxu0 %v4257_v8  ;;  %4192 = vmatpush3.bf16.msra.mxu1 %v4257_v8  ;;  %v4319_v4 = vld [vmem:[%s4600_s15 + $0xf0] sm:$0xff]   ;;  %v4321_v6 = vld [vmem:[%s4600_s15 + $0xf8] sm:$0xff]   ;;  %v4666_v8 = vld [vmem:[#allocation5] ss:$0 sm:$0xff] }
  0x75   : > { %4048 = vmatprep.subr.bf16.mxu0 %v4258_v9  ;;  %4185 = vmatprep.subr.bf16.mxu1 %v4258_v9  ;;  %v4320_v5 = vld [vmem:[%s4600_s15 + $0x1f0] sm:$0xff]   ;;  %v4322_v7 = vld [vmem:[%s4600_s15 + $0x1f8] sm:$0xff]  }
  0x78   : > { %4049 = vmatpush3.bf16.msra.mxu0 %v4258_v9  ;;  %4193 = vmatpush3.bf16.msra.mxu1 %v4258_v9 }
  0x7b   : > { %4051 = vmatmul.mubr.bf16.vlgmr.msra.gmra.mrb[0].mxu0 %v4261_v10  ;;  %4115 = vmatmul.mubr.bf16.vlgmr.msra.gmra.mrb[0].mxu1 %v4262_v11  ;;  %v4668_v10 = vld [vmem:[#allocation7] ss:$0 sm:$0xff] }
  0x7c   : > { %4054 = vmatprep.mubr.bf16.mxu0 %v4263_v12  ;;  %4118 = vmatprep.mubr.bf16.mxu1 %v4264_v13 }
  0x83   : > { %4055 = vmatmul.mubr.bf16.gmra.mrb[4].mxu0 %v4265_v14  ;;  %4119 = vmatmul.mubr.bf16.gmra.mrb[4].mxu1 %v4266_v15 }
  0x84   : > { %4058 = vmatprep.mubr.bf16.mxu0 %v4267_v16  ;;  %4122 = vmatprep.mubr.bf16.mxu1 %v4268_v17 }
  0x8b   : > { %4059 = vmatmul.mubr.bf16.gmra.mrb[8].mxu0 %v4269_v18  ;;  %4123 = vmatmul.mubr.bf16.gmra.mrb[8].mxu1 %v4270_v19 }
  0x8c   : > { %4062 = vmatprep.mubr.bf16.mxu0 %v4271_v20  ;;  %4126 = vmatprep.mubr.bf16.mxu1 %v4272_v21 }
  0x93   : > { %4063 = vmatmul.mubr.bf16.gmra.mrb[12].mxu0 %v4273_v22  ;;  %4127 = vmatmul.mubr.bf16.gmra.mrb[12].mxu1 %v4274_v23 }
  0x94   : > { %4066 = vmatprep.mubr.bf16.mxu0 %v4275_v24  ;;  %4130 = vmatprep.mubr.bf16.mxu1 %v4276_v25 }
  0x9b   : > { %4067 = vmatmul.mubr.bf16.gmra.mrb[16].mxu0 %v4277_v26  ;;  %4131 = vmatmul.mubr.bf16.gmra.mrb[16].mxu1 %v4278_v27 }
  0x9c   : > { %4070 = vmatprep.mubr.bf16.mxu0 %v4279_v28  ;;  %4134 = vmatprep.mubr.bf16.mxu1 %v4280_v29 }
  0xa3   : > { %4071 = vmatmul.mubr.bf16.gmra.mrb[20].mxu0 %v4281_v30  ;;  %4135 = vmatmul.mubr.bf16.gmra.mrb[20].mxu1 %v4282_v31 }
  0xa4   : > { %4074 = vmatprep.mubr.bf16.mxu0 %v4283_v32  ;;  %4138 = vmatprep.mubr.bf16.mxu1 %v4284_v33 }
  0xab   : > { %4075 = vmatmul.mubr.bf16.gmra.mrb[24].mxu0 %v4285_v34  ;;  %4139 = vmatmul.mubr.bf16.gmra.mrb[24].mxu1 %v4286_v35 }
  0xac   : > { %4078 = vmatprep.mubr.bf16.mxu0 %v4287_v36  ;;  %4142 = vmatprep.mubr.bf16.mxu1 %v4288_v37 }
  0xb3   : > { %4079 = vmatmul.mubr.bf16.gmra.mrb[28].mxu0 %v4289_v38  ;;  %4143 = vmatmul.mubr.bf16.gmra.mrb[28].mxu1 %v4290_v39 }
  0xb4   : > { %4082 = vmatprep.mubr.bf16.mxu0 %v4291_v40  ;;  %4146 = vmatprep.mubr.bf16.mxu1 %v4292_v41 }
  0xbb   : > { %4083 = vmatmul.mubr.bf16.gmra.mrb[32].mxu0 %v4293_v42  ;;  %4147 = vmatmul.mubr.bf16.gmra.mrb[32].mxu1 %v4294_v43 }
  0xbc   : > { %4086 = vmatprep.mubr.bf16.mxu0 %v4295_v44  ;;  %4150 = vmatprep.mubr.bf16.mxu1 %v4296_v45 }
  0xc3   : > { %4087 = vmatmul.mubr.bf16.gmra.mrb[36].mxu0 %v4297_v46  ;;  %4151 = vmatmul.mubr.bf16.gmra.mrb[36].mxu1 %v4298_v47 }
  0xc4   : > { %4090 = vmatprep.mubr.bf16.mxu0 %v4299_v48  ;;  %4154 = vmatprep.mubr.bf16.mxu1 %v4300_v49 }
  0xcb   : > { %4091 = vmatmul.mubr.bf16.gmra.mrb[40].mxu0 %v4301_v50  ;;  %4155 = vmatmul.mubr.bf16.gmra.mrb[40].mxu1 %v4302_v51 }
  0xcc   : > { %4094 = vmatprep.mubr.bf16.mxu0 %v4303_v52  ;;  %4158 = vmatprep.mubr.bf16.mxu1 %v4304_v53 }
  0xd3   : > { %4095 = vmatmul.mubr.bf16.gmra.mrb[44].mxu0 %v4305_v54  ;;  %4159 = vmatmul.mubr.bf16.gmra.mrb[44].mxu1 %v4306_v55 }
  0xd4   : > { %4098 = vmatprep.mubr.bf16.mxu0 %v4307_v56  ;;  %4162 = vmatprep.mubr.bf16.mxu1 %v4308_v57 }
  0xdb   : > { %4099 = vmatmul.mubr.bf16.gmra.mrb[48].mxu0 %v4309_v58  ;;  %4163 = vmatmul.mubr.bf16.gmra.mrb[48].mxu1 %v4310_v59 }
  0xdc   : > { %4102 = vmatprep.mubr.bf16.mxu0 %v4311_v60  ;;  %4166 = vmatprep.mubr.bf16.mxu1 %v4312_v61 }
  0xe3   : > { %4103 = vmatmul.mubr.bf16.gmra.mrb[52].mxu0 %v4313_v62  ;;  %4167 = vmatmul.mubr.bf16.gmra.mrb[52].mxu1 %v4314_v63 }
  0xe4   : > { %4106 = vmatprep.mubr.bf16.mxu0 %v4315_v0  ;;  %4170 = vmatprep.mubr.bf16.mxu1 %v4316_v1 }
  0xeb   : > { %4107 = vmatmul.mubr.bf16.gmra.mrb[56].mxu0 %v4317_v2  ;;  %4171 = vmatmul.mubr.bf16.gmra.mrb[56].mxu1 %v4318_v3 }
  0xec   : > { %4110 = vmatprep.mubr.bf16.mxu0 %v4319_v4  ;;  %4174 = vmatprep.mubr.bf16.mxu1 %v4320_v5 }
  0xf3   : > { %4111 = vmatmul.mubr.bf16.gmra.mrb[60].mxu0 %v4321_v6  ;;  %4175 = vmatmul.mubr.bf16.gmra.mrb[60].mxu1 %v4322_v7 }
 0x14e   : > { %v4052_v9 = vpop.f32.mrb[0].mxu0  ;;  %v4116_v11 = vpop.f32.mrb[0].mxu1 }
 0x14f   : > { %v2083_v12 = vmul.f32 %v4052_v9, %v4666_v8  ;;  %v2147_v13 = vmul.f32 %v4116_v11, %v4666_v8  ;;  %v1176_v14 = vpop.f32.mrb[1].mxu0  ;;  %v1432_v15 = vpop.f32.mrb[1].mxu1 }
 0x150   : > { %v2081_v16 = vmul.f32 %v4666_v8, %v1176_v14  ;;  %v2145_v17 = vmul.f32 %v4666_v8, %v1432_v15  ;;  %v4053_v18 = vpop.f32.mrb[2].mxu0  ;;  %v4117_v19 = vpop.f32.mrb[2].mxu1 }
 0x151   : > { %v2218_v20 = vadd.f32 %v4668_v10, %v2083_v12  ;;  %v2282_v21 = vadd.f32 %v4668_v10, %v2147_v13  ;;  %v2084_v22 = vmul.f32 %v4053_v18, %v4666_v8  ;;  %v2148_v23 = vmul.f32 %v4117_v19, %v4666_v8  ;;  %v1179_v24 = vpop.f32.mrb[3].mxu0  ;;  %v1435_v25 = vpop.f32.mrb[3].mxu1 }
 0x152   : > { %v2216_v26 = vadd.f32 %v4668_v10, %v2081_v16  ;;  %v2280_v27 = vadd.f32 %v4668_v10, %v2145_v17  ;;  %v2082_v28 = vmul.f32 %v4666_v8, %v1179_v24  ;;  %v2146_v29 = vmul.f32 %v4666_v8, %v1435_v25 }
 0x153   : > { %v2219_v30 = vadd.f32 %v4668_v10, %v2084_v22  ;;  %v2283_v31 = vadd.f32 %v4668_v10, %v2148_v23  ;;  %v2346_v34 = vmax.f32 %v2218_v20, 0.0  ;;  %v2410_v35 = vmax.f32 %v2282_v21, 0.0 }
 0x154   : > { %v2217_v32 = vadd.f32 %v4668_v10, %v2082_v28  ;;  %v2281_v33 = vadd.f32 %v4668_v10, %v2146_v29  ;;  %v2344_v38 = vmax.f32 %v2216_v26, 0.0  ;;  %v2408_v39 = vmax.f32 %v2280_v27, 0.0 }
 0x155   : > { %v2347_v36 = vmax.f32 %v2219_v30, 0.0  ;;  %v2411_v37 = vmax.f32 %v2283_v31, 0.0 }
 0x156   : > { %v2345_v40 = vmax.f32 %v2217_v32, 0.0  ;;  %v2409_v41 = vmax.f32 %v2281_v33, 0.0  ;;  %v4056_v42 = vpop.f32.mrb[4].mxu0  ;;  %v4120_v43 = vpop.f32.mrb[4].mxu1 }
 0x157   : > { %v3587_v44 = vpack.c.bf16 %v2347_v36, %v2346_v34  ;;  %v3747_v45 = vpack.c.bf16 %v2411_v37, %v2410_v35  ;;  %v2087_v46 = vmul.f32 %v4056_v42, %v4666_v8  ;;  %v2151_v47 = vmul.f32 %v4120_v43, %v4666_v8  ;;  %v1192_v48 = vpop.f32.mrb[5].mxu0  ;;  %v1448_v49 = vpop.f32.mrb[5].mxu1 }
 0x158   : > { %v3582_v50 = vpack.c.bf16 %v2345_v40, %v2344_v38  ;;  %v3742_v51 = vpack.c.bf16 %v2409_v41, %v2408_v39  ;;  %v2085_v52 = vmul.f32 %v4666_v8, %v1192_v48  ;;  %v2149_v53 = vmul.f32 %v4666_v8, %v1448_v49  ;;  %v4057_v54 = vpop.f32.mrb[6].mxu0  ;;  %v4121_v55 = vpop.f32.mrb[6].mxu1 }
 0x159   : > { %3899 = vst [vmem:[%s4691_s5 + $0x8] sm:$0xff] %v3587_v44   ;;  %3931 = vst [vmem:[%s4691_s5 + $0x108] sm:$0xff] %v3747_v45   ;;  %v2222_v56 = vadd.f32 %v4668_v10, %v2087_v46  ;;  %v2286_v57 = vadd.f32 %v4668_v10, %v2151_v47  ;;  %v2088_v58 = vmul.f32 %v4057_v54, %v4666_v8  ;;  %v1195_v60 = vpop.f32.mrb[7].mxu0  ;;  %v1451_v61 = vpop.f32.mrb[7].mxu1 }
 0x15a   : > { %v2152_v59 = vmul.f32 %v4121_v55, %v4666_v8  ;;  %3583 = vst [vmem:[%s4691_s5] sm:$0xff] %v3582_v50   ;;  %3930 = vst [vmem:[%s4691_s5 + $0x100] sm:$0xff] %v3742_v51   ;;  %v2220_v62 = vadd.f32 %v4668_v10, %v2085_v52  ;;  %v2284_v63 = vadd.f32 %v4668_v10, %v2149_v53 }
 0x15b   : > { %v2086_v0 = vmul.f32 %v4666_v8, %v1195_v60  ;;  %v2150_v1 = vmul.f32 %v4666_v8, %v1451_v61  ;;  %v2223_v2 = vadd.f32 %v4668_v10, %v2088_v58  ;;  %v2350_v6 = vmax.f32 %v2222_v56, 0.0 }
 0x15c   : > { %v2287_v3 = vadd.f32 %v4668_v10, %v2152_v59  ;;  %v2414_v7 = vmax.f32 %v2286_v57, 0.0  ;;  %v2348_v12 = vmax.f32 %v2220_v62, 0.0  ;;  %v2412_v13 = vmax.f32 %v2284_v63, 0.0 }
 0x15d   : > { %v2221_v4 = vadd.f32 %v4668_v10, %v2086_v0  ;;  %v2285_v5 = vadd.f32 %v4668_v10, %v2150_v1  ;;  %v2351_v9 = vmax.f32 %v2223_v2, 0.0 }
 0x15e   : > { %v2415_v11 = vmax.f32 %v2287_v3, 0.0  ;;  %v4060_v16 = vpop.f32.mrb[8].mxu0  ;;  %v4124_v17 = vpop.f32.mrb[8].mxu1 }
 0x15f   : > { %v2349_v14 = vmax.f32 %v2221_v4, 0.0  ;;  %v2413_v15 = vmax.f32 %v2285_v5, 0.0  ;;  %v3597_v18 = vpack.c.bf16 %v2351_v9, %v2350_v6  ;;  %v2091_v20 = vmul.f32 %v4060_v16, %v4666_v8  ;;  %v1208_v22 = vpop.f32.mrb[9].mxu0  ;;  %v1464_v23 = vpop.f32.mrb[9].mxu1 }
 0x160   : > { %v3757_v19 = vpack.c.bf16 %v2415_v11, %v2414_v7  ;;  %v2155_v21 = vmul.f32 %v4124_v17, %v4666_v8  ;;  %v2089_v26 = vmul.f32 %v4666_v8, %v1208_v22  ;;  %v2153_v27 = vmul.f32 %v4666_v8, %v1464_v23  ;;  %v4061_v28 = vpop.f32.mrb[10].mxu0  ;;  %v4125_v29 = vpop.f32.mrb[10].mxu1 }
 0x161   : > { %v3592_v24 = vpack.c.bf16 %v2349_v14, %v2348_v12  ;;  %v3752_v25 = vpack.c.bf16 %v2413_v15, %v2412_v13  ;;  %3901 = vst [vmem:[%s4691_s5 + $0x18] sm:$0xff] %v3597_v18   ;;  %v2226_v30 = vadd.f32 %v4668_v10, %v2091_v20  ;;  %v2092_v32 = vmul.f32 %v4061_v28, %v4666_v8  ;;  %v1211_v34 = vpop.f32.mrb[11].mxu0  ;;  %v1467_v35 = vpop.f32.mrb[11].mxu1 }
 0x162   : > { %3933 = vst [vmem:[%s4691_s5 + $0x118] sm:$0xff] %v3757_v19   ;;  %v2290_v31 = vadd.f32 %v4668_v10, %v2155_v21  ;;  %v2156_v33 = vmul.f32 %v4125_v29, %v4666_v8  ;;  %v2224_v36 = vadd.f32 %v4668_v10, %v2089_v26  ;;  %v2288_v37 = vadd.f32 %v4668_v10, %v2153_v27 }
 0x163   : > { %3900 = vst [vmem:[%s4691_s5 + $0x10] sm:$0xff] %v3592_v24   ;;  %3932 = vst [vmem:[%s4691_s5 + $0x110] sm:$0xff] %v3752_v25   ;;  %v2090_v38 = vmul.f32 %v4666_v8, %v1211_v34  ;;  %v2154_v39 = vmul.f32 %v4666_v8, %v1467_v35  ;;  %v2227_v40 = vadd.f32 %v4668_v10, %v2092_v32  ;;  %v2354_v44 = vmax.f32 %v2226_v30, 0.0 }
 0x164   : > { %v2291_v41 = vadd.f32 %v4668_v10, %v2156_v33  ;;  %v2418_v45 = vmax.f32 %v2290_v31, 0.0  ;;  %v2352_v48 = vmax.f32 %v2224_v36, 0.0  ;;  %v2416_v49 = vmax.f32 %v2288_v37, 0.0 }
 0x165   : > { %v2225_v42 = vadd.f32 %v4668_v10, %v2090_v38  ;;  %v2289_v43 = vadd.f32 %v4668_v10, %v2154_v39  ;;  %v2355_v46 = vmax.f32 %v2227_v40, 0.0 }
 0x166   : > { %v2419_v47 = vmax.f32 %v2291_v41, 0.0  ;;  %v4064_v52 = vpop.f32.mrb[12].mxu0  ;;  %v4128_v53 = vpop.f32.mrb[12].mxu1 }
 0x167   : > { %v2353_v50 = vmax.f32 %v2225_v42, 0.0  ;;  %v2417_v51 = vmax.f32 %v2289_v43, 0.0  ;;  %v3607_v54 = vpack.c.bf16 %v2355_v46, %v2354_v44  ;;  %v2095_v56 = vmul.f32 %v4064_v52, %v4666_v8  ;;  %v1224_v58 = vpop.f32.mrb[13].mxu0  ;;  %v1480_v59 = vpop.f32.mrb[13].mxu1 }
 0x168   : > { %v3767_v55 = vpack.c.bf16 %v2419_v47, %v2418_v45  ;;  %v2159_v57 = vmul.f32 %v4128_v53, %v4666_v8  ;;  %v2093_v62 = vmul.f32 %v4666_v8, %v1224_v58  ;;  %v2157_v63 = vmul.f32 %v4666_v8, %v1480_v59  ;;  %v4065_v0 = vpop.f32.mrb[14].mxu0  ;;  %v4129_v1 = vpop.f32.mrb[14].mxu1 }
 0x169   : > { %v3602_v60 = vpack.c.bf16 %v2353_v50, %v2352_v48  ;;  %v3762_v61 = vpack.c.bf16 %v2417_v51, %v2416_v49  ;;  %3903 = vst [vmem:[%s4691_s5 + $0x28] sm:$0xff] %v3607_v54   ;;  %v2230_v2 = vadd.f32 %v4668_v10, %v2095_v56  ;;  %v2096_v4 = vmul.f32 %v4065_v0, %v4666_v8  ;;  %v1227_v6 = vpop.f32.mrb[15].mxu0  ;;  %v1483_v7 = vpop.f32.mrb[15].mxu1 }
 0x16a   : > { %3935 = vst [vmem:[%s4691_s5 + $0x128] sm:$0xff] %v3767_v55   ;;  %v2294_v3 = vadd.f32 %v4668_v10, %v2159_v57  ;;  %v2160_v5 = vmul.f32 %v4129_v1, %v4666_v8  ;;  %v2228_v9 = vadd.f32 %v4668_v10, %v2093_v62  ;;  %v2292_v11 = vadd.f32 %v4668_v10, %v2157_v63 }
 0x16b   : > { %3902 = vst [vmem:[%s4691_s5 + $0x20] sm:$0xff] %v3602_v60   ;;  %3934 = vst [vmem:[%s4691_s5 + $0x120] sm:$0xff] %v3762_v61   ;;  %v2094_v12 = vmul.f32 %v4666_v8, %v1227_v6  ;;  %v2158_v13 = vmul.f32 %v4666_v8, %v1483_v7  ;;  %v2231_v14 = vadd.f32 %v4668_v10, %v2096_v4  ;;  %v2358_v18 = vmax.f32 %v2230_v2, 0.0 }
 0x16c   : > { %v2295_v15 = vadd.f32 %v4668_v10, %v2160_v5  ;;  %v2422_v19 = vmax.f32 %v2294_v3, 0.0  ;;  %v2356_v22 = vmax.f32 %v2228_v9, 0.0  ;;  %v2420_v23 = vmax.f32 %v2292_v11, 0.0 }
 0x16d   : > { %v2229_v16 = vadd.f32 %v4668_v10, %v2094_v12  ;;  %v2293_v17 = vadd.f32 %v4668_v10, %v2158_v13  ;;  %v2359_v20 = vmax.f32 %v2231_v14, 0.0 }
 0x16e   : > { %v2423_v21 = vmax.f32 %v2295_v15, 0.0  ;;  %v4068_v26 = vpop.f32.mrb[16].mxu0  ;;  %v4132_v27 = vpop.f32.mrb[16].mxu1 }
 0x16f   : > { %v2357_v24 = vmax.f32 %v2229_v16, 0.0  ;;  %v2421_v25 = vmax.f32 %v2293_v17, 0.0  ;;  %v3617_v28 = vpack.c.bf16 %v2359_v20, %v2358_v18  ;;  %v2099_v30 = vmul.f32 %v4068_v26, %v4666_v8  ;;  %v1240_v32 = vpop.f32.mrb[17].mxu0  ;;  %v1496_v33 = vpop.f32.mrb[17].mxu1 }
 0x170   : > { %v3777_v29 = vpack.c.bf16 %v2423_v21, %v2422_v19  ;;  %v2163_v31 = vmul.f32 %v4132_v27, %v4666_v8  ;;  %v2097_v36 = vmul.f32 %v4666_v8, %v1240_v32  ;;  %v2161_v37 = vmul.f32 %v4666_v8, %v1496_v33  ;;  %v4069_v38 = vpop.f32.mrb[18].mxu0  ;;  %v4133_v39 = vpop.f32.mrb[18].mxu1 }
 0x171   : > { %v3612_v34 = vpack.c.bf16 %v2357_v24, %v2356_v22  ;;  %v3772_v35 = vpack.c.bf16 %v2421_v25, %v2420_v23  ;;  %3905 = vst [vmem:[%s4691_s5 + $0x38] sm:$0xff] %v3617_v28   ;;  %v2234_v40 = vadd.f32 %v4668_v10, %v2099_v30  ;;  %v2100_v42 = vmul.f32 %v4069_v38, %v4666_v8  ;;  %v1243_v44 = vpop.f32.mrb[19].mxu0  ;;  %v1499_v45 = vpop.f32.mrb[19].mxu1 }
 0x172   : > { %3937 = vst [vmem:[%s4691_s5 + $0x138] sm:$0xff] %v3777_v29   ;;  %v2298_v41 = vadd.f32 %v4668_v10, %v2163_v31  ;;  %v2164_v43 = vmul.f32 %v4133_v39, %v4666_v8  ;;  %v2232_v46 = vadd.f32 %v4668_v10, %v2097_v36  ;;  %v2296_v47 = vadd.f32 %v4668_v10, %v2161_v37 }
 0x173   : > { %3904 = vst [vmem:[%s4691_s5 + $0x30] sm:$0xff] %v3612_v34   ;;  %3936 = vst [vmem:[%s4691_s5 + $0x130] sm:$0xff] %v3772_v35   ;;  %v2098_v48 = vmul.f32 %v4666_v8, %v1243_v44  ;;  %v2162_v49 = vmul.f32 %v4666_v8, %v1499_v45  ;;  %v2235_v50 = vadd.f32 %v4668_v10, %v2100_v42  ;;  %v2362_v54 = vmax.f32 %v2234_v40, 0.0 }
 0x174   : > { %v2299_v51 = vadd.f32 %v4668_v10, %v2164_v43  ;;  %v2426_v55 = vmax.f32 %v2298_v41, 0.0  ;;  %v2360_v58 = vmax.f32 %v2232_v46, 0.0  ;;  %v2424_v59 = vmax.f32 %v2296_v47, 0.0 }
 0x175   : > { %v2233_v52 = vadd.f32 %v4668_v10, %v2098_v48  ;;  %v2297_v53 = vadd.f32 %v4668_v10, %v2162_v49  ;;  %v2363_v56 = vmax.f32 %v2235_v50, 0.0 }
 0x176   : > { %v2427_v57 = vmax.f32 %v2299_v51, 0.0  ;;  %v4072_v62 = vpop.f32.mrb[20].mxu0  ;;  %v4136_v63 = vpop.f32.mrb[20].mxu1 }
 0x177   : > { %v2361_v60 = vmax.f32 %v2233_v52, 0.0  ;;  %v2425_v61 = vmax.f32 %v2297_v53, 0.0  ;;  %v3627_v0 = vpack.c.bf16 %v2363_v56, %v2362_v54  ;;  %v2103_v2 = vmul.f32 %v4072_v62, %v4666_v8  ;;  %v1256_v4 = vpop.f32.mrb[21].mxu0  ;;  %v1512_v5 = vpop.f32.mrb[21].mxu1 }
 0x178   : > { %v3787_v1 = vpack.c.bf16 %v2427_v57, %v2426_v55  ;;  %v2167_v3 = vmul.f32 %v4136_v63, %v4666_v8  ;;  %v2101_v9 = vmul.f32 %v4666_v8, %v1256_v4  ;;  %v2165_v11 = vmul.f32 %v4666_v8, %v1512_v5  ;;  %v4073_v12 = vpop.f32.mrb[22].mxu0  ;;  %v4137_v13 = vpop.f32.mrb[22].mxu1 }
 0x179   : > { %v3622_v6 = vpack.c.bf16 %v2361_v60, %v2360_v58  ;;  %v3782_v7 = vpack.c.bf16 %v2425_v61, %v2424_v59  ;;  %3907 = vst [vmem:[%s4691_s5 + $0x48] sm:$0xff] %v3627_v0   ;;  %v2238_v14 = vadd.f32 %v4668_v10, %v2103_v2  ;;  %v2104_v16 = vmul.f32 %v4073_v12, %v4666_v8  ;;  %v1259_v18 = vpop.f32.mrb[23].mxu0  ;;  %v1515_v19 = vpop.f32.mrb[23].mxu1 }
 0x17a   : > { %3939 = vst [vmem:[%s4691_s5 + $0x148] sm:$0xff] %v3787_v1   ;;  %v2302_v15 = vadd.f32 %v4668_v10, %v2167_v3  ;;  %v2168_v17 = vmul.f32 %v4137_v13, %v4666_v8  ;;  %v2236_v20 = vadd.f32 %v4668_v10, %v2101_v9  ;;  %v2300_v21 = vadd.f32 %v4668_v10, %v2165_v11 }
 0x17b   : > { %3906 = vst [vmem:[%s4691_s5 + $0x40] sm:$0xff] %v3622_v6   ;;  %3938 = vst [vmem:[%s4691_s5 + $0x140] sm:$0xff] %v3782_v7   ;;  %v2102_v22 = vmul.f32 %v4666_v8, %v1259_v18  ;;  %v2166_v23 = vmul.f32 %v4666_v8, %v1515_v19  ;;  %v2239_v24 = vadd.f32 %v4668_v10, %v2104_v16  ;;  %v2366_v28 = vmax.f32 %v2238_v14, 0.0 }
 0x17c   : > { %v2303_v25 = vadd.f32 %v4668_v10, %v2168_v17  ;;  %v2430_v29 = vmax.f32 %v2302_v15, 0.0  ;;  %v2364_v32 = vmax.f32 %v2236_v20, 0.0  ;;  %v2428_v33 = vmax.f32 %v2300_v21, 0.0 }
 0x17d   : > { %v2237_v26 = vadd.f32 %v4668_v10, %v2102_v22  ;;  %v2301_v27 = vadd.f32 %v4668_v10, %v2166_v23  ;;  %v2367_v30 = vmax.f32 %v2239_v24, 0.0 }
 0x17e   : > { %v2431_v31 = vmax.f32 %v2303_v25, 0.0  ;;  %v4076_v36 = vpop.f32.mrb[24].mxu0  ;;  %v4140_v37 = vpop.f32.mrb[24].mxu1 }
 0x17f   : > { %v2365_v34 = vmax.f32 %v2237_v26, 0.0  ;;  %v2429_v35 = vmax.f32 %v2301_v27, 0.0  ;;  %v3637_v38 = vpack.c.bf16 %v2367_v30, %v2366_v28  ;;  %v2107_v40 = vmul.f32 %v4076_v36, %v4666_v8  ;;  %v1272_v42 = vpop.f32.mrb[25].mxu0  ;;  %v1528_v43 = vpop.f32.mrb[25].mxu1 }
 0x180   : > { %v3797_v39 = vpack.c.bf16 %v2431_v31, %v2430_v29  ;;  %v2171_v41 = vmul.f32 %v4140_v37, %v4666_v8  ;;  %v2105_v46 = vmul.f32 %v4666_v8, %v1272_v42  ;;  %v2169_v47 = vmul.f32 %v4666_v8, %v1528_v43  ;;  %v4077_v48 = vpop.f32.mrb[26].mxu0  ;;  %v4141_v49 = vpop.f32.mrb[26].mxu1 }
 0x181   : > { %v3632_v44 = vpack.c.bf16 %v2365_v34, %v2364_v32  ;;  %v3792_v45 = vpack.c.bf16 %v2429_v35, %v2428_v33  ;;  %3909 = vst [vmem:[%s4691_s5 + $0x58] sm:$0xff] %v3637_v38   ;;  %v2242_v50 = vadd.f32 %v4668_v10, %v2107_v40  ;;  %v2108_v52 = vmul.f32 %v4077_v48, %v4666_v8  ;;  %v1275_v54 = vpop.f32.mrb[27].mxu0  ;;  %v1531_v55 = vpop.f32.mrb[27].mxu1 }
 0x182   : > { %3941 = vst [vmem:[%s4691_s5 + $0x158] sm:$0xff] %v3797_v39   ;;  %v2306_v51 = vadd.f32 %v4668_v10, %v2171_v41  ;;  %v2172_v53 = vmul.f32 %v4141_v49, %v4666_v8  ;;  %v2240_v56 = vadd.f32 %v4668_v10, %v2105_v46  ;;  %v2304_v57 = vadd.f32 %v4668_v10, %v2169_v47 }
 0x183   : > { %3908 = vst [vmem:[%s4691_s5 + $0x50] sm:$0xff] %v3632_v44   ;;  %3940 = vst [vmem:[%s4691_s5 + $0x150] sm:$0xff] %v3792_v45   ;;  %v2106_v58 = vmul.f32 %v4666_v8, %v1275_v54  ;;  %v2170_v59 = vmul.f32 %v4666_v8, %v1531_v55  ;;  %v2243_v60 = vadd.f32 %v4668_v10, %v2108_v52  ;;  %v2370_v0 = vmax.f32 %v2242_v50, 0.0 }
 0x184   : > { %v2307_v61 = vadd.f32 %v4668_v10, %v2172_v53  ;;  %v2434_v1 = vmax.f32 %v2306_v51, 0.0  ;;  %v2368_v4 = vmax.f32 %v2240_v56, 0.0  ;;  %v2432_v5 = vmax.f32 %v2304_v57, 0.0 }
 0x185   : > { %v2241_v62 = vadd.f32 %v4668_v10, %v2106_v58  ;;  %v2305_v63 = vadd.f32 %v4668_v10, %v2170_v59  ;;  %v2371_v2 = vmax.f32 %v2243_v60, 0.0 }
 0x186   : > { %v2435_v3 = vmax.f32 %v2307_v61, 0.0  ;;  %v4080_v9 = vpop.f32.mrb[28].mxu0  ;;  %v4144_v11 = vpop.f32.mrb[28].mxu1 }
 0x187   : > { %v2369_v6 = vmax.f32 %v2241_v62, 0.0  ;;  %v2433_v7 = vmax.f32 %v2305_v63, 0.0  ;;  %v3647_v12 = vpack.c.bf16 %v2371_v2, %v2370_v0  ;;  %v2111_v14 = vmul.f32 %v4080_v9, %v4666_v8  ;;  %v1288_v16 = vpop.f32.mrb[29].mxu0  ;;  %v1544_v17 = vpop.f32.mrb[29].mxu1 }
 0x188   : > { %v3807_v13 = vpack.c.bf16 %v2435_v3, %v2434_v1  ;;  %v2175_v15 = vmul.f32 %v4144_v11, %v4666_v8  ;;  %v2109_v20 = vmul.f32 %v4666_v8, %v1288_v16  ;;  %v2173_v21 = vmul.f32 %v4666_v8, %v1544_v17  ;;  %v4081_v22 = vpop.f32.mrb[30].mxu0  ;;  %v4145_v23 = vpop.f32.mrb[30].mxu1 }
 0x189   : > { %v3642_v18 = vpack.c.bf16 %v2369_v6, %v2368_v4  ;;  %v3802_v19 = vpack.c.bf16 %v2433_v7, %v2432_v5  ;;  %3911 = vst [vmem:[%s4691_s5 + $0x68] sm:$0xff] %v3647_v12   ;;  %v2246_v24 = vadd.f32 %v4668_v10, %v2111_v14  ;;  %v2112_v26 = vmul.f32 %v4081_v22, %v4666_v8  ;;  %v1291_v28 = vpop.f32.mrb[31].mxu0  ;;  %v1547_v29 = vpop.f32.mrb[31].mxu1 }
 0x18a   : > { %3943 = vst [vmem:[%s4691_s5 + $0x168] sm:$0xff] %v3807_v13   ;;  %v2310_v25 = vadd.f32 %v4668_v10, %v2175_v15  ;;  %v2176_v27 = vmul.f32 %v4145_v23, %v4666_v8  ;;  %v2244_v30 = vadd.f32 %v4668_v10, %v2109_v20  ;;  %v2308_v31 = vadd.f32 %v4668_v10, %v2173_v21 }
 0x18b   : > { %3910 = vst [vmem:[%s4691_s5 + $0x60] sm:$0xff] %v3642_v18   ;;  %3942 = vst [vmem:[%s4691_s5 + $0x160] sm:$0xff] %v3802_v19   ;;  %v2110_v32 = vmul.f32 %v4666_v8, %v1291_v28  ;;  %v2174_v33 = vmul.f32 %v4666_v8, %v1547_v29  ;;  %v2247_v34 = vadd.f32 %v4668_v10, %v2112_v26  ;;  %v2374_v38 = vmax.f32 %v2246_v24, 0.0 }
 0x18c   : > { %v2311_v35 = vadd.f32 %v4668_v10, %v2176_v27  ;;  %v2438_v39 = vmax.f32 %v2310_v25, 0.0  ;;  %v2372_v42 = vmax.f32 %v2244_v30, 0.0  ;;  %v2436_v43 = vmax.f32 %v2308_v31, 0.0 }
 0x18d   : > { %v2245_v36 = vadd.f32 %v4668_v10, %v2110_v32  ;;  %v2309_v37 = vadd.f32 %v4668_v10, %v2174_v33  ;;  %v2375_v40 = vmax.f32 %v2247_v34, 0.0 }
 0x18e   : > { %v2439_v41 = vmax.f32 %v2311_v35, 0.0  ;;  %v4084_v46 = vpop.f32.mrb[32].mxu0  ;;  %v4148_v47 = vpop.f32.mrb[32].mxu1 }
 0x18f   : > { %v2373_v44 = vmax.f32 %v2245_v36, 0.0  ;;  %v2437_v45 = vmax.f32 %v2309_v37, 0.0  ;;  %v3657_v48 = vpack.c.bf16 %v2375_v40, %v2374_v38  ;;  %v2115_v50 = vmul.f32 %v4084_v46, %v4666_v8  ;;  %v1304_v52 = vpop.f32.mrb[33].mxu0  ;;  %v1560_v53 = vpop.f32.mrb[33].mxu1 }
 0x190   : > { %v3817_v49 = vpack.c.bf16 %v2439_v41, %v2438_v39  ;;  %v2179_v51 = vmul.f32 %v4148_v47, %v4666_v8  ;;  %v2113_v56 = vmul.f32 %v4666_v8, %v1304_v52  ;;  %v2177_v57 = vmul.f32 %v4666_v8, %v1560_v53  ;;  %v4085_v58 = vpop.f32.mrb[34].mxu0  ;;  %v4149_v59 = vpop.f32.mrb[34].mxu1 }
 0x191   : > { %v3652_v54 = vpack.c.bf16 %v2373_v44, %v2372_v42  ;;  %v3812_v55 = vpack.c.bf16 %v2437_v45, %v2436_v43  ;;  %3913 = vst [vmem:[%s4691_s5 + $0x78] sm:$0xff] %v3657_v48   ;;  %v2250_v60 = vadd.f32 %v4668_v10, %v2115_v50  ;;  %v2116_v62 = vmul.f32 %v4085_v58, %v4666_v8  ;;  %v1307_v0 = vpop.f32.mrb[35].mxu0  ;;  %v1563_v1 = vpop.f32.mrb[35].mxu1 }
 0x192   : > { %3945 = vst [vmem:[%s4691_s5 + $0x178] sm:$0xff] %v3817_v49   ;;  %v2314_v61 = vadd.f32 %v4668_v10, %v2179_v51  ;;  %v2180_v63 = vmul.f32 %v4149_v59, %v4666_v8  ;;  %v2248_v2 = vadd.f32 %v4668_v10, %v2113_v56  ;;  %v2312_v3 = vadd.f32 %v4668_v10, %v2177_v57 }
 0x193   : > { %3912 = vst [vmem:[%s4691_s5 + $0x70] sm:$0xff] %v3652_v54   ;;  %3944 = vst [vmem:[%s4691_s5 + $0x170] sm:$0xff] %v3812_v55   ;;  %v2114_v4 = vmul.f32 %v4666_v8, %v1307_v0  ;;  %v2178_v5 = vmul.f32 %v4666_v8, %v1563_v1  ;;  %v2251_v6 = vadd.f32 %v4668_v10, %v2116_v62  ;;  %v2378_v12 = vmax.f32 %v2250_v60, 0.0 }
 0x194   : > { %v2315_v7 = vadd.f32 %v4668_v10, %v2180_v63  ;;  %v2442_v13 = vmax.f32 %v2314_v61, 0.0  ;;  %v2376_v16 = vmax.f32 %v2248_v2, 0.0  ;;  %v2440_v17 = vmax.f32 %v2312_v3, 0.0 }
 0x195   : > { %v2249_v9 = vadd.f32 %v4668_v10, %v2114_v4  ;;  %v2313_v11 = vadd.f32 %v4668_v10, %v2178_v5  ;;  %v2379_v14 = vmax.f32 %v2251_v6, 0.0 }
 0x196   : > { %v2443_v15 = vmax.f32 %v2315_v7, 0.0  ;;  %v4088_v20 = vpop.f32.mrb[36].mxu0  ;;  %v4152_v21 = vpop.f32.mrb[36].mxu1 }
 0x197   : > { %v2377_v18 = vmax.f32 %v2249_v9, 0.0  ;;  %v2441_v19 = vmax.f32 %v2313_v11, 0.0  ;;  %v3667_v22 = vpack.c.bf16 %v2379_v14, %v2378_v12  ;;  %v2119_v24 = vmul.f32 %v4088_v20, %v4666_v8  ;;  %v1320_v26 = vpop.f32.mrb[37].mxu0  ;;  %v1576_v27 = vpop.f32.mrb[37].mxu1 }
 0x198   : > { %v3827_v23 = vpack.c.bf16 %v2443_v15, %v2442_v13  ;;  %v2183_v25 = vmul.f32 %v4152_v21, %v4666_v8  ;;  %v2117_v30 = vmul.f32 %v4666_v8, %v1320_v26  ;;  %v2181_v31 = vmul.f32 %v4666_v8, %v1576_v27  ;;  %v4089_v32 = vpop.f32.mrb[38].mxu0  ;;  %v4153_v33 = vpop.f32.mrb[38].mxu1 }
 0x199   : > { %v3662_v28 = vpack.c.bf16 %v2377_v18, %v2376_v16  ;;  %v3822_v29 = vpack.c.bf16 %v2441_v19, %v2440_v17  ;;  %3915 = vst [vmem:[%s4691_s5 + $0x88] sm:$0xff] %v3667_v22   ;;  %v2254_v34 = vadd.f32 %v4668_v10, %v2119_v24  ;;  %v2120_v36 = vmul.f32 %v4089_v32, %v4666_v8  ;;  %v1323_v38 = vpop.f32.mrb[39].mxu0  ;;  %v1579_v39 = vpop.f32.mrb[39].mxu1 }
 0x19a   : > { %3947 = vst [vmem:[%s4691_s5 + $0x188] sm:$0xff] %v3827_v23   ;;  %v2318_v35 = vadd.f32 %v4668_v10, %v2183_v25  ;;  %v2184_v37 = vmul.f32 %v4153_v33, %v4666_v8  ;;  %v2252_v40 = vadd.f32 %v4668_v10, %v2117_v30  ;;  %v2316_v41 = vadd.f32 %v4668_v10, %v2181_v31 }
 0x19b   : > { %3914 = vst [vmem:[%s4691_s5 + $0x80] sm:$0xff] %v3662_v28   ;;  %3946 = vst [vmem:[%s4691_s5 + $0x180] sm:$0xff] %v3822_v29   ;;  %v2118_v42 = vmul.f32 %v4666_v8, %v1323_v38  ;;  %v2182_v43 = vmul.f32 %v4666_v8, %v1579_v39  ;;  %v2255_v44 = vadd.f32 %v4668_v10, %v2120_v36  ;;  %v2382_v48 = vmax.f32 %v2254_v34, 0.0 }
 0x19c   : > { %v2319_v45 = vadd.f32 %v4668_v10, %v2184_v37  ;;  %v2446_v49 = vmax.f32 %v2318_v35, 0.0  ;;  %v2380_v52 = vmax.f32 %v2252_v40, 0.0  ;;  %v2444_v53 = vmax.f32 %v2316_v41, 0.0 }
 0x19d   : > { %v2253_v46 = vadd.f32 %v4668_v10, %v2118_v42  ;;  %v2317_v47 = vadd.f32 %v4668_v10, %v2182_v43  ;;  %v2383_v50 = vmax.f32 %v2255_v44, 0.0 }
 0x19e   : > { %v2447_v51 = vmax.f32 %v2319_v45, 0.0  ;;  %v4092_v56 = vpop.f32.mrb[40].mxu0  ;;  %v4156_v57 = vpop.f32.mrb[40].mxu1 }
 0x19f   : > { %v2381_v54 = vmax.f32 %v2253_v46, 0.0  ;;  %v2445_v55 = vmax.f32 %v2317_v47, 0.0  ;;  %v3677_v58 = vpack.c.bf16 %v2383_v50, %v2382_v48  ;;  %v2123_v60 = vmul.f32 %v4092_v56, %v4666_v8  ;;  %v1336_v62 = vpop.f32.mrb[41].mxu0  ;;  %v1592_v63 = vpop.f32.mrb[41].mxu1 }
 0x1a0   : > { %v3837_v59 = vpack.c.bf16 %v2447_v51, %v2446_v49  ;;  %v2187_v61 = vmul.f32 %v4156_v57, %v4666_v8  ;;  %v2121_v2 = vmul.f32 %v4666_v8, %v1336_v62  ;;  %v2185_v3 = vmul.f32 %v4666_v8, %v1592_v63  ;;  %v4093_v4 = vpop.f32.mrb[42].mxu0  ;;  %v4157_v5 = vpop.f32.mrb[42].mxu1 }
 0x1a1   : > { %v3672_v0 = vpack.c.bf16 %v2381_v54, %v2380_v52  ;;  %v3832_v1 = vpack.c.bf16 %v2445_v55, %v2444_v53  ;;  %3917 = vst [vmem:[%s4691_s5 + $0x98] sm:$0xff] %v3677_v58   ;;  %v2258_v6 = vadd.f32 %v4668_v10, %v2123_v60  ;;  %v2124_v9 = vmul.f32 %v4093_v4, %v4666_v8  ;;  %v1339_v12 = vpop.f32.mrb[43].mxu0  ;;  %v1595_v13 = vpop.f32.mrb[43].mxu1 }
 0x1a2   : > { %3949 = vst [vmem:[%s4691_s5 + $0x198] sm:$0xff] %v3837_v59   ;;  %v2322_v7 = vadd.f32 %v4668_v10, %v2187_v61  ;;  %v2188_v11 = vmul.f32 %v4157_v5, %v4666_v8  ;;  %v2256_v14 = vadd.f32 %v4668_v10, %v2121_v2  ;;  %v2320_v15 = vadd.f32 %v4668_v10, %v2185_v3 }
 0x1a3   : > { %3916 = vst [vmem:[%s4691_s5 + $0x90] sm:$0xff] %v3672_v0   ;;  %3948 = vst [vmem:[%s4691_s5 + $0x190] sm:$0xff] %v3832_v1   ;;  %v2122_v16 = vmul.f32 %v4666_v8, %v1339_v12  ;;  %v2186_v17 = vmul.f32 %v4666_v8, %v1595_v13  ;;  %v2259_v18 = vadd.f32 %v4668_v10, %v2124_v9  ;;  %v2386_v22 = vmax.f32 %v2258_v6, 0.0 }
 0x1a4   : > { %v2323_v19 = vadd.f32 %v4668_v10, %v2188_v11  ;;  %v2450_v23 = vmax.f32 %v2322_v7, 0.0  ;;  %v2384_v26 = vmax.f32 %v2256_v14, 0.0  ;;  %v2448_v27 = vmax.f32 %v2320_v15, 0.0 }
 0x1a5   : > { %v2257_v20 = vadd.f32 %v4668_v10, %v2122_v16  ;;  %v2321_v21 = vadd.f32 %v4668_v10, %v2186_v17  ;;  %v2387_v24 = vmax.f32 %v2259_v18, 0.0 }
 0x1a6   : > { %v2451_v25 = vmax.f32 %v2323_v19, 0.0  ;;  %v4096_v30 = vpop.f32.mrb[44].mxu0  ;;  %v4160_v31 = vpop.f32.mrb[44].mxu1 }
 0x1a7   : > { %v2385_v28 = vmax.f32 %v2257_v20, 0.0  ;;  %v2449_v29 = vmax.f32 %v2321_v21, 0.0  ;;  %v3687_v32 = vpack.c.bf16 %v2387_v24, %v2386_v22  ;;  %v2127_v34 = vmul.f32 %v4096_v30, %v4666_v8  ;;  %v1352_v36 = vpop.f32.mrb[45].mxu0  ;;  %v1608_v37 = vpop.f32.mrb[45].mxu1 }
 0x1a8   : > { %v3847_v33 = vpack.c.bf16 %v2451_v25, %v2450_v23  ;;  %v2191_v35 = vmul.f32 %v4160_v31, %v4666_v8  ;;  %v2125_v40 = vmul.f32 %v4666_v8, %v1352_v36  ;;  %v2189_v41 = vmul.f32 %v4666_v8, %v1608_v37  ;;  %v4097_v42 = vpop.f32.mrb[46].mxu0  ;;  %v4161_v43 = vpop.f32.mrb[46].mxu1 }
 0x1a9   : > { %v3682_v38 = vpack.c.bf16 %v2385_v28, %v2384_v26  ;;  %v3842_v39 = vpack.c.bf16 %v2449_v29, %v2448_v27  ;;  %3919 = vst [vmem:[%s4691_s5 + $0xa8] sm:$0xff] %v3687_v32   ;;  %v2262_v44 = vadd.f32 %v4668_v10, %v2127_v34  ;;  %v2128_v46 = vmul.f32 %v4097_v42, %v4666_v8  ;;  %v1355_v48 = vpop.f32.mrb[47].mxu0  ;;  %v1611_v49 = vpop.f32.mrb[47].mxu1 }
 0x1aa   : > { %3951 = vst [vmem:[%s4691_s5 + $0x1a8] sm:$0xff] %v3847_v33   ;;  %v2326_v45 = vadd.f32 %v4668_v10, %v2191_v35  ;;  %v2192_v47 = vmul.f32 %v4161_v43, %v4666_v8  ;;  %v2260_v50 = vadd.f32 %v4668_v10, %v2125_v40  ;;  %v2324_v51 = vadd.f32 %v4668_v10, %v2189_v41  ;;  %v4933_v43 = vld [vmem:[#allocation5] ss:$0 sm:$0xff] }
 0x1ab   : > { %3918 = vst [vmem:[%s4691_s5 + $0xa0] sm:$0xff] %v3682_v38   ;;  %3950 = vst [vmem:[%s4691_s5 + $0x1a0] sm:$0xff] %v3842_v39   ;;  %v2126_v52 = vmul.f32 %v4666_v8, %v1355_v48  ;;  %v2190_v53 = vmul.f32 %v4666_v8, %v1611_v49  ;;  %v2263_v54 = vadd.f32 %v4668_v10, %v2128_v46  ;;  %v2390_v58 = vmax.f32 %v2262_v44, 0.0 }
 0x1ac   : > { %v2327_v55 = vadd.f32 %v4668_v10, %v2192_v47  ;;  %v2454_v59 = vmax.f32 %v2326_v45, 0.0  ;;  %v2388_v62 = vmax.f32 %v2260_v50, 0.0  ;;  %v2452_v63 = vmax.f32 %v2324_v51, 0.0 }
 0x1ad   : > { %v2261_v56 = vadd.f32 %v4668_v10, %v2126_v52  ;;  %v2325_v57 = vadd.f32 %v4668_v10, %v2190_v53  ;;  %v2391_v60 = vmax.f32 %v2263_v54, 0.0  ;;  %v4941_v53 = vld [vmem:[#allocation7] ss:$0 sm:$0xff] }
 0x1ae   : > { %v2455_v61 = vmax.f32 %v2327_v55, 0.0  ;;  %v4100_v2 = vpop.f32.mrb[48].mxu0  ;;  %v4164_v3 = vpop.f32.mrb[48].mxu1 }
 0x1af   : > { %v2389_v0 = vmax.f32 %v2261_v56, 0.0  ;;  %v2453_v1 = vmax.f32 %v2325_v57, 0.0  ;;  %v3697_v4 = vpack.c.bf16 %v2391_v60, %v2390_v58  ;;  %v2131_v6 = vmul.f32 %v4100_v2, %v4666_v8  ;;  %v1368_v9 = vpop.f32.mrb[49].mxu0  ;;  %v1624_v11 = vpop.f32.mrb[49].mxu1 }
 0x1b0   : > { %v3857_v5 = vpack.c.bf16 %v2455_v61, %v2454_v59  ;;  %v2195_v7 = vmul.f32 %v4164_v3, %v4666_v8  ;;  %v2129_v14 = vmul.f32 %v4666_v8, %v1368_v9  ;;  %v2193_v15 = vmul.f32 %v4666_v8, %v1624_v11  ;;  %v4101_v16 = vpop.f32.mrb[50].mxu0  ;;  %v4165_v17 = vpop.f32.mrb[50].mxu1 }
 0x1b1   : > { %v3692_v12 = vpack.c.bf16 %v2389_v0, %v2388_v62  ;;  %v3852_v13 = vpack.c.bf16 %v2453_v1, %v2452_v63  ;;  %3921 = vst [vmem:[%s4691_s5 + $0xb8] sm:$0xff] %v3697_v4   ;;  %v2266_v18 = vadd.f32 %v4668_v10, %v2131_v6  ;;  %v2132_v20 = vmul.f32 %v4101_v16, %v4666_v8  ;;  %v1371_v22 = vpop.f32.mrb[51].mxu0  ;;  %v1627_v23 = vpop.f32.mrb[51].mxu1 }
 0x1b2   : > { %3953 = vst [vmem:[%s4691_s5 + $0x1b8] sm:$0xff] %v3857_v5   ;;  %v2330_v19 = vadd.f32 %v4668_v10, %v2195_v7  ;;  %v2196_v21 = vmul.f32 %v4165_v17, %v4666_v8  ;;  %v2264_v24 = vadd.f32 %v4668_v10, %v2129_v14  ;;  %v2328_v25 = vadd.f32 %v4668_v10, %v2193_v15 }
 0x1b3   : > { %3920 = vst [vmem:[%s4691_s5 + $0xb0] sm:$0xff] %v3692_v12   ;;  %3952 = vst [vmem:[%s4691_s5 + $0x1b0] sm:$0xff] %v3852_v13   ;;  %v2130_v26 = vmul.f32 %v4666_v8, %v1371_v22  ;;  %v2194_v27 = vmul.f32 %v4666_v8, %v1627_v23  ;;  %v2267_v28 = vadd.f32 %v4668_v10, %v2132_v20  ;;  %v2394_v32 = vmax.f32 %v2266_v18, 0.0 }
 0x1b4   : > { %v2331_v29 = vadd.f32 %v4668_v10, %v2196_v21  ;;  %v2458_v33 = vmax.f32 %v2330_v19, 0.0  ;;  %v2392_v36 = vmax.f32 %v2264_v24, 0.0  ;;  %v2456_v37 = vmax.f32 %v2328_v25, 0.0 }
 0x1b5   : > { %v2265_v30 = vadd.f32 %v4668_v10, %v2130_v26  ;;  %v2329_v31 = vadd.f32 %v4668_v10, %v2194_v27  ;;  %v2395_v34 = vmax.f32 %v2267_v28, 0.0 }
 0x1b6   : > { %v2459_v35 = vmax.f32 %v2331_v29, 0.0  ;;  %v4104_v40 = vpop.f32.mrb[52].mxu0  ;;  %v4168_v8 = vpop.f32.mrb[52].mxu1 }
 0x1b7   : > { %v2393_v38 = vmax.f32 %v2265_v30, 0.0  ;;  %v2457_v39 = vmax.f32 %v2329_v31, 0.0  ;;  %v3707_v41 = vpack.c.bf16 %v2395_v34, %v2394_v32  ;;  %v2135_v44 = vmul.f32 %v4933_v43, %v4104_v40  ;;  %v1384_v45 = vpop.f32.mrb[53].mxu0  ;;  %v1640_v46 = vpop.f32.mrb[53].mxu1 }
 0x1b8   : > { %v3867_v42 = vpack.c.bf16 %v2459_v35, %v2458_v33  ;;  %v2199_v10 = vmul.f32 %v4933_v43, %v4168_v8  ;;  %v2133_v49 = vmul.f32 %v4933_v43, %v1384_v45  ;;  %v2197_v50 = vmul.f32 %v4933_v43, %v1640_v46  ;;  %v4105_v51 = vpop.f32.mrb[54].mxu0  ;;  %v4169_v52 = vpop.f32.mrb[54].mxu1 }
 0x1b9   : > { %v3702_v47 = vpack.c.bf16 %v2393_v38, %v2392_v36  ;;  %v3862_v48 = vpack.c.bf16 %v2457_v39, %v2456_v37  ;;  %3923 = vst [vmem:[%s4691_s5 + $0xc8] sm:$0xff] %v3707_v41   ;;  %v2270_v54 = vadd.f32 %v4941_v53, %v2135_v44  ;;  %v2136_v56 = vmul.f32 %v4933_v43, %v4105_v51  ;;  %v1387_v58 = vpop.f32.mrb[55].mxu0  ;;  %v1643_v59 = vpop.f32.mrb[55].mxu1 }
 0x1ba   : > { %3955 = vst [vmem:[%s4691_s5 + $0x1c8] sm:$0xff] %v3867_v42   ;;  %v2334_v55 = vadd.f32 %v4941_v53, %v2199_v10  ;;  %v2200_v57 = vmul.f32 %v4933_v43, %v4169_v52  ;;  %v2268_v60 = vadd.f32 %v4941_v53, %v2133_v49  ;;  %v2332_v61 = vadd.f32 %v4941_v53, %v2197_v50 }
 0x1bb   : > { %3922 = vst [vmem:[%s4691_s5 + $0xc0] sm:$0xff] %v3702_v47   ;;  %3954 = vst [vmem:[%s4691_s5 + $0x1c0] sm:$0xff] %v3862_v48   ;;  %v2134_v62 = vmul.f32 %v4933_v43, %v1387_v58  ;;  %v2198_v63 = vmul.f32 %v4933_v43, %v1643_v59  ;;  %v2271_v0 = vadd.f32 %v4941_v53, %v2136_v56  ;;  %v2398_v4 = vmax.f32 %v2270_v54, 0.0 }
 0x1bc   : > { %v2335_v1 = vadd.f32 %v4941_v53, %v2200_v57  ;;  %v2462_v5 = vmax.f32 %v2334_v55, 0.0  ;;  %v2396_v9 = vmax.f32 %v2268_v60, 0.0  ;;  %v2460_v11 = vmax.f32 %v2332_v61, 0.0 }
 0x1bd   : > { %v2269_v2 = vadd.f32 %v4941_v53, %v2134_v62  ;;  %v2333_v3 = vadd.f32 %v4941_v53, %v2198_v63  ;;  %v2399_v6 = vmax.f32 %v2271_v0, 0.0 }
 0x1be   : > { %v2463_v7 = vmax.f32 %v2335_v1, 0.0  ;;  %v4108_v14 = vpop.f32.mrb[56].mxu0  ;;  %v4172_v15 = vpop.f32.mrb[56].mxu1 }
 0x1bf   : > { %v2397_v12 = vmax.f32 %v2269_v2, 0.0  ;;  %v2461_v13 = vmax.f32 %v2333_v3, 0.0  ;;  %v3717_v16 = vpack.c.bf16 %v2399_v6, %v2398_v4  ;;  %v2139_v18 = vmul.f32 %v4933_v43, %v4108_v14  ;;  %v1400_v20 = vpop.f32.mrb[57].mxu0  ;;  %v1656_v21 = vpop.f32.mrb[57].mxu1 }
 0x1c0   : > { %v3877_v17 = vpack.c.bf16 %v2463_v7, %v2462_v5  ;;  %v2203_v19 = vmul.f32 %v4933_v43, %v4172_v15  ;;  %v2137_v24 = vmul.f32 %v4933_v43, %v1400_v20  ;;  %v2201_v25 = vmul.f32 %v4933_v43, %v1656_v21  ;;  %v4109_v26 = vpop.f32.mrb[58].mxu0  ;;  %v4173_v27 = vpop.f32.mrb[58].mxu1 }
 0x1c1   : > { %v3712_v22 = vpack.c.bf16 %v2397_v12, %v2396_v9  ;;  %v3872_v23 = vpack.c.bf16 %v2461_v13, %v2460_v11  ;;  %3925 = vst [vmem:[%s4691_s5 + $0xd8] sm:$0xff] %v3717_v16   ;;  %v2274_v28 = vadd.f32 %v4941_v53, %v2139_v18  ;;  %v2140_v30 = vmul.f32 %v4933_v43, %v4109_v26  ;;  %v1403_v32 = vpop.f32.mrb[59].mxu0  ;;  %v1659_v33 = vpop.f32.mrb[59].mxu1 }
 0x1c2   : > { %3957 = vst [vmem:[%s4691_s5 + $0x1d8] sm:$0xff] %v3877_v17   ;;  %v2338_v29 = vadd.f32 %v4941_v53, %v2203_v19  ;;  %v2204_v31 = vmul.f32 %v4933_v43, %v4173_v27  ;;  %v2272_v34 = vadd.f32 %v4941_v53, %v2137_v24  ;;  %v2336_v35 = vadd.f32 %v4941_v53, %v2201_v25 }
 0x1c3   : > { %3924 = vst [vmem:[%s4691_s5 + $0xd0] sm:$0xff] %v3712_v22   ;;  %3956 = vst [vmem:[%s4691_s5 + $0x1d0] sm:$0xff] %v3872_v23   ;;  %v2138_v36 = vmul.f32 %v4933_v43, %v1403_v32  ;;  %v2202_v37 = vmul.f32 %v4933_v43, %v1659_v33  ;;  %v2275_v38 = vadd.f32 %v4941_v53, %v2140_v30  ;;  %v2402_v41 = vmax.f32 %v2274_v28, 0.0 }
 0x1c4   : > { %v2339_v39 = vadd.f32 %v4941_v53, %v2204_v31  ;;  %v2466_v42 = vmax.f32 %v2338_v29, 0.0  ;;  %v2400_v45 = vmax.f32 %v2272_v34, 0.0  ;;  %v2464_v46 = vmax.f32 %v2336_v35, 0.0 }
 0x1c5   : > { %v2273_v40 = vadd.f32 %v4941_v53, %v2138_v36  ;;  %v2337_v8 = vadd.f32 %v4941_v53, %v2202_v37  ;;  %v2403_v44 = vmax.f32 %v2275_v38, 0.0 }
 0x1c6   : > { %v2467_v10 = vmax.f32 %v2339_v39, 0.0  ;;  %v4112_v49 = vpop.f32.mrb[60].mxu0  ;;  %v4176_v50 = vpop.f32.mrb[60].mxu1 }
 0x1c7   : > { %v2401_v47 = vmax.f32 %v2273_v40, 0.0  ;;  %v2465_v48 = vmax.f32 %v2337_v8, 0.0  ;;  %v3727_v51 = vpack.c.bf16 %v2403_v44, %v2402_v41  ;;  %v2143_v54 = vmul.f32 %v4933_v43, %v4112_v49  ;;  %v1416_v56 = vpop.f32.mrb[61].mxu0  ;;  %v1672_v57 = vpop.f32.mrb[61].mxu1 }
 0x1c8   : > { %v3887_v52 = vpack.c.bf16 %v2467_v10, %v2466_v42  ;;  %v2207_v55 = vmul.f32 %v4933_v43, %v4176_v50  ;;  %v2141_v60 = vmul.f32 %v4933_v43, %v1416_v56  ;;  %v2205_v61 = vmul.f32 %v4933_v43, %v1672_v57  ;;  %v4113_v62 = vpop.f32.mrb[62].mxu0  ;;  %v4177_v63 = vpop.f32.mrb[62].mxu1 }
 0x1c9   : > { %v3722_v58 = vpack.c.bf16 %v2401_v47, %v2400_v45  ;;  %v3882_v59 = vpack.c.bf16 %v2465_v48, %v2464_v46  ;;  %3927 = vst [vmem:[%s4691_s5 + $0xe8] sm:$0xff] %v3727_v51   ;;  %v2278_v0 = vadd.f32 %v4941_v53, %v2143_v54  ;;  %v2144_v2 = vmul.f32 %v4933_v43, %v4113_v62  ;;  %v1419_v4 = vpop.f32.mrb[63].mxu0  ;;  %v1675_v5 = vpop.f32.mrb[63].mxu1 }
 0x1ca   : > { %3959 = vst [vmem:[%s4691_s5 + $0x1e8] sm:$0xff] %v3887_v52   ;;  %v2342_v1 = vadd.f32 %v4941_v53, %v2207_v55  ;;  %v2208_v3 = vmul.f32 %v4933_v43, %v4177_v63  ;;  %v2276_v6 = vadd.f32 %v4941_v53, %v2141_v60  ;;  %v2340_v7 = vadd.f32 %v4941_v53, %v2205_v61 }
 0x1cb   : > { %3926 = vst [vmem:[%s4691_s5 + $0xe0] sm:$0xff] %v3722_v58   ;;  %3958 = vst [vmem:[%s4691_s5 + $0x1e0] sm:$0xff] %v3882_v59   ;;  %v2142_v9 = vmul.f32 %v4933_v43, %v1419_v4  ;;  %v2206_v11 = vmul.f32 %v4933_v43, %v1675_v5  ;;  %v2279_v12 = vadd.f32 %v4941_v53, %v2144_v2  ;;  %v2406_v16 = vmax.f32 %v2278_v0, 0.0 }
 0x1cc   : > { %v2343_v13 = vadd.f32 %v4941_v53, %v2208_v3  ;;  %v2470_v17 = vmax.f32 %v2342_v1, 0.0  ;;  %v2404_v20 = vmax.f32 %v2276_v6, 0.0  ;;  %v2468_v21 = vmax.f32 %v2340_v7, 0.0 }
 0x1cd   : > { %v2277_v14 = vadd.f32 %v4941_v53, %v2142_v9  ;;  %v2341_v15 = vadd.f32 %v4941_v53, %v2206_v11  ;;  %v2407_v18 = vmax.f32 %v2279_v12, 0.0 }
 0x1ce   : > { %v2471_v19 = vmax.f32 %v2343_v13, 0.0 }
 0x1cf   : > { %v2405_v22 = vmax.f32 %v2277_v14, 0.0  ;;  %v2469_v43 = vmax.f32 %v2341_v15, 0.0  ;;  %v3737_v23 = vpack.c.bf16 %v2407_v18, %v2406_v16 }
 0x1d0   : > { %v3897_v24 = vpack.c.bf16 %v2471_v19, %v2470_v17 }
 0x1d1   : > { %v3732_v25 = vpack.c.bf16 %v2405_v22, %v2404_v20  ;;  %v3892_v26 = vpack.c.bf16 %v2469_v43, %v2468_v21  ;;  %3929 = vst [vmem:[%s4691_s5 + $0xf8] sm:$0xff] %v3737_v23  }
 0x1d2   : > { %3961 = vst [vmem:[%s4691_s5 + $0x1f8] sm:$0xff] %v3897_v24  }
 0x1d3   : > { %3928 = vst [vmem:[%s4691_s5 + $0xf0] sm:$0xff] %v3732_v25   ;;  %3960 = vst [vmem:[%s4691_s5 + $0x1f0] sm:$0xff] %v3892_v26  }
 0x1d4 PF: > { %s16_s17 = sadd.s32 1, %s4439_s17   ;;  %s5026_s15 = smov %s4435_s16 }
 0x1d5   : > { %p13_p5 = scmp.ge.s32.totalorder %s16_s17, 4   ;;  %s5027_s16 = smov %s5029_s23 }
 0x1d7   :  { %15 = sbr.rel (!%p13_p5) target bundleno = 3 (0x3), region = 90 }
 0x1de   :  { %3140 = vsyncpa [#allocation4], 1 }
 0x1df   :  { %3142 = vsyncpa [#allocation4 + $0x1], 1 }
 0x1e0   :  { %3143 = vsyncpa [#allocation6], 1 }

// kernel: generator_forward.37
= control target key start
LH: loop header
LB: loop body
LE: loop exit
PB: predicated region body
PF: predicated region fallthrough
CT: control target
= control target key end

     0   :  { %s1843_s15 = smov 0   ;;  %s1845_s16 = smov 0   ;;  %s2054_s0 = inlined_call_operand.vmem [shape: bf16[512,256], index: 0, kind: input, shape index: {}]   ;;  %s2055_s1 = inlined_call_operand.vmem [shape: bf16[256,128], index: 1, kind: input, shape index: {}]   ;;  %s2056_s2 = inlined_call_operand.vmem [shape: f32[1,128], index: 2, kind: input, shape index: {}]   ;;  %s2057_s3 = inlined_call_operand.vmem [shape: f32[1,128], index: 3, kind: input, shape index: {}]   ;;  %s2058_s4 = inlined_call_operand.vmem [shape: bf16[512,128], index: 4, kind: output, shape index: {}]  }
   0x1   :  { %s1847_s17 = smov 0  }
   0x2 LB: > { %s33_s18 = sadd.s32 1, %s1812_s16  ;;  %p1360_p0 = scmp.ge.s32.totalorder %s1816_s17, 1  ;;  %s1816_s17 = sphi %s1847_s17, %s14_s17   ;;  %s1812_s16 = sphi %s1845_s16, %s2060_s16   ;;  %s1808_s15 = sphi %s1843_s15, %s2059_s15  }
   0x3   : > { %p35_p1 = scmp.ge.s32.totalorder %s33_s18, 2  ;;  %p224_p2 = scmp.lt.s32.totalorder %s1816_s17, 3 }
   0x5   : > { %s2062_s18 = smov (%p35_p1, %s33_s18), 0  ;;  %p225_p3 = pnand %p1360_p0, %p224_p2 }
   0x6   : > { %v1730_v0 = vld [vmem:[%s2055_s1 + $0x40] sm:$0xff] (!%p225_p3)   ;;  %s1361_s21 = sshll.u32 (!%p225_p3), %s1808_s15, 5  ;;  %v1732_v2 = vld [vmem:[%s2055_s1 + $0x48] sm:$0xff] (!%p225_p3)   ;;  %v1734_v4 = vld [vmem:[%s2055_s1 + $0x50] sm:$0xff] (!%p225_p3)  }
   0x7   : > { %228 = sbr.rel (%p225_p3) target bundleno = 322 (0x142), region = 36  ;;  %v1731_v1 = vld [vmem:[%s2055_s1] sm:$0xff] (!%p225_p3)   ;;  %1578 = vmatprep.subr.bf16.mxu0 (!%p225_p3), %v1730_v0  ;;  %1690 = vmatprep.subr.bf16.mxu1 (!%p225_p3), %v1730_v0  ;;  %v1733_v3 = vld [vmem:[%s2055_s1 + $0x8] sm:$0xff] (!%p225_p3)   ;;  %p274_p4 = scmp.lt.s32.totalorder (!%p225_p3), %s1361_s21, 63  ;;  %v1735_v5 = vld [vmem:[%s2055_s1 + $0x10] sm:$0xff] (!%p225_p3)  }
   0x8   : > { %1579 = vmatpush3.bf16.msra.mxu0 (!%p225_p3), %v1731_v1  ;;  %1698 = vmatpush3.bf16.msra.mxu1 (!%p225_p3), %v1731_v1  ;;  %v1736_v6 = vld [vmem:[%s2055_s1 + $0x58] sm:$0xff] (!%p225_p3)   ;;  %v1738_v8 = vld [vmem:[%s2055_s1 + $0x60] sm:$0xff] (!%p225_p3)   ;;  %v1740_v10 = vld [vmem:[%s2055_s1 + $0x68] sm:$0xff] (!%p225_p3)  }
   0x9   : > { %1580 = vmatprep.subr.bf16.mxu0 (!%p225_p3), %v1732_v2  ;;  %1691 = vmatprep.subr.bf16.mxu1 (!%p225_p3), %v1732_v2  ;;  %v1737_v7 = vld [vmem:[%s2055_s1 + $0x18] sm:$0xff] (!%p225_p3)   ;;  %v1739_v9 = vld [vmem:[%s2055_s1 + $0x20] sm:$0xff] (!%p225_p3)   ;;  %v1741_v13 = vld [vmem:[%s2055_s1 + $0x28] sm:$0xff] (!%p225_p3)  }
   0xa   : > { %v1742_v14 = vld [vmem:[%s2055_s1 + $0x70] sm:$0xff] (!%p225_p3)   ;;  %v1744_v16 = vld [vmem:[%s2055_s1 + $0x78] sm:$0xff] (!%p225_p3)   ;;  %v1952_v51 = vld [vmem:[%s2056_s2] ss:$0 sm:$0xff] (!%p225_p3) }
   0xb   : > { %v1743_v15 = vld [vmem:[%s2055_s1 + $0x30] sm:$0xff] (!%p225_p3)   ;;  %v1745_v17 = vld [vmem:[%s2055_s1 + $0x38] sm:$0xff] (!%p225_p3)   ;;  %v1957_v57 = vld [vmem:[%s2057_s3] ss:$0 sm:$0xff] (!%p225_p3) }
   0xc   : > { %1581 = vmatpush3.bf16.msra.mxu0 (!%p225_p3), %v1733_v3  ;;  %1699 = vmatpush3.bf16.msra.mxu1 (!%p225_p3), %v1733_v3 }
   0xd   : > { %1582 = vmatprep.subr.bf16.mxu0 (!%p225_p3), %v1734_v4  ;;  %1692 = vmatprep.subr.bf16.mxu1 (!%p225_p3), %v1734_v4 }
   0xe   : > { %s2064_s21 = smov (!%p274_p4, %s1361_s21), 63 }
   0xf   : > { %s1450_s10 = sshll.u32 %s2064_s21, 3  ;;  %s1365_s12 = sshll.u32 %s2064_s21, 2 }
  0x10   : > { %1583 = vmatpush3.bf16.msra.mxu0 %v1735_v5  ;;  %1700 = vmatpush3.bf16.msra.mxu1 %v1735_v5  ;;  %s1894_s15 = scalar_lea.vmem %s2054_s0, %s1450_s10  ;;  %s1971_s21 = scalar_lea.vmem %s2058_s4, %s1365_s12 }
  0x11   : > { %1584 = vmatprep.subr.bf16.mxu0 %v1736_v6  ;;  %1693 = vmatprep.subr.bf16.mxu1 %v1736_v6  ;;  %v1748_v11 = vld [vmem:[%s1894_s15 + $0x4] ss:$8 sps:$4 sm:$0xff]   ;;  %v1746_v18 = vld [vmem:[%s1894_s15] ss:$8 sps:$4 sm:$0xff]   ;;  %v1752_v20 = vld [vmem:[%s1894_s15 + $0x14] ss:$8 sps:$4 sm:$0xff]  }
  0x12   : > { %v1751_v12 = vld [vmem:[%s1894_s15 + $0x84] ss:$8 sps:$4 sm:$0xff]   ;;  %729 = vmatprep.mubr.bf16.mxu0 %v1748_v11  ;;  %v1749_v19 = vld [vmem:[%s1894_s15 + $0x80] ss:$8 sps:$4 sm:$0xff]   ;;  %v1754_v21 = vld [vmem:[%s1894_s15 + $0x94] ss:$8 sps:$4 sm:$0xff]  }
  0x13   : > { %793 = vmatprep.mubr.bf16.mxu1 %v1751_v12  ;;  %v1756_v22 = vld [vmem:[%s1894_s15 + $0x10] ss:$8 sps:$4 sm:$0xff]   ;;  %v1758_v24 = vld [vmem:[%s1894_s15 + $0x24] ss:$8 sps:$4 sm:$0xff]   ;;  %v1762_v26 = vld [vmem:[%s1894_s15 + $0x20] ss:$8 sps:$4 sm:$0xff]  }
  0x14   : > { %1585 = vmatpush3.bf16.msra.mxu0 %v1737_v7  ;;  %1701 = vmatpush3.bf16.msra.mxu1 %v1737_v7  ;;  %v1757_v23 = vld [vmem:[%s1894_s15 + $0x90] ss:$8 sps:$4 sm:$0xff]   ;;  %v1760_v25 = vld [vmem:[%s1894_s15 + $0xa4] ss:$8 sps:$4 sm:$0xff]   ;;  %v1763_v27 = vld [vmem:[%s1894_s15 + $0xa0] ss:$8 sps:$4 sm:$0xff]  }
  0x15   : > { %1586 = vmatprep.subr.bf16.mxu0 %v1738_v8  ;;  %1694 = vmatprep.subr.bf16.mxu1 %v1738_v8  ;;  %v1764_v28 = vld [vmem:[%s1894_s15 + $0x34] ss:$8 sps:$4 sm:$0xff]   ;;  %v1768_v30 = vld [vmem:[%s1894_s15 + $0x30] ss:$8 sps:$4 sm:$0xff]   ;;  %v1770_v32 = vld [vmem:[%s1894_s15 + $0x44] ss:$8 sps:$4 sm:$0xff]  }
  0x16   : > { %v1766_v29 = vld [vmem:[%s1894_s15 + $0xb4] ss:$8 sps:$4 sm:$0xff]   ;;  %v1769_v31 = vld [vmem:[%s1894_s15 + $0xb0] ss:$8 sps:$4 sm:$0xff]   ;;  %v1772_v33 = vld [vmem:[%s1894_s15 + $0xc4] ss:$8 sps:$4 sm:$0xff]  }
  0x17   : > { %v1774_v34 = vld [vmem:[%s1894_s15 + $0x40] ss:$8 sps:$4 sm:$0xff]   ;;  %v1776_v36 = vld [vmem:[%s1894_s15 + $0x54] ss:$8 sps:$4 sm:$0xff]   ;;  %v1780_v38 = vld [vmem:[%s1894_s15 + $0x50] ss:$8 sps:$4 sm:$0xff]  }
  0x18   : > { %1587 = vmatpush3.bf16.msra.mxu0 %v1739_v9  ;;  %1702 = vmatpush3.bf16.msra.mxu1 %v1739_v9  ;;  %v1775_v35 = vld [vmem:[%s1894_s15 + $0xc0] ss:$8 sps:$4 sm:$0xff]   ;;  %v1778_v37 = vld [vmem:[%s1894_s15 + $0xd4] ss:$8 sps:$4 sm:$0xff]   ;;  %v1781_v39 = vld [vmem:[%s1894_s15 + $0xd0] ss:$8 sps:$4 sm:$0xff]  }
  0x19   : > { %1588 = vmatprep.subr.bf16.mxu0 %v1740_v10  ;;  %1695 = vmatprep.subr.bf16.mxu1 %v1740_v10  ;;  %v1782_v40 = vld [vmem:[%s1894_s15 + $0x64] ss:$8 sps:$4 sm:$0xff]   ;;  %v1786_v42 = vld [vmem:[%s1894_s15 + $0x60] ss:$8 sps:$4 sm:$0xff]   ;;  %v1788_v44 = vld [vmem:[%s1894_s15 + $0x74] ss:$8 sps:$4 sm:$0xff]  }
  0x1a   : > { %v1784_v41 = vld [vmem:[%s1894_s15 + $0xe4] ss:$8 sps:$4 sm:$0xff]   ;;  %v1787_v43 = vld [vmem:[%s1894_s15 + $0xe0] ss:$8 sps:$4 sm:$0xff]   ;;  %v1790_v45 = vld [vmem:[%s1894_s15 + $0xf4] ss:$8 sps:$4 sm:$0xff]  }
  0x1b   : > { %v1792_v46 = vld [vmem:[%s1894_s15 + $0x70] ss:$8 sps:$4 sm:$0xff]  }
  0x1c   : > { %1589 = vmatpush3.bf16.msra.mxu0 %v1741_v13  ;;  %1703 = vmatpush3.bf16.msra.mxu1 %v1741_v13  ;;  %v1793_v47 = vld [vmem:[%s1894_s15 + $0xf0] ss:$8 sps:$4 sm:$0xff]  }
  0x1d   : > { %1590 = vmatprep.subr.bf16.mxu0 %v1742_v14  ;;  %1696 = vmatprep.subr.bf16.mxu1 %v1742_v14 }
  0x20   : > { %1591 = vmatpush3.bf16.msra.mxu0 %v1743_v15  ;;  %1704 = vmatpush3.bf16.msra.mxu1 %v1743_v15 }
  0x21   : > { %1592 = vmatprep.subr.bf16.mxu0 %v1744_v16  ;;  %1697 = vmatprep.subr.bf16.mxu1 %v1744_v16 }
  0x24   : > { %1593 = vmatpush3.bf16.msra.mxu0 %v1745_v17  ;;  %1705 = vmatpush3.bf16.msra.mxu1 %v1745_v17 }
  0x27   : > { %730 = vmatmul.mubr.bf16.vlgmr.msra.gmra.mrb[0].mxu0 %v1746_v18  ;;  %794 = vmatmul.mubr.bf16.vlgmr.msra.gmra.mrb[0].mxu1 %v1749_v19 }
  0x28   : > { %737 = vmatprep.mubr.bf16.mxu0 %v1752_v20  ;;  %801 = vmatprep.mubr.bf16.mxu1 %v1754_v21 }
  0x2f   : > { %738 = vmatmul.mubr.bf16.gmra.mrb[4].mxu0 %v1756_v22  ;;  %802 = vmatmul.mubr.bf16.gmra.mrb[4].mxu1 %v1757_v23 }
  0x30   : > { %745 = vmatprep.mubr.bf16.mxu0 %v1758_v24  ;;  %809 = vmatprep.mubr.bf16.mxu1 %v1760_v25 }
  0x37   : > { %746 = vmatmul.mubr.bf16.gmra.mrb[8].mxu0 %v1762_v26  ;;  %810 = vmatmul.mubr.bf16.gmra.mrb[8].mxu1 %v1763_v27 }
  0x38   : > { %753 = vmatprep.mubr.bf16.mxu0 %v1764_v28  ;;  %817 = vmatprep.mubr.bf16.mxu1 %v1766_v29 }
  0x3f   : > { %754 = vmatmul.mubr.bf16.gmra.mrb[12].mxu0 %v1768_v30  ;;  %818 = vmatmul.mubr.bf16.gmra.mrb[12].mxu1 %v1769_v31 }
  0x40   : > { %761 = vmatprep.mubr.bf16.mxu0 %v1770_v32  ;;  %825 = vmatprep.mubr.bf16.mxu1 %v1772_v33 }
  0x47   : > { %762 = vmatmul.mubr.bf16.gmra.mrb[16].mxu0 %v1774_v34  ;;  %826 = vmatmul.mubr.bf16.gmra.mrb[16].mxu1 %v1775_v35 }
  0x48   : > { %769 = vmatprep.mubr.bf16.mxu0 %v1776_v36  ;;  %833 = vmatprep.mubr.bf16.mxu1 %v1778_v37 }
  0x4f   : > { %770 = vmatmul.mubr.bf16.gmra.mrb[20].mxu0 %v1780_v38  ;;  %834 = vmatmul.mubr.bf16.gmra.mrb[20].mxu1 %v1781_v39 }
  0x50   : > { %777 = vmatprep.mubr.bf16.mxu0 %v1782_v40  ;;  %841 = vmatprep.mubr.bf16.mxu1 %v1784_v41 }
  0x57   : > { %778 = vmatmul.mubr.bf16.gmra.mrb[24].mxu0 %v1786_v42  ;;  %842 = vmatmul.mubr.bf16.gmra.mrb[24].mxu1 %v1787_v43 }
  0x58   : > { %785 = vmatprep.mubr.bf16.mxu0 %v1788_v44  ;;  %849 = vmatprep.mubr.bf16.mxu1 %v1790_v45 }
  0x5f   : > { %786 = vmatmul.mubr.bf16.gmra.mrb[28].mxu0 %v1792_v46  ;;  %850 = vmatmul.mubr.bf16.gmra.mrb[28].mxu1 %v1793_v47 }
  0xfa   : > { %v1594_v48 = vpop.f32.mrb[0].mxu0  ;;  %v1642_v49 = vpop.f32.mrb[0].mxu1 }
  0xfb   : > { %v1595_v50 = vpop.f32.mrb[1].mxu0  ;;  %v1643_v52 = vpop.f32.mrb[1].mxu1 }
  0xfc   : > { %v1596_v53 = vadd.f32 %v1595_v50, %v1594_v48  ;;  %v1644_v54 = vadd.f32 %v1643_v52, %v1642_v49  ;;  %v1597_v55 = vpop.f32.mrb[2].mxu0  ;;  %v1645_v56 = vpop.f32.mrb[2].mxu1 }
  0xfd   : > { %v1598_v58 = vpop.f32.mrb[3].mxu0  ;;  %v1646_v59 = vpop.f32.mrb[3].mxu1 }
  0xfe   : > { %v964_v60 = vmul.f32 %v1596_v53, %v1952_v51  ;;  %v980_v61 = vmul.f32 %v1644_v54, %v1952_v51  ;;  %v1599_v62 = vadd.f32 %v1598_v58, %v1597_v55  ;;  %v1647_v63 = vadd.f32 %v1646_v59, %v1645_v56 }
 0x100   : > { %v1003_v0 = vadd.f32 %v1957_v57, %v964_v60  ;;  %v1019_v1 = vadd.f32 %v1957_v57, %v980_v61  ;;  %v965_v2 = vmul.f32 %v1599_v62, %v1952_v51  ;;  %v981_v3 = vmul.f32 %v1647_v63, %v1952_v51 }
 0x102   : > { %v1004_v4 = vadd.f32 %v1957_v57, %v965_v2  ;;  %v1020_v5 = vadd.f32 %v1957_v57, %v981_v3  ;;  %v1600_v6 = vpop.f32.mrb[4].mxu0  ;;  %v1648_v7 = vpop.f32.mrb[4].mxu1  ;;  %v1035_v8 = vmax.f32 %v1003_v0, 0.0  ;;  %v1051_v9 = vmax.f32 %v1019_v1, 0.0 }
 0x103   : > { %v1601_v10 = vpop.f32.mrb[5].mxu0  ;;  %v1649_v11 = vpop.f32.mrb[5].mxu1 }
 0x104   : > { %v1036_v12 = vmax.f32 %v1004_v4, 0.0  ;;  %v1052_v13 = vmax.f32 %v1020_v5, 0.0  ;;  %v1602_v14 = vadd.f32 %v1601_v10, %v1600_v6  ;;  %v1650_v15 = vadd.f32 %v1649_v11, %v1648_v7  ;;  %v1603_v16 = vpop.f32.mrb[6].mxu0  ;;  %v1651_v17 = vpop.f32.mrb[6].mxu1 }
 0x105   : > { %v1604_v18 = vpop.f32.mrb[7].mxu0  ;;  %v1652_v19 = vpop.f32.mrb[7].mxu1 }
 0x106   : > { %v1486_v20 = vpack.c.bf16 %v1036_v12, %v1035_v8  ;;  %v1526_v21 = vpack.c.bf16 %v1052_v13, %v1051_v9  ;;  %v966_v22 = vmul.f32 %v1602_v14, %v1952_v51  ;;  %v982_v23 = vmul.f32 %v1650_v15, %v1952_v51 }
 0x107   : > { %v1605_v24 = vadd.f32 %v1604_v18, %v1603_v16  ;;  %v1653_v25 = vadd.f32 %v1652_v19, %v1651_v17 }
 0x108   : > { %1487 = vst [vmem:[%s1971_s21] sm:$0xff] %v1486_v20   ;;  %1570 = vst [vmem:[%s1971_s21 + $0x40] sm:$0xff] %v1526_v21   ;;  %v1005_v26 = vadd.f32 %v1957_v57, %v966_v22  ;;  %v1021_v27 = vadd.f32 %v1957_v57, %v982_v23 }
 0x109   : > { %v967_v28 = vmul.f32 %v1605_v24, %v1952_v51  ;;  %v983_v29 = vmul.f32 %v1653_v25, %v1952_v51 }
 0x10a   : > { %v1606_v30 = vpop.f32.mrb[8].mxu0  ;;  %v1654_v31 = vpop.f32.mrb[8].mxu1  ;;  %v1037_v40 = vmax.f32 %v1005_v26, 0.0  ;;  %v1053_v41 = vmax.f32 %v1021_v27, 0.0 }
 0x10b   : > { %v1006_v32 = vadd.f32 %v1957_v57, %v967_v28  ;;  %v1022_v33 = vadd.f32 %v1957_v57, %v983_v29  ;;  %v1607_v34 = vpop.f32.mrb[9].mxu0  ;;  %v1655_v35 = vpop.f32.mrb[9].mxu1 }
 0x10c   : > { %v1608_v36 = vadd.f32 %v1607_v34, %v1606_v30  ;;  %v1656_v37 = vadd.f32 %v1655_v35, %v1654_v31  ;;  %v1609_v38 = vpop.f32.mrb[10].mxu0  ;;  %v1657_v39 = vpop.f32.mrb[10].mxu1 }
 0x10d   : > { %v1038_v42 = vmax.f32 %v1006_v32, 0.0  ;;  %v1054_v43 = vmax.f32 %v1022_v33, 0.0  ;;  %v1610_v44 = vpop.f32.mrb[11].mxu0  ;;  %v1658_v45 = vpop.f32.mrb[11].mxu1 }
 0x10e   : > { %v968_v46 = vmul.f32 %v1608_v36, %v1952_v51  ;;  %v984_v47 = vmul.f32 %v1656_v37, %v1952_v51  ;;  %v1611_v48 = vadd.f32 %v1610_v44, %v1609_v38  ;;  %v1659_v49 = vadd.f32 %v1658_v45, %v1657_v39 }
 0x10f   : > { %v1491_v50 = vpack.c.bf16 %v1038_v42, %v1037_v40  ;;  %v1531_v52 = vpack.c.bf16 %v1054_v43, %v1053_v41 }
 0x110   : > { %v1007_v53 = vadd.f32 %v1957_v57, %v968_v46  ;;  %v1023_v54 = vadd.f32 %v1957_v57, %v984_v47  ;;  %v969_v55 = vmul.f32 %v1611_v48, %v1952_v51  ;;  %v985_v56 = vmul.f32 %v1659_v49, %v1952_v51 }
 0x111   : > { %1563 = vst [vmem:[%s1971_s21 + $0x8] sm:$0xff] %v1491_v50   ;;  %1571 = vst [vmem:[%s1971_s21 + $0x48] sm:$0xff] %v1531_v52  }
 0x112   : > { %v1008_v58 = vadd.f32 %v1957_v57, %v969_v55  ;;  %v1024_v59 = vadd.f32 %v1957_v57, %v985_v56  ;;  %v1612_v60 = vpop.f32.mrb[12].mxu0  ;;  %v1660_v61 = vpop.f32.mrb[12].mxu1  ;;  %v1039_v62 = vmax.f32 %v1007_v53, 0.0  ;;  %v1055_v63 = vmax.f32 %v1023_v54, 0.0 }
 0x113   : > { %v1613_v0 = vpop.f32.mrb[13].mxu0  ;;  %v1661_v1 = vpop.f32.mrb[13].mxu1 }
 0x114   : > { %v1040_v2 = vmax.f32 %v1008_v58, 0.0  ;;  %v1056_v3 = vmax.f32 %v1024_v59, 0.0  ;;  %v1614_v4 = vadd.f32 %v1613_v0, %v1612_v60  ;;  %v1662_v5 = vadd.f32 %v1661_v1, %v1660_v61  ;;  %v1615_v6 = vpop.f32.mrb[14].mxu0  ;;  %v1663_v7 = vpop.f32.mrb[14].mxu1 }
 0x115   : > { %v1616_v8 = vpop.f32.mrb[15].mxu0  ;;  %v1664_v9 = vpop.f32.mrb[15].mxu1 }
 0x116   : > { %v1496_v10 = vpack.c.bf16 %v1040_v2, %v1039_v62  ;;  %v1536_v11 = vpack.c.bf16 %v1056_v3, %v1055_v63  ;;  %v970_v12 = vmul.f32 %v1614_v4, %v1952_v51  ;;  %v986_v13 = vmul.f32 %v1662_v5, %v1952_v51 }
 0x117   : > { %v1617_v14 = vadd.f32 %v1616_v8, %v1615_v6  ;;  %v1665_v15 = vadd.f32 %v1664_v9, %v1663_v7 }
 0x118   : > { %1564 = vst [vmem:[%s1971_s21 + $0x10] sm:$0xff] %v1496_v10   ;;  %1572 = vst [vmem:[%s1971_s21 + $0x50] sm:$0xff] %v1536_v11   ;;  %v1009_v16 = vadd.f32 %v1957_v57, %v970_v12  ;;  %v1025_v17 = vadd.f32 %v1957_v57, %v986_v13 }
 0x119   : > { %v971_v18 = vmul.f32 %v1617_v14, %v1952_v51  ;;  %v987_v19 = vmul.f32 %v1665_v15, %v1952_v51 }
 0x11a   : > { %v1618_v20 = vpop.f32.mrb[16].mxu0  ;;  %v1666_v21 = vpop.f32.mrb[16].mxu1  ;;  %v1041_v30 = vmax.f32 %v1009_v16, 0.0  ;;  %v1057_v31 = vmax.f32 %v1025_v17, 0.0 }
 0x11b   : > { %v1010_v22 = vadd.f32 %v1957_v57, %v971_v18  ;;  %v1026_v23 = vadd.f32 %v1957_v57, %v987_v19  ;;  %v1619_v24 = vpop.f32.mrb[17].mxu0  ;;  %v1667_v25 = vpop.f32.mrb[17].mxu1 }
 0x11c   : > { %v1620_v26 = vadd.f32 %v1619_v24, %v1618_v20  ;;  %v1668_v27 = vadd.f32 %v1667_v25, %v1666_v21  ;;  %v1621_v28 = vpop.f32.mrb[18].mxu0  ;;  %v1669_v29 = vpop.f32.mrb[18].mxu1 }
 0x11d   : > { %v1042_v32 = vmax.f32 %v1010_v22, 0.0  ;;  %v1058_v33 = vmax.f32 %v1026_v23, 0.0  ;;  %v1622_v34 = vpop.f32.mrb[19].mxu0  ;;  %v1670_v35 = vpop.f32.mrb[19].mxu1 }
 0x11e   : > { %v972_v36 = vmul.f32 %v1620_v26, %v1952_v51  ;;  %v988_v37 = vmul.f32 %v1668_v27, %v1952_v51  ;;  %v1623_v38 = vadd.f32 %v1622_v34, %v1621_v28  ;;  %v1671_v39 = vadd.f32 %v1670_v35, %v1669_v29 }
 0x11f   : > { %v1501_v40 = vpack.c.bf16 %v1042_v32, %v1041_v30  ;;  %v1541_v41 = vpack.c.bf16 %v1058_v33, %v1057_v31 }
 0x120   : > { %v1011_v42 = vadd.f32 %v1957_v57, %v972_v36  ;;  %v1027_v43 = vadd.f32 %v1957_v57, %v988_v37  ;;  %v973_v44 = vmul.f32 %v1623_v38, %v1952_v51  ;;  %v989_v45 = vmul.f32 %v1671_v39, %v1952_v51 }
 0x121   : > { %1565 = vst [vmem:[%s1971_s21 + $0x18] sm:$0xff] %v1501_v40   ;;  %1573 = vst [vmem:[%s1971_s21 + $0x58] sm:$0xff] %v1541_v41  }
 0x122   : > { %v1012_v46 = vadd.f32 %v1957_v57, %v973_v44  ;;  %v1028_v47 = vadd.f32 %v1957_v57, %v989_v45  ;;  %v1624_v48 = vpop.f32.mrb[20].mxu0  ;;  %v1672_v49 = vpop.f32.mrb[20].mxu1  ;;  %v1043_v50 = vmax.f32 %v1011_v42, 0.0  ;;  %v1059_v52 = vmax.f32 %v1027_v43, 0.0 }
 0x123   : > { %v1625_v53 = vpop.f32.mrb[21].mxu0  ;;  %v1673_v54 = vpop.f32.mrb[21].mxu1 }
 0x124   : > { %v1044_v55 = vmax.f32 %v1012_v46, 0.0  ;;  %v1060_v56 = vmax.f32 %v1028_v47, 0.0  ;;  %v1626_v58 = vadd.f32 %v1625_v53, %v1624_v48  ;;  %v1674_v59 = vadd.f32 %v1673_v54, %v1672_v49  ;;  %v1627_v60 = vpop.f32.mrb[22].mxu0  ;;  %v1675_v61 = vpop.f32.mrb[22].mxu1 }
 0x125   : > { %v1628_v62 = vpop.f32.mrb[23].mxu0  ;;  %v1676_v63 = vpop.f32.mrb[23].mxu1 }
 0x126   : > { %v1506_v0 = vpack.c.bf16 %v1044_v55, %v1043_v50  ;;  %v1546_v1 = vpack.c.bf16 %v1060_v56, %v1059_v52  ;;  %v974_v2 = vmul.f32 %v1626_v58, %v1952_v51  ;;  %v990_v3 = vmul.f32 %v1674_v59, %v1952_v51 }
 0x127   : > { %v1629_v4 = vadd.f32 %v1628_v62, %v1627_v60  ;;  %v1677_v5 = vadd.f32 %v1676_v63, %v1675_v61 }
 0x128   : > { %1566 = vst [vmem:[%s1971_s21 + $0x20] sm:$0xff] %v1506_v0   ;;  %1574 = vst [vmem:[%s1971_s21 + $0x60] sm:$0xff] %v1546_v1   ;;  %v1013_v6 = vadd.f32 %v1957_v57, %v974_v2  ;;  %v1029_v7 = vadd.f32 %v1957_v57, %v990_v3 }
 0x129   : > { %v975_v8 = vmul.f32 %v1629_v4, %v1952_v51  ;;  %v991_v9 = vmul.f32 %v1677_v5, %v1952_v51 }
 0x12a   : > { %v1630_v10 = vpop.f32.mrb[24].mxu0  ;;  %v1678_v11 = vpop.f32.mrb[24].mxu1  ;;  %v1045_v20 = vmax.f32 %v1013_v6, 0.0  ;;  %v1061_v21 = vmax.f32 %v1029_v7, 0.0 }
 0x12b   : > { %v1014_v12 = vadd.f32 %v1957_v57, %v975_v8  ;;  %v1030_v13 = vadd.f32 %v1957_v57, %v991_v9  ;;  %v1631_v14 = vpop.f32.mrb[25].mxu0  ;;  %v1679_v15 = vpop.f32.mrb[25].mxu1 }
 0x12c   : > { %v1632_v16 = vadd.f32 %v1631_v14, %v1630_v10  ;;  %v1680_v17 = vadd.f32 %v1679_v15, %v1678_v11  ;;  %v1633_v18 = vpop.f32.mrb[26].mxu0  ;;  %v1681_v19 = vpop.f32.mrb[26].mxu1 }
 0x12d   : > { %v1046_v22 = vmax.f32 %v1014_v12, 0.0  ;;  %v1062_v23 = vmax.f32 %v1030_v13, 0.0  ;;  %v1634_v24 = vpop.f32.mrb[27].mxu0  ;;  %v1682_v25 = vpop.f32.mrb[27].mxu1 }
 0x12e   : > { %v976_v26 = vmul.f32 %v1632_v16, %v1952_v51  ;;  %v992_v27 = vmul.f32 %v1680_v17, %v1952_v51  ;;  %v1635_v28 = vadd.f32 %v1634_v24, %v1633_v18  ;;  %v1683_v29 = vadd.f32 %v1682_v25, %v1681_v19 }
 0x12f   : > { %v1511_v30 = vpack.c.bf16 %v1046_v22, %v1045_v20  ;;  %v1551_v31 = vpack.c.bf16 %v1062_v23, %v1061_v21 }
 0x130   : > { %v1015_v32 = vadd.f32 %v1957_v57, %v976_v26  ;;  %v1031_v33 = vadd.f32 %v1957_v57, %v992_v27  ;;  %v977_v34 = vmul.f32 %v1635_v28, %v1952_v51  ;;  %v993_v35 = vmul.f32 %v1683_v29, %v1952_v51 }
 0x131   : > { %1567 = vst [vmem:[%s1971_s21 + $0x28] sm:$0xff] %v1511_v30   ;;  %1575 = vst [vmem:[%s1971_s21 + $0x68] sm:$0xff] %v1551_v31  }
 0x132   : > { %v1016_v36 = vadd.f32 %v1957_v57, %v977_v34  ;;  %v1032_v37 = vadd.f32 %v1957_v57, %v993_v35  ;;  %v1636_v38 = vpop.f32.mrb[28].mxu0  ;;  %v1684_v39 = vpop.f32.mrb[28].mxu1  ;;  %v1047_v40 = vmax.f32 %v1015_v32, 0.0  ;;  %v1063_v41 = vmax.f32 %v1031_v33, 0.0 }
 0x133   : > { %v1637_v42 = vpop.f32.mrb[29].mxu0  ;;  %v1685_v43 = vpop.f32.mrb[29].mxu1 }
 0x134   : > { %v1048_v44 = vmax.f32 %v1016_v36, 0.0  ;;  %v1064_v45 = vmax.f32 %v1032_v37, 0.0  ;;  %v1638_v46 = vadd.f32 %v1637_v42, %v1636_v38  ;;  %v1686_v47 = vadd.f32 %v1685_v43, %v1684_v39  ;;  %v1639_v48 = vpop.f32.mrb[30].mxu0  ;;  %v1687_v49 = vpop.f32.mrb[30].mxu1 }
 0x135   : > { %v1640_v50 = vpop.f32.mrb[31].mxu0  ;;  %v1688_v52 = vpop.f32.mrb[31].mxu1 }
 0x136   : > { %v1516_v53 = vpack.c.bf16 %v1048_v44, %v1047_v40  ;;  %v1556_v54 = vpack.c.bf16 %v1064_v45, %v1063_v41  ;;  %v978_v55 = vmul.f32 %v1638_v46, %v1952_v51  ;;  %v994_v56 = vmul.f32 %v1686_v47, %v1952_v51 }
 0x137   : > { %v1641_v58 = vadd.f32 %v1640_v50, %v1639_v48  ;;  %v1689_v59 = vadd.f32 %v1688_v52, %v1687_v49 }
 0x138   : > { %1568 = vst [vmem:[%s1971_s21 + $0x30] sm:$0xff] %v1516_v53   ;;  %1576 = vst [vmem:[%s1971_s21 + $0x70] sm:$0xff] %v1556_v54   ;;  %v1017_v60 = vadd.f32 %v1957_v57, %v978_v55  ;;  %v1033_v61 = vadd.f32 %v1957_v57, %v994_v56 }
 0x139   : > { %v979_v62 = vmul.f32 %v1641_v58, %v1952_v51  ;;  %v995_v63 = vmul.f32 %v1689_v59, %v1952_v51 }
 0x13a   : > { %v1049_v2 = vmax.f32 %v1017_v60, 0.0  ;;  %v1065_v3 = vmax.f32 %v1033_v61, 0.0 }
 0x13b   : > { %v1018_v0 = vadd.f32 %v1957_v57, %v979_v62  ;;  %v1034_v1 = vadd.f32 %v1957_v57, %v995_v63 }
 0x13d   : > { %v1050_v4 = vmax.f32 %v1018_v0, 0.0  ;;  %v1066_v5 = vmax.f32 %v1034_v1, 0.0 }
 0x13f   : > { %v1521_v6 = vpack.c.bf16 %v1050_v4, %v1049_v2  ;;  %v1561_v7 = vpack.c.bf16 %v1066_v5, %v1065_v3 }
 0x141   : > { %1569 = vst [vmem:[%s1971_s21 + $0x38] sm:$0xff] %v1521_v6   ;;  %1577 = vst [vmem:[%s1971_s21 + $0x78] sm:$0xff] %v1561_v7  }
 0x142 PF: > { %s14_s17 = sadd.s32 1, %s1816_s17   ;;  %s2059_s15 = smov %s1812_s16 }
 0x143   : > { %p11_p5 = scmp.ge.s32.totalorder %s14_s17, 4   ;;  %s2060_s16 = smov %s2062_s18 }
 0x145   :  { %13 = sbr.rel (!%p11_p5) target bundleno = 2 (0x2), region = 83 }

// kernel: generator_forward.38
= control target key start
LH: loop header
LB: loop body
LE: loop exit
PB: predicated region body
PF: predicated region fallthrough
CT: control target
= control target key end

     0   :  { %s1529_s1 = inlined_call_operand.vmem [shape: bf16[512,128], index: 1, kind: input, shape index: {}]   ;;  %s1530_s0 = inlined_call_operand.vmem [shape: bf16[128,512], index: 0, kind: input, shape index: {}]   ;;  %s1531_s2 = inlined_call_operand.vmem [shape: f32[1,128], index: 2, kind: input, shape index: {}]   ;;  %s1532_s3 = inlined_call_operand.vmem [shape: f32[1,128], index: 3, kind: input, shape index: {}]   ;;  %s1533_s4 = inlined_call_operand.vmem [shape: bf16[128,128], index: 4, kind: output, shape index: {}]  }
   0x1   :  { %v1166_v0 = vld [vmem:[%s1529_s1 + $0x40] sm:$0xff]   ;;  %v1170_v4 = vld [vmem:[%s1529_s1 + $0x48] sm:$0xff]   ;;  %v1174_v8 = vld [vmem:[%s1529_s1 + $0x50] sm:$0xff]  }
   0x2   :  { %v1167_v1 = vld [vmem:[%s1529_s1 + $0xc0] sm:$0xff]   ;;  %1038 = vmatprep.subr.bf16.mxu0 %v1166_v0  ;;  %v1171_v5 = vld [vmem:[%s1529_s1 + $0xc8] sm:$0xff]   ;;  %v1175_v9 = vld [vmem:[%s1529_s1 + $0xd0] sm:$0xff]  }
   0x3   :  { %v1168_v2 = vld [vmem:[%s1529_s1] sm:$0xff]   ;;  %1102 = vmatprep.subr.bf16.mxu1 %v1167_v1  ;;  %v1172_v6 = vld [vmem:[%s1529_s1 + $0x8] sm:$0xff]   ;;  %v1176_v10 = vld [vmem:[%s1529_s1 + $0x10] sm:$0xff]  }
   0x4   :  { %v1169_v3 = vld [vmem:[%s1529_s1 + $0x80] sm:$0xff]   ;;  %1039 = vmatpush3.bf16.msra.mxu0 %v1168_v2  ;;  %v1173_v7 = vld [vmem:[%s1529_s1 + $0x88] sm:$0xff]   ;;  %v1177_v11 = vld [vmem:[%s1529_s1 + $0x90] sm:$0xff]  }
   0x5   :  { %1103 = vmatpush3.bf16.msra.mxu1 %v1169_v3  ;;  %1040 = vmatprep.subr.bf16.mxu0 %v1170_v4  ;;  %v1178_v12 = vld [vmem:[%s1529_s1 + $0x58] sm:$0xff]   ;;  %v1182_v16 = vld [vmem:[%s1529_s1 + $0x60] sm:$0xff]   ;;  %v1186_v20 = vld [vmem:[%s1529_s1 + $0x68] sm:$0xff]  }
   0x6   :  { %1104 = vmatprep.subr.bf16.mxu1 %v1171_v5  ;;  %v1179_v13 = vld [vmem:[%s1529_s1 + $0xd8] sm:$0xff]   ;;  %v1183_v17 = vld [vmem:[%s1529_s1 + $0xe0] sm:$0xff]   ;;  %v1187_v21 = vld [vmem:[%s1529_s1 + $0xe8] sm:$0xff]  }
   0x7   :  { %v1180_v14 = vld [vmem:[%s1529_s1 + $0x18] sm:$0xff]   ;;  %v1184_v18 = vld [vmem:[%s1529_s1 + $0x20] sm:$0xff]   ;;  %v1188_v22 = vld [vmem:[%s1529_s1 + $0x28] sm:$0xff]  }
   0x8   :  { %1041 = vmatpush3.bf16.msra.mxu0 %v1172_v6  ;;  %v1181_v15 = vld [vmem:[%s1529_s1 + $0x98] sm:$0xff]   ;;  %v1185_v19 = vld [vmem:[%s1529_s1 + $0xa0] sm:$0xff]   ;;  %v1189_v23 = vld [vmem:[%s1529_s1 + $0xa8] sm:$0xff]  }
   0x9   :  { %1105 = vmatpush3.bf16.msra.mxu1 %v1173_v7  ;;  %1042 = vmatprep.subr.bf16.mxu0 %v1174_v8  ;;  %v1190_v24 = vld [vmem:[%s1529_s1 + $0x70] sm:$0xff]   ;;  %v1194_v28 = vld [vmem:[%s1529_s1 + $0x78] sm:$0xff]  }
   0xa   :  { %1106 = vmatprep.subr.bf16.mxu1 %v1175_v9  ;;  %v1191_v25 = vld [vmem:[%s1529_s1 + $0xf0] sm:$0xff]   ;;  %v1195_v29 = vld [vmem:[%s1529_s1 + $0xf8] sm:$0xff]   ;;  %v1466_v9 = vld [vmem:[%s1531_s2] ss:$0 sm:$0xff] }
   0xb   :  { %v1192_v26 = vld [vmem:[%s1529_s1 + $0x30] sm:$0xff]   ;;  %v1196_v30 = vld [vmem:[%s1529_s1 + $0x38] sm:$0xff]  }
   0xc   :  { %1043 = vmatpush3.bf16.msra.mxu0 %v1176_v10  ;;  %v1193_v27 = vld [vmem:[%s1529_s1 + $0xb0] sm:$0xff]   ;;  %v1197_v31 = vld [vmem:[%s1529_s1 + $0xb8] sm:$0xff]  }
   0xd   :  { %1107 = vmatpush3.bf16.msra.mxu1 %v1177_v11  ;;  %1044 = vmatprep.subr.bf16.mxu0 %v1178_v12  ;;  %v1198_v32 = vld [vmem:[%s1530_s0] ss:$16 sps:$4 sm:$0xff]   ;;  %v1200_v33 = vld [vmem:[%s1530_s0 + $0x4] ss:$16 sps:$4 sm:$0xff]   ;;  %v1201_v34 = vld [vmem:[%s1530_s0 + $0x8] ss:$16 sps:$4 sm:$0xff]  }
   0xe   :  { %1108 = vmatprep.subr.bf16.mxu1 %v1179_v13  ;;  %v1203_v35 = vld [vmem:[%s1530_s0 + $0xc] ss:$16 sps:$4 sm:$0xff]   ;;  %534 = vmatprep.mubr.bf16.mxu0 %v1200_v33  ;;  %v1204_v36 = vld [vmem:[%s1530_s0 + $0x24] ss:$16 sps:$4 sm:$0xff]   ;;  %v1208_v38 = vld [vmem:[%s1530_s0 + $0x20] ss:$16 sps:$4 sm:$0xff]  }
   0xf   :  { %631 = vmatprep.mubr.bf16.mxu1 %v1203_v35  ;;  %v1206_v37 = vld [vmem:[%s1530_s0 + $0x2c] ss:$16 sps:$4 sm:$0xff]   ;;  %v1209_v39 = vld [vmem:[%s1530_s0 + $0x28] ss:$16 sps:$4 sm:$0xff]   ;;  %v1210_v40 = vld [vmem:[%s1530_s0 + $0x44] ss:$16 sps:$4 sm:$0xff]  }
  0x10   :  { %1045 = vmatpush3.bf16.msra.mxu0 %v1180_v14  ;;  %v1212_v41 = vld [vmem:[%s1530_s0 + $0x4c] ss:$16 sps:$4 sm:$0xff]   ;;  %v1214_v42 = vld [vmem:[%s1530_s0 + $0x40] ss:$16 sps:$4 sm:$0xff]   ;;  %v1215_v43 = vld [vmem:[%s1530_s0 + $0x48] ss:$16 sps:$4 sm:$0xff]  }
  0x11   :  { %1109 = vmatpush3.bf16.msra.mxu1 %v1181_v15  ;;  %1046 = vmatprep.subr.bf16.mxu0 %v1182_v16  ;;  %v1216_v44 = vld [vmem:[%s1530_s0 + $0x64] ss:$16 sps:$4 sm:$0xff]   ;;  %v1218_v45 = vld [vmem:[%s1530_s0 + $0x6c] ss:$16 sps:$4 sm:$0xff]   ;;  %v1220_v46 = vld [vmem:[%s1530_s0 + $0x60] ss:$16 sps:$4 sm:$0xff]  }
  0x12   :  { %1110 = vmatprep.subr.bf16.mxu1 %v1183_v17  ;;  %v1221_v47 = vld [vmem:[%s1530_s0 + $0x68] ss:$16 sps:$4 sm:$0xff]   ;;  %v1222_v48 = vld [vmem:[%s1530_s0 + $0x84] ss:$16 sps:$4 sm:$0xff]   ;;  %v1224_v49 = vld [vmem:[%s1530_s0 + $0x8c] ss:$16 sps:$4 sm:$0xff]  }
  0x13   :  { %v1226_v50 = vld [vmem:[%s1530_s0 + $0x80] ss:$16 sps:$4 sm:$0xff]   ;;  %v1227_v51 = vld [vmem:[%s1530_s0 + $0x88] ss:$16 sps:$4 sm:$0xff]   ;;  %v1228_v52 = vld [vmem:[%s1530_s0 + $0xa4] ss:$16 sps:$4 sm:$0xff]  }
  0x14   :  { %1047 = vmatpush3.bf16.msra.mxu0 %v1184_v18  ;;  %v1230_v53 = vld [vmem:[%s1530_s0 + $0xac] ss:$16 sps:$4 sm:$0xff]   ;;  %v1232_v54 = vld [vmem:[%s1530_s0 + $0xa0] ss:$16 sps:$4 sm:$0xff]   ;;  %v1233_v55 = vld [vmem:[%s1530_s0 + $0xa8] ss:$16 sps:$4 sm:$0xff]  }
  0x15   :  { %1111 = vmatpush3.bf16.msra.mxu1 %v1185_v19  ;;  %1048 = vmatprep.subr.bf16.mxu0 %v1186_v20  ;;  %v1234_v56 = vld [vmem:[%s1530_s0 + $0xc4] ss:$16 sps:$4 sm:$0xff]   ;;  %v1236_v57 = vld [vmem:[%s1530_s0 + $0xcc] ss:$16 sps:$4 sm:$0xff]   ;;  %v1238_v58 = vld [vmem:[%s1530_s0 + $0xc0] ss:$16 sps:$4 sm:$0xff]  }
  0x16   :  { %1112 = vmatprep.subr.bf16.mxu1 %v1187_v21  ;;  %v1239_v59 = vld [vmem:[%s1530_s0 + $0xc8] ss:$16 sps:$4 sm:$0xff]   ;;  %v1240_v60 = vld [vmem:[%s1530_s0 + $0xe4] ss:$16 sps:$4 sm:$0xff]   ;;  %v1242_v61 = vld [vmem:[%s1530_s0 + $0xec] ss:$16 sps:$4 sm:$0xff]  }
  0x17   :  { %v1244_v62 = vld [vmem:[%s1530_s0 + $0xe0] ss:$16 sps:$4 sm:$0xff]   ;;  %v1245_v63 = vld [vmem:[%s1530_s0 + $0xe8] ss:$16 sps:$4 sm:$0xff]  }
  0x18   :  { %1049 = vmatpush3.bf16.msra.mxu0 %v1188_v22  ;;  %v1471_v14 = vld [vmem:[%s1532_s3] ss:$0 sm:$0xff] }
  0x19   :  { %1113 = vmatpush3.bf16.msra.mxu1 %v1189_v23  ;;  %1050 = vmatprep.subr.bf16.mxu0 %v1190_v24 }
  0x1a   :  { %1114 = vmatprep.subr.bf16.mxu1 %v1191_v25 }
  0x1c   :  { %1051 = vmatpush3.bf16.msra.mxu0 %v1192_v26 }
  0x1d   :  { %1115 = vmatpush3.bf16.msra.mxu1 %v1193_v27  ;;  %1052 = vmatprep.subr.bf16.mxu0 %v1194_v28 }
  0x1e   :  { %1116 = vmatprep.subr.bf16.mxu1 %v1195_v29 }
  0x20   :  { %1053 = vmatpush3.bf16.msra.mxu0 %v1196_v30 }
  0x21   :  { %1117 = vmatpush3.bf16.msra.mxu1 %v1197_v31 }
  0x23   :  { %535 = vmatmul.mubr.bf16.vlgmr.msra.gmra.mrb[0].mxu0 %v1198_v32 }
  0x24   :  { %632 = vmatmul.mubr.bf16.vlgmr.msra.gmra.mrb[0].mxu1 %v1201_v34  ;;  %542 = vmatprep.mubr.bf16.mxu0 %v1204_v36 }
  0x25   :  { %639 = vmatprep.mubr.bf16.mxu1 %v1206_v37 }
  0x2b   :  { %543 = vmatmul.mubr.bf16.gmra.mrb[4].mxu0 %v1208_v38 }
  0x2c   :  { %640 = vmatmul.mubr.bf16.gmra.mrb[4].mxu1 %v1209_v39  ;;  %550 = vmatprep.mubr.bf16.mxu0 %v1210_v40 }
  0x2d   :  { %647 = vmatprep.mubr.bf16.mxu1 %v1212_v41 }
  0x33   :  { %551 = vmatmul.mubr.bf16.gmra.mrb[8].mxu0 %v1214_v42 }
  0x34   :  { %648 = vmatmul.mubr.bf16.gmra.mrb[8].mxu1 %v1215_v43  ;;  %558 = vmatprep.mubr.bf16.mxu0 %v1216_v44 }
  0x35   :  { %655 = vmatprep.mubr.bf16.mxu1 %v1218_v45 }
  0x3b   :  { %559 = vmatmul.mubr.bf16.gmra.mrb[12].mxu0 %v1220_v46 }
  0x3c   :  { %656 = vmatmul.mubr.bf16.gmra.mrb[12].mxu1 %v1221_v47  ;;  %566 = vmatprep.mubr.bf16.mxu0 %v1222_v48 }
  0x3d   :  { %663 = vmatprep.mubr.bf16.mxu1 %v1224_v49 }
  0x43   :  { %567 = vmatmul.mubr.bf16.gmra.mrb[16].mxu0 %v1226_v50 }
  0x44   :  { %664 = vmatmul.mubr.bf16.gmra.mrb[16].mxu1 %v1227_v51  ;;  %574 = vmatprep.mubr.bf16.mxu0 %v1228_v52 }
  0x45   :  { %671 = vmatprep.mubr.bf16.mxu1 %v1230_v53 }
  0x4b   :  { %575 = vmatmul.mubr.bf16.gmra.mrb[20].mxu0 %v1232_v54 }
  0x4c   :  { %672 = vmatmul.mubr.bf16.gmra.mrb[20].mxu1 %v1233_v55  ;;  %582 = vmatprep.mubr.bf16.mxu0 %v1234_v56 }
  0x4d   :  { %679 = vmatprep.mubr.bf16.mxu1 %v1236_v57 }
  0x53   :  { %583 = vmatmul.mubr.bf16.gmra.mrb[24].mxu0 %v1238_v58 }
  0x54   :  { %680 = vmatmul.mubr.bf16.gmra.mrb[24].mxu1 %v1239_v59  ;;  %590 = vmatprep.mubr.bf16.mxu0 %v1240_v60 }
  0x55   :  { %687 = vmatprep.mubr.bf16.mxu1 %v1242_v61 }
  0x5b   :  { %591 = vmatmul.mubr.bf16.gmra.mrb[28].mxu0 %v1244_v62 }
  0x5c   :  { %688 = vmatmul.mubr.bf16.gmra.mrb[28].mxu1 %v1245_v63 }
  0xf6   :  { %v1054_v0 = vpop.f32.mrb[0].mxu0 }
  0xf7   :  { %v1118_v1 = vpop.f32.mrb[0].mxu1  ;;  %v1055_v2 = vpop.f32.mrb[1].mxu0 }
  0xf8   :  { %v1056_v3 = vadd.f32 %v1055_v2, %v1054_v0  ;;  %v1119_v4 = vpop.f32.mrb[1].mxu1  ;;  %v1057_v5 = vpop.f32.mrb[2].mxu0 }
  0xf9   :  { %v1120_v6 = vadd.f32 %v1119_v4, %v1118_v1  ;;  %v1121_v7 = vpop.f32.mrb[2].mxu1  ;;  %v1058_v8 = vpop.f32.mrb[3].mxu0 }
  0xfa   :  { %v1059_v10 = vadd.f32 %v1058_v8, %v1057_v5  ;;  %v1122_v11 = vpop.f32.mrb[3].mxu1 }
  0xfb   :  { %v634_v12 = vadd.f32 %v1120_v6, %v1056_v3  ;;  %v1123_v13 = vadd.f32 %v1122_v11, %v1121_v7 }
  0xfd   :  { %v754_v15 = vmul.f32 %v1466_v9, %v634_v12  ;;  %v637_v16 = vadd.f32 %v1123_v13, %v1059_v10 }
  0xfe   :  { %v1060_v17 = vpop.f32.mrb[4].mxu0 }
  0xff   :  { %v777_v18 = vadd.f32 %v1471_v14, %v754_v15  ;;  %v755_v19 = vmul.f32 %v1466_v9, %v637_v16  ;;  %v1124_v20 = vpop.f32.mrb[4].mxu1  ;;  %v1061_v21 = vpop.f32.mrb[5].mxu0 }
 0x100   :  { %v1062_v22 = vadd.f32 %v1061_v21, %v1060_v17  ;;  %v1125_v23 = vpop.f32.mrb[5].mxu1  ;;  %v1063_v24 = vpop.f32.mrb[6].mxu0 }
 0x101   :  { %v778_v25 = vadd.f32 %v1471_v14, %v755_v19  ;;  %v1126_v26 = vadd.f32 %v1125_v23, %v1124_v20  ;;  %v1127_v27 = vpop.f32.mrb[6].mxu1  ;;  %v1064_v28 = vpop.f32.mrb[7].mxu0  ;;  %v793_v31 = vmax.f32 %v777_v18, 0.0 }
 0x102   :  { %v1065_v29 = vadd.f32 %v1064_v28, %v1063_v24  ;;  %v1128_v30 = vpop.f32.mrb[7].mxu1 }
 0x103   :  { %v794_v32 = vmax.f32 %v778_v25, 0.0  ;;  %v642_v33 = vadd.f32 %v1126_v26, %v1062_v22  ;;  %v1129_v34 = vadd.f32 %v1128_v30, %v1127_v27 }
 0x105   :  { %v994_v35 = vpack.c.bf16 %v794_v32, %v793_v31  ;;  %v756_v36 = vmul.f32 %v1466_v9, %v642_v33  ;;  %v645_v37 = vadd.f32 %v1129_v34, %v1065_v29 }
 0x106   :  { %v1066_v38 = vpop.f32.mrb[8].mxu0 }
 0x107   :  { %995 = vst [vmem:[%s1533_s4] sm:$0xff] %v994_v35   ;;  %v779_v39 = vadd.f32 %v1471_v14, %v756_v36  ;;  %v757_v40 = vmul.f32 %v1466_v9, %v645_v37  ;;  %v1130_v41 = vpop.f32.mrb[8].mxu1  ;;  %v1067_v42 = vpop.f32.mrb[9].mxu0 }
 0x108   :  { %v1068_v43 = vadd.f32 %v1067_v42, %v1066_v38  ;;  %v1131_v44 = vpop.f32.mrb[9].mxu1  ;;  %v1069_v45 = vpop.f32.mrb[10].mxu0 }
 0x109   :  { %v780_v46 = vadd.f32 %v1471_v14, %v757_v40  ;;  %v1132_v47 = vadd.f32 %v1131_v44, %v1130_v41  ;;  %v1133_v48 = vpop.f32.mrb[10].mxu1  ;;  %v1070_v49 = vpop.f32.mrb[11].mxu0  ;;  %v795_v52 = vmax.f32 %v779_v39, 0.0 }
 0x10a   :  { %v1071_v50 = vadd.f32 %v1070_v49, %v1069_v45  ;;  %v1134_v51 = vpop.f32.mrb[11].mxu1 }
 0x10b   :  { %v796_v53 = vmax.f32 %v780_v46, 0.0  ;;  %v650_v54 = vadd.f32 %v1132_v47, %v1068_v43  ;;  %v1135_v55 = vadd.f32 %v1134_v51, %v1133_v48 }
 0x10d   :  { %v999_v56 = vpack.c.bf16 %v796_v53, %v795_v52  ;;  %v758_v57 = vmul.f32 %v1466_v9, %v650_v54  ;;  %v653_v58 = vadd.f32 %v1135_v55, %v1071_v50 }
 0x10e   :  { %v1072_v59 = vpop.f32.mrb[12].mxu0 }
 0x10f   :  { %1031 = vst [vmem:[%s1533_s4 + $0x8] sm:$0xff] %v999_v56   ;;  %v781_v60 = vadd.f32 %v1471_v14, %v758_v57  ;;  %v759_v61 = vmul.f32 %v1466_v9, %v653_v58  ;;  %v1136_v62 = vpop.f32.mrb[12].mxu1  ;;  %v1073_v63 = vpop.f32.mrb[13].mxu0 }
 0x110   :  { %v1074_v0 = vadd.f32 %v1073_v63, %v1072_v59  ;;  %v1137_v1 = vpop.f32.mrb[13].mxu1  ;;  %v1075_v2 = vpop.f32.mrb[14].mxu0 }
 0x111   :  { %v782_v3 = vadd.f32 %v1471_v14, %v759_v61  ;;  %v1138_v4 = vadd.f32 %v1137_v1, %v1136_v62  ;;  %v1139_v5 = vpop.f32.mrb[14].mxu1  ;;  %v1076_v6 = vpop.f32.mrb[15].mxu0  ;;  %v797_v10 = vmax.f32 %v781_v60, 0.0 }
 0x112   :  { %v1077_v7 = vadd.f32 %v1076_v6, %v1075_v2  ;;  %v1140_v8 = vpop.f32.mrb[15].mxu1 }
 0x113   :  { %v798_v11 = vmax.f32 %v782_v3, 0.0  ;;  %v658_v12 = vadd.f32 %v1138_v4, %v1074_v0  ;;  %v1141_v13 = vadd.f32 %v1140_v8, %v1139_v5 }
 0x115   :  { %v1004_v15 = vpack.c.bf16 %v798_v11, %v797_v10  ;;  %v760_v16 = vmul.f32 %v1466_v9, %v658_v12  ;;  %v661_v17 = vadd.f32 %v1141_v13, %v1077_v7 }
 0x116   :  { %v1078_v18 = vpop.f32.mrb[16].mxu0 }
 0x117   :  { %1032 = vst [vmem:[%s1533_s4 + $0x10] sm:$0xff] %v1004_v15   ;;  %v783_v19 = vadd.f32 %v1471_v14, %v760_v16  ;;  %v761_v20 = vmul.f32 %v1466_v9, %v661_v17  ;;  %v1142_v21 = vpop.f32.mrb[16].mxu1  ;;  %v1079_v22 = vpop.f32.mrb[17].mxu0 }
 0x118   :  { %v1080_v23 = vadd.f32 %v1079_v22, %v1078_v18  ;;  %v1143_v24 = vpop.f32.mrb[17].mxu1  ;;  %v1081_v25 = vpop.f32.mrb[18].mxu0 }
 0x119   :  { %v784_v26 = vadd.f32 %v1471_v14, %v761_v20  ;;  %v1144_v27 = vadd.f32 %v1143_v24, %v1142_v21  ;;  %v1145_v28 = vpop.f32.mrb[18].mxu1  ;;  %v1082_v29 = vpop.f32.mrb[19].mxu0  ;;  %v799_v32 = vmax.f32 %v783_v19, 0.0 }
 0x11a   :  { %v1083_v30 = vadd.f32 %v1082_v29, %v1081_v25  ;;  %v1146_v31 = vpop.f32.mrb[19].mxu1 }
 0x11b   :  { %v800_v33 = vmax.f32 %v784_v26, 0.0  ;;  %v666_v34 = vadd.f32 %v1144_v27, %v1080_v23  ;;  %v1147_v35 = vadd.f32 %v1146_v31, %v1145_v28 }
 0x11d   :  { %v1009_v36 = vpack.c.bf16 %v800_v33, %v799_v32  ;;  %v762_v37 = vmul.f32 %v1466_v9, %v666_v34  ;;  %v669_v38 = vadd.f32 %v1147_v35, %v1083_v30 }
 0x11e   :  { %v1084_v39 = vpop.f32.mrb[20].mxu0 }
 0x11f   :  { %1033 = vst [vmem:[%s1533_s4 + $0x18] sm:$0xff] %v1009_v36   ;;  %v785_v40 = vadd.f32 %v1471_v14, %v762_v37  ;;  %v763_v41 = vmul.f32 %v1466_v9, %v669_v38  ;;  %v1148_v42 = vpop.f32.mrb[20].mxu1  ;;  %v1085_v43 = vpop.f32.mrb[21].mxu0 }
 0x120   :  { %v1086_v44 = vadd.f32 %v1085_v43, %v1084_v39  ;;  %v1149_v45 = vpop.f32.mrb[21].mxu1  ;;  %v1087_v46 = vpop.f32.mrb[22].mxu0 }
 0x121   :  { %v786_v47 = vadd.f32 %v1471_v14, %v763_v41  ;;  %v1150_v48 = vadd.f32 %v1149_v45, %v1148_v42  ;;  %v1151_v49 = vpop.f32.mrb[22].mxu1  ;;  %v1088_v50 = vpop.f32.mrb[23].mxu0  ;;  %v801_v53 = vmax.f32 %v785_v40, 0.0 }
 0x122   :  { %v1089_v51 = vadd.f32 %v1088_v50, %v1087_v46  ;;  %v1152_v52 = vpop.f32.mrb[23].mxu1 }
 0x123   :  { %v802_v54 = vmax.f32 %v786_v47, 0.0  ;;  %v674_v55 = vadd.f32 %v1150_v48, %v1086_v44  ;;  %v1153_v56 = vadd.f32 %v1152_v52, %v1151_v49 }
 0x125   :  { %v1014_v57 = vpack.c.bf16 %v802_v54, %v801_v53  ;;  %v764_v58 = vmul.f32 %v1466_v9, %v674_v55  ;;  %v677_v59 = vadd.f32 %v1153_v56, %v1089_v51 }
 0x126   :  { %v1090_v60 = vpop.f32.mrb[24].mxu0 }
 0x127   :  { %1034 = vst [vmem:[%s1533_s4 + $0x20] sm:$0xff] %v1014_v57   ;;  %v787_v61 = vadd.f32 %v1471_v14, %v764_v58  ;;  %v765_v62 = vmul.f32 %v1466_v9, %v677_v59  ;;  %v1154_v63 = vpop.f32.mrb[24].mxu1  ;;  %v1091_v0 = vpop.f32.mrb[25].mxu0 }
 0x128   :  { %v1092_v1 = vadd.f32 %v1091_v0, %v1090_v60  ;;  %v1155_v2 = vpop.f32.mrb[25].mxu1  ;;  %v1093_v3 = vpop.f32.mrb[26].mxu0 }
 0x129   :  { %v788_v4 = vadd.f32 %v1471_v14, %v765_v62  ;;  %v1156_v5 = vadd.f32 %v1155_v2, %v1154_v63  ;;  %v1157_v6 = vpop.f32.mrb[26].mxu1  ;;  %v1094_v7 = vpop.f32.mrb[27].mxu0  ;;  %v803_v11 = vmax.f32 %v787_v61, 0.0 }
 0x12a   :  { %v1095_v8 = vadd.f32 %v1094_v7, %v1093_v3  ;;  %v1158_v10 = vpop.f32.mrb[27].mxu1 }
 0x12b   :  { %v804_v12 = vmax.f32 %v788_v4, 0.0  ;;  %v682_v13 = vadd.f32 %v1156_v5, %v1092_v1  ;;  %v1159_v15 = vadd.f32 %v1158_v10, %v1157_v6 }
 0x12d   :  { %v1019_v16 = vpack.c.bf16 %v804_v12, %v803_v11  ;;  %v766_v17 = vmul.f32 %v1466_v9, %v682_v13  ;;  %v685_v18 = vadd.f32 %v1159_v15, %v1095_v8 }
 0x12e   :  { %v1096_v19 = vpop.f32.mrb[28].mxu0 }
 0x12f   :  { %1035 = vst [vmem:[%s1533_s4 + $0x28] sm:$0xff] %v1019_v16   ;;  %v789_v20 = vadd.f32 %v1471_v14, %v766_v17  ;;  %v767_v21 = vmul.f32 %v1466_v9, %v685_v18  ;;  %v1160_v22 = vpop.f32.mrb[28].mxu1  ;;  %v1097_v23 = vpop.f32.mrb[29].mxu0 }
 0x130   :  { %v1098_v24 = vadd.f32 %v1097_v23, %v1096_v19  ;;  %v1161_v25 = vpop.f32.mrb[29].mxu1  ;;  %v1099_v26 = vpop.f32.mrb[30].mxu0 }
 0x131   :  { %v790_v27 = vadd.f32 %v1471_v14, %v767_v21  ;;  %v1162_v28 = vadd.f32 %v1161_v25, %v1160_v22  ;;  %v1163_v29 = vpop.f32.mrb[30].mxu1  ;;  %v1100_v30 = vpop.f32.mrb[31].mxu0  ;;  %v805_v33 = vmax.f32 %v789_v20, 0.0 }
 0x132   :  { %v1101_v31 = vadd.f32 %v1100_v30, %v1099_v26  ;;  %v1164_v32 = vpop.f32.mrb[31].mxu1 }
 0x133   :  { %v806_v34 = vmax.f32 %v790_v27, 0.0  ;;  %v690_v35 = vadd.f32 %v1162_v28, %v1098_v24  ;;  %v1165_v36 = vadd.f32 %v1164_v32, %v1163_v29 }
 0x135   :  { %v1024_v37 = vpack.c.bf16 %v806_v34, %v805_v33  ;;  %v768_v38 = vmul.f32 %v1466_v9, %v690_v35  ;;  %v693_v39 = vadd.f32 %v1165_v36, %v1101_v31 }
 0x137   :  { %1036 = vst [vmem:[%s1533_s4 + $0x30] sm:$0xff] %v1024_v37   ;;  %v791_v40 = vadd.f32 %v1471_v14, %v768_v38  ;;  %v769_v41 = vmul.f32 %v1466_v9, %v693_v39 }
 0x139   :  { %v792_v42 = vadd.f32 %v1471_v14, %v769_v41  ;;  %v807_v43 = vmax.f32 %v791_v40, 0.0 }
 0x13b   :  { %v808_v44 = vmax.f32 %v792_v42, 0.0 }
 0x13d   :  { %v1029_v45 = vpack.c.bf16 %v808_v44, %v807_v43 }
 0x13f   :  { %1037 = vst [vmem:[%s1533_s4 + $0x38] sm:$0xff] %v1029_v45  }

// kernel: generator_forward.39
= control target key start
LH: loop header
LB: loop body
LE: loop exit
PB: predicated region body
PF: predicated region fallthrough
CT: control target
= control target key end

     0   :  { %s2587_s1 = inlined_call_operand.vmem [shape: bf16[1024,128], index: 1, kind: input, shape index: {}]   ;;  %s2588_s0 = inlined_call_operand.vmem [shape: bf16[128,1024], index: 0, kind: input, shape index: {}]   ;;  %s2589_s2 = inlined_call_operand.vmem [shape: f32[1,128], index: 2, kind: input, shape index: {}]   ;;  %s2590_s3 = inlined_call_operand.vmem [shape: f32[1,128], index: 3, kind: input, shape index: {}]   ;;  %s2591_s4 = inlined_call_operand.vmem [shape: bf16[128,128], index: 4, kind: output, shape index: {}]  }
   0x1   :  { %v2000_v0 = vld [vmem:[%s2587_s1 + $0x40] sm:$0xff]   ;;  %v2004_v4 = vld [vmem:[%s2587_s1 + $0x48] sm:$0xff]   ;;  %v2008_v8 = vld [vmem:[%s2587_s1 + $0x50] sm:$0xff]  }
   0x2   :  { %v2001_v1 = vld [vmem:[%s2587_s1 + $0xc0] sm:$0xff]   ;;  %1744 = vmatprep.subr.bf16.mxu0 %v2000_v0  ;;  %v2005_v5 = vld [vmem:[%s2587_s1 + $0xc8] sm:$0xff]   ;;  %v2009_v9 = vld [vmem:[%s2587_s1 + $0xd0] sm:$0xff]  }
   0x3   :  { %v2002_v2 = vld [vmem:[%s2587_s1] sm:$0xff]   ;;  %1808 = vmatprep.subr.bf16.mxu1 %v2001_v1  ;;  %v2006_v6 = vld [vmem:[%s2587_s1 + $0x8] sm:$0xff]   ;;  %v2010_v10 = vld [vmem:[%s2587_s1 + $0x10] sm:$0xff]  }
   0x4   :  { %v2003_v3 = vld [vmem:[%s2587_s1 + $0x80] sm:$0xff]   ;;  %1745 = vmatpush3.bf16.msra.mxu0 %v2002_v2  ;;  %v2007_v7 = vld [vmem:[%s2587_s1 + $0x88] sm:$0xff]   ;;  %v2011_v11 = vld [vmem:[%s2587_s1 + $0x90] sm:$0xff]  }
   0x5   :  { %1809 = vmatpush3.bf16.msra.mxu1 %v2003_v3  ;;  %1746 = vmatprep.subr.bf16.mxu0 %v2004_v4  ;;  %v2012_v12 = vld [vmem:[%s2587_s1 + $0x58] sm:$0xff]   ;;  %v2016_v16 = vld [vmem:[%s2587_s1 + $0x60] sm:$0xff]   ;;  %v2020_v20 = vld [vmem:[%s2587_s1 + $0x68] sm:$0xff]  }
   0x6   :  { %1810 = vmatprep.subr.bf16.mxu1 %v2005_v5  ;;  %v2013_v13 = vld [vmem:[%s2587_s1 + $0xd8] sm:$0xff]   ;;  %v2017_v17 = vld [vmem:[%s2587_s1 + $0xe0] sm:$0xff]   ;;  %v2021_v21 = vld [vmem:[%s2587_s1 + $0xe8] sm:$0xff]  }
   0x7   :  { %v2014_v14 = vld [vmem:[%s2587_s1 + $0x18] sm:$0xff]   ;;  %v2018_v18 = vld [vmem:[%s2587_s1 + $0x20] sm:$0xff]   ;;  %v2022_v22 = vld [vmem:[%s2587_s1 + $0x28] sm:$0xff]  }
   0x8   :  { %1747 = vmatpush3.bf16.msra.mxu0 %v2006_v6  ;;  %v2015_v15 = vld [vmem:[%s2587_s1 + $0x98] sm:$0xff]   ;;  %v2019_v19 = vld [vmem:[%s2587_s1 + $0xa0] sm:$0xff]   ;;  %v2023_v23 = vld [vmem:[%s2587_s1 + $0xa8] sm:$0xff]  }
   0x9   :  { %1811 = vmatpush3.bf16.msra.mxu1 %v2007_v7  ;;  %1748 = vmatprep.subr.bf16.mxu0 %v2008_v8  ;;  %v2024_v24 = vld [vmem:[%s2587_s1 + $0x70] sm:$0xff]   ;;  %v2028_v28 = vld [vmem:[%s2587_s1 + $0x78] sm:$0xff]   ;;  %v54_v32 = vld [vmem:[%s2588_s0] sm:$0xff] }
   0xa   :  { %1812 = vmatprep.subr.bf16.mxu1 %v2009_v9  ;;  %v2025_v25 = vld [vmem:[%s2587_s1 + $0xf0] sm:$0xff]   ;;  %v2029_v29 = vld [vmem:[%s2587_s1 + $0xf8] sm:$0xff]   ;;  %v58_v33 = vld [vmem:[%s2588_s0 + $0x20] sm:$0xff] }
   0xb   :  { %v2026_v26 = vld [vmem:[%s2587_s1 + $0x30] sm:$0xff]   ;;  %v2030_v30 = vld [vmem:[%s2587_s1 + $0x38] sm:$0xff]   ;;  %v55_v34 = vld [vmem:[%s2588_s0 + $0x8] sm:$0xff]  ;;  %v1535_v35 = vcombine.low %v54_v32, %v58_v33  ;;  %v1536_v36 = vcombine.high %v54_v32, %v58_v33 }
   0xc   :  { %1749 = vmatpush3.bf16.msra.mxu0 %v2010_v10  ;;  %v2027_v27 = vld [vmem:[%s2587_s1 + $0xb0] sm:$0xff]   ;;  %v2031_v31 = vld [vmem:[%s2587_s1 + $0xb8] sm:$0xff]   ;;  %v59_v37 = vld [vmem:[%s2588_s0 + $0x28] sm:$0xff] }
   0xd   :  { %1813 = vmatpush3.bf16.msra.mxu1 %v2011_v11  ;;  %1750 = vmatprep.subr.bf16.mxu0 %v2012_v12  ;;  %v1537_v38 = vcombine.low %v55_v34, %v59_v37  ;;  %v1538_v39 = vcombine.high %v55_v34, %v59_v37  ;;  %v2032_v40 = vld [vmem:[%s2587_s1 + $0x140] sm:$0xff]   ;;  %v63_v47 = vld [vmem:[%s2588_s0 + $0x48] sm:$0xff]  ;;  %v2040_v62 = vld [vmem:[%s2587_s1 + $0x150] sm:$0xff]  }
   0xe   :  { %1814 = vmatprep.subr.bf16.mxu1 %v2013_v13  ;;  %982 = vmatprep.mubr.bf16.mxu0 %v1536_v36  ;;  %v2033_v41 = vld [vmem:[%s2587_s1 + $0x100] sm:$0xff]   ;;  %v67_v48 = vld [vmem:[%s2588_s0 + $0x68] sm:$0xff]  ;;  %v2041_v63 = vld [vmem:[%s2587_s1 + $0x110] sm:$0xff]  }
   0xf   :  { %1079 = vmatprep.mubr.bf16.mxu1 %v1538_v39  ;;  %v2034_v42 = vld [vmem:[%s2587_s1 + $0x1c0] sm:$0xff]   ;;  %v1546_v49 = vcombine.high %v63_v47, %v67_v48  ;;  %v2036_v50 = vld [vmem:[%s2587_s1 + $0x148] sm:$0xff]   ;;  %v1545_v53 = vcombine.low %v63_v47, %v67_v48  ;;  %v2042_v0 = vld [vmem:[%s2587_s1 + $0x1d0] sm:$0xff]  }
  0x10   :  { %1751 = vmatpush3.bf16.msra.mxu0 %v2014_v14  ;;  %v2035_v43 = vld [vmem:[%s2587_s1 + $0x180] sm:$0xff]   ;;  %v2037_v52 = vld [vmem:[%s2587_s1 + $0x108] sm:$0xff]   ;;  %v2043_v1 = vld [vmem:[%s2587_s1 + $0x190] sm:$0xff]  }
  0x11   :  { %1815 = vmatpush3.bf16.msra.mxu1 %v2015_v15  ;;  %1752 = vmatprep.subr.bf16.mxu0 %v2016_v16  ;;  %v62_v44 = vld [vmem:[%s2588_s0 + $0x40] sm:$0xff]  ;;  %v2038_v54 = vld [vmem:[%s2587_s1 + $0x1c8] sm:$0xff]   ;;  %v2044_v10 = vld [vmem:[%s2587_s1 + $0x158] sm:$0xff]  }
  0x12   :  { %1816 = vmatprep.subr.bf16.mxu1 %v2017_v17  ;;  %v66_v45 = vld [vmem:[%s2588_s0 + $0x60] sm:$0xff]  ;;  %v2039_v55 = vld [vmem:[%s2587_s1 + $0x188] sm:$0xff]   ;;  %v2045_v11 = vld [vmem:[%s2587_s1 + $0x118] sm:$0xff]  }
  0x13   :  { %v1544_v46 = vcombine.high %v62_v44, %v66_v45  ;;  %v1543_v51 = vcombine.low %v62_v44, %v66_v45  ;;  %v70_v56 = vld [vmem:[%s2588_s0 + $0x80] sm:$0xff]  ;;  %v71_v58 = vld [vmem:[%s2588_s0 + $0x88] sm:$0xff]  ;;  %v2046_v12 = vld [vmem:[%s2587_s1 + $0x1d8] sm:$0xff]  }
  0x14   :  { %1753 = vmatpush3.bf16.msra.mxu0 %v2018_v18  ;;  %v74_v57 = vld [vmem:[%s2588_s0 + $0xa0] sm:$0xff]  ;;  %v75_v59 = vld [vmem:[%s2588_s0 + $0xa8] sm:$0xff]  ;;  %v2047_v13 = vld [vmem:[%s2587_s1 + $0x198] sm:$0xff]  }
  0x15   :  { %1817 = vmatpush3.bf16.msra.mxu1 %v2019_v19  ;;  %1754 = vmatprep.subr.bf16.mxu0 %v2020_v20  ;;  %v1552_v60 = vcombine.high %v70_v56, %v74_v57  ;;  %v1554_v61 = vcombine.high %v71_v58, %v75_v59  ;;  %v1551_v2 = vcombine.low %v70_v56, %v74_v57  ;;  %v78_v3 = vld [vmem:[%s2588_s0 + $0xc0] sm:$0xff]  ;;  %v79_v5 = vld [vmem:[%s2588_s0 + $0xc8] sm:$0xff]  ;;  %v2057_v39 = vld [vmem:[%s2587_s1 + $0x130] sm:$0xff]  }
  0x16   :  { %1818 = vmatprep.subr.bf16.mxu1 %v2021_v21  ;;  %v82_v4 = vld [vmem:[%s2588_s0 + $0xe0] sm:$0xff]  ;;  %v1553_v6 = vcombine.low %v71_v58, %v75_v59  ;;  %v83_v8 = vld [vmem:[%s2588_s0 + $0xe8] sm:$0xff]  ;;  %v2061_v48 = vld [vmem:[%s2587_s1 + $0x138] sm:$0xff]  }
  0x17   :  { %v1560_v7 = vcombine.high %v78_v3, %v82_v4  ;;  %v1562_v9 = vcombine.high %v79_v5, %v83_v8  ;;  %v86_v14 = vld [vmem:[%s2588_s0 + $0x100] sm:$0xff]  ;;  %v87_v16 = vld [vmem:[%s2588_s0 + $0x108] sm:$0xff]  ;;  %v1559_v19 = vcombine.low %v78_v3, %v82_v4  ;;  %v1561_v21 = vcombine.low %v79_v5, %v83_v8  ;;  %v65_v8 = vld [vmem:[%s2588_s0 + $0x58] sm:$0xff] }
  0x18   :  { %1755 = vmatpush3.bf16.msra.mxu0 %v2022_v22  ;;  %v90_v15 = vld [vmem:[%s2588_s0 + $0x120] sm:$0xff]  ;;  %v91_v17 = vld [vmem:[%s2588_s0 + $0x128] sm:$0xff] }
  0x19   :  { %1819 = vmatpush3.bf16.msra.mxu1 %v2023_v23  ;;  %1756 = vmatprep.subr.bf16.mxu0 %v2024_v24  ;;  %v2048_v18 = vld [vmem:[%s2587_s1 + $0x160] sm:$0xff]   ;;  %v1568_v22 = vcombine.high %v86_v14, %v90_v15  ;;  %v1570_v24 = vcombine.high %v87_v16, %v91_v17  ;;  %v2054_v32 = vld [vmem:[%s2587_s1 + $0x1e8] sm:$0xff]   ;;  %v1567_v34 = vcombine.low %v86_v14, %v90_v15  ;;  %v72_v14 = vld [vmem:[%s2588_s0 + $0x90] sm:$0xff] }
  0x1a   :  { %1820 = vmatprep.subr.bf16.mxu1 %v2025_v25  ;;  %v2049_v20 = vld [vmem:[%s2587_s1 + $0x120] sm:$0xff]   ;;  %v2055_v33 = vld [vmem:[%s2587_s1 + $0x1a8] sm:$0xff]   ;;  %v76_v15 = vld [vmem:[%s2588_s0 + $0xb0] sm:$0xff] }
  0x1b   :  { %v2050_v23 = vld [vmem:[%s2587_s1 + $0x1e0] sm:$0xff]   ;;  %v103_v44 = vld [vmem:[%s2588_s0 + $0x188] sm:$0xff] }
  0x1c   :  { %1757 = vmatpush3.bf16.msra.mxu0 %v2026_v26  ;;  %v2051_v25 = vld [vmem:[%s2587_s1 + $0x1a0] sm:$0xff]   ;;  %v107_v45 = vld [vmem:[%s2588_s0 + $0x1a8] sm:$0xff] }
  0x1d   :  { %1821 = vmatpush3.bf16.msra.mxu1 %v2027_v27  ;;  %1758 = vmatprep.subr.bf16.mxu0 %v2028_v28  ;;  %v94_v26 = vld [vmem:[%s2588_s0 + $0x140] sm:$0xff]  ;;  %v2052_v28 = vld [vmem:[%s2587_s1 + $0x168] sm:$0xff]   ;;  %v1585_v59 = vcombine.low %v103_v44, %v107_v45 }
  0x1e   :  { %1822 = vmatprep.subr.bf16.mxu1 %v2029_v29  ;;  %v98_v27 = vld [vmem:[%s2588_s0 + $0x160] sm:$0xff]  ;;  %v95_v29 = vld [vmem:[%s2588_s0 + $0x148] sm:$0xff] }
  0x1f   :  { %v1576_v36 = vcombine.high %v94_v26, %v98_v27  ;;  %v1575_v47 = vcombine.low %v94_v26, %v98_v27  ;;  %v111_v56 = vld [vmem:[%s2588_s0 + $0x1c8] sm:$0xff]  ;;  %v1555_v26 = vcombine.low %v72_v14, %v76_v15 }
  0x20   :  { %1759 = vmatpush3.bf16.msra.mxu0 %v2030_v30  ;;  %v99_v30 = vld [vmem:[%s2588_s0 + $0x168] sm:$0xff] }
  0x21   :  { %1823 = vmatpush3.bf16.msra.mxu1 %v2031_v31  ;;  %1872 = vmatprep.subr.bf16.mxu0 %v2032_v40  ;;  %v2053_v31 = vld [vmem:[%s2587_s1 + $0x128] sm:$0xff]   ;;  %v1578_v37 = vcombine.high %v95_v29, %v99_v30  ;;  %v2058_v40 = vld [vmem:[%s2587_s1 + $0x1f0] sm:$0xff]  }
  0x22   :  { %1936 = vmatprep.subr.bf16.mxu1 %v2034_v42  ;;  %v106_v42 = vld [vmem:[%s2588_s0 + $0x1a0] sm:$0xff]  ;;  %v115_v57 = vld [vmem:[%s2588_s0 + $0x1e8] sm:$0xff] }
  0x23   :  { %983 = vmatmul.mubr.bf16.vlgmr.msra.gmra.mrb[0].mxu0 %v1535_v35  ;;  %v1569_v35 = vcombine.low %v87_v16, %v91_v17  ;;  %v1593_v3 = vcombine.low %v111_v56, %v115_v57  ;;  %v73_v16 = vld [vmem:[%s2588_s0 + $0x98] sm:$0xff] }
  0x24   :  { %1080 = vmatmul.mubr.bf16.vlgmr.msra.gmra.mrb[0].mxu1 %v1537_v38  ;;  %1873 = vmatpush3.bf16.msra.mxu0 %v2033_v41  ;;  %v2056_v38 = vld [vmem:[%s2587_s1 + $0x170] sm:$0xff]   ;;  %v102_v41 = vld [vmem:[%s2588_s0 + $0x180] sm:$0xff]  ;;  %v77_v17 = vld [vmem:[%s2588_s0 + $0xb8] sm:$0xff] }
  0x25   :  { %1937 = vmatpush3.bf16.msra.mxu1 %v2035_v43  ;;  %990 = vmatprep.mubr.bf16.mxu0 %v1544_v46  ;;  %v2059_v43 = vld [vmem:[%s2587_s1 + $0x1b0] sm:$0xff]   ;;  %v2060_v46 = vld [vmem:[%s2587_s1 + $0x178] sm:$0xff]   ;;  %v1583_v58 = vcombine.low %v102_v41, %v106_v42  ;;  %v1557_v27 = vcombine.low %v73_v16, %v77_v17 }
  0x26   :  { %1087 = vmatprep.mubr.bf16.mxu1 %v1546_v49  ;;  %1874 = vmatprep.subr.bf16.mxu0 %v2036_v50  ;;  %v1577_v49 = vcombine.low %v95_v29, %v99_v30  ;;  %v1584_v50 = vcombine.high %v102_v41, %v106_v42  ;;  %v88_v30 = vld [vmem:[%s2588_s0 + $0x110] sm:$0xff]  ;;  %v101_v41 = vld [vmem:[%s2588_s0 + $0x178] sm:$0xff] }
  0x27   :  { %1938 = vmatprep.subr.bf16.mxu1 %v2038_v54  ;;  %v110_v54 = vld [vmem:[%s2588_s0 + $0x1c0] sm:$0xff] }
  0x28   :  { %1875 = vmatpush3.bf16.msra.mxu0 %v2037_v52  ;;  %v1586_v52 = vcombine.high %v103_v44, %v107_v45 }
  0x29   :  { %1939 = vmatpush3.bf16.msra.mxu1 %v2039_v55  ;;  %1876 = vmatprep.subr.bf16.mxu0 %v2040_v62  ;;  %v114_v55 = vld [vmem:[%s2588_s0 + $0x1e0] sm:$0xff]  ;;  %v56_v62 = vld [vmem:[%s2588_s0 + $0x10] sm:$0xff] }
  0x2a   :  { %1940 = vmatprep.subr.bf16.mxu1 %v2042_v0  ;;  %v57_v0 = vld [vmem:[%s2588_s0 + $0x18] sm:$0xff] }
  0x2b   :  { %991 = vmatmul.mubr.bf16.gmra.mrb[4].mxu0 %v1543_v51  ;;  %v2062_v51 = vld [vmem:[%s2587_s1 + $0x1f8] sm:$0xff]  }
  0x2c   :  { %1088 = vmatmul.mubr.bf16.gmra.mrb[4].mxu1 %v1545_v53  ;;  %998 = vmatprep.mubr.bf16.mxu0 %v1552_v60  ;;  %v2063_v53 = vld [vmem:[%s2587_s1 + $0x1b8] sm:$0xff]   ;;  %v1592_v60 = vcombine.high %v110_v54, %v114_v55 }
  0x2d   :  { %1095 = vmatprep.mubr.bf16.mxu1 %v1554_v61  ;;  %1877 = vmatpush3.bf16.msra.mxu0 %v2041_v63  ;;  %v1594_v61 = vcombine.high %v111_v56, %v115_v57  ;;  %v60_v63 = vld [vmem:[%s2588_s0 + $0x30] sm:$0xff]  ;;  %v113_v56 = vld [vmem:[%s2588_s0 + $0x1d8] sm:$0xff] }
  0x2e   :  { %1941 = vmatpush3.bf16.msra.mxu1 %v2043_v1  ;;  %1878 = vmatprep.subr.bf16.mxu0 %v2044_v10  ;;  %v61_v1 = vld [vmem:[%s2588_s0 + $0x38] sm:$0xff]  ;;  %v1540_v4 = vcombine.high %v56_v62, %v60_v63  ;;  %v1539_v10 = vcombine.low %v56_v62, %v60_v63 }
  0x2f   :  { %1942 = vmatprep.subr.bf16.mxu1 %v2046_v12  ;;  %v1542_v5 = vcombine.high %v57_v0, %v61_v1  ;;  %v117_v57 = vld [vmem:[%s2588_s0 + $0x1f8] sm:$0xff] }
  0x30   :  { %v1597_v63 = vcombine.low %v113_v56, %v117_v57 }
  0x31   :  { %1879 = vmatpush3.bf16.msra.mxu0 %v2045_v11  ;;  %v1541_v11 = vcombine.low %v57_v0, %v61_v1 }
  0x32   :  { %1943 = vmatpush3.bf16.msra.mxu1 %v2047_v13  ;;  %1880 = vmatprep.subr.bf16.mxu0 %v2048_v18 }
  0x33   :  { %999 = vmatmul.mubr.bf16.gmra.mrb[8].mxu0 %v1551_v2  ;;  %1944 = vmatprep.subr.bf16.mxu1 %v2050_v23  ;;  %v1591_v2 = vcombine.low %v110_v54, %v114_v55  ;;  %v84_v23 = vld [vmem:[%s2588_s0 + $0xf0] sm:$0xff] }
  0x34   :  { %1096 = vmatmul.mubr.bf16.gmra.mrb[8].mxu1 %v1553_v6  ;;  %1006 = vmatprep.mubr.bf16.mxu0 %v1560_v7  ;;  %v64_v6 = vld [vmem:[%s2588_s0 + $0x50] sm:$0xff] }
  0x35   :  { %1103 = vmatprep.mubr.bf16.mxu1 %v1562_v9  ;;  %1881 = vmatpush3.bf16.msra.mxu0 %v2049_v20  ;;  %v68_v7 = vld [vmem:[%s2588_s0 + $0x70] sm:$0xff]  ;;  %v69_v9 = vld [vmem:[%s2588_s0 + $0x78] sm:$0xff]  ;;  %v1556_v20 = vcombine.high %v72_v14, %v76_v15 }
  0x36   :  { %1945 = vmatpush3.bf16.msra.mxu1 %v2051_v25  ;;  %1882 = vmatprep.subr.bf16.mxu0 %v2052_v28  ;;  %v1548_v12 = vcombine.high %v64_v6, %v68_v7  ;;  %v1550_v13 = vcombine.high %v65_v8, %v69_v9  ;;  %v1547_v18 = vcombine.low %v64_v6, %v68_v7  ;;  %v85_v25 = vld [vmem:[%s2588_s0 + $0xf8] sm:$0xff]  ;;  %v112_v54 = vld [vmem:[%s2588_s0 + $0x1d0] sm:$0xff] }
  0x37   :  { %1946 = vmatprep.subr.bf16.mxu1 %v2054_v32  ;;  %v89_v32 = vld [vmem:[%s2588_s0 + $0x118] sm:$0xff]  ;;  %v116_v55 = vld [vmem:[%s2588_s0 + $0x1f0] sm:$0xff] }
  0x38   :  { %v1595_v62 = vcombine.low %v112_v54, %v116_v55 }
  0x39   :  { %1883 = vmatpush3.bf16.msra.mxu0 %v2053_v31  ;;  %v92_v31 = vld [vmem:[%s2588_s0 + $0x130] sm:$0xff] }
  0x3a   :  { %1947 = vmatpush3.bf16.msra.mxu1 %v2055_v33  ;;  %1884 = vmatprep.subr.bf16.mxu0 %v2056_v38  ;;  %v93_v33 = vld [vmem:[%s2588_s0 + $0x138] sm:$0xff]  ;;  %v96_v38 = vld [vmem:[%s2588_s0 + $0x150] sm:$0xff]  ;;  %v1571_v42 = vcombine.low %v88_v30, %v92_v31 }
  0x3b   :  { %1007 = vmatmul.mubr.bf16.gmra.mrb[12].mxu0 %v1559_v19  ;;  %1948 = vmatprep.subr.bf16.mxu1 %v2058_v40  ;;  %v1549_v19 = vcombine.low %v65_v8, %v69_v9  ;;  %v97_v40 = vld [vmem:[%s2588_s0 + $0x158] sm:$0xff] }
  0x3c   :  { %1104 = vmatmul.mubr.bf16.gmra.mrb[12].mxu1 %v1561_v21  ;;  %1014 = vmatprep.mubr.bf16.mxu0 %v1568_v22  ;;  %v1558_v21 = vcombine.high %v73_v16, %v77_v17  ;;  %v80_v22 = vld [vmem:[%s2588_s0 + $0xd0] sm:$0xff]  ;;  %v1582_v45 = vcombine.high %v97_v40, %v101_v41 }
  0x3d   :  { %1111 = vmatprep.mubr.bf16.mxu1 %v1570_v24  ;;  %1885 = vmatpush3.bf16.msra.mxu0 %v2057_v39  ;;  %v81_v24 = vld [vmem:[%s2588_s0 + $0xd8] sm:$0xff]  ;;  %v1564_v28 = vcombine.high %v80_v22, %v84_v23  ;;  %v100_v39 = vld [vmem:[%s2588_s0 + $0x170] sm:$0xff] }
  0x3e   :  { %1949 = vmatpush3.bf16.msra.mxu1 %v2059_v43  ;;  %1886 = vmatprep.subr.bf16.mxu0 %v2060_v46  ;;  %v1566_v29 = vcombine.high %v81_v24, %v85_v25  ;;  %v1573_v43 = vcombine.low %v89_v32, %v93_v33  ;;  %v1580_v44 = vcombine.high %v96_v38, %v100_v39  ;;  %v104_v46 = vld [vmem:[%s2588_s0 + $0x190] sm:$0xff] }
  0x3f   :  { %1950 = vmatprep.subr.bf16.mxu1 %v2062_v51  ;;  %v1581_v51 = vcombine.low %v97_v40, %v101_v41 }
  0x41   :  { %1887 = vmatpush3.bf16.msra.mxu0 %v2061_v48  ;;  %v105_v48 = vld [vmem:[%s2588_s0 + $0x198] sm:$0xff] }
  0x42   :  { %1951 = vmatpush3.bf16.msra.mxu1 %v2063_v53 }
  0x43   :  { %1015 = vmatmul.mubr.bf16.gmra.mrb[16].mxu0 %v1567_v34  ;;  %v1563_v34 = vcombine.low %v80_v22, %v84_v23 }
  0x44   :  { %1112 = vmatmul.mubr.bf16.gmra.mrb[16].mxu1 %v1569_v35  ;;  %1022 = vmatprep.mubr.bf16.mxu0 %v1576_v36  ;;  %v1565_v35 = vcombine.low %v81_v24, %v85_v25  ;;  %v1572_v36 = vcombine.high %v88_v30, %v92_v31 }
  0x45   :  { %1119 = vmatprep.mubr.bf16.mxu1 %v1578_v37  ;;  %v1574_v37 = vcombine.high %v89_v32, %v93_v33 }
  0x4b   :  { %1023 = vmatmul.mubr.bf16.gmra.mrb[20].mxu0 %v1575_v47  ;;  %v108_v47 = vld [vmem:[%s2588_s0 + $0x1b0] sm:$0xff] }
  0x4c   :  { %1120 = vmatmul.mubr.bf16.gmra.mrb[20].mxu1 %v1577_v49  ;;  %1030 = vmatprep.mubr.bf16.mxu0 %v1584_v50  ;;  %v109_v49 = vld [vmem:[%s2588_s0 + $0x1b8] sm:$0xff]  ;;  %v1579_v50 = vcombine.low %v96_v38, %v100_v39 }
  0x4d   :  { %1127 = vmatprep.mubr.bf16.mxu1 %v1586_v52  ;;  %v1588_v52 = vcombine.high %v104_v46, %v108_v47  ;;  %v1590_v53 = vcombine.high %v105_v48, %v109_v49 }
  0x53   :  { %1031 = vmatmul.mubr.bf16.gmra.mrb[24].mxu0 %v1583_v58  ;;  %v1587_v58 = vcombine.low %v104_v46, %v108_v47 }
  0x54   :  { %1128 = vmatmul.mubr.bf16.gmra.mrb[24].mxu1 %v1585_v59  ;;  %1038 = vmatprep.mubr.bf16.mxu0 %v1592_v60  ;;  %v1589_v59 = vcombine.low %v105_v48, %v109_v49  ;;  %v1596_v60 = vcombine.high %v112_v54, %v116_v55 }
  0x55   :  { %1135 = vmatprep.mubr.bf16.mxu1 %v1594_v61  ;;  %v1598_v61 = vcombine.high %v113_v56, %v117_v57 }
  0x5b   :  { %1039 = vmatmul.mubr.bf16.gmra.mrb[28].mxu0 %v1591_v2 }
  0x5c   :  { %1136 = vmatmul.mubr.bf16.gmra.mrb[28].mxu1 %v1593_v3  ;;  %1176 = vmatprep.mubr.bf16.mxu0 %v1540_v4 }
  0x5d   :  { %1273 = vmatprep.mubr.bf16.mxu1 %v1542_v5 }
  0x63   :  { %1177 = vmatmul.mubr.bf16.vlgmr.msra.gmra.mrb[32].mxu0 %v1539_v10 }
  0x64   :  { %1274 = vmatmul.mubr.bf16.vlgmr.msra.gmra.mrb[32].mxu1 %v1541_v11  ;;  %1184 = vmatprep.mubr.bf16.mxu0 %v1548_v12 }
  0x65   :  { %1281 = vmatprep.mubr.bf16.mxu1 %v1550_v13 }
  0x6b   :  { %1185 = vmatmul.mubr.bf16.gmra.mrb[36].mxu0 %v1547_v18 }
  0x6c   :  { %1282 = vmatmul.mubr.bf16.gmra.mrb[36].mxu1 %v1549_v19  ;;  %1192 = vmatprep.mubr.bf16.mxu0 %v1556_v20 }
  0x6d   :  { %1289 = vmatprep.mubr.bf16.mxu1 %v1558_v21 }
  0x73   :  { %1193 = vmatmul.mubr.bf16.gmra.mrb[40].mxu0 %v1555_v26 }
  0x74   :  { %1290 = vmatmul.mubr.bf16.gmra.mrb[40].mxu1 %v1557_v27  ;;  %1200 = vmatprep.mubr.bf16.mxu0 %v1564_v28 }
  0x75   :  { %1297 = vmatprep.mubr.bf16.mxu1 %v1566_v29 }
  0x7b   :  { %1201 = vmatmul.mubr.bf16.gmra.mrb[44].mxu0 %v1563_v34 }
  0x7c   :  { %1298 = vmatmul.mubr.bf16.gmra.mrb[44].mxu1 %v1565_v35  ;;  %1208 = vmatprep.mubr.bf16.mxu0 %v1572_v36 }
  0x7d   :  { %1305 = vmatprep.mubr.bf16.mxu1 %v1574_v37 }
  0x83   :  { %1209 = vmatmul.mubr.bf16.gmra.mrb[48].mxu0 %v1571_v42 }
  0x84   :  { %1306 = vmatmul.mubr.bf16.gmra.mrb[48].mxu1 %v1573_v43  ;;  %1216 = vmatprep.mubr.bf16.mxu0 %v1580_v44 }
  0x85   :  { %1313 = vmatprep.mubr.bf16.mxu1 %v1582_v45 }
  0x8b   :  { %1217 = vmatmul.mubr.bf16.gmra.mrb[52].mxu0 %v1579_v50 }
  0x8c   :  { %1314 = vmatmul.mubr.bf16.gmra.mrb[52].mxu1 %v1581_v51  ;;  %1224 = vmatprep.mubr.bf16.mxu0 %v1588_v52 }
  0x8d   :  { %1321 = vmatprep.mubr.bf16.mxu1 %v1590_v53 }
  0x93   :  { %1225 = vmatmul.mubr.bf16.gmra.mrb[56].mxu0 %v1587_v58 }
  0x94   :  { %1322 = vmatmul.mubr.bf16.gmra.mrb[56].mxu1 %v1589_v59  ;;  %1232 = vmatprep.mubr.bf16.mxu0 %v1596_v60 }
  0x95   :  { %1329 = vmatprep.mubr.bf16.mxu1 %v1598_v61 }
  0x9b   :  { %1233 = vmatmul.mubr.bf16.gmra.mrb[60].mxu0 %v1595_v62 }
  0x9c   :  { %1330 = vmatmul.mubr.bf16.gmra.mrb[60].mxu1 %v1597_v63 }
  0xf6   :  { %v1760_v0 = vpop.f32.mrb[0].mxu0 }
  0xf7   :  { %v1824_v1 = vpop.f32.mrb[0].mxu1  ;;  %v1761_v2 = vpop.f32.mrb[1].mxu0 }
  0xf8   :  { %v1762_v3 = vadd.f32 %v1761_v2, %v1760_v0  ;;  %v1825_v4 = vpop.f32.mrb[1].mxu1  ;;  %v1763_v5 = vpop.f32.mrb[2].mxu0 }
  0xf9   :  { %v1826_v6 = vadd.f32 %v1825_v4, %v1824_v1  ;;  %v1827_v7 = vpop.f32.mrb[2].mxu1  ;;  %v1764_v8 = vpop.f32.mrb[3].mxu0 }
  0xfa   :  { %v1765_v9 = vadd.f32 %v1764_v8, %v1763_v5  ;;  %v1828_v10 = vpop.f32.mrb[3].mxu1 }
  0xfb   :  { %v2473_v11 = vadd.f32 %v1826_v6, %v1762_v3  ;;  %v1829_v12 = vadd.f32 %v1828_v10, %v1827_v7 }
  0xfd   :  { %v2475_v13 = vadd.f32 %v1829_v12, %v1765_v9 }
  0xfe   :  { %v1766_v14 = vpop.f32.mrb[4].mxu0 }
  0xff   :  { %v1830_v15 = vpop.f32.mrb[4].mxu1  ;;  %v1767_v16 = vpop.f32.mrb[5].mxu0 }
 0x100   :  { %v1768_v17 = vadd.f32 %v1767_v16, %v1766_v14  ;;  %v1831_v18 = vpop.f32.mrb[5].mxu1  ;;  %v1769_v19 = vpop.f32.mrb[6].mxu0 }
 0x101   :  { %v1832_v20 = vadd.f32 %v1831_v18, %v1830_v15  ;;  %v1833_v21 = vpop.f32.mrb[6].mxu1  ;;  %v1770_v22 = vpop.f32.mrb[7].mxu0 }
 0x102   :  { %v1771_v23 = vadd.f32 %v1770_v22, %v1769_v19  ;;  %v1834_v24 = vpop.f32.mrb[7].mxu1 }
 0x103   :  { %v2477_v25 = vadd.f32 %v1832_v20, %v1768_v17  ;;  %v1835_v26 = vadd.f32 %v1834_v24, %v1833_v21 }
 0x105   :  { %v2479_v27 = vadd.f32 %v1835_v26, %v1771_v23 }
 0x106   :  { %v1772_v28 = vpop.f32.mrb[8].mxu0 }
 0x107   :  { %v1836_v29 = vpop.f32.mrb[8].mxu1  ;;  %v1773_v30 = vpop.f32.mrb[9].mxu0 }
 0x108   :  { %v1774_v31 = vadd.f32 %v1773_v30, %v1772_v28  ;;  %v1837_v32 = vpop.f32.mrb[9].mxu1  ;;  %v1775_v33 = vpop.f32.mrb[10].mxu0 }
 0x109   :  { %v1838_v34 = vadd.f32 %v1837_v32, %v1836_v29  ;;  %v1839_v35 = vpop.f32.mrb[10].mxu1  ;;  %v1776_v36 = vpop.f32.mrb[11].mxu0 }
 0x10a   :  { %v1777_v37 = vadd.f32 %v1776_v36, %v1775_v33  ;;  %v1840_v38 = vpop.f32.mrb[11].mxu1 }
 0x10b   :  { %v2481_v39 = vadd.f32 %v1838_v34, %v1774_v31  ;;  %v1841_v40 = vadd.f32 %v1840_v38, %v1839_v35 }
 0x10d   :  { %v2483_v41 = vadd.f32 %v1841_v40, %v1777_v37 }
 0x10e   :  { %v1778_v42 = vpop.f32.mrb[12].mxu0 }
 0x10f   :  { %v1842_v43 = vpop.f32.mrb[12].mxu1  ;;  %v1779_v44 = vpop.f32.mrb[13].mxu0 }
 0x110   :  { %v1780_v45 = vadd.f32 %v1779_v44, %v1778_v42  ;;  %v1843_v46 = vpop.f32.mrb[13].mxu1  ;;  %v1781_v47 = vpop.f32.mrb[14].mxu0 }
 0x111   :  { %v1844_v48 = vadd.f32 %v1843_v46, %v1842_v43  ;;  %v1845_v49 = vpop.f32.mrb[14].mxu1  ;;  %v1782_v50 = vpop.f32.mrb[15].mxu0 }
 0x112   :  { %v1783_v51 = vadd.f32 %v1782_v50, %v1781_v47  ;;  %v1846_v52 = vpop.f32.mrb[15].mxu1 }
 0x113   :  { %v2485_v53 = vadd.f32 %v1844_v48, %v1780_v45  ;;  %v1847_v54 = vadd.f32 %v1846_v52, %v1845_v49 }
 0x115   :  { %v2487_v55 = vadd.f32 %v1847_v54, %v1783_v51 }
 0x116   :  { %v1784_v56 = vpop.f32.mrb[16].mxu0 }
 0x117   :  { %v1848_v57 = vpop.f32.mrb[16].mxu1  ;;  %v1785_v58 = vpop.f32.mrb[17].mxu0 }
 0x118   :  { %v1786_v59 = vadd.f32 %v1785_v58, %v1784_v56  ;;  %v1849_v60 = vpop.f32.mrb[17].mxu1  ;;  %v1787_v61 = vpop.f32.mrb[18].mxu0 }
 0x119   :  { %v1850_v62 = vadd.f32 %v1849_v60, %v1848_v57  ;;  %v1851_v63 = vpop.f32.mrb[18].mxu1  ;;  %v1788_v0 = vpop.f32.mrb[19].mxu0 }
 0x11a   :  { %v1789_v1 = vadd.f32 %v1788_v0, %v1787_v61  ;;  %v1852_v2 = vpop.f32.mrb[19].mxu1 }
 0x11b   :  { %v2489_v3 = vadd.f32 %v1850_v62, %v1786_v59  ;;  %v1853_v4 = vadd.f32 %v1852_v2, %v1851_v63 }
 0x11d   :  { %v2491_v5 = vadd.f32 %v1853_v4, %v1789_v1 }
 0x11e   :  { %v1790_v6 = vpop.f32.mrb[20].mxu0 }
 0x11f   :  { %v1854_v7 = vpop.f32.mrb[20].mxu1  ;;  %v1791_v8 = vpop.f32.mrb[21].mxu0 }
 0x120   :  { %v1792_v9 = vadd.f32 %v1791_v8, %v1790_v6  ;;  %v1855_v10 = vpop.f32.mrb[21].mxu1  ;;  %v1793_v12 = vpop.f32.mrb[22].mxu0  ;;  %v2509_v6 = vld [vmem:[%s2589_s2] ss:$0 sm:$0xff] }
 0x121   :  { %v1856_v14 = vadd.f32 %v1855_v10, %v1854_v7  ;;  %v1857_v15 = vpop.f32.mrb[22].mxu1  ;;  %v1794_v16 = vpop.f32.mrb[23].mxu0  ;;  %v2515_v10 = vld [vmem:[%s2590_s3] ss:$0 sm:$0xff] }
 0x122   :  { %v1795_v17 = vadd.f32 %v1794_v16, %v1793_v12  ;;  %v1858_v18 = vpop.f32.mrb[23].mxu1 }
 0x123   :  { %v2493_v19 = vadd.f32 %v1856_v14, %v1792_v9  ;;  %v1859_v20 = vadd.f32 %v1858_v18, %v1857_v15 }
 0x125   :  { %v2495_v21 = vadd.f32 %v1859_v20, %v1795_v17 }
 0x126   :  { %v1796_v22 = vpop.f32.mrb[24].mxu0 }
 0x127   :  { %v1860_v23 = vpop.f32.mrb[24].mxu1  ;;  %v1797_v24 = vpop.f32.mrb[25].mxu0 }
 0x128   :  { %v1798_v26 = vadd.f32 %v1797_v24, %v1796_v22  ;;  %v1861_v28 = vpop.f32.mrb[25].mxu1  ;;  %v1799_v29 = vpop.f32.mrb[26].mxu0 }
 0x129   :  { %v1862_v30 = vadd.f32 %v1861_v28, %v1860_v23  ;;  %v1863_v31 = vpop.f32.mrb[26].mxu1  ;;  %v1800_v32 = vpop.f32.mrb[27].mxu0 }
 0x12a   :  { %v1801_v33 = vadd.f32 %v1800_v32, %v1799_v29  ;;  %v1864_v34 = vpop.f32.mrb[27].mxu1 }
 0x12b   :  { %v2497_v35 = vadd.f32 %v1862_v30, %v1798_v26  ;;  %v1865_v36 = vadd.f32 %v1864_v34, %v1863_v31 }
 0x12d   :  { %v2499_v37 = vadd.f32 %v1865_v36, %v1801_v33 }
 0x12e   :  { %v1802_v38 = vpop.f32.mrb[28].mxu0 }
 0x12f   :  { %v1866_v40 = vpop.f32.mrb[28].mxu1  ;;  %v1803_v42 = vpop.f32.mrb[29].mxu0 }
 0x130   :  { %v1804_v43 = vadd.f32 %v1803_v42, %v1802_v38  ;;  %v1867_v44 = vpop.f32.mrb[29].mxu1  ;;  %v1805_v45 = vpop.f32.mrb[30].mxu0 }
 0x131   :  { %v1868_v46 = vadd.f32 %v1867_v44, %v1866_v40  ;;  %v1869_v47 = vpop.f32.mrb[30].mxu1  ;;  %v1806_v48 = vpop.f32.mrb[31].mxu0 }
 0x132   :  { %v1807_v49 = vadd.f32 %v1806_v48, %v1805_v45  ;;  %v1870_v50 = vpop.f32.mrb[31].mxu1 }
 0x133   :  { %v2501_v51 = vadd.f32 %v1868_v46, %v1804_v43  ;;  %v1871_v52 = vadd.f32 %v1870_v50, %v1869_v47 }
 0x135   :  { %v2503_v54 = vadd.f32 %v1871_v52, %v1807_v49 }
 0x136   :  { %v1888_v56 = vpop.f32.mrb[32].mxu0 }
 0x137   :  { %v1952_v57 = vpop.f32.mrb[32].mxu1  ;;  %v1889_v58 = vpop.f32.mrb[33].mxu0 }
 0x138   :  { %v1890_v59 = vadd.f32 %v1889_v58, %v1888_v56  ;;  %v1953_v60 = vpop.f32.mrb[33].mxu1  ;;  %v1891_v61 = vpop.f32.mrb[34].mxu0 }
 0x139   :  { %v1954_v62 = vadd.f32 %v1953_v60, %v1952_v57  ;;  %v1955_v63 = vpop.f32.mrb[34].mxu1  ;;  %v1892_v0 = vpop.f32.mrb[35].mxu0 }
 0x13a   :  { %v1179_v1 = vadd.f32 %v1890_v59, %v2473_v11  ;;  %v1893_v2 = vadd.f32 %v1892_v0, %v1891_v61  ;;  %v1956_v4 = vpop.f32.mrb[35].mxu1 }
 0x13b   :  { %v1957_v7 = vadd.f32 %v1956_v4, %v1955_v63 }
 0x13c   :  { %v1276_v8 = vadd.f32 %v1954_v62, %v1179_v1  ;;  %v1182_v9 = vadd.f32 %v1893_v2, %v2475_v13 }
 0x13e   :  { %v1396_v12 = vmul.f32 %v2509_v6, %v1276_v8  ;;  %v1279_v14 = vadd.f32 %v1957_v7, %v1182_v9  ;;  %v1894_v11 = vpop.f32.mrb[36].mxu0 }
 0x13f   :  { %v1958_v15 = vpop.f32.mrb[36].mxu1  ;;  %v1895_v16 = vpop.f32.mrb[37].mxu0 }
 0x140   :  { %v1419_v17 = vadd.f32 %v2515_v10, %v1396_v12  ;;  %v1397_v18 = vmul.f32 %v2509_v6, %v1279_v14  ;;  %v1896_v20 = vadd.f32 %v1895_v16, %v1894_v11  ;;  %v1959_v22 = vpop.f32.mrb[37].mxu1  ;;  %v1897_v23 = vpop.f32.mrb[38].mxu0 }
 0x141   :  { %v1960_v24 = vadd.f32 %v1959_v22, %v1958_v15  ;;  %v1961_v13 = vpop.f32.mrb[38].mxu1  ;;  %v1898_v26 = vpop.f32.mrb[39].mxu0 }
 0x142   :  { %v1420_v28 = vadd.f32 %v2515_v10, %v1397_v18  ;;  %v1187_v29 = vadd.f32 %v1896_v20, %v2477_v25  ;;  %v1899_v30 = vadd.f32 %v1898_v26, %v1897_v23  ;;  %v1962_v31 = vpop.f32.mrb[39].mxu1  ;;  %v1435_v33 = vmax.f32 %v1419_v17, 0.0 }
 0x143   :  { %v1963_v32 = vadd.f32 %v1962_v31, %v1961_v13 }
 0x144   :  { %v1436_v34 = vmax.f32 %v1420_v28, 0.0  ;;  %v1284_v36 = vadd.f32 %v1960_v24, %v1187_v29  ;;  %v1190_v38 = vadd.f32 %v1899_v30, %v2479_v27 }
 0x146   :  { %v1700_v40 = vpack.c.bf16 %v1436_v34, %v1435_v33  ;;  %v1398_v42 = vmul.f32 %v2509_v6, %v1284_v36  ;;  %v1287_v43 = vadd.f32 %v1963_v32, %v1190_v38  ;;  %v1900_v44 = vpop.f32.mrb[40].mxu0 }
 0x147   :  { %v1964_v45 = vpop.f32.mrb[40].mxu1  ;;  %v1901_v46 = vpop.f32.mrb[41].mxu0 }
 0x148   :  { %1701 = vst [vmem:[%s2591_s4] sm:$0xff] %v1700_v40   ;;  %v1421_v25 = vadd.f32 %v2515_v10, %v1398_v42  ;;  %v1399_v47 = vmul.f32 %v2509_v6, %v1287_v43  ;;  %v1902_v48 = vadd.f32 %v1901_v46, %v1900_v44  ;;  %v1965_v49 = vpop.f32.mrb[41].mxu1  ;;  %v1903_v50 = vpop.f32.mrb[42].mxu0 }
 0x149   :  { %v1966_v52 = vadd.f32 %v1965_v49, %v1964_v45  ;;  %v1967_v27 = vpop.f32.mrb[42].mxu1  ;;  %v1904_v56 = vpop.f32.mrb[43].mxu0 }
 0x14a   :  { %v1422_v57 = vadd.f32 %v2515_v10, %v1399_v47  ;;  %v1195_v58 = vadd.f32 %v1902_v48, %v2481_v39  ;;  %v1905_v59 = vadd.f32 %v1904_v56, %v1903_v50  ;;  %v1968_v60 = vpop.f32.mrb[43].mxu1  ;;  %v1437_v62 = vmax.f32 %v1421_v25, 0.0 }
 0x14b   :  { %v1969_v61 = vadd.f32 %v1968_v60, %v1967_v27 }
 0x14c   :  { %v1438_v63 = vmax.f32 %v1422_v57, 0.0  ;;  %v1292_v0 = vadd.f32 %v1966_v52, %v1195_v58  ;;  %v1198_v1 = vadd.f32 %v1905_v59, %v2483_v41 }
 0x14e   :  { %v1705_v2 = vpack.c.bf16 %v1438_v63, %v1437_v62  ;;  %v1400_v4 = vmul.f32 %v2509_v6, %v1292_v0  ;;  %v1295_v7 = vadd.f32 %v1969_v61, %v1198_v1  ;;  %v1906_v8 = vpop.f32.mrb[44].mxu0 }
 0x14f   :  { %v1970_v9 = vpop.f32.mrb[44].mxu1  ;;  %v1907_v12 = vpop.f32.mrb[45].mxu0 }
 0x150   :  { %1737 = vst [vmem:[%s2591_s4 + $0x8] sm:$0xff] %v1705_v2   ;;  %v1423_v39 = vadd.f32 %v2515_v10, %v1400_v4  ;;  %v1401_v14 = vmul.f32 %v2509_v6, %v1295_v7  ;;  %v1908_v11 = vadd.f32 %v1907_v12, %v1906_v8  ;;  %v1971_v15 = vpop.f32.mrb[45].mxu1  ;;  %v1909_v16 = vpop.f32.mrb[46].mxu0 }
 0x151   :  { %v1972_v17 = vadd.f32 %v1971_v15, %v1970_v9  ;;  %v1973_v41 = vpop.f32.mrb[46].mxu1  ;;  %v1910_v18 = vpop.f32.mrb[47].mxu0 }
 0x152   :  { %v1424_v20 = vadd.f32 %v2515_v10, %v1401_v14  ;;  %v1203_v22 = vadd.f32 %v1908_v11, %v2485_v53  ;;  %v1911_v23 = vadd.f32 %v1910_v18, %v1909_v16  ;;  %v1974_v24 = vpop.f32.mrb[47].mxu1  ;;  %v1439_v26 = vmax.f32 %v1423_v39, 0.0 }
 0x153   :  { %v1975_v13 = vadd.f32 %v1974_v24, %v1973_v41 }
 0x154   :  { %v1440_v28 = vmax.f32 %v1424_v20, 0.0  ;;  %v1300_v29 = vadd.f32 %v1972_v17, %v1203_v22  ;;  %v1206_v30 = vadd.f32 %v1911_v23, %v2487_v55 }
 0x156   :  { %v1710_v31 = vpack.c.bf16 %v1440_v28, %v1439_v26  ;;  %v1402_v32 = vmul.f32 %v2509_v6, %v1300_v29  ;;  %v1303_v33 = vadd.f32 %v1975_v13, %v1206_v30  ;;  %v1912_v34 = vpop.f32.mrb[48].mxu0 }
 0x157   :  { %v1976_v36 = vpop.f32.mrb[48].mxu1  ;;  %v1913_v38 = vpop.f32.mrb[49].mxu0 }
 0x158   :  { %1738 = vst [vmem:[%s2591_s4 + $0x10] sm:$0xff] %v1710_v31   ;;  %v1425_v53 = vadd.f32 %v2515_v10, %v1402_v32  ;;  %v1403_v40 = vmul.f32 %v2509_v6, %v1303_v33  ;;  %v1914_v42 = vadd.f32 %v1913_v38, %v1912_v34  ;;  %v1977_v43 = vpop.f32.mrb[49].mxu1  ;;  %v1915_v44 = vpop.f32.mrb[50].mxu0 }
 0x159   :  { %v1978_v45 = vadd.f32 %v1977_v43, %v1976_v36  ;;  %v1979_v55 = vpop.f32.mrb[50].mxu1  ;;  %v1916_v46 = vpop.f32.mrb[51].mxu0 }
 0x15a   :  { %v1426_v25 = vadd.f32 %v2515_v10, %v1403_v40  ;;  %v1211_v47 = vadd.f32 %v1914_v42, %v2489_v3  ;;  %v1917_v48 = vadd.f32 %v1916_v46, %v1915_v44  ;;  %v1980_v49 = vpop.f32.mrb[51].mxu1  ;;  %v1441_v52 = vmax.f32 %v1425_v53, 0.0 }
 0x15b   :  { %v1981_v50 = vadd.f32 %v1980_v49, %v1979_v55 }
 0x15c   :  { %v1442_v27 = vmax.f32 %v1426_v25, 0.0  ;;  %v1308_v56 = vadd.f32 %v1978_v45, %v1211_v47  ;;  %v1214_v57 = vadd.f32 %v1917_v48, %v2491_v5 }
 0x15e   :  { %v1715_v58 = vpack.c.bf16 %v1442_v27, %v1441_v52  ;;  %v1404_v59 = vmul.f32 %v2509_v6, %v1308_v56  ;;  %v1311_v60 = vadd.f32 %v1981_v50, %v1214_v57  ;;  %v1918_v61 = vpop.f32.mrb[52].mxu0 }
 0x15f   :  { %v1982_v62 = vpop.f32.mrb[52].mxu1  ;;  %v1919_v63 = vpop.f32.mrb[53].mxu0 }
 0x160   :  { %1739 = vst [vmem:[%s2591_s4 + $0x18] sm:$0xff] %v1715_v58   ;;  %v1427_v3 = vadd.f32 %v2515_v10, %v1404_v59  ;;  %v1405_v0 = vmul.f32 %v2509_v6, %v1311_v60  ;;  %v1920_v1 = vadd.f32 %v1919_v63, %v1918_v61  ;;  %v1983_v2 = vpop.f32.mrb[53].mxu1  ;;  %v1921_v4 = vpop.f32.mrb[54].mxu0 }
 0x161   :  { %v1984_v7 = vadd.f32 %v1983_v2, %v1982_v62  ;;  %v1985_v5 = vpop.f32.mrb[54].mxu1  ;;  %v1922_v8 = vpop.f32.mrb[55].mxu0 }
 0x162   :  { %v1428_v9 = vadd.f32 %v2515_v10, %v1405_v0  ;;  %v1219_v12 = vadd.f32 %v1920_v1, %v2493_v19  ;;  %v1923_v39 = vadd.f32 %v1922_v8, %v1921_v4  ;;  %v1986_v14 = vpop.f32.mrb[55].mxu1  ;;  %v1443_v15 = vmax.f32 %v1427_v3, 0.0 }
 0x163   :  { %v1987_v11 = vadd.f32 %v1986_v14, %v1985_v5 }
 0x164   :  { %v1444_v16 = vmax.f32 %v1428_v9, 0.0  ;;  %v1316_v17 = vadd.f32 %v1984_v7, %v1219_v12  ;;  %v1222_v41 = vadd.f32 %v1923_v39, %v2495_v21 }
 0x166   :  { %v1720_v18 = vpack.c.bf16 %v1444_v16, %v1443_v15  ;;  %v1406_v20 = vmul.f32 %v2509_v6, %v1316_v17  ;;  %v1319_v22 = vadd.f32 %v1987_v11, %v1222_v41  ;;  %v1924_v23 = vpop.f32.mrb[56].mxu0 }
 0x167   :  { %v1988_v24 = vpop.f32.mrb[56].mxu1  ;;  %v1925_v13 = vpop.f32.mrb[57].mxu0 }
 0x168   :  { %1740 = vst [vmem:[%s2591_s4 + $0x20] sm:$0xff] %v1720_v18   ;;  %v1429_v19 = vadd.f32 %v2515_v10, %v1406_v20  ;;  %v1407_v26 = vmul.f32 %v2509_v6, %v1319_v22  ;;  %v1926_v28 = vadd.f32 %v1925_v13, %v1924_v23  ;;  %v1989_v29 = vpop.f32.mrb[57].mxu1  ;;  %v1927_v30 = vpop.f32.mrb[58].mxu0 }
 0x169   :  { %v1990_v31 = vadd.f32 %v1989_v29, %v1988_v24  ;;  %v1991_v21 = vpop.f32.mrb[58].mxu1  ;;  %v1928_v32 = vpop.f32.mrb[59].mxu0 }
 0x16a   :  { %v1430_v33 = vadd.f32 %v2515_v10, %v1407_v26  ;;  %v1227_v34 = vadd.f32 %v1926_v28, %v2497_v35  ;;  %v1929_v36 = vadd.f32 %v1928_v32, %v1927_v30  ;;  %v1992_v38 = vpop.f32.mrb[59].mxu1  ;;  %v1445_v40 = vmax.f32 %v1429_v19, 0.0 }
 0x16b   :  { %v1993_v53 = vadd.f32 %v1992_v38, %v1991_v21 }
 0x16c   :  { %v1446_v42 = vmax.f32 %v1430_v33, 0.0  ;;  %v1324_v43 = vadd.f32 %v1990_v31, %v1227_v34  ;;  %v1230_v44 = vadd.f32 %v1929_v36, %v2499_v37 }
 0x16e   :  { %v1725_v45 = vpack.c.bf16 %v1446_v42, %v1445_v40  ;;  %v1408_v55 = vmul.f32 %v2509_v6, %v1324_v43  ;;  %v1327_v46 = vadd.f32 %v1993_v53, %v1230_v44  ;;  %v1930_v25 = vpop.f32.mrb[60].mxu0 }
 0x16f   :  { %v1994_v47 = vpop.f32.mrb[60].mxu1  ;;  %v1931_v48 = vpop.f32.mrb[61].mxu0 }
 0x170   :  { %1741 = vst [vmem:[%s2591_s4 + $0x28] sm:$0xff] %v1725_v45   ;;  %v1431_v35 = vadd.f32 %v2515_v10, %v1408_v55  ;;  %v1409_v49 = vmul.f32 %v2509_v6, %v1327_v46  ;;  %v1932_v50 = vadd.f32 %v1931_v48, %v1930_v25  ;;  %v1995_v52 = vpop.f32.mrb[61].mxu1  ;;  %v1933_v27 = vpop.f32.mrb[62].mxu0 }
 0x171   :  { %v1996_v56 = vadd.f32 %v1995_v52, %v1994_v47  ;;  %v1997_v37 = vpop.f32.mrb[62].mxu1  ;;  %v1934_v57 = vpop.f32.mrb[63].mxu0 }
 0x172   :  { %v1432_v58 = vadd.f32 %v2515_v10, %v1409_v49  ;;  %v1235_v59 = vadd.f32 %v1932_v50, %v2501_v51  ;;  %v1935_v60 = vadd.f32 %v1934_v57, %v1933_v27  ;;  %v1998_v61 = vpop.f32.mrb[63].mxu1  ;;  %v1447_v63 = vmax.f32 %v1431_v35, 0.0 }
 0x173   :  { %v1999_v62 = vadd.f32 %v1998_v61, %v1997_v37 }
 0x174   :  { %v1448_v3 = vmax.f32 %v1432_v58, 0.0  ;;  %v1332_v0 = vadd.f32 %v1996_v56, %v1235_v59  ;;  %v1238_v1 = vadd.f32 %v1935_v60, %v2503_v54 }
 0x176   :  { %v1730_v2 = vpack.c.bf16 %v1448_v3, %v1447_v63  ;;  %v1410_v4 = vmul.f32 %v2509_v6, %v1332_v0  ;;  %v1335_v7 = vadd.f32 %v1999_v62, %v1238_v1 }
 0x178   :  { %1742 = vst [vmem:[%s2591_s4 + $0x30] sm:$0xff] %v1730_v2   ;;  %v1433_v5 = vadd.f32 %v2515_v10, %v1410_v4  ;;  %v1411_v51 = vmul.f32 %v2509_v6, %v1335_v7 }
 0x17a   :  { %v1434_v8 = vadd.f32 %v2515_v10, %v1411_v51  ;;  %v1449_v9 = vmax.f32 %v1433_v5, 0.0 }
 0x17c   :  { %v1450_v12 = vmax.f32 %v1434_v8, 0.0 }
 0x17e   :  { %v1735_v39 = vpack.c.bf16 %v1450_v12, %v1449_v9 }
 0x180   :  { %1743 = vst [vmem:[%s2591_s4 + $0x38] sm:$0xff] %v1735_v39  }

// kernel: generator_forward.41
= control target key start
LH: loop header
LB: loop body
LE: loop exit
PB: predicated region body
PF: predicated region fallthrough
CT: control target
= control target key end

     0   :  { %s267_s6 = smov 0   ;;  %s291_s0 = inlined_call_operand.vmem [shape: bf16[2,16,128], index: 0, kind: input, shape index: {}]   ;;  %s292_s1 = inlined_call_operand.vmem [shape: bf16[2,16,128], index: 1, kind: output, shape index: {}]  }
   0x1 LB: > { %s213_s7 = sadd.s32 4294967295, %s255_s6   ;;  %p217_p0 = scmp.ge.s32.totalorder %s255_s6, 1  ;;  %s255_s6 = sphi %s267_s6, %s11_s6  }
   0x2   : > { %p87_p1 = scmp.lt.s32.totalorder %s255_s6, 3 }
   0x4   : > { %p88_p2 = pnand %p217_p0, %p87_p1 }
   0x5   : > { %p107_p3 = scmp.lt.s32.totalorder (!%p88_p2), %s213_s7, 1 }
   0x6   : > { %91 = sbr.rel (%p88_p2) target bundleno = 75 (0x4b), region = 24 }
   0xd   : > { %s294_s7 = smov (!%p107_p3, %s213_s7), 1 }
   0xe   : > { %s226_s8 = sshll.u32 %s294_s7, 3 }
   0xf   : > { %s111_s11 = scalar_lea.vmem %s291_s0, %s226_s8  ;;  %s116_s14 = scalar_lea.vmem %s292_s1, %s226_s8 }
  0x10   : > { %v231_v0 = vld [vmem:[%s111_s11] sm:$0xff]  }
  0x11   : > { %v232_v1 = vunpack.c.l.bf16 %v231_v0  ;;  %v233_v2 = vunpack.c.h.bf16 %v231_v0 }
  0x13   : > { %v121_v3 = vadd.f32 %v233_v2, %v232_v1 }
  0x15   : > { %v122_v4 = vrot.slane %v121_v3, 4 }
  0x17   : > { %v123_v5 = vadd.f32 %v122_v4, %v121_v3 }
  0x19   : > { %v124_v6 = vrot.slane %v123_v5, 2 }
  0x1b   : > { %v125_v7 = vadd.f32 %v124_v6, %v123_v5 }
  0x1d   : > { %v126_v8 = vrot.slane %v125_v7, 1 }
  0x1f   : > { %v127_v9 = vadd.f32 %v126_v8, %v125_v7 }
  0x21   : > { %v129_v10 = vmul.f32 0.0625, %v127_v9 }
  0x23   : > { %v130_v11 = vsub.f32 %v232_v1, %v129_v10  ;;  %v131_v12 = vsub.f32 %v233_v2, %v129_v10 }
  0x25   : > { %v132_v13 = vmul.f32 %v130_v11, %v130_v11  ;;  %v133_v14 = vmul.f32 %v131_v12, %v131_v12 }
  0x27   : > { %v134_v15 = vadd.f32 %v133_v14, %v132_v13 }
  0x29   : > { %v135_v16 = vrot.slane %v134_v15, 4 }
  0x2b   : > { %v136_v17 = vadd.f32 %v135_v16, %v134_v15 }
  0x2d   : > { %v137_v18 = vrot.slane %v136_v17, 2 }
  0x2f   : > { %v138_v19 = vadd.f32 %v137_v18, %v136_v17 }
  0x31   : > { %v139_v20 = vrot.slane %v138_v19, 1 }
  0x33   : > { %v140_v21 = vadd.f32 %v139_v20, %v138_v19 }
  0x35   : > { %v141_v22 = vmul.f32 0.0625, %v140_v21 }
  0x37   : > { %v142_v23 = vadd.f32 1e-05, %v141_v22 }
  0x39   : > { %247 = vrsqrt.f32 %v142_v23 }
  0x43   : > { %v248_v24 = vpop.eup %247 }
  0x44   : > { %v144_v25 = vmul.f32 %v248_v24, %v130_v11  ;;  %v145_v26 = vmul.f32 %v248_v24, %v131_v12 }
  0x46   : > { %v146_v27 = vmax.f32 %v144_v25, 0.0  ;;  %v147_v28 = vmax.f32 %v145_v26, 0.0 }
  0x48   : > { %v237_v29 = vpack.c.bf16 %v147_v28, %v146_v27 }
  0x4a   : > { %238 = vst [vmem:[%s116_s14] sm:$0xff] %v237_v29  }
  0x4b PF: > { %s11_s6 = sadd.s32 1, %s255_s6  }
  0x4c   : > { %p8_p4 = scmp.ge.s32.totalorder %s11_s6, 4  }
  0x4e   :  { %10 = sbr.rel (!%p8_p4) target bundleno = 1 (0x1), region = 54 }

// kernel: generator_forward.43
= control target key start
LH: loop header
LB: loop body
LE: loop exit
PB: predicated region body
PF: predicated region fallthrough
CT: control target
= control target key end

     0   :  { %s342_s9 = smov 0   ;;  %s367_s0 = inlined_call_operand.vmem [shape: bf16[2,16,128], index: 0, kind: input, shape index: {}]   ;;  %s368_s1 = inlined_call_operand.vmem [shape: bf16[2,16,128], index: 1, kind: input, shape index: {}]   ;;  %s369_s2 = inlined_call_operand.vmem [shape: bf16[2,16,128], index: 2, kind: output, shape index: {}]  }
   0x1 LB: > { %s276_s10 = sadd.s32 4294967295, %s325_s9   ;;  %p280_p0 = scmp.ge.s32.totalorder %s325_s9, 1  ;;  %s325_s9 = sphi %s342_s9, %s12_s9  }
   0x2   : > { %p122_p1 = scmp.lt.s32.totalorder %s325_s9, 3 }
   0x4   : > { %p123_p2 = pnand %p280_p0, %p122_p1 }
   0x5   : > { %p149_p3 = scmp.lt.s32.totalorder (!%p123_p2), %s276_s10, 1 }
   0x6   : > { %126 = sbr.rel (%p123_p2) target bundleno = 75 (0x4b), region = 28 }
   0xd   : > { %s371_s10 = smov (!%p149_p3, %s276_s10), 1 }
   0xe   : > { %s350_s11 = sshll.u32 %s371_s10, 3 }
   0xf   : > { %s153_s14 = scalar_lea.vmem %s367_s0, %s350_s11  ;;  %s158_s17 = scalar_lea.vmem %s368_s1, %s350_s11 }
  0x10   : > { %v297_v0 = vld [vmem:[%s153_s14] sm:$0xff]   ;;  %s163_s20 = scalar_lea.vmem %s369_s2, %s350_s11 }
  0x11   : > { %v298_v1 = vunpack.c.l.bf16 %v297_v0  ;;  %v299_v2 = vunpack.c.h.bf16 %v297_v0  ;;  %v301_v24 = vld [vmem:[%s158_s17] sm:$0xff]  }
  0x12   : > { %v302_v25 = vunpack.c.l.bf16 %v301_v24  ;;  %v303_v26 = vunpack.c.h.bf16 %v301_v24 }
  0x13   : > { %v168_v3 = vadd.f32 %v299_v2, %v298_v1 }
  0x15   : > { %v169_v4 = vrot.slane %v168_v3, 4 }
  0x17   : > { %v170_v5 = vadd.f32 %v169_v4, %v168_v3 }
  0x19   : > { %v171_v6 = vrot.slane %v170_v5, 2 }
  0x1b   : > { %v172_v7 = vadd.f32 %v171_v6, %v170_v5 }
  0x1d   : > { %v173_v8 = vrot.slane %v172_v7, 1 }
  0x1f   : > { %v174_v9 = vadd.f32 %v173_v8, %v172_v7 }
  0x21   : > { %v176_v10 = vmul.f32 0.0625, %v174_v9 }
  0x23   : > { %v177_v11 = vsub.f32 %v298_v1, %v176_v10  ;;  %v178_v12 = vsub.f32 %v299_v2, %v176_v10 }
  0x25   : > { %v179_v13 = vmul.f32 %v177_v11, %v177_v11  ;;  %v180_v14 = vmul.f32 %v178_v12, %v178_v12 }
  0x27   : > { %v181_v15 = vadd.f32 %v180_v14, %v179_v13 }
  0x29   : > { %v182_v16 = vrot.slane %v181_v15, 4 }
  0x2b   : > { %v183_v17 = vadd.f32 %v182_v16, %v181_v15 }
  0x2d   : > { %v184_v18 = vrot.slane %v183_v17, 2 }
  0x2f   : > { %v185_v19 = vadd.f32 %v184_v18, %v183_v17 }
  0x31   : > { %v186_v20 = vrot.slane %v185_v19, 1 }
  0x33   : > { %v187_v21 = vadd.f32 %v186_v20, %v185_v19 }
  0x35   : > { %v188_v22 = vmul.f32 0.0625, %v187_v21 }
  0x37   : > { %v189_v23 = vadd.f32 1e-05, %v188_v22 }
  0x39   : > { %317 = vrsqrt.f32 %v189_v23 }
  0x43   : > { %v318_v27 = vpop.eup %317 }
  0x44   : > { %v191_v28 = vmul.f32 %v318_v27, %v177_v11  ;;  %v192_v29 = vmul.f32 %v318_v27, %v178_v12 }
  0x46   : > { %v197_v30 = vadd.f32 %v302_v25, %v191_v28  ;;  %v198_v31 = vadd.f32 %v303_v26, %v192_v29 }
  0x48   : > { %v307_v32 = vpack.c.bf16 %v198_v31, %v197_v30 }
  0x4a   : > { %308 = vst [vmem:[%s163_s20] sm:$0xff] %v307_v32  }
  0x4b PF: > { %s12_s9 = sadd.s32 1, %s325_s9  }
  0x4c   : > { %p9_p4 = scmp.ge.s32.totalorder %s12_s9, 4  }
  0x4e   :  { %11 = sbr.rel (!%p9_p4) target bundleno = 1 (0x1), region = 61 }

// kernel: generator_forward.40
= control target key start
LH: loop header
LB: loop body
LE: loop exit
PB: predicated region body
PF: predicated region fallthrough
CT: control target
= control target key end

     0   :  { %s3051_s1 = inlined_call_operand.vmem [shape: bf16[1152,128], index: 1, kind: input, shape index: {}]   ;;  %s3052_s0 = inlined_call_operand.vmem [shape: bf16[128,1152], index: 0, kind: input, shape index: {}]   ;;  %s3053_s2 = inlined_call_operand.vmem [shape: f32[1,128], index: 2, kind: input, shape index: {}]   ;;  %s3054_s3 = inlined_call_operand.vmem [shape: f32[1,128], index: 3, kind: input, shape index: {}]   ;;  %s3055_s4 = inlined_call_operand.vmem [shape: bf16[128,128], index: 4, kind: output, shape index: {}]  }
   0x1   :  { %v2289_v0 = vld [vmem:[%s3051_s1 + $0x40] sm:$0xff]   ;;  %v2293_v4 = vld [vmem:[%s3051_s1 + $0x48] sm:$0xff]   ;;  %v2297_v8 = vld [vmem:[%s3051_s1 + $0x50] sm:$0xff]  }
   0x2   :  { %v2290_v1 = vld [vmem:[%s3051_s1 + $0xc0] sm:$0xff]   ;;  %1969 = vmatprep.subr.bf16.mxu0 %v2289_v0  ;;  %v2294_v5 = vld [vmem:[%s3051_s1 + $0xc8] sm:$0xff]   ;;  %v2298_v9 = vld [vmem:[%s3051_s1 + $0xd0] sm:$0xff]  }
   0x3   :  { %v2291_v2 = vld [vmem:[%s3051_s1] sm:$0xff]   ;;  %2033 = vmatprep.subr.bf16.mxu1 %v2290_v1  ;;  %v2295_v6 = vld [vmem:[%s3051_s1 + $0x8] sm:$0xff]   ;;  %v2299_v10 = vld [vmem:[%s3051_s1 + $0x10] sm:$0xff]  }
   0x4   :  { %v2292_v3 = vld [vmem:[%s3051_s1 + $0x80] sm:$0xff]   ;;  %1970 = vmatpush3.bf16.msra.mxu0 %v2291_v2  ;;  %v2296_v7 = vld [vmem:[%s3051_s1 + $0x88] sm:$0xff]   ;;  %v2300_v11 = vld [vmem:[%s3051_s1 + $0x90] sm:$0xff]  }
   0x5   :  { %2034 = vmatpush3.bf16.msra.mxu1 %v2292_v3  ;;  %1971 = vmatprep.subr.bf16.mxu0 %v2293_v4  ;;  %v2301_v12 = vld [vmem:[%s3051_s1 + $0x58] sm:$0xff]   ;;  %v2305_v16 = vld [vmem:[%s3051_s1 + $0x60] sm:$0xff]   ;;  %v2309_v20 = vld [vmem:[%s3051_s1 + $0x68] sm:$0xff]  }
   0x6   :  { %2035 = vmatprep.subr.bf16.mxu1 %v2294_v5  ;;  %v2302_v13 = vld [vmem:[%s3051_s1 + $0xd8] sm:$0xff]   ;;  %v2306_v17 = vld [vmem:[%s3051_s1 + $0xe0] sm:$0xff]   ;;  %v2310_v21 = vld [vmem:[%s3051_s1 + $0xe8] sm:$0xff]  }
   0x7   :  { %v2303_v14 = vld [vmem:[%s3051_s1 + $0x18] sm:$0xff]   ;;  %v2307_v18 = vld [vmem:[%s3051_s1 + $0x20] sm:$0xff]   ;;  %v2311_v22 = vld [vmem:[%s3051_s1 + $0x28] sm:$0xff]  }
   0x8   :  { %1972 = vmatpush3.bf16.msra.mxu0 %v2295_v6  ;;  %v2304_v15 = vld [vmem:[%s3051_s1 + $0x98] sm:$0xff]   ;;  %v2308_v19 = vld [vmem:[%s3051_s1 + $0xa0] sm:$0xff]   ;;  %v2312_v23 = vld [vmem:[%s3051_s1 + $0xa8] sm:$0xff]  }
   0x9   :  { %2036 = vmatpush3.bf16.msra.mxu1 %v2296_v7  ;;  %1973 = vmatprep.subr.bf16.mxu0 %v2297_v8  ;;  %v2313_v24 = vld [vmem:[%s3051_s1 + $0x70] sm:$0xff]   ;;  %v2317_v28 = vld [vmem:[%s3051_s1 + $0x78] sm:$0xff]   ;;  %v2321_v32 = vld [vmem:[%s3052_s0] ss:$36 sps:$4 sm:$0xff]  }
   0xa   :  { %2037 = vmatprep.subr.bf16.mxu1 %v2298_v9  ;;  %v2314_v25 = vld [vmem:[%s3051_s1 + $0xf0] sm:$0xff]   ;;  %v2318_v29 = vld [vmem:[%s3051_s1 + $0xf8] sm:$0xff]   ;;  %v2323_v33 = vld [vmem:[%s3052_s0 + $0x4] ss:$36 sps:$4 sm:$0xff]  }
   0xb   :  { %v2315_v26 = vld [vmem:[%s3051_s1 + $0x30] sm:$0xff]   ;;  %v2319_v30 = vld [vmem:[%s3051_s1 + $0x38] sm:$0xff]   ;;  %v2324_v34 = vld [vmem:[%s3052_s0 + $0x8] ss:$36 sps:$4 sm:$0xff]   ;;  %1110 = vmatprep.mubr.bf16.mxu0 %v2323_v33 }
   0xc   :  { %1974 = vmatpush3.bf16.msra.mxu0 %v2299_v10  ;;  %v2316_v27 = vld [vmem:[%s3051_s1 + $0xb0] sm:$0xff]   ;;  %v2320_v31 = vld [vmem:[%s3051_s1 + $0xb8] sm:$0xff]   ;;  %v2327_v36 = vld [vmem:[%s3051_s1 + $0x140] sm:$0xff]  }
   0xd   :  { %2038 = vmatpush3.bf16.msra.mxu1 %v2300_v11  ;;  %1975 = vmatprep.subr.bf16.mxu0 %v2301_v12  ;;  %v2326_v35 = vld [vmem:[%s3052_s0 + $0xc] ss:$36 sps:$4 sm:$0xff]   ;;  %v2328_v37 = vld [vmem:[%s3051_s1 + $0x1c0] sm:$0xff]   ;;  %v2333_v41 = vld [vmem:[%s3052_s0 + $0x54] ss:$36 sps:$4 sm:$0xff]  }
   0xe   :  { %2039 = vmatprep.subr.bf16.mxu1 %v2302_v13  ;;  %1207 = vmatprep.mubr.bf16.mxu1 %v2326_v35  ;;  %v2329_v38 = vld [vmem:[%s3051_s1 + $0x100] sm:$0xff]   ;;  %v2331_v40 = vld [vmem:[%s3052_s0 + $0x4c] ss:$36 sps:$4 sm:$0xff]   ;;  %v2341_v48 = vld [vmem:[%s3052_s0 + $0x94] ss:$36 sps:$4 sm:$0xff]  }
   0xf   :  { %v2330_v39 = vld [vmem:[%s3051_s1 + $0x180] sm:$0xff]   ;;  %v2335_v42 = vld [vmem:[%s3052_s0 + $0x48] ss:$36 sps:$4 sm:$0xff]   ;;  %v2336_v43 = vld [vmem:[%s3052_s0 + $0x50] ss:$36 sps:$4 sm:$0xff]  }
  0x10   :  { %1976 = vmatpush3.bf16.msra.mxu0 %v2303_v14  ;;  %v2337_v44 = vld [vmem:[%s3051_s1 + $0x148] sm:$0xff]   ;;  %v2343_v49 = vld [vmem:[%s3052_s0 + $0x9c] ss:$36 sps:$4 sm:$0xff]   ;;  %v2345_v50 = vld [vmem:[%s3052_s0 + $0x90] ss:$36 sps:$4 sm:$0xff]  }
  0x11   :  { %2040 = vmatpush3.bf16.msra.mxu1 %v2304_v15  ;;  %1977 = vmatprep.subr.bf16.mxu0 %v2305_v16  ;;  %v2338_v45 = vld [vmem:[%s3051_s1 + $0x1c8] sm:$0xff]   ;;  %v2346_v51 = vld [vmem:[%s3052_s0 + $0x98] ss:$36 sps:$4 sm:$0xff]   ;;  %v2347_v52 = vld [vmem:[%s3051_s1 + $0x150] sm:$0xff]  }
  0x12   :  { %2041 = vmatprep.subr.bf16.mxu1 %v2306_v17  ;;  %v2339_v46 = vld [vmem:[%s3051_s1 + $0x108] sm:$0xff]   ;;  %v2348_v53 = vld [vmem:[%s3051_s1 + $0x1d0] sm:$0xff]   ;;  %v2351_v56 = vld [vmem:[%s3052_s0 + $0xdc] ss:$36 sps:$4 sm:$0xff]  }
  0x13   :  { %v2340_v47 = vld [vmem:[%s3051_s1 + $0x188] sm:$0xff]   ;;  %v2349_v54 = vld [vmem:[%s3051_s1 + $0x110] sm:$0xff]   ;;  %v2355_v58 = vld [vmem:[%s3052_s0 + $0xd8] ss:$36 sps:$4 sm:$0xff]  }
  0x14   :  { %1978 = vmatpush3.bf16.msra.mxu0 %v2307_v18  ;;  %v2350_v55 = vld [vmem:[%s3051_s1 + $0x190] sm:$0xff]   ;;  %v2353_v57 = vld [vmem:[%s3052_s0 + $0xe4] ss:$36 sps:$4 sm:$0xff]   ;;  %v2357_v60 = vld [vmem:[%s3051_s1 + $0x158] sm:$0xff]  }
  0x15   :  { %2042 = vmatpush3.bf16.msra.mxu1 %v2308_v19  ;;  %1979 = vmatprep.subr.bf16.mxu0 %v2309_v20  ;;  %v2356_v59 = vld [vmem:[%s3052_s0 + $0xe0] ss:$36 sps:$4 sm:$0xff]   ;;  %v2358_v61 = vld [vmem:[%s3051_s1 + $0x1d8] sm:$0xff]   ;;  %v2363_v1 = vld [vmem:[%s3052_s0 + $0x12c] ss:$36 sps:$4 sm:$0xff]  }
  0x16   :  { %2043 = vmatprep.subr.bf16.mxu1 %v2310_v21  ;;  %v2359_v62 = vld [vmem:[%s3051_s1 + $0x118] sm:$0xff]   ;;  %v2361_v0 = vld [vmem:[%s3052_s0 + $0x124] ss:$36 sps:$4 sm:$0xff]   ;;  %v2371_v8 = vld [vmem:[%s3052_s0 + $0x16c] ss:$36 sps:$4 sm:$0xff]  }
  0x17   :  { %v2360_v63 = vld [vmem:[%s3051_s1 + $0x198] sm:$0xff]   ;;  %v2365_v2 = vld [vmem:[%s3052_s0 + $0x120] ss:$36 sps:$4 sm:$0xff]   ;;  %v2366_v4 = vld [vmem:[%s3052_s0 + $0x128] ss:$36 sps:$4 sm:$0xff]  }
  0x18   :  { %1980 = vmatpush3.bf16.msra.mxu0 %v2311_v22  ;;  %v2367_v3 = vld [vmem:[%s3051_s1 + $0x160] sm:$0xff]   ;;  %v2373_v9 = vld [vmem:[%s3052_s0 + $0x174] ss:$36 sps:$4 sm:$0xff]   ;;  %v2377_v10 = vld [vmem:[%s3051_s1 + $0x168] sm:$0xff]  }
  0x19   :  { %2044 = vmatpush3.bf16.msra.mxu1 %v2312_v23  ;;  %1981 = vmatprep.subr.bf16.mxu0 %v2313_v24  ;;  %v2368_v5 = vld [vmem:[%s3051_s1 + $0x1e0] sm:$0xff]   ;;  %v2378_v11 = vld [vmem:[%s3051_s1 + $0x1e8] sm:$0xff]   ;;  %v2376_v15 = vld [vmem:[%s3052_s0 + $0x170] ss:$36 sps:$4 sm:$0xff]  }
  0x1a   :  { %2045 = vmatprep.subr.bf16.mxu1 %v2314_v25  ;;  %v2369_v6 = vld [vmem:[%s3051_s1 + $0x120] sm:$0xff]   ;;  %v2375_v12 = vld [vmem:[%s3052_s0 + $0x168] ss:$36 sps:$4 sm:$0xff]   ;;  %v2381_v16 = vld [vmem:[%s3052_s0 + $0x1b4] ss:$36 sps:$4 sm:$0xff]  }
  0x1b   :  { %v2370_v7 = vld [vmem:[%s3051_s1 + $0x1a0] sm:$0xff]   ;;  %v2379_v13 = vld [vmem:[%s3051_s1 + $0x128] sm:$0xff]   ;;  %v2387_v18 = vld [vmem:[%s3051_s1 + $0x170] sm:$0xff]  }
  0x1c   :  { %1982 = vmatpush3.bf16.msra.mxu0 %v2315_v26  ;;  %v2380_v14 = vld [vmem:[%s3051_s1 + $0x1a8] sm:$0xff]   ;;  %v2383_v17 = vld [vmem:[%s3052_s0 + $0x1bc] ss:$36 sps:$4 sm:$0xff]   ;;  %v2388_v19 = vld [vmem:[%s3051_s1 + $0x1f0] sm:$0xff]  }
  0x1d   :  { %2046 = vmatpush3.bf16.msra.mxu1 %v2316_v27  ;;  %1983 = vmatprep.subr.bf16.mxu0 %v2317_v28  ;;  %v2389_v20 = vld [vmem:[%s3051_s1 + $0x130] sm:$0xff]   ;;  %v2386_v23 = vld [vmem:[%s3052_s0 + $0x1b8] ss:$36 sps:$4 sm:$0xff]   ;;  %v2393_v25 = vld [vmem:[%s3052_s0 + $0x204] ss:$36 sps:$4 sm:$0xff]  }
  0x1e   :  { %2047 = vmatprep.subr.bf16.mxu1 %v2318_v29  ;;  %v2390_v21 = vld [vmem:[%s3051_s1 + $0x1b0] sm:$0xff]   ;;  %v2391_v24 = vld [vmem:[%s3052_s0 + $0x1fc] ss:$36 sps:$4 sm:$0xff]  }
  0x1f   :  { %v2385_v22 = vld [vmem:[%s3052_s0 + $0x1b0] ss:$36 sps:$4 sm:$0xff]   ;;  %v2397_v26 = vld [vmem:[%s3051_s1 + $0x178] sm:$0xff]  }
  0x20   :  { %1984 = vmatpush3.bf16.msra.mxu0 %v2319_v30  ;;  %v2398_v27 = vld [vmem:[%s3051_s1 + $0x1f8] sm:$0xff]   ;;  %v2401_v35 = vld [vmem:[%s3052_s0 + $0x10] ss:$36 sps:$4 sm:$0xff]  }
  0x21   :  { %2048 = vmatpush3.bf16.msra.mxu1 %v2320_v31  ;;  %2097 = vmatprep.subr.bf16.mxu0 %v2327_v36  ;;  %v2399_v28 = vld [vmem:[%s3051_s1 + $0x138] sm:$0xff]   ;;  %v2396_v31 = vld [vmem:[%s3052_s0 + $0x200] ss:$36 sps:$4 sm:$0xff]  }
  0x22   :  { %2161 = vmatprep.subr.bf16.mxu1 %v2328_v37  ;;  %v2400_v29 = vld [vmem:[%s3051_s1 + $0x1b8] sm:$0xff]  }
  0x23   :  { %1111 = vmatmul.mubr.bf16.vlgmr.msra.gmra.mrb[0].mxu0 %v2321_v32  ;;  %v2395_v30 = vld [vmem:[%s3052_s0 + $0x1f8] ss:$36 sps:$4 sm:$0xff]   ;;  %v2407_v32 = vld [vmem:[%s3051_s1 + $0x200] sm:$0xff]  }
  0x24   :  { %1208 = vmatmul.mubr.bf16.vlgmr.msra.gmra.mrb[0].mxu1 %v2324_v34  ;;  %2098 = vmatpush3.bf16.msra.mxu0 %v2329_v38  ;;  %v2403_v33 = vld [vmem:[%s3052_s0 + $0x14] ss:$36 sps:$4 sm:$0xff]   ;;  %v2406_v34 = vld [vmem:[%s3052_s0 + $0x1c] ss:$36 sps:$4 sm:$0xff]   ;;  %v2410_v38 = vld [vmem:[%s3052_s0 + $0x64] ss:$36 sps:$4 sm:$0xff]  }
  0x25   :  { %2162 = vmatpush3.bf16.msra.mxu1 %v2330_v39  ;;  %1118 = vmatprep.mubr.bf16.mxu0 %v2331_v40  ;;  %v2404_v36 = vld [vmem:[%s3052_s0 + $0x18] ss:$36 sps:$4 sm:$0xff]   ;;  %v2414_v39 = vld [vmem:[%s3051_s1 + $0x208] sm:$0xff]   ;;  %v2421_v40 = vld [vmem:[%s3051_s1 + $0x210] sm:$0xff]  }
  0x26   :  { %1215 = vmatprep.mubr.bf16.mxu1 %v2333_v41  ;;  %2099 = vmatprep.subr.bf16.mxu0 %v2337_v44  ;;  %v2408_v37 = vld [vmem:[%s3052_s0 + $0x5c] ss:$36 sps:$4 sm:$0xff]   ;;  %v2417_v44 = vld [vmem:[%s3052_s0 + $0xac] ss:$36 sps:$4 sm:$0xff]  }
  0x27   :  { %2163 = vmatprep.subr.bf16.mxu1 %v2338_v45  ;;  %v2412_v41 = vld [vmem:[%s3052_s0 + $0x58] ss:$36 sps:$4 sm:$0xff]  }
  0x28   :  { %2100 = vmatpush3.bf16.msra.mxu0 %v2339_v46  ;;  %v2428_v45 = vld [vmem:[%s3051_s1 + $0x218] sm:$0xff]   ;;  %v2435_v46 = vld [vmem:[%s3051_s1 + $0x220] sm:$0xff]  }
  0x29   :  { %2164 = vmatpush3.bf16.msra.mxu1 %v2340_v47  ;;  %2101 = vmatprep.subr.bf16.mxu0 %v2347_v52  ;;  %v2419_v47 = vld [vmem:[%s3052_s0 + $0xa0] ss:$36 sps:$4 sm:$0xff]   ;;  %v2426_v52 = vld [vmem:[%s3052_s0 + $0xe8] ss:$36 sps:$4 sm:$0xff]  }
  0x2a   :  { %2165 = vmatprep.subr.bf16.mxu1 %v2348_v53  ;;  %v2449_v53 = vld [vmem:[%s3051_s1 + $0x230] sm:$0xff]  }
  0x2b   :  { %1119 = vmatmul.mubr.bf16.gmra.mrb[4].mxu0 %v2335_v42  ;;  %v2413_v42 = vld [vmem:[%s3052_s0 + $0x60] ss:$36 sps:$4 sm:$0xff]  }
  0x2c   :  { %1216 = vmatmul.mubr.bf16.gmra.mrb[4].mxu1 %v2336_v43  ;;  %1126 = vmatprep.mubr.bf16.mxu0 %v2341_v48  ;;  %v2415_v43 = vld [vmem:[%s3052_s0 + $0xa4] ss:$36 sps:$4 sm:$0xff]  }
  0x2d   :  { %1223 = vmatprep.mubr.bf16.mxu1 %v2343_v49  ;;  %2102 = vmatpush3.bf16.msra.mxu0 %v2349_v54  ;;  %v2420_v48 = vld [vmem:[%s3052_s0 + $0xa8] ss:$36 sps:$4 sm:$0xff]   ;;  %v2427_v54 = vld [vmem:[%s3052_s0 + $0xf0] ss:$36 sps:$4 sm:$0xff]  }
  0x2e   :  { %2166 = vmatpush3.bf16.msra.mxu1 %v2350_v55  ;;  %2103 = vmatprep.subr.bf16.mxu0 %v2357_v60  ;;  %v2422_v49 = vld [vmem:[%s3052_s0 + $0xec] ss:$36 sps:$4 sm:$0xff]   ;;  %v2429_v55 = vld [vmem:[%s3052_s0 + $0x134] ss:$36 sps:$4 sm:$0xff]   ;;  %v2436_v60 = vld [vmem:[%s3052_s0 + $0x17c] ss:$36 sps:$4 sm:$0xff]  }
  0x2f   :  { %2167 = vmatprep.subr.bf16.mxu1 %v2358_v61  ;;  %v2438_v61 = vld [vmem:[%s3052_s0 + $0x184] ss:$36 sps:$4 sm:$0xff]  }
  0x31   :  { %2104 = vmatpush3.bf16.msra.mxu0 %v2359_v62  ;;  %v2440_v62 = vld [vmem:[%s3052_s0 + $0x178] ss:$36 sps:$4 sm:$0xff]  }
  0x32   :  { %2168 = vmatpush3.bf16.msra.mxu1 %v2360_v63  ;;  %2105 = vmatprep.subr.bf16.mxu0 %v2367_v3  ;;  %v2441_v63 = vld [vmem:[%s3052_s0 + $0x180] ss:$36 sps:$4 sm:$0xff]   ;;  %v2448_v3 = vld [vmem:[%s3052_s0 + $0x1c8] ss:$36 sps:$4 sm:$0xff]  }
  0x33   :  { %1127 = vmatmul.mubr.bf16.gmra.mrb[8].mxu0 %v2345_v50  ;;  %2169 = vmatprep.subr.bf16.mxu1 %v2368_v5  ;;  %v2424_v50 = vld [vmem:[%s3052_s0 + $0xf4] ss:$36 sps:$4 sm:$0xff]  }
  0x34   :  { %1224 = vmatmul.mubr.bf16.gmra.mrb[8].mxu1 %v2346_v51  ;;  %1134 = vmatprep.mubr.bf16.mxu0 %v2351_v56  ;;  %v2442_v51 = vld [vmem:[%s3051_s1 + $0x228] sm:$0xff]   ;;  %v2431_v56 = vld [vmem:[%s3052_s0 + $0x13c] ss:$36 sps:$4 sm:$0xff]   ;;  %v2452_v5 = vld [vmem:[%s3052_s0 + $0x214] ss:$36 sps:$4 sm:$0xff]  }
  0x35   :  { %1231 = vmatprep.mubr.bf16.mxu1 %v2353_v57  ;;  %2106 = vmatpush3.bf16.msra.mxu0 %v2369_v6  ;;  %v2456_v57 = vld [vmem:[%s3051_s1 + $0x238] sm:$0xff]   ;;  %v2454_v6 = vld [vmem:[%s3052_s0 + $0x208] ss:$36 sps:$4 sm:$0xff]  }
  0x36   :  { %2170 = vmatpush3.bf16.msra.mxu1 %v2370_v7  ;;  %2107 = vmatprep.subr.bf16.mxu0 %v2377_v10  ;;  %v2455_v7 = vld [vmem:[%s3052_s0 + $0x210] ss:$36 sps:$4 sm:$0xff]   ;;  %v2459_v10 = vld [vmem:[%s3052_s0 + $0x68] ss:$36 sps:$4 sm:$0xff]  }
  0x37   :  { %2171 = vmatprep.subr.bf16.mxu1 %v2378_v11  ;;  %v2460_v11 = vld [vmem:[%s3052_s0 + $0x188] ss:$36 sps:$4 sm:$0xff]  }
  0x39   :  { %2108 = vmatpush3.bf16.msra.mxu0 %v2379_v13  ;;  %v2462_v13 = vld [vmem:[%s3052_s0 + $0x1d0] ss:$36 sps:$4 sm:$0xff]  }
  0x3a   :  { %2172 = vmatpush3.bf16.msra.mxu1 %v2380_v14  ;;  %2109 = vmatprep.subr.bf16.mxu0 %v2387_v18  ;;  %v2463_v14 = vld [vmem:[%s3052_s0 + $0xf8] ss:$36 sps:$4 sm:$0xff]  }
  0x3b   :  { %1135 = vmatmul.mubr.bf16.gmra.mrb[12].mxu0 %v2355_v58  ;;  %2173 = vmatprep.subr.bf16.mxu1 %v2388_v19  ;;  %v2433_v58 = vld [vmem:[%s3052_s0 + $0x130] ss:$36 sps:$4 sm:$0xff]  }
  0x3c   :  { %1232 = vmatmul.mubr.bf16.gmra.mrb[12].mxu1 %v2356_v59  ;;  %1142 = vmatprep.mubr.bf16.mxu0 %v2361_v0  ;;  %v2434_v59 = vld [vmem:[%s3052_s0 + $0x138] ss:$36 sps:$4 sm:$0xff]   ;;  %v2443_v0 = vld [vmem:[%s3052_s0 + $0x1c4] ss:$36 sps:$4 sm:$0xff]  }
  0x3d   :  { %1239 = vmatprep.mubr.bf16.mxu1 %v2363_v1  ;;  %2110 = vmatpush3.bf16.msra.mxu0 %v2389_v20  ;;  %v2445_v1 = vld [vmem:[%s3052_s0 + $0x1cc] ss:$36 sps:$4 sm:$0xff]  }
  0x3e   :  { %2174 = vmatpush3.bf16.msra.mxu1 %v2390_v21  ;;  %2111 = vmatprep.subr.bf16.mxu0 %v2397_v26 }
  0x3f   :  { %2175 = vmatprep.subr.bf16.mxu1 %v2398_v27 }
  0x41   :  { %2112 = vmatpush3.bf16.msra.mxu0 %v2399_v28 }
  0x42   :  { %2176 = vmatpush3.bf16.msra.mxu1 %v2400_v29  ;;  %2241 = vmatprep.subr.bf16.mxu0 %v2407_v32 }
  0x43   :  { %1143 = vmatmul.mubr.bf16.gmra.mrb[16].mxu0 %v2365_v2  ;;  %2273 = vmatprep.subr.bf16.mxu1 %v2407_v32  ;;  %v2447_v2 = vld [vmem:[%s3052_s0 + $0x1c0] ss:$36 sps:$4 sm:$0xff]  }
  0x44   :  { %1240 = vmatmul.mubr.bf16.gmra.mrb[16].mxu1 %v2366_v4  ;;  %1150 = vmatprep.mubr.bf16.mxu0 %v2371_v8  ;;  %v2450_v4 = vld [vmem:[%s3052_s0 + $0x20c] ss:$36 sps:$4 sm:$0xff]   ;;  %v2457_v8 = vld [vmem:[%s3052_s0 + $0x20] ss:$36 sps:$4 sm:$0xff]  }
  0x45   :  { %1247 = vmatprep.mubr.bf16.mxu1 %v2373_v9  ;;  %v2458_v9 = vld [vmem:[%s3052_s0 + $0x140] ss:$36 sps:$4 sm:$0xff]  }
  0x4b   :  { %1151 = vmatmul.mubr.bf16.gmra.mrb[20].mxu0 %v2375_v12  ;;  %v2461_v12 = vld [vmem:[%s3052_s0 + $0xb0] ss:$36 sps:$4 sm:$0xff]  }
  0x4c   :  { %1248 = vmatmul.mubr.bf16.gmra.mrb[20].mxu1 %v2376_v15  ;;  %1158 = vmatprep.mubr.bf16.mxu0 %v2381_v16  ;;  %v2464_v15 = vld [vmem:[%s3052_s0 + $0x218] ss:$36 sps:$4 sm:$0xff]  }
  0x4d   :  { %1255 = vmatprep.mubr.bf16.mxu1 %v2383_v17 }
  0x53   :  { %1159 = vmatmul.mubr.bf16.gmra.mrb[24].mxu0 %v2385_v22 }
  0x54   :  { %1256 = vmatmul.mubr.bf16.gmra.mrb[24].mxu1 %v2386_v23  ;;  %1166 = vmatprep.mubr.bf16.mxu0 %v2391_v24 }
  0x55   :  { %1263 = vmatprep.mubr.bf16.mxu1 %v2393_v25 }
  0x5b   :  { %1167 = vmatmul.mubr.bf16.gmra.mrb[28].mxu0 %v2395_v30 }
  0x5c   :  { %1264 = vmatmul.mubr.bf16.gmra.mrb[28].mxu1 %v2396_v31  ;;  %1304 = vmatprep.mubr.bf16.mxu0 %v2403_v33 }
  0x5d   :  { %1401 = vmatprep.mubr.bf16.mxu1 %v2406_v34 }
  0x63   :  { %1305 = vmatmul.mubr.bf16.vlgmr.msra.gmra.mrb[32].mxu0 %v2401_v35 }
  0x64   :  { %1402 = vmatmul.mubr.bf16.vlgmr.msra.gmra.mrb[32].mxu1 %v2404_v36  ;;  %2242 = vmatpush3.bf16.msra.mxu0 %v2407_v32 }
  0x65   :  { %2281 = vmatpush3.bf16.msra.mxu1 %v2407_v32  ;;  %1312 = vmatprep.mubr.bf16.mxu0 %v2408_v37 }
  0x66   :  { %1409 = vmatprep.mubr.bf16.mxu1 %v2410_v38  ;;  %2243 = vmatprep.subr.bf16.mxu0 %v2414_v39 }
  0x67   :  { %2274 = vmatprep.subr.bf16.mxu1 %v2414_v39 }
  0x68   :  { %2244 = vmatpush3.bf16.msra.mxu0 %v2414_v39 }
  0x69   :  { %2282 = vmatpush3.bf16.msra.mxu1 %v2414_v39  ;;  %2245 = vmatprep.subr.bf16.mxu0 %v2421_v40 }
  0x6a   :  { %2275 = vmatprep.subr.bf16.mxu1 %v2421_v40 }
  0x6b   :  { %1313 = vmatmul.mubr.bf16.gmra.mrb[36].mxu0 %v2412_v41 }
  0x6c   :  { %1410 = vmatmul.mubr.bf16.gmra.mrb[36].mxu1 %v2413_v42  ;;  %1320 = vmatprep.mubr.bf16.mxu0 %v2415_v43 }
  0x6d   :  { %1417 = vmatprep.mubr.bf16.mxu1 %v2417_v44  ;;  %2246 = vmatpush3.bf16.msra.mxu0 %v2421_v40 }
  0x6e   :  { %2283 = vmatpush3.bf16.msra.mxu1 %v2421_v40  ;;  %2247 = vmatprep.subr.bf16.mxu0 %v2428_v45 }
  0x6f   :  { %2276 = vmatprep.subr.bf16.mxu1 %v2428_v45 }
  0x71   :  { %2248 = vmatpush3.bf16.msra.mxu0 %v2428_v45 }
  0x72   :  { %2284 = vmatpush3.bf16.msra.mxu1 %v2428_v45  ;;  %2249 = vmatprep.subr.bf16.mxu0 %v2435_v46 }
  0x73   :  { %1321 = vmatmul.mubr.bf16.gmra.mrb[40].mxu0 %v2419_v47  ;;  %2277 = vmatprep.subr.bf16.mxu1 %v2435_v46 }
  0x74   :  { %1418 = vmatmul.mubr.bf16.gmra.mrb[40].mxu1 %v2420_v48  ;;  %1328 = vmatprep.mubr.bf16.mxu0 %v2422_v49 }
  0x75   :  { %1425 = vmatprep.mubr.bf16.mxu1 %v2424_v50  ;;  %2250 = vmatpush3.bf16.msra.mxu0 %v2435_v46 }
  0x76   :  { %2285 = vmatpush3.bf16.msra.mxu1 %v2435_v46  ;;  %2251 = vmatprep.subr.bf16.mxu0 %v2442_v51 }
  0x77   :  { %2278 = vmatprep.subr.bf16.mxu1 %v2442_v51 }
  0x79   :  { %2252 = vmatpush3.bf16.msra.mxu0 %v2442_v51 }
  0x7a   :  { %2286 = vmatpush3.bf16.msra.mxu1 %v2442_v51  ;;  %2253 = vmatprep.subr.bf16.mxu0 %v2449_v53 }
  0x7b   :  { %1329 = vmatmul.mubr.bf16.gmra.mrb[44].mxu0 %v2426_v52  ;;  %2279 = vmatprep.subr.bf16.mxu1 %v2449_v53 }
  0x7c   :  { %1426 = vmatmul.mubr.bf16.gmra.mrb[44].mxu1 %v2427_v54  ;;  %1336 = vmatprep.mubr.bf16.mxu0 %v2429_v55 }
  0x7d   :  { %1433 = vmatprep.mubr.bf16.mxu1 %v2431_v56  ;;  %2254 = vmatpush3.bf16.msra.mxu0 %v2449_v53 }
  0x7e   :  { %2287 = vmatpush3.bf16.msra.mxu1 %v2449_v53  ;;  %2255 = vmatprep.subr.bf16.mxu0 %v2456_v57 }
  0x7f   :  { %2280 = vmatprep.subr.bf16.mxu1 %v2456_v57 }
  0x81   :  { %2256 = vmatpush3.bf16.msra.mxu0 %v2456_v57 }
  0x82   :  { %2288 = vmatpush3.bf16.msra.mxu1 %v2456_v57 }
  0x83   :  { %1337 = vmatmul.mubr.bf16.gmra.mrb[48].mxu0 %v2433_v58 }
  0x84   :  { %1434 = vmatmul.mubr.bf16.gmra.mrb[48].mxu1 %v2434_v59  ;;  %1344 = vmatprep.mubr.bf16.mxu0 %v2436_v60 }
  0x85   :  { %1441 = vmatprep.mubr.bf16.mxu1 %v2438_v61 }
  0x8b   :  { %1345 = vmatmul.mubr.bf16.gmra.mrb[52].mxu0 %v2440_v62 }
  0x8c   :  { %1442 = vmatmul.mubr.bf16.gmra.mrb[52].mxu1 %v2441_v63  ;;  %1352 = vmatprep.mubr.bf16.mxu0 %v2443_v0 }
  0x8d   :  { %1449 = vmatprep.mubr.bf16.mxu1 %v2445_v1 }
  0x93   :  { %1353 = vmatmul.mubr.bf16.gmra.mrb[56].mxu0 %v2447_v2 }
  0x94   :  { %1450 = vmatmul.mubr.bf16.gmra.mrb[56].mxu1 %v2448_v3  ;;  %1360 = vmatprep.mubr.bf16.mxu0 %v2450_v4 }
  0x95   :  { %1457 = vmatprep.mubr.bf16.mxu1 %v2452_v5 }
  0x9b   :  { %1361 = vmatmul.mubr.bf16.gmra.mrb[60].mxu0 %v2454_v6 }
  0x9c   :  { %1458 = vmatmul.mubr.bf16.gmra.mrb[60].mxu1 %v2455_v7  ;;  %2257 = vmatprep.mubr.bf16.mxu0 %v2457_v8 }
  0x9d   :  { %2265 = vmatprep.mubr.bf16.mxu1 %v2458_v9 }
  0xa3   :  { %2258 = vmatmul.mubr.bf16.vlgmr.msra.gmra.mrb[64].mxu0 %v2459_v10 }
  0xa4   :  { %2266 = vmatmul.mubr.bf16.vlgmr.msra.gmra.mrb[64].mxu1 %v2460_v11  ;;  %2261 = vmatprep.mubr.bf16.mxu0 %v2461_v12 }
  0xa5   :  { %2269 = vmatprep.mubr.bf16.mxu1 %v2462_v13 }
  0xab   :  { %2262 = vmatmul.mubr.bf16.gmra.mrb[68].mxu0 %v2463_v14 }
  0xac   :  { %2270 = vmatmul.mubr.bf16.gmra.mrb[68].mxu1 %v2464_v15 }
  0xf6   :  { %v1985_v16 = vpop.f32.mrb[0].mxu0 }
  0xf7   :  { %v2049_v17 = vpop.f32.mrb[0].mxu1  ;;  %v1986_v18 = vpop.f32.mrb[1].mxu0 }
  0xf8   :  { %v1987_v19 = vadd.f32 %v1986_v18, %v1985_v16  ;;  %v2050_v20 = vpop.f32.mrb[1].mxu1  ;;  %v1988_v21 = vpop.f32.mrb[2].mxu0 }
  0xf9   :  { %v2051_v22 = vadd.f32 %v2050_v20, %v2049_v17  ;;  %v2052_v23 = vpop.f32.mrb[2].mxu1  ;;  %v1989_v24 = vpop.f32.mrb[3].mxu0 }
  0xfa   :  { %v1990_v25 = vadd.f32 %v1989_v24, %v1988_v21  ;;  %v2053_v26 = vpop.f32.mrb[3].mxu1 }
  0xfb   :  { %v2922_v27 = vadd.f32 %v2051_v22, %v1987_v19  ;;  %v2054_v28 = vadd.f32 %v2053_v26, %v2052_v23 }
  0xfd   :  { %v2924_v29 = vadd.f32 %v2054_v28, %v1990_v25 }
  0xfe   :  { %v1991_v30 = vpop.f32.mrb[4].mxu0 }
  0xff   :  { %v2055_v31 = vpop.f32.mrb[4].mxu1  ;;  %v1992_v32 = vpop.f32.mrb[5].mxu0 }
 0x100   :  { %v1993_v33 = vadd.f32 %v1992_v32, %v1991_v30  ;;  %v2056_v34 = vpop.f32.mrb[5].mxu1  ;;  %v1994_v35 = vpop.f32.mrb[6].mxu0 }
 0x101   :  { %v2057_v36 = vadd.f32 %v2056_v34, %v2055_v31  ;;  %v2058_v37 = vpop.f32.mrb[6].mxu1  ;;  %v1995_v38 = vpop.f32.mrb[7].mxu0 }
 0x102   :  { %v1996_v39 = vadd.f32 %v1995_v38, %v1994_v35  ;;  %v2059_v40 = vpop.f32.mrb[7].mxu1 }
 0x103   :  { %v2926_v41 = vadd.f32 %v2057_v36, %v1993_v33  ;;  %v2060_v42 = vadd.f32 %v2059_v40, %v2058_v37 }
 0x105   :  { %v2928_v43 = vadd.f32 %v2060_v42, %v1996_v39 }
 0x106   :  { %v1997_v44 = vpop.f32.mrb[8].mxu0 }
 0x107   :  { %v2061_v45 = vpop.f32.mrb[8].mxu1  ;;  %v1998_v46 = vpop.f32.mrb[9].mxu0 }
 0x108   :  { %v1999_v47 = vadd.f32 %v1998_v46, %v1997_v44  ;;  %v2062_v48 = vpop.f32.mrb[9].mxu1  ;;  %v2000_v49 = vpop.f32.mrb[10].mxu0 }
 0x109   :  { %v2063_v50 = vadd.f32 %v2062_v48, %v2061_v45  ;;  %v2064_v51 = vpop.f32.mrb[10].mxu1  ;;  %v2001_v52 = vpop.f32.mrb[11].mxu0 }
 0x10a   :  { %v2002_v53 = vadd.f32 %v2001_v52, %v2000_v49  ;;  %v2065_v54 = vpop.f32.mrb[11].mxu1 }
 0x10b   :  { %v2930_v55 = vadd.f32 %v2063_v50, %v1999_v47  ;;  %v2066_v56 = vadd.f32 %v2065_v54, %v2064_v51 }
 0x10d   :  { %v2932_v57 = vadd.f32 %v2066_v56, %v2002_v53 }
 0x10e   :  { %v2003_v58 = vpop.f32.mrb[12].mxu0 }
 0x10f   :  { %v2067_v59 = vpop.f32.mrb[12].mxu1  ;;  %v2004_v60 = vpop.f32.mrb[13].mxu0 }
 0x110   :  { %v2005_v61 = vadd.f32 %v2004_v60, %v2003_v58  ;;  %v2068_v62 = vpop.f32.mrb[13].mxu1  ;;  %v2006_v63 = vpop.f32.mrb[14].mxu0 }
 0x111   :  { %v2069_v0 = vadd.f32 %v2068_v62, %v2067_v59  ;;  %v2070_v1 = vpop.f32.mrb[14].mxu1  ;;  %v2007_v2 = vpop.f32.mrb[15].mxu0 }
 0x112   :  { %v2008_v3 = vadd.f32 %v2007_v2, %v2006_v63  ;;  %v2071_v4 = vpop.f32.mrb[15].mxu1 }
 0x113   :  { %v2934_v5 = vadd.f32 %v2069_v0, %v2005_v61  ;;  %v2072_v6 = vadd.f32 %v2071_v4, %v2070_v1 }
 0x115   :  { %v2936_v7 = vadd.f32 %v2072_v6, %v2008_v3 }
 0x116   :  { %v2009_v8 = vpop.f32.mrb[16].mxu0 }
 0x117   :  { %v2073_v9 = vpop.f32.mrb[16].mxu1  ;;  %v2010_v10 = vpop.f32.mrb[17].mxu0 }
 0x118   :  { %v2011_v11 = vadd.f32 %v2010_v10, %v2009_v8  ;;  %v2074_v12 = vpop.f32.mrb[17].mxu1  ;;  %v2012_v13 = vpop.f32.mrb[18].mxu0 }
 0x119   :  { %v2075_v14 = vadd.f32 %v2074_v12, %v2073_v9  ;;  %v2076_v15 = vpop.f32.mrb[18].mxu1  ;;  %v2013_v16 = vpop.f32.mrb[19].mxu0 }
 0x11a   :  { %v2014_v17 = vadd.f32 %v2013_v16, %v2012_v13  ;;  %v2077_v18 = vpop.f32.mrb[19].mxu1 }
 0x11b   :  { %v2938_v19 = vadd.f32 %v2075_v14, %v2011_v11  ;;  %v2078_v20 = vadd.f32 %v2077_v18, %v2076_v15 }
 0x11d   :  { %v2940_v21 = vadd.f32 %v2078_v20, %v2014_v17 }
 0x11e   :  { %v2015_v22 = vpop.f32.mrb[20].mxu0 }
 0x11f   :  { %v2079_v23 = vpop.f32.mrb[20].mxu1  ;;  %v2016_v24 = vpop.f32.mrb[21].mxu0 }
 0x120   :  { %v2017_v25 = vadd.f32 %v2016_v24, %v2015_v22  ;;  %v2080_v26 = vpop.f32.mrb[21].mxu1  ;;  %v2018_v28 = vpop.f32.mrb[22].mxu0 }
 0x121   :  { %v2081_v30 = vadd.f32 %v2080_v26, %v2079_v23  ;;  %v2082_v31 = vpop.f32.mrb[22].mxu1  ;;  %v2019_v32 = vpop.f32.mrb[23].mxu0 }
 0x122   :  { %v2020_v33 = vadd.f32 %v2019_v32, %v2018_v28  ;;  %v2083_v34 = vpop.f32.mrb[23].mxu1 }
 0x123   :  { %v2942_v35 = vadd.f32 %v2081_v30, %v2017_v25  ;;  %v2084_v36 = vadd.f32 %v2083_v34, %v2082_v31 }
 0x125   :  { %v2944_v37 = vadd.f32 %v2084_v36, %v2020_v33 }
 0x126   :  { %v2021_v38 = vpop.f32.mrb[24].mxu0 }
 0x127   :  { %v2085_v39 = vpop.f32.mrb[24].mxu1  ;;  %v2022_v40 = vpop.f32.mrb[25].mxu0 }
 0x128   :  { %v2023_v42 = vadd.f32 %v2022_v40, %v2021_v38  ;;  %v2086_v44 = vpop.f32.mrb[25].mxu1  ;;  %v2024_v45 = vpop.f32.mrb[26].mxu0 }
 0x129   :  { %v2087_v46 = vadd.f32 %v2086_v44, %v2085_v39  ;;  %v2088_v47 = vpop.f32.mrb[26].mxu1  ;;  %v2025_v48 = vpop.f32.mrb[27].mxu0 }
 0x12a   :  { %v2026_v49 = vadd.f32 %v2025_v48, %v2024_v45  ;;  %v2089_v50 = vpop.f32.mrb[27].mxu1 }
 0x12b   :  { %v2946_v51 = vadd.f32 %v2087_v46, %v2023_v42  ;;  %v2090_v52 = vadd.f32 %v2089_v50, %v2088_v47 }
 0x12d   :  { %v2948_v53 = vadd.f32 %v2090_v52, %v2026_v49 }
 0x12e   :  { %v2027_v54 = vpop.f32.mrb[28].mxu0 }
 0x12f   :  { %v2091_v56 = vpop.f32.mrb[28].mxu1  ;;  %v2028_v58 = vpop.f32.mrb[29].mxu0 }
 0x130   :  { %v2029_v59 = vadd.f32 %v2028_v58, %v2027_v54  ;;  %v2092_v60 = vpop.f32.mrb[29].mxu1  ;;  %v2030_v61 = vpop.f32.mrb[30].mxu0 }
 0x131   :  { %v2093_v62 = vadd.f32 %v2092_v60, %v2091_v56  ;;  %v2094_v63 = vpop.f32.mrb[30].mxu1  ;;  %v2031_v0 = vpop.f32.mrb[31].mxu0 }
 0x132   :  { %v2032_v1 = vadd.f32 %v2031_v0, %v2030_v61  ;;  %v2095_v2 = vpop.f32.mrb[31].mxu1 }
 0x133   :  { %v2950_v3 = vadd.f32 %v2093_v62, %v2029_v59  ;;  %v2096_v4 = vadd.f32 %v2095_v2, %v2094_v63 }
 0x135   :  { %v2952_v6 = vadd.f32 %v2096_v4, %v2032_v1 }
 0x136   :  { %v2113_v8 = vpop.f32.mrb[32].mxu0 }
 0x137   :  { %v2177_v9 = vpop.f32.mrb[32].mxu1  ;;  %v2114_v10 = vpop.f32.mrb[33].mxu0 }
 0x138   :  { %v2115_v11 = vadd.f32 %v2114_v10, %v2113_v8  ;;  %v2178_v12 = vpop.f32.mrb[33].mxu1  ;;  %v2116_v13 = vpop.f32.mrb[34].mxu0 }
 0x139   :  { %v2179_v14 = vadd.f32 %v2178_v12, %v2177_v9  ;;  %v2180_v15 = vpop.f32.mrb[34].mxu1  ;;  %v2117_v16 = vpop.f32.mrb[35].mxu0 }
 0x13a   :  { %v1307_v17 = vadd.f32 %v2115_v11, %v2922_v27  ;;  %v2118_v18 = vadd.f32 %v2117_v16, %v2116_v13  ;;  %v2181_v20 = vpop.f32.mrb[35].mxu1 }
 0x13b   :  { %v2182_v22 = vadd.f32 %v2181_v20, %v2180_v15 }
 0x13c   :  { %v1310_v23 = vadd.f32 %v2118_v18, %v2924_v29  ;;  %v2956_v24 = vadd.f32 %v2179_v14, %v1307_v17 }
 0x13e   :  { %v2119_v25 = vpop.f32.mrb[36].mxu0  ;;  %v2958_v26 = vadd.f32 %v2182_v22, %v1310_v23 }
 0x13f   :  { %v2183_v28 = vpop.f32.mrb[36].mxu1  ;;  %v2120_v30 = vpop.f32.mrb[37].mxu0 }
 0x140   :  { %v2121_v31 = vadd.f32 %v2120_v30, %v2119_v25  ;;  %v2184_v32 = vpop.f32.mrb[37].mxu1  ;;  %v2122_v33 = vpop.f32.mrb[38].mxu0 }
 0x141   :  { %v2185_v34 = vadd.f32 %v2184_v32, %v2183_v28  ;;  %v2186_v36 = vpop.f32.mrb[38].mxu1  ;;  %v2123_v38 = vpop.f32.mrb[39].mxu0 }
 0x142   :  { %v1315_v27 = vadd.f32 %v2121_v31, %v2926_v41  ;;  %v2124_v39 = vadd.f32 %v2123_v38, %v2122_v33  ;;  %v2187_v40 = vpop.f32.mrb[39].mxu1 }
 0x143   :  { %v2188_v42 = vadd.f32 %v2187_v40, %v2186_v36 }
 0x144   :  { %v1318_v29 = vadd.f32 %v2124_v39, %v2928_v43  ;;  %v2962_v44 = vadd.f32 %v2185_v34, %v1315_v27 }
 0x146   :  { %v2125_v45 = vpop.f32.mrb[40].mxu0  ;;  %v2964_v46 = vadd.f32 %v2188_v42, %v1318_v29 }
 0x147   :  { %v2189_v47 = vpop.f32.mrb[40].mxu1  ;;  %v2126_v48 = vpop.f32.mrb[41].mxu0 }
 0x148   :  { %v2127_v49 = vadd.f32 %v2126_v48, %v2125_v45  ;;  %v2190_v50 = vpop.f32.mrb[41].mxu1  ;;  %v2128_v52 = vpop.f32.mrb[42].mxu0 }
 0x149   :  { %v2191_v54 = vadd.f32 %v2190_v50, %v2189_v47  ;;  %v2192_v56 = vpop.f32.mrb[42].mxu1  ;;  %v2129_v58 = vpop.f32.mrb[43].mxu0 }
 0x14a   :  { %v1323_v41 = vadd.f32 %v2127_v49, %v2930_v55  ;;  %v2130_v59 = vadd.f32 %v2129_v58, %v2128_v52  ;;  %v2193_v60 = vpop.f32.mrb[43].mxu1 }
 0x14b   :  { %v2194_v61 = vadd.f32 %v2193_v60, %v2192_v56 }
 0x14c   :  { %v1326_v43 = vadd.f32 %v2130_v59, %v2932_v57  ;;  %v2968_v62 = vadd.f32 %v2191_v54, %v1323_v41 }
 0x14e   :  { %v2131_v63 = vpop.f32.mrb[44].mxu0  ;;  %v2970_v0 = vadd.f32 %v2194_v61, %v1326_v43 }
 0x14f   :  { %v2195_v1 = vpop.f32.mrb[44].mxu1  ;;  %v2132_v2 = vpop.f32.mrb[45].mxu0 }
 0x150   :  { %v2133_v4 = vadd.f32 %v2132_v2, %v2131_v63  ;;  %v2196_v8 = vpop.f32.mrb[45].mxu1  ;;  %v2134_v9 = vpop.f32.mrb[46].mxu0 }
 0x151   :  { %v2197_v10 = vadd.f32 %v2196_v8, %v2195_v1  ;;  %v2198_v11 = vpop.f32.mrb[46].mxu1  ;;  %v2135_v12 = vpop.f32.mrb[47].mxu0 }
 0x152   :  { %v1331_v55 = vadd.f32 %v2133_v4, %v2934_v5  ;;  %v2136_v13 = vadd.f32 %v2135_v12, %v2134_v9  ;;  %v2199_v14 = vpop.f32.mrb[47].mxu1 }
 0x153   :  { %v2200_v15 = vadd.f32 %v2199_v14, %v2198_v11 }
 0x154   :  { %v1334_v57 = vadd.f32 %v2136_v13, %v2936_v7  ;;  %v2974_v16 = vadd.f32 %v2197_v10, %v1331_v55 }
 0x156   :  { %v2137_v17 = vpop.f32.mrb[48].mxu0  ;;  %v2976_v18 = vadd.f32 %v2200_v15, %v1334_v57 }
 0x157   :  { %v2201_v20 = vpop.f32.mrb[48].mxu1  ;;  %v2138_v22 = vpop.f32.mrb[49].mxu0 }
 0x158   :  { %v2139_v23 = vadd.f32 %v2138_v22, %v2137_v17  ;;  %v2202_v25 = vpop.f32.mrb[49].mxu1  ;;  %v2140_v28 = vpop.f32.mrb[50].mxu0 }
 0x159   :  { %v2203_v30 = vadd.f32 %v2202_v25, %v2201_v20  ;;  %v2204_v31 = vpop.f32.mrb[50].mxu1  ;;  %v2141_v32 = vpop.f32.mrb[51].mxu0 }
 0x15a   :  { %v1339_v5 = vadd.f32 %v2139_v23, %v2938_v19  ;;  %v2142_v33 = vadd.f32 %v2141_v32, %v2140_v28  ;;  %v2205_v34 = vpop.f32.mrb[51].mxu1 }
 0x15b   :  { %v2206_v36 = vadd.f32 %v2205_v34, %v2204_v31 }
 0x15c   :  { %v1342_v7 = vadd.f32 %v2142_v33, %v2940_v21  ;;  %v1436_v38 = vadd.f32 %v2203_v30, %v1339_v5  ;;  %v2995_v33 = vld [vmem:[%s3053_s2] ss:$0 sm:$0xff] }
 0x15e   :  { %v2143_v27 = vpop.f32.mrb[52].mxu0  ;;  %v2980_v39 = vadd.f32 %v2206_v36, %v1342_v7 }
 0x15f   :  { %v2207_v40 = vpop.f32.mrb[52].mxu1  ;;  %v2144_v42 = vpop.f32.mrb[53].mxu0 }
 0x160   :  { %v2145_v29 = vadd.f32 %v2144_v42, %v2143_v27  ;;  %v2208_v45 = vpop.f32.mrb[53].mxu1  ;;  %v2146_v47 = vpop.f32.mrb[54].mxu0 }
 0x161   :  { %v2209_v48 = vadd.f32 %v2208_v45, %v2207_v40  ;;  %v2210_v49 = vpop.f32.mrb[54].mxu1  ;;  %v2147_v50 = vpop.f32.mrb[55].mxu0 }
 0x162   :  { %v1347_v52 = vadd.f32 %v2145_v29, %v2942_v35  ;;  %v2148_v19 = vadd.f32 %v2147_v50, %v2146_v47  ;;  %v2211_v54 = vpop.f32.mrb[55].mxu1  ;;  %v1889_v50 = vld [vmem:[%s3054_s3] ss:$0 sm:$0xff] }
 0x163   :  { %v2212_v56 = vadd.f32 %v2211_v54, %v2210_v49 }
 0x164   :  { %v1350_v58 = vadd.f32 %v2148_v19, %v2944_v37  ;;  %v1444_v21 = vadd.f32 %v2209_v48, %v1347_v52 }
 0x166   :  { %v2149_v41 = vpop.f32.mrb[56].mxu0  ;;  %v1447_v59 = vadd.f32 %v2212_v56, %v1350_v58 }
 0x167   :  { %v2213_v60 = vpop.f32.mrb[56].mxu1  ;;  %v2150_v61 = vpop.f32.mrb[57].mxu0 }
 0x168   :  { %v2151_v43 = vadd.f32 %v2150_v61, %v2149_v41  ;;  %v2214_v63 = vpop.f32.mrb[57].mxu1  ;;  %v2152_v1 = vpop.f32.mrb[58].mxu0 }
 0x169   :  { %v2215_v2 = vadd.f32 %v2214_v63, %v2213_v60  ;;  %v2216_v4 = vpop.f32.mrb[58].mxu1  ;;  %v2153_v8 = vpop.f32.mrb[59].mxu0 }
 0x16a   :  { %v1355_v9 = vadd.f32 %v2151_v43, %v2946_v51  ;;  %v2154_v10 = vadd.f32 %v2153_v8, %v2152_v1  ;;  %v2217_v35 = vpop.f32.mrb[59].mxu1 }
 0x16b   :  { %v2218_v11 = vadd.f32 %v2217_v35, %v2216_v4 }
 0x16c   :  { %v1358_v12 = vadd.f32 %v2154_v10, %v2948_v53  ;;  %v2986_v55 = vadd.f32 %v2215_v2, %v1355_v9 }
 0x16e   :  { %v2155_v37 = vpop.f32.mrb[60].mxu0  ;;  %v2988_v13 = vadd.f32 %v2218_v11, %v1358_v12 }
 0x16f   :  { %v2219_v14 = vpop.f32.mrb[60].mxu1  ;;  %v2156_v15 = vpop.f32.mrb[61].mxu0 }
 0x170   :  { %v2157_v57 = vadd.f32 %v2156_v15, %v2155_v37  ;;  %v2220_v17 = vpop.f32.mrb[61].mxu1  ;;  %v2158_v20 = vpop.f32.mrb[62].mxu0 }
 0x171   :  { %v2221_v22 = vadd.f32 %v2220_v17, %v2219_v14  ;;  %v2222_v23 = vpop.f32.mrb[62].mxu1  ;;  %v2159_v25 = vpop.f32.mrb[63].mxu0 }
 0x172   :  { %v1363_v51 = vadd.f32 %v2157_v57, %v2950_v3  ;;  %v2160_v28 = vadd.f32 %v2159_v25, %v2158_v20  ;;  %v2223_v30 = vpop.f32.mrb[63].mxu1 }
 0x173   :  { %v2224_v31 = vadd.f32 %v2223_v30, %v2222_v23 }
 0x174   :  { %v1366_v53 = vadd.f32 %v2160_v28, %v2952_v6  ;;  %v1460_v32 = vadd.f32 %v2221_v22, %v1363_v51 }
 0x176   :  { %v2259_v5 = vpop.f32.mrb[64].mxu0  ;;  %v1463_v34 = vadd.f32 %v2224_v31, %v1366_v53 }
 0x177   :  { %v1509_v36 = vadd.f32 %v2259_v5, %v2962_v44  ;;  %v2267_v7 = vpop.f32.mrb[64].mxu1  ;;  %v1500_v27 = vpop.f32.mrb[65].mxu0 }
 0x178   :  { %v1541_v40 = vadd.f32 %v2267_v7, %v1444_v21  ;;  %v1501_v3 = vadd.f32 %v1500_v27, %v2956_v24  ;;  %v1532_v42 = vpop.f32.mrb[65].mxu1  ;;  %v2260_v29 = vpop.f32.mrb[66].mxu0 }
 0x179   :  { %v1623_v45 = vmul.f32 %v2995_v33, %v1509_v36  ;;  %v1533_v6 = vadd.f32 %v1532_v42, %v1436_v38  ;;  %v1512_v47 = vadd.f32 %v2260_v29, %v2964_v46  ;;  %v2268_v48 = vpop.f32.mrb[66].mxu1  ;;  %v1503_v49 = vpop.f32.mrb[67].mxu0 }
 0x17a   :  { %v1631_v44 = vmul.f32 %v2995_v33, %v1541_v40  ;;  %v1621_v52 = vmul.f32 %v2995_v33, %v1501_v3  ;;  %v1544_v19 = vadd.f32 %v2268_v48, %v1447_v59  ;;  %v1504_v24 = vadd.f32 %v1503_v49, %v2958_v26  ;;  %v1535_v54 = vpop.f32.mrb[67].mxu1 }
 0x17b   :  { %v1629_v56 = vmul.f32 %v2995_v33, %v1533_v6  ;;  %v1624_v38 = vmul.f32 %v2995_v33, %v1512_v47  ;;  %v1536_v46 = vadd.f32 %v1535_v54, %v2980_v39  ;;  %v1646_v41 = vadd.f32 %v1889_v50, %v1623_v45 }
 0x17c   :  { %v1632_v58 = vmul.f32 %v2995_v33, %v1544_v19  ;;  %v1622_v21 = vmul.f32 %v2995_v33, %v1504_v24  ;;  %v1654_v43 = vadd.f32 %v1889_v50, %v1631_v44  ;;  %v1644_v63 = vadd.f32 %v1889_v50, %v1621_v52 }
 0x17d   :  { %v1647_v60 = vadd.f32 %v1889_v50, %v1624_v38  ;;  %v1630_v61 = vmul.f32 %v2995_v33, %v1536_v46  ;;  %v1652_v2 = vadd.f32 %v1889_v50, %v1629_v56 }
 0x17e   :  { %v1655_v59 = vadd.f32 %v1889_v50, %v1632_v58  ;;  %v1645_v1 = vadd.f32 %v1889_v50, %v1622_v21  ;;  %v2263_v26 = vpop.f32.mrb[68].mxu0 }
 0x17f   :  { %v1930_v4 = vpack.c.bf16 %v1647_v60, %v1646_v41  ;;  %v1653_v8 = vadd.f32 %v1889_v50, %v1630_v61  ;;  %v1525_v9 = vadd.f32 %v2263_v26, %v2974_v16  ;;  %v2271_v10 = vpop.f32.mrb[68].mxu1  ;;  %v1516_v39 = vpop.f32.mrb[69].mxu0 }
 0x180   :  { %v1950_v35 = vpack.c.bf16 %v1655_v59, %v1654_v43  ;;  %v1925_v11 = vpack.c.bf16 %v1645_v1, %v1644_v63  ;;  %v1557_v12 = vadd.f32 %v2271_v10, %v1460_v32  ;;  %v1517_v37 = vadd.f32 %v1516_v39, %v2968_v62  ;;  %v1548_v14 = vpop.f32.mrb[69].mxu1  ;;  %v2264_v15 = vpop.f32.mrb[70].mxu0 }
 0x181   :  { %1962 = vst [vmem:[%s3055_s4 + $0x8] sm:$0xff] %v1930_v4   ;;  %v1945_v57 = vpack.c.bf16 %v1653_v8, %v1652_v2  ;;  %v1627_v17 = vmul.f32 %v2995_v33, %v1525_v9  ;;  %v1549_v20 = vadd.f32 %v1548_v14, %v2986_v55  ;;  %v1528_v16 = vadd.f32 %v2264_v15, %v2976_v18  ;;  %v2272_v22 = vpop.f32.mrb[70].mxu1  ;;  %v1519_v23 = vpop.f32.mrb[71].mxu0 }
 0x182   :  { %1966 = vst [vmem:[%s3055_s4 + $0x28] sm:$0xff] %v1950_v35   ;;  %1926 = vst [vmem:[%s3055_s4] sm:$0xff] %v1925_v11   ;;  %v1635_v62 = vmul.f32 %v2995_v33, %v1557_v12  ;;  %v1625_v25 = vmul.f32 %v2995_v33, %v1517_v37  ;;  %v1560_v51 = vadd.f32 %v2272_v22, %v1463_v34  ;;  %v1551_v55 = vpop.f32.mrb[71].mxu1 }
 0x183   :  { %v1520_v28 = vadd.f32 %v1519_v23, %v2970_v0  ;;  %1965 = vst [vmem:[%s3055_s4 + $0x20] sm:$0xff] %v1945_v57   ;;  %v1633_v18 = vmul.f32 %v2995_v33, %v1549_v20  ;;  %v1628_v30 = vmul.f32 %v2995_v33, %v1528_v16  ;;  %v1552_v31 = vadd.f32 %v1551_v55, %v2988_v13 }
 0x184   :  { %v1636_v53 = vmul.f32 %v2995_v33, %v1560_v51  ;;  %v1650_v5 = vadd.f32 %v1889_v50, %v1627_v17  ;;  %v1658_v0 = vadd.f32 %v1889_v50, %v1635_v62  ;;  %v1648_v7 = vadd.f32 %v1889_v50, %v1625_v25 }
 0x185   :  { %v1626_v32 = vmul.f32 %v2995_v33, %v1520_v28  ;;  %v1651_v36 = vadd.f32 %v1889_v50, %v1628_v30  ;;  %v1634_v34 = vmul.f32 %v2995_v33, %v1552_v31  ;;  %v1656_v3 = vadd.f32 %v1889_v50, %v1633_v18 }
 0x186   :  { %v1659_v27 = vadd.f32 %v1889_v50, %v1636_v53 }
 0x187   :  { %v1649_v40 = vadd.f32 %v1889_v50, %v1626_v32  ;;  %v1940_v42 = vpack.c.bf16 %v1651_v36, %v1650_v5  ;;  %v1657_v29 = vadd.f32 %v1889_v50, %v1634_v34 }
 0x188   :  { %v1960_v45 = vpack.c.bf16 %v1659_v27, %v1658_v0 }
 0x189   :  { %v1935_v6 = vpack.c.bf16 %v1649_v40, %v1648_v7  ;;  %1964 = vst [vmem:[%s3055_s4 + $0x18] sm:$0xff] %v1940_v42   ;;  %v1955_v13 = vpack.c.bf16 %v1657_v29, %v1656_v3 }
 0x18a   :  { %1968 = vst [vmem:[%s3055_s4 + $0x38] sm:$0xff] %v1960_v45  }
 0x18b   :  { %1963 = vst [vmem:[%s3055_s4 + $0x10] sm:$0xff] %v1935_v6   ;;  %1967 = vst [vmem:[%s3055_s4 + $0x30] sm:$0xff] %v1955_v13  }

// kernel: generator_forward.68
= control target key start
LH: loop header
LB: loop body
LE: loop exit
PB: predicated region body
PF: predicated region fallthrough
CT: control target
= control target key end

     0   :  { %s4077_s1 = inlined_call_operand.vmem [shape: bf16[1152,256], index: 1, kind: input, shape index: {}]   ;;  %s4078_s0 = inlined_call_operand.vmem [shape: bf16[128,1152], index: 0, kind: input, shape index: {}]   ;;  %s4079_s2 = inlined_call_operand.vmem [shape: f32[1,256], index: 2, kind: input, shape index: {}]   ;;  %s4080_s3 = inlined_call_operand.vmem [shape: f32[1,256], index: 3, kind: input, shape index: {}]   ;;  %s4081_s4 = inlined_call_operand.vmem [shape: bf16[128,256], index: 4, kind: output, shape index: {}]  }
   0x1   :  { %v2707_v0 = vld [vmem:[%s4077_s1 + $0x4] ss:$8 sps:$4 sm:$0xff]   ;;  %v2711_v2 = vld [vmem:[%s4077_s1] ss:$8 sps:$4 sm:$0xff]   ;;  %v2713_v4 = vld [vmem:[%s4077_s1 + $0x14] ss:$8 sps:$4 sm:$0xff]  }
   0x2   :  { %v2709_v1 = vld [vmem:[%s4077_s1 + $0x204] ss:$8 sps:$4 sm:$0xff]   ;;  %1398 = vmatprep.subr.bf16.mxu1 %v2707_v0  ;;  %v2712_v3 = vld [vmem:[%s4077_s1 + $0x200] ss:$8 sps:$4 sm:$0xff]   ;;  %v2715_v5 = vld [vmem:[%s4077_s1 + $0x214] ss:$8 sps:$4 sm:$0xff]  }
   0x3   :  { %1624 = vmatprep.subr.bf16.mxu0 %v2709_v1  ;;  %1399 = vmatpush1.bf16.msra.mxu1 %v2711_v2  ;;  %v2717_v6 = vld [vmem:[%s4077_s1 + $0x10] ss:$8 sps:$4 sm:$0xff]   ;;  %v2719_v8 = vld [vmem:[%s4077_s1 + $0x24] ss:$8 sps:$4 sm:$0xff]   ;;  %v2723_v10 = vld [vmem:[%s4077_s1 + $0x20] ss:$8 sps:$4 sm:$0xff]  }
   0x4   :  { %1625 = vmatpush1.bf16.msra.mxu0 %v2712_v3  ;;  %1400 = vmatprep.subr.bf16.mxu1 %v2713_v4  ;;  %v2718_v7 = vld [vmem:[%s4077_s1 + $0x210] ss:$8 sps:$4 sm:$0xff]   ;;  %v2721_v9 = vld [vmem:[%s4077_s1 + $0x224] ss:$8 sps:$4 sm:$0xff]   ;;  %v2724_v11 = vld [vmem:[%s4077_s1 + $0x220] ss:$8 sps:$4 sm:$0xff]  }
   0x5   :  { %1626 = vmatprep.subr.bf16.mxu0 %v2715_v5  ;;  %v2725_v12 = vld [vmem:[%s4077_s1 + $0x34] ss:$8 sps:$4 sm:$0xff]   ;;  %v2729_v14 = vld [vmem:[%s4077_s1 + $0x30] ss:$8 sps:$4 sm:$0xff]   ;;  %v2731_v16 = vld [vmem:[%s4077_s1 + $0x44] ss:$8 sps:$4 sm:$0xff]  }
   0x6   :  { %v2727_v13 = vld [vmem:[%s4077_s1 + $0x234] ss:$8 sps:$4 sm:$0xff]   ;;  %v2730_v15 = vld [vmem:[%s4077_s1 + $0x230] ss:$8 sps:$4 sm:$0xff]   ;;  %v2733_v17 = vld [vmem:[%s4077_s1 + $0x244] ss:$8 sps:$4 sm:$0xff]  }
   0x7   :  { %1401 = vmatpush1.bf16.msra.mxu1 %v2717_v6  ;;  %v2735_v18 = vld [vmem:[%s4077_s1 + $0x40] ss:$8 sps:$4 sm:$0xff]   ;;  %v2737_v20 = vld [vmem:[%s4077_s1 + $0x54] ss:$8 sps:$4 sm:$0xff]   ;;  %v2741_v22 = vld [vmem:[%s4077_s1 + $0x50] ss:$8 sps:$4 sm:$0xff]  }
   0x8   :  { %1627 = vmatpush1.bf16.msra.mxu0 %v2718_v7  ;;  %1402 = vmatprep.subr.bf16.mxu1 %v2719_v8  ;;  %v2736_v19 = vld [vmem:[%s4077_s1 + $0x240] ss:$8 sps:$4 sm:$0xff]   ;;  %v2739_v21 = vld [vmem:[%s4077_s1 + $0x254] ss:$8 sps:$4 sm:$0xff]   ;;  %v2742_v23 = vld [vmem:[%s4077_s1 + $0x250] ss:$8 sps:$4 sm:$0xff]  }
   0x9   :  { %1628 = vmatprep.subr.bf16.mxu0 %v2721_v9  ;;  %v2743_v24 = vld [vmem:[%s4077_s1 + $0x64] ss:$8 sps:$4 sm:$0xff]   ;;  %v2747_v26 = vld [vmem:[%s4077_s1 + $0x60] ss:$8 sps:$4 sm:$0xff]   ;;  %v2749_v28 = vld [vmem:[%s4077_s1 + $0x74] ss:$8 sps:$4 sm:$0xff]  }
   0xa   :  { %v2745_v25 = vld [vmem:[%s4077_s1 + $0x264] ss:$8 sps:$4 sm:$0xff]   ;;  %v2748_v27 = vld [vmem:[%s4077_s1 + $0x260] ss:$8 sps:$4 sm:$0xff]   ;;  %v2751_v29 = vld [vmem:[%s4077_s1 + $0x274] ss:$8 sps:$4 sm:$0xff]  }
   0xb   :  { %1403 = vmatpush1.bf16.msra.mxu1 %v2723_v10  ;;  %v2753_v30 = vld [vmem:[%s4077_s1 + $0x70] ss:$8 sps:$4 sm:$0xff]   ;;  %v2755_v32 = vld [vmem:[%s4077_s1 + $0x84] ss:$8 sps:$4 sm:$0xff]   ;;  %v2759_v34 = vld [vmem:[%s4077_s1 + $0x80] ss:$8 sps:$4 sm:$0xff]  }
   0xc   :  { %1629 = vmatpush1.bf16.msra.mxu0 %v2724_v11  ;;  %1404 = vmatprep.subr.bf16.mxu1 %v2725_v12  ;;  %v2754_v31 = vld [vmem:[%s4077_s1 + $0x270] ss:$8 sps:$4 sm:$0xff]   ;;  %v2757_v33 = vld [vmem:[%s4077_s1 + $0x284] ss:$8 sps:$4 sm:$0xff]   ;;  %v2760_v35 = vld [vmem:[%s4077_s1 + $0x280] ss:$8 sps:$4 sm:$0xff]  }
   0xd   :  { %1630 = vmatprep.subr.bf16.mxu0 %v2727_v13  ;;  %v2761_v36 = vld [vmem:[%s4077_s1 + $0x94] ss:$8 sps:$4 sm:$0xff]   ;;  %v2765_v38 = vld [vmem:[%s4077_s1 + $0x90] ss:$8 sps:$4 sm:$0xff]   ;;  %v2767_v40 = vld [vmem:[%s4077_s1 + $0xa4] ss:$8 sps:$4 sm:$0xff]  }
   0xe   :  { %v2763_v37 = vld [vmem:[%s4077_s1 + $0x294] ss:$8 sps:$4 sm:$0xff]   ;;  %v2766_v39 = vld [vmem:[%s4077_s1 + $0x290] ss:$8 sps:$4 sm:$0xff]   ;;  %v2769_v41 = vld [vmem:[%s4077_s1 + $0x2a4] ss:$8 sps:$4 sm:$0xff]  }
   0xf   :  { %1405 = vmatpush1.bf16.msra.mxu1 %v2729_v14  ;;  %v2771_v42 = vld [vmem:[%s4077_s1 + $0xa0] ss:$8 sps:$4 sm:$0xff]   ;;  %v2773_v44 = vld [vmem:[%s4077_s1 + $0xb4] ss:$8 sps:$4 sm:$0xff]   ;;  %v2777_v46 = vld [vmem:[%s4077_s1 + $0xb0] ss:$8 sps:$4 sm:$0xff]  }
  0x10   :  { %1631 = vmatpush1.bf16.msra.mxu0 %v2730_v15  ;;  %1406 = vmatprep.subr.bf16.mxu1 %v2731_v16  ;;  %v2772_v43 = vld [vmem:[%s4077_s1 + $0x2a0] ss:$8 sps:$4 sm:$0xff]   ;;  %v2775_v45 = vld [vmem:[%s4077_s1 + $0x2b4] ss:$8 sps:$4 sm:$0xff]   ;;  %v2778_v47 = vld [vmem:[%s4077_s1 + $0x2b0] ss:$8 sps:$4 sm:$0xff]  }
  0x11   :  { %1632 = vmatprep.subr.bf16.mxu0 %v2733_v17  ;;  %v2779_v48 = vld [vmem:[%s4077_s1 + $0xc4] ss:$8 sps:$4 sm:$0xff]   ;;  %v2808_v51 = vld [vmem:[%s4078_s0 + $0x14] ss:$36 sps:$4 sm:$0xff]   ;;  %v2783_v52 = vld [vmem:[%s4077_s1 + $0xc0] ss:$8 sps:$4 sm:$0xff]  }
  0x12   :  { %v2805_v49 = vld [vmem:[%s4078_s0 + $0x4] ss:$36 sps:$4 sm:$0xff]   ;;  %1656 = vmatprep.mubr.bf16.mxu0 %v2808_v51  ;;  %v2785_v54 = vld [vmem:[%s4077_s1 + $0xd4] ss:$8 sps:$4 sm:$0xff]   ;;  %v2789_v56 = vld [vmem:[%s4077_s1 + $0xd0] ss:$8 sps:$4 sm:$0xff]  }
  0x13   :  { %1407 = vmatpush1.bf16.msra.mxu1 %v2735_v18  ;;  %v2781_v50 = vld [vmem:[%s4077_s1 + $0x2c4] ss:$8 sps:$4 sm:$0xff]   ;;  %1430 = vmatprep.mubr.bf16.mxu1 %v2805_v49  ;;  %v2784_v53 = vld [vmem:[%s4077_s1 + $0x2c0] ss:$8 sps:$4 sm:$0xff]   ;;  %v2787_v55 = vld [vmem:[%s4077_s1 + $0x2d4] ss:$8 sps:$4 sm:$0xff]  }
  0x14   :  { %1633 = vmatpush1.bf16.msra.mxu0 %v2736_v19  ;;  %1408 = vmatprep.subr.bf16.mxu1 %v2737_v20  ;;  %v2790_v57 = vld [vmem:[%s4077_s1 + $0x2d0] ss:$8 sps:$4 sm:$0xff]   ;;  %v2791_v58 = vld [vmem:[%s4077_s1 + $0xe4] ss:$8 sps:$4 sm:$0xff]   ;;  %v2795_v60 = vld [vmem:[%s4077_s1 + $0xe0] ss:$8 sps:$4 sm:$0xff]  }
  0x15   :  { %1634 = vmatprep.subr.bf16.mxu0 %v2739_v21  ;;  %v2793_v59 = vld [vmem:[%s4077_s1 + $0x2e4] ss:$8 sps:$4 sm:$0xff]   ;;  %v2796_v61 = vld [vmem:[%s4077_s1 + $0x2e0] ss:$8 sps:$4 sm:$0xff]   ;;  %v2797_v62 = vld [vmem:[%s4077_s1 + $0xf4] ss:$8 sps:$4 sm:$0xff]  }
  0x16   :  { %v2799_v63 = vld [vmem:[%s4077_s1 + $0x2f4] ss:$8 sps:$4 sm:$0xff]   ;;  %v2801_v0 = vld [vmem:[%s4077_s1 + $0xf0] ss:$8 sps:$4 sm:$0xff]   ;;  %v2811_v2 = vld [vmem:[%s4077_s1 + $0x104] ss:$8 sps:$4 sm:$0xff]  }
  0x17   :  { %1409 = vmatpush1.bf16.msra.mxu1 %v2741_v22  ;;  %v2802_v1 = vld [vmem:[%s4077_s1 + $0x2f0] ss:$8 sps:$4 sm:$0xff]   ;;  %v3257_v3 = vld [vmem:[%s4077_s1 + $0x304] ss:$8 sps:$4 sm:$0xff]   ;;  %v2809_v6 = vld [vmem:[%s4077_s1 + $0x100] ss:$8 sps:$4 sm:$0xff]  }
  0x18   :  { %1635 = vmatpush1.bf16.msra.mxu0 %v2742_v23  ;;  %1410 = vmatprep.subr.bf16.mxu1 %v2743_v24  ;;  %v2803_v4 = vld [vmem:[%s4078_s0] ss:$36 sps:$4 sm:$0xff]   ;;  %v2806_v5 = vld [vmem:[%s4078_s0 + $0x10] ss:$36 sps:$4 sm:$0xff]   ;;  %v2825_v16 = vld [vmem:[%s4078_s0 + $0x48] ss:$36 sps:$4 sm:$0xff]  }
  0x19   :  { %1636 = vmatprep.subr.bf16.mxu0 %v2745_v25  ;;  %v3271_v7 = vld [vmem:[%s4077_s1 + $0x300] ss:$8 sps:$4 sm:$0xff]   ;;  %v2817_v8 = vld [vmem:[%s4077_s1 + $0x114] ss:$8 sps:$4 sm:$0xff]   ;;  %v2821_v10 = vld [vmem:[%s4078_s0 + $0x4c] ss:$36 sps:$4 sm:$0xff]  }
  0x1a   :  { %v3280_v9 = vld [vmem:[%s4077_s1 + $0x314] ss:$8 sps:$4 sm:$0xff]   ;;  %v2815_v12 = vld [vmem:[%s4077_s1 + $0x110] ss:$8 sps:$4 sm:$0xff]   ;;  %v2828_v14 = vld [vmem:[%s4077_s1 + $0x124] ss:$8 sps:$4 sm:$0xff]  }
  0x1b   :  { %1411 = vmatpush1.bf16.msra.mxu1 %v2747_v26  ;;  %v2823_v11 = vld [vmem:[%s4078_s0 + $0x5c] ss:$36 sps:$4 sm:$0xff]   ;;  %v3295_v13 = vld [vmem:[%s4077_s1 + $0x310] ss:$8 sps:$4 sm:$0xff]   ;;  %v3304_v15 = vld [vmem:[%s4077_s1 + $0x324] ss:$8 sps:$4 sm:$0xff]  }
  0x1c   :  { %1637 = vmatpush1.bf16.msra.mxu0 %v2748_v27  ;;  %1412 = vmatprep.subr.bf16.mxu1 %v2749_v28  ;;  %v2826_v17 = vld [vmem:[%s4077_s1 + $0x120] ss:$8 sps:$4 sm:$0xff]   ;;  %v2829_v18 = vld [vmem:[%s4078_s0 + $0x58] ss:$36 sps:$4 sm:$0xff]   ;;  %v2846_v26 = vld [vmem:[%s4077_s1 + $0x144] ss:$8 sps:$4 sm:$0xff]  }
  0x1d   :  { %1638 = vmatprep.subr.bf16.mxu0 %v2751_v29  ;;  %v3318_v19 = vld [vmem:[%s4077_s1 + $0x320] ss:$8 sps:$4 sm:$0xff]   ;;  %v2835_v20 = vld [vmem:[%s4077_s1 + $0x134] ss:$8 sps:$4 sm:$0xff]   ;;  %v2833_v24 = vld [vmem:[%s4077_s1 + $0x130] ss:$8 sps:$4 sm:$0xff]  }
  0x1e   :  { %v3328_v21 = vld [vmem:[%s4077_s1 + $0x334] ss:$8 sps:$4 sm:$0xff]   ;;  %v2841_v23 = vld [vmem:[%s4078_s0 + $0xa4] ss:$36 sps:$4 sm:$0xff]   ;;  %v3343_v25 = vld [vmem:[%s4077_s1 + $0x330] ss:$8 sps:$4 sm:$0xff]  }
  0x1f   :  { %1413 = vmatpush1.bf16.msra.mxu1 %v2753_v30  ;;  %v2839_v22 = vld [vmem:[%s4078_s0 + $0x94] ss:$36 sps:$4 sm:$0xff]   ;;  %v3352_v27 = vld [vmem:[%s4077_s1 + $0x344] ss:$8 sps:$4 sm:$0xff]   ;;  %v2844_v29 = vld [vmem:[%s4077_s1 + $0x140] ss:$8 sps:$4 sm:$0xff]  }
  0x20   :  { %1639 = vmatpush1.bf16.msra.mxu0 %v2754_v31  ;;  %1414 = vmatprep.subr.bf16.mxu1 %v2755_v32  ;;  %v2843_v28 = vld [vmem:[%s4078_s0 + $0x90] ss:$36 sps:$4 sm:$0xff]   ;;  %v2847_v30 = vld [vmem:[%s4078_s0 + $0xa0] ss:$36 sps:$4 sm:$0xff]  }
  0x21   :  { %1640 = vmatprep.subr.bf16.mxu0 %v2757_v33  ;;  %v3366_v31 = vld [vmem:[%s4077_s1 + $0x340] ss:$8 sps:$4 sm:$0xff]   ;;  %v2853_v32 = vld [vmem:[%s4077_s1 + $0x154] ss:$8 sps:$4 sm:$0xff]   ;;  %v3439_v49 = vld [vmem:[%s4077_s1 + $0x370] ss:$8 sps:$4 sm:$0xff]  }
  0x22   :  { %v3376_v33 = vld [vmem:[%s4077_s1 + $0x354] ss:$8 sps:$4 sm:$0xff]   ;;  %v3448_v51 = vld [vmem:[%s4077_s1 + $0x384] ss:$8 sps:$4 sm:$0xff]  }
  0x23   :  { %1415 = vmatpush1.bf16.msra.mxu1 %v2759_v34  ;;  %v2857_v34 = vld [vmem:[%s4078_s0 + $0xdc] ss:$36 sps:$4 sm:$0xff]  }
  0x24   :  { %1641 = vmatpush1.bf16.msra.mxu0 %v2760_v35  ;;  %1416 = vmatprep.subr.bf16.mxu1 %v2761_v36  ;;  %v2859_v35 = vld [vmem:[%s4078_s0 + $0xec] ss:$36 sps:$4 sm:$0xff]  }
  0x25   :  { %1642 = vmatprep.subr.bf16.mxu0 %v2763_v37  ;;  %v2851_v36 = vld [vmem:[%s4077_s1 + $0x150] ss:$8 sps:$4 sm:$0xff]  }
  0x26   :  { %v3391_v37 = vld [vmem:[%s4077_s1 + $0x350] ss:$8 sps:$4 sm:$0xff]  }
  0x27   :  { %1417 = vmatpush1.bf16.msra.mxu1 %v2765_v38  ;;  %v2864_v38 = vld [vmem:[%s4077_s1 + $0x164] ss:$8 sps:$4 sm:$0xff]  }
  0x28   :  { %1643 = vmatpush1.bf16.msra.mxu0 %v2766_v39  ;;  %1418 = vmatprep.subr.bf16.mxu1 %v2767_v40  ;;  %v3400_v39 = vld [vmem:[%s4077_s1 + $0x364] ss:$8 sps:$4 sm:$0xff]   ;;  %v2861_v40 = vld [vmem:[%s4078_s0 + $0xd8] ss:$36 sps:$4 sm:$0xff]  }
  0x29   :  { %1644 = vmatprep.subr.bf16.mxu0 %v2769_v41  ;;  %v2862_v41 = vld [vmem:[%s4077_s1 + $0x160] ss:$8 sps:$4 sm:$0xff]  }
  0x2b   :  { %1419 = vmatpush1.bf16.msra.mxu1 %v2771_v42  ;;  %v2865_v42 = vld [vmem:[%s4078_s0 + $0xe8] ss:$36 sps:$4 sm:$0xff]  }
  0x2c   :  { %1645 = vmatpush1.bf16.msra.mxu0 %v2772_v43  ;;  %1420 = vmatprep.subr.bf16.mxu1 %v2773_v44  ;;  %v3414_v43 = vld [vmem:[%s4077_s1 + $0x360] ss:$8 sps:$4 sm:$0xff]   ;;  %v2871_v44 = vld [vmem:[%s4077_s1 + $0x174] ss:$8 sps:$4 sm:$0xff]  }
  0x2d   :  { %1646 = vmatprep.subr.bf16.mxu0 %v2775_v45  ;;  %v3424_v45 = vld [vmem:[%s4077_s1 + $0x374] ss:$8 sps:$4 sm:$0xff]  }
  0x2f   :  { %1421 = vmatpush1.bf16.msra.mxu1 %v2777_v46  ;;  %v2875_v46 = vld [vmem:[%s4078_s0 + $0x124] ss:$36 sps:$4 sm:$0xff]  }
  0x30   :  { %1647 = vmatpush1.bf16.msra.mxu0 %v2778_v47  ;;  %1422 = vmatprep.subr.bf16.mxu1 %v2779_v48  ;;  %v2877_v47 = vld [vmem:[%s4078_s0 + $0x134] ss:$36 sps:$4 sm:$0xff]  }
  0x31   :  { %1648 = vmatprep.subr.bf16.mxu0 %v2781_v50  ;;  %v2869_v48 = vld [vmem:[%s4077_s1 + $0x170] ss:$8 sps:$4 sm:$0xff]   ;;  %v2882_v50 = vld [vmem:[%s4077_s1 + $0x184] ss:$8 sps:$4 sm:$0xff]  }
  0x33   :  { %1423 = vmatpush1.bf16.msra.mxu1 %v2783_v52  ;;  %v2879_v52 = vld [vmem:[%s4078_s0 + $0x120] ss:$36 sps:$4 sm:$0xff]  }
  0x34   :  { %1649 = vmatpush1.bf16.msra.mxu0 %v2784_v53  ;;  %1424 = vmatprep.subr.bf16.mxu1 %v2785_v54  ;;  %v2880_v53 = vld [vmem:[%s4077_s1 + $0x180] ss:$8 sps:$4 sm:$0xff]   ;;  %v2883_v54 = vld [vmem:[%s4078_s0 + $0x130] ss:$36 sps:$4 sm:$0xff]  }
  0x35   :  { %1650 = vmatprep.subr.bf16.mxu0 %v2787_v55  ;;  %v3462_v55 = vld [vmem:[%s4077_s1 + $0x380] ss:$8 sps:$4 sm:$0xff]  }
  0x37   :  { %1425 = vmatpush1.bf16.msra.mxu1 %v2789_v56  ;;  %v2889_v56 = vld [vmem:[%s4077_s1 + $0x194] ss:$8 sps:$4 sm:$0xff]  }
  0x38   :  { %1651 = vmatpush1.bf16.msra.mxu0 %v2790_v57  ;;  %1426 = vmatprep.subr.bf16.mxu1 %v2791_v58  ;;  %v3472_v57 = vld [vmem:[%s4077_s1 + $0x394] ss:$8 sps:$4 sm:$0xff]   ;;  %v2893_v58 = vld [vmem:[%s4078_s0 + $0x16c] ss:$36 sps:$4 sm:$0xff]  }
  0x39   :  { %1652 = vmatprep.subr.bf16.mxu0 %v2793_v59  ;;  %v2895_v59 = vld [vmem:[%s4078_s0 + $0x17c] ss:$36 sps:$4 sm:$0xff]  }
  0x3b   :  { %1427 = vmatpush1.bf16.msra.mxu1 %v2795_v60  ;;  %v2887_v60 = vld [vmem:[%s4077_s1 + $0x190] ss:$8 sps:$4 sm:$0xff]  }
  0x3c   :  { %1653 = vmatpush1.bf16.msra.mxu0 %v2796_v61  ;;  %1428 = vmatprep.subr.bf16.mxu1 %v2797_v62  ;;  %v3487_v61 = vld [vmem:[%s4077_s1 + $0x390] ss:$8 sps:$4 sm:$0xff]   ;;  %v2900_v62 = vld [vmem:[%s4077_s1 + $0x1a4] ss:$8 sps:$4 sm:$0xff]  }
  0x3d   :  { %1654 = vmatprep.subr.bf16.mxu0 %v2799_v63  ;;  %v3496_v63 = vld [vmem:[%s4077_s1 + $0x3a4] ss:$8 sps:$4 sm:$0xff]  }
  0x3f   :  { %1429 = vmatpush1.bf16.msra.mxu1 %v2801_v0  ;;  %v2897_v0 = vld [vmem:[%s4078_s0 + $0x168] ss:$36 sps:$4 sm:$0xff]  }
  0x40   :  { %1655 = vmatpush1.bf16.msra.mxu0 %v2802_v1  ;;  %1511 = vmatprep.subr.bf16.mxu1 %v2811_v2  ;;  %v2898_v1 = vld [vmem:[%s4077_s1 + $0x1a0] ss:$8 sps:$4 sm:$0xff]   ;;  %v2901_v2 = vld [vmem:[%s4078_s0 + $0x178] ss:$36 sps:$4 sm:$0xff]  }
  0x41   :  { %1737 = vmatprep.subr.bf16.mxu0 %v3257_v3 }
  0x42   :  { %1431 = vmatmul.mubr.bf16.vlgmr.msra.gmra.mrb[0].mxu1 %v2803_v4  ;;  %v3510_v4 = vld [vmem:[%s4077_s1 + $0x3a0] ss:$8 sps:$4 sm:$0xff]  }
  0x43   :  { %1657 = vmatmul.mubr.bf16.vlgmr.msra.gmra.mrb[0].mxu0 %v2806_v5  ;;  %1512 = vmatpush1.bf16.msra.mxu1 %v2809_v6  ;;  %v2907_v5 = vld [vmem:[%s4077_s1 + $0x1b4] ss:$8 sps:$4 sm:$0xff]  }
  0x44   :  { %1738 = vmatpush1.bf16.msra.mxu0 %v3271_v7  ;;  %1513 = vmatprep.subr.bf16.mxu1 %v2817_v8  ;;  %v3520_v6 = vld [vmem:[%s4077_s1 + $0x3b4] ss:$8 sps:$4 sm:$0xff]  }
  0x45   :  { %1739 = vmatprep.subr.bf16.mxu0 %v3280_v9  ;;  %1440 = vmatprep.mubr.bf16.mxu1 %v2821_v10  ;;  %v2911_v8 = vld [vmem:[%s4078_s0 + $0x1b4] ss:$36 sps:$4 sm:$0xff]   ;;  %v2913_v10 = vld [vmem:[%s4078_s0 + $0x1c4] ss:$36 sps:$4 sm:$0xff]  }
  0x46   :  { %1666 = vmatprep.mubr.bf16.mxu0 %v2823_v11  ;;  %v2905_v11 = vld [vmem:[%s4077_s1 + $0x1b0] ss:$8 sps:$4 sm:$0xff]  }
  0x47   :  { %1514 = vmatpush1.bf16.msra.mxu1 %v2815_v12  ;;  %v3534_v12 = vld [vmem:[%s4077_s1 + $0x3b0] ss:$8 sps:$4 sm:$0xff]  }
  0x48   :  { %1740 = vmatpush1.bf16.msra.mxu0 %v3295_v13  ;;  %1515 = vmatprep.subr.bf16.mxu1 %v2828_v14  ;;  %v2918_v14 = vld [vmem:[%s4077_s1 + $0x1c4] ss:$8 sps:$4 sm:$0xff]  }
  0x49   :  { %1741 = vmatprep.subr.bf16.mxu0 %v3304_v15 }
  0x4a   :  { %1441 = vmatmul.mubr.bf16.gmra.mrb[4].mxu1 %v2825_v16  ;;  %v3544_v16 = vld [vmem:[%s4077_s1 + $0x3c4] ss:$8 sps:$4 sm:$0xff]  }
  0x4b   :  { %1667 = vmatmul.mubr.bf16.gmra.mrb[4].mxu0 %v2829_v18  ;;  %1516 = vmatpush1.bf16.msra.mxu1 %v2826_v17  ;;  %v2915_v17 = vld [vmem:[%s4078_s0 + $0x1b0] ss:$36 sps:$4 sm:$0xff]   ;;  %v2916_v18 = vld [vmem:[%s4077_s1 + $0x1c0] ss:$8 sps:$4 sm:$0xff]  }
  0x4c   :  { %1742 = vmatpush1.bf16.msra.mxu0 %v3318_v19  ;;  %1517 = vmatprep.subr.bf16.mxu1 %v2835_v20  ;;  %v2919_v20 = vld [vmem:[%s4078_s0 + $0x1c0] ss:$36 sps:$4 sm:$0xff]  }
  0x4d   :  { %1743 = vmatprep.subr.bf16.mxu0 %v3328_v21  ;;  %1450 = vmatprep.mubr.bf16.mxu1 %v2839_v22  ;;  %v3558_v22 = vld [vmem:[%s4077_s1 + $0x3c0] ss:$8 sps:$4 sm:$0xff]  }
  0x4e   :  { %1676 = vmatprep.mubr.bf16.mxu0 %v2841_v23  ;;  %v2925_v23 = vld [vmem:[%s4077_s1 + $0x1d4] ss:$8 sps:$4 sm:$0xff]  }
  0x4f   :  { %1518 = vmatpush1.bf16.msra.mxu1 %v2833_v24  ;;  %v3568_v24 = vld [vmem:[%s4077_s1 + $0x3d4] ss:$8 sps:$4 sm:$0xff]  }
  0x50   :  { %1744 = vmatpush1.bf16.msra.mxu0 %v3343_v25  ;;  %1519 = vmatprep.subr.bf16.mxu1 %v2846_v26  ;;  %v2929_v26 = vld [vmem:[%s4078_s0 + $0x1fc] ss:$36 sps:$4 sm:$0xff]  }
  0x51   :  { %1745 = vmatprep.subr.bf16.mxu0 %v3352_v27 }
  0x52   :  { %1451 = vmatmul.mubr.bf16.gmra.mrb[8].mxu1 %v2843_v28  ;;  %v2931_v28 = vld [vmem:[%s4078_s0 + $0x20c] ss:$36 sps:$4 sm:$0xff]  }
  0x53   :  { %1677 = vmatmul.mubr.bf16.gmra.mrb[8].mxu0 %v2847_v30  ;;  %1520 = vmatpush1.bf16.msra.mxu1 %v2844_v29  ;;  %v2923_v29 = vld [vmem:[%s4077_s1 + $0x1d0] ss:$8 sps:$4 sm:$0xff]  }
  0x54   :  { %1746 = vmatpush1.bf16.msra.mxu0 %v3366_v31  ;;  %1521 = vmatprep.subr.bf16.mxu1 %v2853_v32  ;;  %v3582_v30 = vld [vmem:[%s4077_s1 + $0x3d0] ss:$8 sps:$4 sm:$0xff]   ;;  %v2936_v32 = vld [vmem:[%s4077_s1 + $0x1e4] ss:$8 sps:$4 sm:$0xff]  }
  0x55   :  { %1747 = vmatprep.subr.bf16.mxu0 %v3376_v33  ;;  %1460 = vmatprep.mubr.bf16.mxu1 %v2857_v34  ;;  %v3592_v34 = vld [vmem:[%s4077_s1 + $0x3e4] ss:$8 sps:$4 sm:$0xff]  }
  0x56   :  { %1686 = vmatprep.mubr.bf16.mxu0 %v2859_v35  ;;  %v2933_v35 = vld [vmem:[%s4078_s0 + $0x1f8] ss:$36 sps:$4 sm:$0xff]  }
  0x57   :  { %1522 = vmatpush1.bf16.msra.mxu1 %v2851_v36  ;;  %v2934_v36 = vld [vmem:[%s4077_s1 + $0x1e0] ss:$8 sps:$4 sm:$0xff]  }
  0x58   :  { %1748 = vmatpush1.bf16.msra.mxu0 %v3391_v37  ;;  %1523 = vmatprep.subr.bf16.mxu1 %v2864_v38  ;;  %v2937_v38 = vld [vmem:[%s4078_s0 + $0x208] ss:$36 sps:$4 sm:$0xff]  }
  0x59   :  { %1749 = vmatprep.subr.bf16.mxu0 %v3400_v39 }
  0x5a   :  { %1461 = vmatmul.mubr.bf16.gmra.mrb[12].mxu1 %v2861_v40  ;;  %v3606_v40 = vld [vmem:[%s4077_s1 + $0x3e0] ss:$8 sps:$4 sm:$0xff]  }
  0x5b   :  { %1687 = vmatmul.mubr.bf16.gmra.mrb[12].mxu0 %v2865_v42  ;;  %1524 = vmatpush1.bf16.msra.mxu1 %v2862_v41  ;;  %v2943_v41 = vld [vmem:[%s4077_s1 + $0x1f4] ss:$8 sps:$4 sm:$0xff]  }
  0x5c   :  { %1750 = vmatpush1.bf16.msra.mxu0 %v3414_v43  ;;  %1525 = vmatprep.subr.bf16.mxu1 %v2871_v44  ;;  %v3616_v42 = vld [vmem:[%s4077_s1 + $0x3f4] ss:$8 sps:$4 sm:$0xff]   ;;  %v2949_v44 = vld [vmem:[%s4078_s0 + $0xc] ss:$36 sps:$4 sm:$0xff]  }
  0x5d   :  { %1751 = vmatprep.subr.bf16.mxu0 %v3424_v45  ;;  %1470 = vmatprep.mubr.bf16.mxu1 %v2875_v46  ;;  %v2952_v46 = vld [vmem:[%s4078_s0 + $0x1c] ss:$36 sps:$4 sm:$0xff]  }
  0x5e   :  { %1696 = vmatprep.mubr.bf16.mxu0 %v2877_v47  ;;  %v2941_v47 = vld [vmem:[%s4077_s1 + $0x1f0] ss:$8 sps:$4 sm:$0xff]  }
  0x5f   :  { %1526 = vmatpush1.bf16.msra.mxu1 %v2869_v48  ;;  %v3631_v48 = vld [vmem:[%s4077_s1 + $0x3f0] ss:$8 sps:$4 sm:$0xff]  }
  0x60   :  { %1752 = vmatpush1.bf16.msra.mxu0 %v3439_v49  ;;  %1527 = vmatprep.subr.bf16.mxu1 %v2882_v50  ;;  %v2955_v50 = vld [vmem:[%s4077_s1 + $0x404] ss:$8 sps:$4 sm:$0xff]  }
  0x61   :  { %1753 = vmatprep.subr.bf16.mxu0 %v3448_v51 }
  0x62   :  { %1471 = vmatmul.mubr.bf16.gmra.mrb[16].mxu1 %v2879_v52  ;;  %v2947_v52 = vld [vmem:[%s4078_s0 + $0x8] ss:$36 sps:$4 sm:$0xff]  }
  0x63   :  { %1697 = vmatmul.mubr.bf16.gmra.mrb[16].mxu0 %v2883_v54  ;;  %1528 = vmatpush1.bf16.msra.mxu1 %v2880_v53  ;;  %v2950_v53 = vld [vmem:[%s4078_s0 + $0x18] ss:$36 sps:$4 sm:$0xff]   ;;  %v2953_v54 = vld [vmem:[%s4077_s1 + $0x400] ss:$8 sps:$4 sm:$0xff]  }
  0x64   :  { %1754 = vmatpush1.bf16.msra.mxu0 %v3462_v55  ;;  %1529 = vmatprep.subr.bf16.mxu1 %v2889_v56  ;;  %v2958_v56 = vld [vmem:[%s4077_s1 + $0x414] ss:$8 sps:$4 sm:$0xff]  }
  0x65   :  { %1755 = vmatprep.subr.bf16.mxu0 %v3472_v57  ;;  %1480 = vmatprep.mubr.bf16.mxu1 %v2893_v58  ;;  %v2959_v58 = vld [vmem:[%s4078_s0 + $0x54] ss:$36 sps:$4 sm:$0xff]  }
  0x66   :  { %1706 = vmatprep.mubr.bf16.mxu0 %v2895_v59  ;;  %v2961_v59 = vld [vmem:[%s4078_s0 + $0x64] ss:$36 sps:$4 sm:$0xff]  }
  0x67   :  { %1530 = vmatpush1.bf16.msra.mxu1 %v2887_v60  ;;  %v2956_v60 = vld [vmem:[%s4077_s1 + $0x410] ss:$8 sps:$4 sm:$0xff]  }
  0x68   :  { %1756 = vmatpush1.bf16.msra.mxu0 %v3487_v61  ;;  %1531 = vmatprep.subr.bf16.mxu1 %v2900_v62  ;;  %v2963_v62 = vld [vmem:[%s4078_s0 + $0x50] ss:$36 sps:$4 sm:$0xff]  }
  0x69   :  { %1757 = vmatprep.subr.bf16.mxu0 %v3496_v63 }
  0x6a   :  { %1481 = vmatmul.mubr.bf16.gmra.mrb[20].mxu1 %v2897_v0  ;;  %v2970_v0 = vld [vmem:[%s4077_s1 + $0x434] ss:$8 sps:$4 sm:$0xff]  }
  0x6b   :  { %1707 = vmatmul.mubr.bf16.gmra.mrb[20].mxu0 %v2901_v2  ;;  %1532 = vmatpush1.bf16.msra.mxu1 %v2898_v1  ;;  %v2971_v1 = vld [vmem:[%s4078_s0 + $0x9c] ss:$36 sps:$4 sm:$0xff]   ;;  %v2979_v2 = vld [vmem:[%s4077_s1 + $0x444] ss:$8 sps:$4 sm:$0xff]  }
  0x6c   :  { %1758 = vmatpush1.bf16.msra.mxu0 %v3510_v4  ;;  %1533 = vmatprep.subr.bf16.mxu1 %v2907_v5  ;;  %v2975_v5 = vld [vmem:[%s4078_s0 + $0x98] ss:$36 sps:$4 sm:$0xff]  }
  0x6d   :  { %1759 = vmatprep.subr.bf16.mxu0 %v3520_v6  ;;  %1490 = vmatprep.mubr.bf16.mxu1 %v2911_v8  ;;  %v2982_v8 = vld [vmem:[%s4077_s1 + $0x454] ss:$8 sps:$4 sm:$0xff]  }
  0x6e   :  { %1716 = vmatprep.mubr.bf16.mxu0 %v2913_v10  ;;  %v2983_v10 = vld [vmem:[%s4078_s0 + $0xe4] ss:$36 sps:$4 sm:$0xff]  }
  0x6f   :  { %1534 = vmatpush1.bf16.msra.mxu1 %v2905_v11  ;;  %v2991_v11 = vld [vmem:[%s4077_s1 + $0x464] ss:$8 sps:$4 sm:$0xff]  }
  0x70   :  { %1760 = vmatpush1.bf16.msra.mxu0 %v3534_v12  ;;  %1535 = vmatprep.subr.bf16.mxu1 %v2918_v14  ;;  %v2987_v14 = vld [vmem:[%s4078_s0 + $0xe0] ss:$36 sps:$4 sm:$0xff]  }
  0x71   :  { %1761 = vmatprep.subr.bf16.mxu0 %v3544_v16 }
  0x72   :  { %1491 = vmatmul.mubr.bf16.gmra.mrb[24].mxu1 %v2915_v17  ;;  %v2994_v17 = vld [vmem:[%s4077_s1 + $0x474] ss:$8 sps:$4 sm:$0xff]  }
  0x73   :  { %1717 = vmatmul.mubr.bf16.gmra.mrb[24].mxu0 %v2919_v20  ;;  %1536 = vmatpush1.bf16.msra.mxu1 %v2916_v18  ;;  %v2995_v18 = vld [vmem:[%s4078_s0 + $0x12c] ss:$36 sps:$4 sm:$0xff]  }
  0x74   :  { %1762 = vmatpush1.bf16.msra.mxu0 %v3558_v22  ;;  %1537 = vmatprep.subr.bf16.mxu1 %v2925_v23  ;;  %v2997_v20 = vld [vmem:[%s4078_s0 + $0x128] ss:$36 sps:$4 sm:$0xff]  }
  0x75   :  { %1763 = vmatprep.subr.bf16.mxu0 %v3568_v24  ;;  %1500 = vmatprep.mubr.bf16.mxu1 %v2929_v26  ;;  %v3002_v23 = vld [vmem:[%s4078_s0 + $0x68] ss:$36 sps:$4 sm:$0xff]  }
  0x76   :  { %1726 = vmatprep.mubr.bf16.mxu0 %v2931_v28  ;;  %v3018_v26 = vld [vmem:[%s4078_s0 + $0x188] ss:$36 sps:$4 sm:$0xff]  }
  0x77   :  { %1538 = vmatpush1.bf16.msra.mxu1 %v2923_v29  ;;  %v3019_v28 = vld [vmem:[%s4078_s0 + $0x1cc] ss:$36 sps:$4 sm:$0xff]  }
  0x78   :  { %1764 = vmatpush1.bf16.msra.mxu0 %v3582_v30  ;;  %1539 = vmatprep.subr.bf16.mxu1 %v2936_v32  ;;  %v3021_v29 = vld [vmem:[%s4078_s0 + $0x1c8] ss:$36 sps:$4 sm:$0xff]   ;;  %v3023_v32 = vld [vmem:[%s4078_s0 + $0x214] ss:$36 sps:$4 sm:$0xff]  }
  0x79   :  { %1765 = vmatprep.subr.bf16.mxu0 %v3592_v34 }
  0x7a   :  { %1501 = vmatmul.mubr.bf16.gmra.mrb[28].mxu1 %v2933_v35  ;;  %v3026_v35 = vld [vmem:[%s4078_s0 + $0x218] ss:$36 sps:$4 sm:$0xff]  }
  0x7b   :  { %1727 = vmatmul.mubr.bf16.gmra.mrb[28].mxu0 %v2937_v38  ;;  %1540 = vmatpush1.bf16.msra.mxu1 %v2934_v36 }
  0x7c   :  { %1766 = vmatpush1.bf16.msra.mxu0 %v3606_v40  ;;  %1541 = vmatprep.subr.bf16.mxu1 %v2943_v41 }
  0x7d   :  { %1767 = vmatprep.subr.bf16.mxu0 %v3616_v42  ;;  %1543 = vmatprep.mubr.bf16.mxu1 %v2949_v44 }
  0x7e   :  { %1769 = vmatprep.mubr.bf16.mxu0 %v2952_v46 }
  0x7f   :  { %1542 = vmatpush1.bf16.msra.mxu1 %v2941_v47 }
  0x80   :  { %1768 = vmatpush1.bf16.msra.mxu0 %v3631_v48  ;;  %2546 = vmatprep.subr.bf16.mxu1 %v3257_v3  ;;  %v2967_v3 = vld [vmem:[%s4077_s1 + $0x424] ss:$8 sps:$4 sm:$0xff]  }
  0x81   :  { %1850 = vmatprep.subr.bf16.mxu0 %v2955_v50 }
  0x82   :  { %1544 = vmatmul.mubr.bf16.vlgmr.msra.gmra.mrb[0].mxu1 %v2947_v52 }
  0x83   :  { %1770 = vmatmul.mubr.bf16.vlgmr.msra.gmra.mrb[0].mxu0 %v2950_v53  ;;  %2562 = vmatpush1.bf16.msra.mxu1 %v3271_v7  ;;  %v2964_v7 = vld [vmem:[%s4078_s0 + $0x60] ss:$36 sps:$4 sm:$0xff]  }
  0x84   :  { %1851 = vmatpush1.bf16.msra.mxu0 %v2953_v54  ;;  %2547 = vmatprep.subr.bf16.mxu1 %v3280_v9  ;;  %v2965_v9 = vld [vmem:[%s4077_s1 + $0x420] ss:$8 sps:$4 sm:$0xff]  }
  0x85   :  { %1852 = vmatprep.subr.bf16.mxu0 %v2958_v56  ;;  %1553 = vmatprep.mubr.bf16.mxu1 %v2959_v58 }
  0x86   :  { %1779 = vmatprep.mubr.bf16.mxu0 %v2961_v59 }
  0x87   :  { %2563 = vmatpush1.bf16.msra.mxu1 %v3295_v13  ;;  %v2973_v13 = vld [vmem:[%s4078_s0 + $0xac] ss:$36 sps:$4 sm:$0xff]  }
  0x88   :  { %1853 = vmatpush1.bf16.msra.mxu0 %v2956_v60  ;;  %2548 = vmatprep.subr.bf16.mxu1 %v3304_v15  ;;  %v2968_v15 = vld [vmem:[%s4077_s1 + $0x430] ss:$8 sps:$4 sm:$0xff]  }
  0x89   :  { %1854 = vmatprep.subr.bf16.mxu0 %v2967_v3 }
  0x8a   :  { %1554 = vmatmul.mubr.bf16.gmra.mrb[4].mxu1 %v2963_v62 }
  0x8b   :  { %1780 = vmatmul.mubr.bf16.gmra.mrb[4].mxu0 %v2964_v7  ;;  %2564 = vmatpush1.bf16.msra.mxu1 %v3318_v19  ;;  %v2976_v19 = vld [vmem:[%s4078_s0 + $0xa8] ss:$36 sps:$4 sm:$0xff]  }
  0x8c   :  { %1855 = vmatpush1.bf16.msra.mxu0 %v2965_v9  ;;  %2549 = vmatprep.subr.bf16.mxu1 %v3328_v21  ;;  %v2977_v21 = vld [vmem:[%s4077_s1 + $0x440] ss:$8 sps:$4 sm:$0xff]  }
  0x8d   :  { %1856 = vmatprep.subr.bf16.mxu0 %v2970_v0  ;;  %1563 = vmatprep.mubr.bf16.mxu1 %v2971_v1 }
  0x8e   :  { %1789 = vmatprep.mubr.bf16.mxu0 %v2973_v13 }
  0x8f   :  { %2565 = vmatpush1.bf16.msra.mxu1 %v3343_v25  ;;  %v2985_v25 = vld [vmem:[%s4078_s0 + $0xf4] ss:$36 sps:$4 sm:$0xff]  }
  0x90   :  { %1857 = vmatpush1.bf16.msra.mxu0 %v2968_v15  ;;  %2550 = vmatprep.subr.bf16.mxu1 %v3352_v27  ;;  %v2980_v27 = vld [vmem:[%s4077_s1 + $0x450] ss:$8 sps:$4 sm:$0xff]  }
  0x91   :  { %1858 = vmatprep.subr.bf16.mxu0 %v2979_v2 }
  0x92   :  { %1564 = vmatmul.mubr.bf16.gmra.mrb[8].mxu1 %v2975_v5 }
  0x93   :  { %1790 = vmatmul.mubr.bf16.gmra.mrb[8].mxu0 %v2976_v19  ;;  %2566 = vmatpush1.bf16.msra.mxu1 %v3366_v31  ;;  %v2988_v31 = vld [vmem:[%s4078_s0 + $0xf0] ss:$36 sps:$4 sm:$0xff]  }
  0x94   :  { %1859 = vmatpush1.bf16.msra.mxu0 %v2977_v21  ;;  %2551 = vmatprep.subr.bf16.mxu1 %v3376_v33  ;;  %v2989_v33 = vld [vmem:[%s4077_s1 + $0x460] ss:$8 sps:$4 sm:$0xff]   ;;  %v2064_v21 = vlaneseq }
  0x95   :  { %1860 = vmatprep.subr.bf16.mxu0 %v2982_v8  ;;  %1573 = vmatprep.mubr.bf16.mxu1 %v2983_v10 }
  0x96   :  { %1799 = vmatprep.mubr.bf16.mxu0 %v2985_v25  ;;  %v2065_v8 = vshrl.u32 %v2064_v21, 7 }
  0x97   :  { %2567 = vmatpush1.bf16.msra.mxu1 %v3391_v37  ;;  %v2992_v37 = vld [vmem:[%s4077_s1 + $0x470] ss:$8 sps:$4 sm:$0xff]  }
  0x98   :  { %1861 = vmatpush1.bf16.msra.mxu0 %v2980_v27  ;;  %2552 = vmatprep.subr.bf16.mxu1 %v3400_v39  ;;  %v3027_v39 = vmov 0  }
  0x99   :  { %1862 = vmatprep.subr.bf16.mxu0 %v2991_v11 }
  0x9a   :  { %1574 = vmatmul.mubr.bf16.gmra.mrb[12].mxu1 %v2987_v14  ;;  %v2066_v14 = vsub.s32 0, %v2065_v8 }
  0x9b   :  { %1800 = vmatmul.mubr.bf16.gmra.mrb[12].mxu0 %v2988_v31  ;;  %2568 = vmatpush1.bf16.msra.mxu1 %v3414_v43  ;;  %v2998_v43 = vld [vmem:[%s4078_s0 + $0x20] ss:$36 sps:$4 sm:$0xff]  }
  0x9c   :  { %1863 = vmatpush1.bf16.msra.mxu0 %v2989_v33  ;;  %2553 = vmatprep.subr.bf16.mxu1 %v3424_v45  ;;  %v2999_v45 = vld [vmem:[%s4078_s0 + $0x174] ss:$36 sps:$4 sm:$0xff]   ;;  %v2062_v31 = vld [vmem:[%s4079_s2] sm:$0x3]  ;;  %v2070_v33 = vsub.s32 1, %v2065_v8 }
  0x9d   :  { %1864 = vmatprep.subr.bf16.mxu0 %v2994_v17  ;;  %1583 = vmatprep.mubr.bf16.mxu1 %v2995_v18  ;;  %v2106_v17 = vld [vmem:[%s4080_s3] sm:$0x3]  ;;  %v3887_v18 = vrot.slane %v2062_v31, %v2066_v14 }
  0x9e   :  { %1882 = vmatprep.mubr.bf16.mxu0 %v3027_v39 }
  0x9f   :  { %2569 = vmatpush1.bf16.msra.mxu1 %v3439_v49  ;;  %v3001_v49 = vld [vmem:[%s4078_s0 + $0x170] ss:$36 sps:$4 sm:$0xff]  }
  0xa0   :  { %1865 = vmatpush1.bf16.msra.mxu0 %v2992_v37  ;;  %2554 = vmatprep.subr.bf16.mxu1 %v3448_v51  ;;  %v3003_v51 = vld [vmem:[%s4078_s0 + $0x1bc] ss:$36 sps:$4 sm:$0xff]  }
  0xa2   :  { %1584 = vmatmul.mubr.bf16.gmra.mrb[16].mxu1 %v2997_v20  ;;  %v3889_v20 = vrot.slane %v2062_v31, %v2070_v33 }
  0xa3   :  { %1883 = vmatmul.mubr.bf16.vlgmr.msra.gmra.mrb[0].mxu0 %v2998_v43  ;;  %2570 = vmatpush1.bf16.msra.mxu1 %v3462_v55  ;;  %v3005_v55 = vld [vmem:[%s4078_s0 + $0x1b8] ss:$36 sps:$4 sm:$0xff]  }
  0xa4   :  { %1593 = vmatprep.mubr.bf16.mxu1 %v2999_v45  ;;  %2555 = vmatprep.subr.bf16.mxu1 %v3472_v57  ;;  %v3006_v57 = vld [vmem:[%s4078_s0 + $0xb0] ss:$36 sps:$4 sm:$0xff]  }
  0xa5   :  { %1892 = vmatprep.mubr.bf16.mxu0 %v3027_v39 }
  0xa7   :  { %2571 = vmatpush1.bf16.msra.mxu1 %v3487_v61  ;;  %v3007_v61 = vld [vmem:[%s4078_s0 + $0x204] ss:$36 sps:$4 sm:$0xff]  }
  0xa8   :  { %2556 = vmatprep.subr.bf16.mxu1 %v3496_v63  ;;  %v3009_v63 = vld [vmem:[%s4078_s0 + $0x200] ss:$36 sps:$4 sm:$0xff]  }
  0xaa   :  { %1594 = vmatmul.mubr.bf16.gmra.mrb[20].mxu1 %v3001_v49  ;;  %v3893_v49 = vrot.slane %v2106_v17, %v2066_v14 }
  0xab   :  { %1893 = vmatmul.mubr.bf16.gmra.mrb[4].mxu0 %v3002_v23  ;;  %2572 = vmatpush1.bf16.msra.mxu1 %v3510_v4  ;;  %v3010_v4 = vld [vmem:[%s4078_s0 + $0xf8] ss:$36 sps:$4 sm:$0xff]  }
  0xac   :  { %1603 = vmatprep.mubr.bf16.mxu1 %v3003_v51  ;;  %2557 = vmatprep.subr.bf16.mxu1 %v3520_v6  ;;  %v3013_v6 = vld [vmem:[%s4078_s0 + $0x13c] ss:$36 sps:$4 sm:$0xff]  }
  0xad   :  { %1902 = vmatprep.mubr.bf16.mxu0 %v3027_v39 }
  0xaf   :  { %2573 = vmatpush1.bf16.msra.mxu1 %v3534_v12  ;;  %v3011_v12 = vld [vmem:[%s4078_s0 + $0x138] ss:$36 sps:$4 sm:$0xff]  }
  0xb0   :  { %2558 = vmatprep.subr.bf16.mxu1 %v3544_v16  ;;  %v3014_v16 = vld [vmem:[%s4078_s0 + $0x140] ss:$36 sps:$4 sm:$0xff]  }
  0xb2   :  { %1604 = vmatmul.mubr.bf16.gmra.mrb[24].mxu1 %v3005_v55 }
  0xb3   :  { %1903 = vmatmul.mubr.bf16.gmra.mrb[8].mxu0 %v3006_v57  ;;  %2574 = vmatpush1.bf16.msra.mxu1 %v3558_v22  ;;  %v3015_v22 = vld [vmem:[%s4078_s0 + $0x184] ss:$36 sps:$4 sm:$0xff]  }
  0xb4   :  { %1613 = vmatprep.mubr.bf16.mxu1 %v3007_v61  ;;  %2559 = vmatprep.subr.bf16.mxu1 %v3568_v24  ;;  %v3017_v24 = vld [vmem:[%s4078_s0 + $0x180] ss:$36 sps:$4 sm:$0xff]   ;;  %v3897_v61 = vrot.slane %v2106_v17, %v2070_v33 }
  0xb5   :  { %1912 = vmatprep.mubr.bf16.mxu0 %v3027_v39 }
  0xb7   :  { %2575 = vmatpush1.bf16.msra.mxu1 %v3582_v30  ;;  %v3022_v30 = vld [vmem:[%s4078_s0 + $0x1d0] ss:$36 sps:$4 sm:$0xff]  }
  0xb8   :  { %2560 = vmatprep.subr.bf16.mxu1 %v3592_v34  ;;  %v3025_v34 = vld [vmem:[%s4078_s0 + $0x210] ss:$36 sps:$4 sm:$0xff]  }
  0xba   :  { %1614 = vmatmul.mubr.bf16.gmra.mrb[28].mxu1 %v3009_v63 }
  0xbb   :  { %1913 = vmatmul.mubr.bf16.gmra.mrb[12].mxu0 %v3010_v4  ;;  %2576 = vmatpush1.bf16.msra.mxu1 %v3606_v40 }
  0xbc   :  { %1809 = vmatprep.mubr.bf16.mxu1 %v3013_v6  ;;  %2561 = vmatprep.subr.bf16.mxu1 %v3616_v42 }
  0xbd   :  { %1922 = vmatprep.mubr.bf16.mxu0 %v3027_v39 }
  0xbf   :  { %2577 = vmatpush1.bf16.msra.mxu1 %v3631_v48 }
  0xc2   :  { %1810 = vmatmul.mubr.bf16.vlgmr.msra.gmra.mrb[32].mxu1 %v3011_v12 }
  0xc3   :  { %1923 = vmatmul.mubr.bf16.gmra.mrb[32].mxu0 %v3014_v16  ;;  %1819 = vmatprep.mubr.bf16.mxu1 %v3015_v22 }
  0xc4   :  { %1932 = vmatprep.mubr.bf16.mxu0 %v3027_v39 }
  0xca   :  { %1820 = vmatmul.mubr.bf16.gmra.mrb[36].mxu1 %v3017_v24 }
  0xcb   :  { %1933 = vmatmul.mubr.bf16.gmra.mrb[36].mxu0 %v3018_v26  ;;  %1829 = vmatprep.mubr.bf16.mxu1 %v3019_v28 }
  0xcc   :  { %1942 = vmatprep.mubr.bf16.mxu0 %v3027_v39 }
  0xd2   :  { %1830 = vmatmul.mubr.bf16.gmra.mrb[40].mxu1 %v3021_v29 }
  0xd3   :  { %1943 = vmatmul.mubr.bf16.gmra.mrb[40].mxu0 %v3022_v30  ;;  %1839 = vmatprep.mubr.bf16.mxu1 %v3023_v32 }
  0xd4   :  { %1952 = vmatprep.mubr.bf16.mxu0 %v3027_v39 }
  0xda   :  { %1840 = vmatmul.mubr.bf16.gmra.mrb[44].mxu1 %v3025_v34 }
  0xdb   :  { %1953 = vmatmul.mubr.bf16.gmra.mrb[44].mxu0 %v3026_v35 }
 0x136   :  { %v1698_v36 = vpop.f32.mrb[16].mxu0 }
 0x137   :  { %v1700_v38 = vpop.f32.mrb[17].mxu0 }
 0x138   :  { %v1702_v40 = vpop.f32.mrb[18].mxu0 }
 0x139   :  { %v1704_v41 = vpop.f32.mrb[19].mxu0 }
 0x13e   :  { %v3837_v42 = vpop.f32.mrb[20].mxu0 }
 0x13f   :  { %v3839_v44 = vpop.f32.mrb[21].mxu0 }
 0x140   :  { %v3841_v46 = vpop.f32.mrb[22].mxu0 }
 0x141   :  { %v3843_v47 = vpop.f32.mrb[23].mxu0 }
 0x146   :  { %v3845_v48 = vpop.f32.mrb[24].mxu0 }
 0x147   :  { %v3847_v50 = vpop.f32.mrb[25].mxu0 }
 0x148   :  { %v3849_v52 = vpop.f32.mrb[26].mxu0 }
 0x149   :  { %v3851_v53 = vpop.f32.mrb[27].mxu0 }
 0x14e   :  { %v3853_v54 = vpop.f32.mrb[28].mxu0 }
 0x14f   :  { %v3855_v56 = vpop.f32.mrb[29].mxu0 }
 0x150   :  { %v3857_v58 = vpop.f32.mrb[30].mxu0 }
 0x151   :  { %v3859_v59 = vpop.f32.mrb[31].mxu0 }
 0x155   :  { %v1545_v60 = vpop.f32.mrb[0].mxu1 }
 0x156   :  { %v1547_v3 = vpop.f32.mrb[1].mxu1 }
 0x157   :  { %v1549_v62 = vpop.f32.mrb[2].mxu1 }
 0x158   :  { %v1551_v7 = vpop.f32.mrb[3].mxu1 }
 0x15d   :  { %v1555_v9 = vpop.f32.mrb[4].mxu1 }
 0x15e   :  { %v1557_v0 = vpop.f32.mrb[5].mxu1 }
 0x15f   :  { %v3861_v1 = vpop.f32.mrb[6].mxu1 }
 0x160   :  { %v3863_v13 = vpop.f32.mrb[7].mxu1 }
 0x165   :  { %v3865_v15 = vpop.f32.mrb[8].mxu1 }
 0x166   :  { %v3867_v2 = vpop.f32.mrb[9].mxu1 }
 0x167   :  { %v3869_v5 = vpop.f32.mrb[10].mxu1 }
 0x168   :  { %v3871_v19 = vpop.f32.mrb[11].mxu1 }
 0x16d   :  { %v3873_v10 = vpop.f32.mrb[12].mxu1 }
 0x16e   :  { %v3875_v25 = vpop.f32.mrb[13].mxu1 }
 0x16f   :  { %v3877_v27 = vpop.f32.mrb[14].mxu1 }
 0x170   :  { %v3879_v11 = vpop.f32.mrb[15].mxu1 }
 0x175   :  { %v1585_v37 = vpop.f32.mrb[16].mxu1 }
 0x176   :  { %v1884_v39 = vpop.f32.mrb[0].mxu0  ;;  %v3891_v43 = vadd.f32 %v1698_v36, %v1585_v37  ;;  %v1587_v23 = vpop.f32.mrb[17].mxu1 }
 0x177   :  { %v2578_v45 = vadd.f32 %v1884_v39, %v1545_v60  ;;  %v1886_v51 = vpop.f32.mrb[1].mxu0  ;;  %v3895_v55 = vadd.f32 %v1700_v38, %v1587_v23  ;;  %v1589_v63 = vpop.f32.mrb[18].mxu1 }
 0x178   :  { %v2579_v57 = vadd.f32 %v1886_v51, %v1547_v3  ;;  %v1888_v4 = vpop.f32.mrb[2].mxu0  ;;  %v3900_v12 = vadd.f32 %v1702_v40, %v1589_v63  ;;  %v1591_v22 = vpop.f32.mrb[19].mxu1 }
 0x179   :  { %v2074_v6 = vmul.f32 %v2578_v45, %v3887_v18  ;;  %v2580_v16 = vadd.f32 %v1888_v4, %v1549_v62  ;;  %v1890_v24 = vpop.f32.mrb[3].mxu0  ;;  %v3903_v28 = vadd.f32 %v1704_v41, %v1591_v22 }
 0x17a   :  { %v2075_v26 = vmul.f32 %v2579_v57, %v3889_v20  ;;  %v2581_v29 = vadd.f32 %v1890_v24, %v1551_v7 }
 0x17b   :  { %v2118_v30 = vadd.f32 %v3893_v49, %v2074_v6  ;;  %v2076_v32 = vmul.f32 %v2580_v16, %v3887_v18 }
 0x17c   :  { %v2119_v34 = vadd.f32 %v3897_v61, %v2075_v26  ;;  %v2077_v35 = vmul.f32 %v2581_v29, %v3889_v20 }
 0x17d   :  { %v2150_v36 = vmax.f32 %v2118_v30, 0.0  ;;  %v2120_v38 = vadd.f32 %v3893_v49, %v2076_v32  ;;  %v1595_v3 = vpop.f32.mrb[20].mxu1 }
 0x17e   :  { %v2151_v40 = vmax.f32 %v2119_v34, 0.0  ;;  %v2121_v60 = vadd.f32 %v3897_v61, %v2077_v35  ;;  %v1894_v62 = vpop.f32.mrb[4].mxu0  ;;  %v3912_v41 = vadd.f32 %v3837_v42, %v1595_v3  ;;  %v1597_v8 = vpop.f32.mrb[21].mxu1 }
 0x17f   :  { %v2152_v21 = vmax.f32 %v2120_v38, 0.0  ;;  %v2582_v7 = vadd.f32 %v1894_v62, %v1555_v9  ;;  %v1896_v14 = vpop.f32.mrb[5].mxu0  ;;  %v3915_v17 = vadd.f32 %v3839_v44, %v1597_v8  ;;  %v1599_v39 = vpop.f32.mrb[22].mxu1 }
 0x180   :  { %v2530_v31 = vpack.c.bf16 %v2151_v40, %v2150_v36  ;;  %v2153_v33 = vmax.f32 %v2121_v60, 0.0  ;;  %v2583_v37 = vadd.f32 %v1896_v14, %v1557_v0  ;;  %v1898_v45 = vpop.f32.mrb[6].mxu0  ;;  %v3919_v51 = vadd.f32 %v3841_v46, %v1599_v39  ;;  %v1601_v42 = vpop.f32.mrb[23].mxu1 }
 0x181   :  { %v2078_v23 = vmul.f32 %v2582_v7, %v3887_v18  ;;  %v2584_v57 = vadd.f32 %v1898_v45, %v3861_v1  ;;  %v1900_v63 = vpop.f32.mrb[7].mxu0  ;;  %v3927_v0 = vadd.f32 %v3843_v47, %v1601_v42 }
 0x182   :  { %2278 = vst [vmem:[%s4081_s4] sm:$0xff] %v2530_v31  ;;  %v2531_v9 = vpack.c.bf16 %v2153_v33, %v2152_v21  ;;  %v2079_v44 = vmul.f32 %v2583_v37, %v3889_v20  ;;  %v2585_v4 = vadd.f32 %v1900_v63, %v3863_v13 }
 0x183   :  { %v2122_v6 = vadd.f32 %v3893_v49, %v2078_v23  ;;  %v2080_v46 = vmul.f32 %v2584_v57, %v3887_v18 }
 0x184   :  { %2279 = vst [vmem:[%s4081_s4 + $0x8] sm:$0xff] %v2531_v9  ;;  %v2123_v1 = vadd.f32 %v3897_v61, %v2079_v44  ;;  %v2081_v16 = vmul.f32 %v2585_v4, %v3889_v20 }
 0x185   :  { %v2154_v22 = vmax.f32 %v2122_v6, 0.0  ;;  %v2124_v24 = vadd.f32 %v3893_v49, %v2080_v46  ;;  %v1605_v29 = vpop.f32.mrb[24].mxu1 }
 0x186   :  { %v2155_v26 = vmax.f32 %v2123_v1, 0.0  ;;  %v2125_v47 = vadd.f32 %v3897_v61, %v2081_v16  ;;  %v1904_v13 = vpop.f32.mrb[8].mxu0  ;;  %v3940_v32 = vadd.f32 %v3845_v48, %v1605_v29  ;;  %v1607_v35 = vpop.f32.mrb[25].mxu1 }
 0x187   :  { %v2156_v30 = vmax.f32 %v2124_v24, 0.0  ;;  %v2586_v34 = vadd.f32 %v1904_v13, %v3865_v15  ;;  %v1906_v36 = vpop.f32.mrb[9].mxu0  ;;  %v3944_v60 = vadd.f32 %v3847_v50, %v1607_v35  ;;  %v1609_v62 = vpop.f32.mrb[26].mxu1 }
 0x188   :  { %v2532_v38 = vpack.c.bf16 %v2155_v26, %v2154_v22  ;;  %v2157_v40 = vmax.f32 %v2125_v47, 0.0  ;;  %v2587_v3 = vadd.f32 %v1906_v36, %v3867_v2  ;;  %v1908_v21 = vpop.f32.mrb[10].mxu0  ;;  %v3949_v8 = vadd.f32 %v3849_v52, %v1609_v62  ;;  %v1611_v14 = vpop.f32.mrb[27].mxu1 }
 0x189   :  { %v2082_v7 = vmul.f32 %v2586_v34, %v3887_v18  ;;  %v2588_v48 = vadd.f32 %v1908_v21, %v3869_v5  ;;  %v1910_v15 = vpop.f32.mrb[11].mxu0  ;;  %v3957_v2 = vadd.f32 %v3851_v53, %v1611_v14 }
 0x18a   :  { %2280 = vst [vmem:[%s4081_s4 + $0x10] sm:$0xff] %v2532_v38  ;;  %v2533_v31 = vpack.c.bf16 %v2157_v40, %v2156_v30  ;;  %v2083_v50 = vmul.f32 %v2587_v3, %v3889_v20  ;;  %v2589_v33 = vadd.f32 %v1910_v15, %v3871_v19 }
 0x18b   :  { %v2126_v37 = vadd.f32 %v3893_v49, %v2082_v7  ;;  %v2084_v52 = vmul.f32 %v2588_v48, %v3887_v18 }
 0x18c   :  { %2281 = vst [vmem:[%s4081_s4 + $0x18] sm:$0xff] %v2533_v31  ;;  %v2127_v5 = vadd.f32 %v3897_v61, %v2083_v50  ;;  %v2085_v39 = vmul.f32 %v2589_v33, %v3889_v20 }
 0x18d   :  { %v2158_v45 = vmax.f32 %v2126_v37, 0.0  ;;  %v2128_v23 = vadd.f32 %v3893_v49, %v2084_v52  ;;  %v1615_v42 = vpop.f32.mrb[28].mxu1 }
 0x18e   :  { %v2159_v57 = vmax.f32 %v2127_v5, 0.0  ;;  %v2129_v53 = vadd.f32 %v3897_v61, %v2085_v39  ;;  %v1914_v19 = vpop.f32.mrb[12].mxu0  ;;  %v3970_v9 = vadd.f32 %v3853_v54, %v1615_v42  ;;  %v1617_v4 = vpop.f32.mrb[29].mxu1 }
 0x18f   :  { %v2160_v63 = vmax.f32 %v2128_v23, 0.0  ;;  %v2590_v44 = vadd.f32 %v1914_v19, %v3873_v10  ;;  %v1916_v6 = vpop.f32.mrb[13].mxu0  ;;  %v3974_v16 = vadd.f32 %v3855_v56, %v1617_v4  ;;  %v1619_v24 = vpop.f32.mrb[30].mxu1 }
 0x190   :  { %v2534_v46 = vpack.c.bf16 %v2159_v57, %v2158_v45  ;;  %v2161_v1 = vmax.f32 %v2129_v53, 0.0  ;;  %v2591_v22 = vadd.f32 %v1916_v6, %v3875_v25  ;;  %v1918_v26 = vpop.f32.mrb[14].mxu0  ;;  %v3979_v29 = vadd.f32 %v3857_v58, %v1619_v24  ;;  %v1621_v13 = vpop.f32.mrb[31].mxu1 }
 0x191   :  { %v2086_v47 = vmul.f32 %v2590_v44, %v3887_v18  ;;  %v2592_v54 = vadd.f32 %v1918_v26, %v3877_v27  ;;  %v1920_v10 = vpop.f32.mrb[15].mxu0  ;;  %v3987_v25 = vadd.f32 %v3859_v59, %v1621_v13 }
 0x192   :  { %2282 = vst [vmem:[%s4081_s4 + $0x20] sm:$0xff] %v2534_v46  ;;  %v2535_v30 = vpack.c.bf16 %v2161_v1, %v2160_v63  ;;  %v2087_v56 = vmul.f32 %v2591_v22, %v3889_v20  ;;  %v2593_v34 = vadd.f32 %v1920_v10, %v3879_v11 }
 0x193   :  { %v2130_v35 = vadd.f32 %v3893_v49, %v2086_v47  ;;  %v2088_v58 = vmul.f32 %v2592_v54, %v3887_v18 }
 0x194   :  { %2283 = vst [vmem:[%s4081_s4 + $0x28] sm:$0xff] %v2535_v30  ;;  %v2131_v27 = vadd.f32 %v3897_v61, %v2087_v56  ;;  %v2089_v36 = vmul.f32 %v2593_v34, %v3889_v20 }
 0x195   :  { %v2162_v38 = vmax.f32 %v2130_v35, 0.0  ;;  %v2132_v40 = vadd.f32 %v3893_v49, %v2088_v58  ;;  %v1811_v62 = vpop.f32.mrb[32].mxu1 }
 0x196   :  { %v2163_v3 = vmax.f32 %v2131_v27, 0.0  ;;  %v2133_v59 = vadd.f32 %v3897_v61, %v2089_v36  ;;  %v1924_v11 = vpop.f32.mrb[32].mxu0  ;;  %v2595_v7 = vadd.f32 %v3891_v43, %v1811_v62  ;;  %v1813_v48 = vpop.f32.mrb[33].mxu1 }
 0x197   :  { %v2164_v21 = vmax.f32 %v2132_v40, 0.0  ;;  %v1926_v14 = vpop.f32.mrb[33].mxu0  ;;  %v2598_v50 = vadd.f32 %v3895_v55, %v1813_v48  ;;  %v1815_v33 = vpop.f32.mrb[34].mxu1 }
 0x198   :  { %v2536_v15 = vpack.c.bf16 %v2163_v3, %v2162_v38  ;;  %v2165_v31 = vmax.f32 %v2133_v59, 0.0  ;;  %v1928_v37 = vpop.f32.mrb[34].mxu0  ;;  %v2596_v52 = vadd.f32 %v2595_v7, %v1924_v11  ;;  %v2601_v5 = vadd.f32 %v3900_v12, %v1815_v33  ;;  %v1817_v39 = vpop.f32.mrb[35].mxu1 }
 0x199   :  { %v1930_v45 = vpop.f32.mrb[35].mxu0  ;;  %v2599_v57 = vadd.f32 %v2598_v50, %v1926_v14  ;;  %v2604_v43 = vadd.f32 %v3903_v28, %v1817_v39 }
 0x19a   :  { %2284 = vst [vmem:[%s4081_s4 + $0x30] sm:$0xff] %v2536_v15  ;;  %v2537_v23 = vpack.c.bf16 %v2165_v31, %v2164_v21  ;;  %v2090_v53 = vmul.f32 %v2596_v52, %v3887_v18  ;;  %v2602_v42 = vadd.f32 %v2601_v5, %v1928_v37 }
 0x19b   :  { %v2091_v55 = vmul.f32 %v2599_v57, %v3889_v20  ;;  %v2605_v12 = vadd.f32 %v2604_v43, %v1930_v45 }
 0x19c   :  { %2285 = vst [vmem:[%s4081_s4 + $0x38] sm:$0xff] %v2537_v23  ;;  %v2134_v19 = vadd.f32 %v3893_v49, %v2090_v53  ;;  %v2092_v63 = vmul.f32 %v2602_v42, %v3887_v18 }
 0x19d   :  { %v2135_v44 = vadd.f32 %v3897_v61, %v2091_v55  ;;  %v2093_v4 = vmul.f32 %v2605_v12, %v3889_v20  ;;  %v1821_v6 = vpop.f32.mrb[36].mxu1 }
 0x19e   :  { %v1934_v28 = vpop.f32.mrb[36].mxu0  ;;  %v2166_v46 = vmax.f32 %v2134_v19, 0.0  ;;  %v2136_v1 = vadd.f32 %v3893_v49, %v2092_v63  ;;  %v2607_v22 = vadd.f32 %v3912_v41, %v1821_v6  ;;  %v1823_v24 = vpop.f32.mrb[37].mxu1 }
 0x19f   :  { %v1936_v26 = vpop.f32.mrb[37].mxu0  ;;  %v2167_v47 = vmax.f32 %v2135_v44, 0.0  ;;  %v2137_v54 = vadd.f32 %v3897_v61, %v2093_v4  ;;  %v2610_v13 = vadd.f32 %v3915_v17, %v1823_v24  ;;  %v1825_v10 = vpop.f32.mrb[38].mxu1 }
 0x1a0   :  { %v1938_v30 = vpop.f32.mrb[38].mxu0  ;;  %v2168_v56 = vmax.f32 %v2136_v1, 0.0  ;;  %v2608_v34 = vadd.f32 %v2607_v22, %v1934_v28  ;;  %v2613_v35 = vadd.f32 %v3919_v51, %v1825_v10  ;;  %v1827_v58 = vpop.f32.mrb[39].mxu1 }
 0x1a1   :  { %v1940_v27 = vpop.f32.mrb[39].mxu0  ;;  %v2538_v36 = vpack.c.bf16 %v2167_v47, %v2166_v46  ;;  %v2169_v38 = vmax.f32 %v2137_v54, 0.0  ;;  %v2611_v40 = vadd.f32 %v2610_v13, %v1936_v26  ;;  %v2616_v41 = vadd.f32 %v3927_v0, %v1827_v58 }
 0x1a2   :  { %v2094_v3 = vmul.f32 %v2608_v34, %v3887_v18  ;;  %v2614_v59 = vadd.f32 %v2613_v35, %v1938_v30 }
 0x1a3   :  { %2286 = vst [vmem:[%s4081_s4 + $0x40] sm:$0xff] %v2538_v36  ;;  %v2539_v17 = vpack.c.bf16 %v2169_v38, %v2168_v56  ;;  %v2095_v62 = vmul.f32 %v2611_v40, %v3889_v20  ;;  %v2617_v11 = vadd.f32 %v2616_v41, %v1940_v27 }
 0x1a4   :  { %v2138_v51 = vadd.f32 %v3893_v49, %v2094_v3  ;;  %v2096_v21 = vmul.f32 %v2614_v59, %v3887_v18 }
 0x1a5   :  { %2287 = vst [vmem:[%s4081_s4 + $0x48] sm:$0xff] %v2539_v17  ;;  %v2139_v0 = vadd.f32 %v3897_v61, %v2095_v62  ;;  %v2097_v7 = vmul.f32 %v2617_v11, %v3889_v20  ;;  %v1831_v48 = vpop.f32.mrb[40].mxu1 }
 0x1a6   :  { %v1944_v14 = vpop.f32.mrb[40].mxu0  ;;  %v2170_v15 = vmax.f32 %v2138_v51, 0.0  ;;  %v2140_v31 = vadd.f32 %v3893_v49, %v2096_v21  ;;  %v2619_v50 = vadd.f32 %v3940_v32, %v1831_v48  ;;  %v1833_v33 = vpop.f32.mrb[41].mxu1 }
 0x1a7   :  { %v1946_v37 = vpop.f32.mrb[41].mxu0  ;;  %v2171_v52 = vmax.f32 %v2139_v0, 0.0  ;;  %v2141_v5 = vadd.f32 %v3897_v61, %v2097_v7  ;;  %v2622_v39 = vadd.f32 %v3944_v60, %v1833_v33  ;;  %v1835_v45 = vpop.f32.mrb[42].mxu1 }
 0x1a8   :  { %v1948_v23 = vpop.f32.mrb[42].mxu0  ;;  %v2172_v57 = vmax.f32 %v2140_v31, 0.0  ;;  %v2620_v43 = vadd.f32 %v2619_v50, %v1944_v14  ;;  %v2625_v53 = vadd.f32 %v3949_v8, %v1835_v45  ;;  %v1837_v42 = vpop.f32.mrb[43].mxu1 }
 0x1a9   :  { %v1950_v55 = vpop.f32.mrb[43].mxu0  ;;  %v2540_v12 = vpack.c.bf16 %v2171_v52, %v2170_v15  ;;  %v2173_v19 = vmax.f32 %v2141_v5, 0.0  ;;  %v2623_v63 = vadd.f32 %v2622_v39, %v1946_v37  ;;  %v2628_v32 = vadd.f32 %v3957_v2, %v1837_v42 }
 0x1aa   :  { %v2098_v44 = vmul.f32 %v2620_v43, %v3887_v18  ;;  %v2626_v4 = vadd.f32 %v2625_v53, %v1948_v23 }
 0x1ab   :  { %2288 = vst [vmem:[%s4081_s4 + $0x50] sm:$0xff] %v2540_v12  ;;  %v2541_v60 = vpack.c.bf16 %v2173_v19, %v2172_v57  ;;  %v2099_v6 = vmul.f32 %v2623_v63, %v3889_v20  ;;  %v2629_v28 = vadd.f32 %v2628_v32, %v1950_v55 }
 0x1ac   :  { %v2142_v8 = vadd.f32 %v3893_v49, %v2098_v44  ;;  %v2100_v46 = vmul.f32 %v2626_v4, %v3887_v18 }
 0x1ad   :  { %2289 = vst [vmem:[%s4081_s4 + $0x58] sm:$0xff] %v2541_v60  ;;  %v2143_v2 = vadd.f32 %v3897_v61, %v2099_v6  ;;  %v2101_v1 = vmul.f32 %v2629_v28, %v3889_v20  ;;  %v1841_v22 = vpop.f32.mrb[44].mxu1 }
 0x1ae   :  { %v1954_v24 = vpop.f32.mrb[44].mxu0  ;;  %v2174_v26 = vmax.f32 %v2142_v8, 0.0  ;;  %v2144_v47 = vadd.f32 %v3893_v49, %v2100_v46  ;;  %v2631_v54 = vadd.f32 %v3970_v9, %v1841_v22  ;;  %v1843_v13 = vpop.f32.mrb[45].mxu1 }
 0x1af   :  { %v1956_v10 = vpop.f32.mrb[45].mxu0  ;;  %v2175_v30 = vmax.f32 %v2143_v2, 0.0  ;;  %v2145_v56 = vadd.f32 %v3897_v61, %v2101_v1  ;;  %v2634_v34 = vadd.f32 %v3974_v16, %v1843_v13  ;;  %v1845_v35 = vpop.f32.mrb[46].mxu1 }
 0x1b0   :  { %v1958_v58 = vpop.f32.mrb[46].mxu0  ;;  %v2176_v27 = vmax.f32 %v2144_v47, 0.0  ;;  %v2632_v36 = vadd.f32 %v2631_v54, %v1954_v24  ;;  %v2637_v38 = vadd.f32 %v3979_v29, %v1845_v35  ;;  %v1847_v40 = vpop.f32.mrb[47].mxu1 }
 0x1b1   :  { %v1960_v41 = vpop.f32.mrb[47].mxu0  ;;  %v2542_v3 = vpack.c.bf16 %v2175_v30, %v2174_v26  ;;  %v2177_v59 = vmax.f32 %v2145_v56, 0.0  ;;  %v2635_v17 = vadd.f32 %v2634_v34, %v1956_v10  ;;  %v2640_v9 = vadd.f32 %v3987_v25, %v1847_v40 }
 0x1b2   :  { %v2102_v62 = vmul.f32 %v2632_v36, %v3887_v18  ;;  %v2638_v11 = vadd.f32 %v2637_v38, %v1958_v58 }
 0x1b3   :  { %2290 = vst [vmem:[%s4081_s4 + $0x60] sm:$0xff] %v2542_v3  ;;  %v2543_v16 = vpack.c.bf16 %v2177_v59, %v2176_v27  ;;  %v2103_v51 = vmul.f32 %v2635_v17, %v3889_v20  ;;  %v2641_v21 = vadd.f32 %v2640_v9, %v1960_v41 }
 0x1b4   :  { %v2146_v29 = vadd.f32 %v3893_v49, %v2102_v62  ;;  %v2104_v0 = vmul.f32 %v2638_v11, %v3887_v18 }
 0x1b5   :  { %2291 = vst [vmem:[%s4081_s4 + $0x68] sm:$0xff] %v2543_v16  ;;  %v2147_v25 = vadd.f32 %v3897_v61, %v2103_v51  ;;  %v2105_v7 = vmul.f32 %v2641_v21, %v3889_v20 }
 0x1b6   :  { %v2178_v48 = vmax.f32 %v2146_v29, 0.0  ;;  %v2148_v14 = vadd.f32 %v3893_v49, %v2104_v0 }
 0x1b7   :  { %v2179_v15 = vmax.f32 %v2147_v25, 0.0  ;;  %v2149_v31 = vadd.f32 %v3897_v61, %v2105_v7 }
 0x1b8   :  { %v2180_v50 = vmax.f32 %v2148_v14, 0.0 }
 0x1b9   :  { %v2544_v33 = vpack.c.bf16 %v2179_v15, %v2178_v48  ;;  %v2181_v37 = vmax.f32 %v2149_v31, 0.0 }
 0x1bb   :  { %2292 = vst [vmem:[%s4081_s4 + $0x70] sm:$0xff] %v2544_v33  ;;  %v2545_v18 = vpack.c.bf16 %v2181_v37, %v2180_v50 }
 0x1bd   :  { %2293 = vst [vmem:[%s4081_s4 + $0x78] sm:$0xff] %v2545_v18 }

// kernel: generator_forward.69
= control target key start
LH: loop header
LB: loop body
LE: loop exit
PB: predicated region body
PF: predicated region fallthrough
CT: control target
= control target key end

     0   :  { %s1934_s1 = inlined_call_operand.vmem [shape: bf16[640,128], index: 1, kind: input, shape index: {}]   ;;  %s1935_s0 = inlined_call_operand.vmem [shape: bf16[128,640], index: 0, kind: input, shape index: {}]   ;;  %s1936_s2 = inlined_call_operand.vmem [shape: f32[1,128], index: 2, kind: input, shape index: {}]   ;;  %s1937_s3 = inlined_call_operand.vmem [shape: f32[1,128], index: 3, kind: input, shape index: {}]   ;;  %s1938_s4 = inlined_call_operand.vmem [shape: bf16[128,128], index: 4, kind: output, shape index: {}]  }
   0x1   :  { %v1471_v0 = vld [vmem:[%s1934_s1 + $0x40] sm:$0xff]   ;;  %v1475_v4 = vld [vmem:[%s1934_s1 + $0x48] sm:$0xff]   ;;  %v1479_v8 = vld [vmem:[%s1934_s1 + $0x50] sm:$0xff]  }
   0x2   :  { %v1472_v1 = vld [vmem:[%s1934_s1 + $0xc0] sm:$0xff]   ;;  %1279 = vmatprep.subr.bf16.mxu0 %v1471_v0  ;;  %v1476_v5 = vld [vmem:[%s1934_s1 + $0xc8] sm:$0xff]   ;;  %v1480_v9 = vld [vmem:[%s1934_s1 + $0xd0] sm:$0xff]  }
   0x3   :  { %v1473_v2 = vld [vmem:[%s1934_s1] sm:$0xff]   ;;  %1343 = vmatprep.subr.bf16.mxu1 %v1472_v1  ;;  %v1477_v6 = vld [vmem:[%s1934_s1 + $0x8] sm:$0xff]   ;;  %v1481_v10 = vld [vmem:[%s1934_s1 + $0x10] sm:$0xff]  }
   0x4   :  { %v1474_v3 = vld [vmem:[%s1934_s1 + $0x80] sm:$0xff]   ;;  %1280 = vmatpush3.bf16.msra.mxu0 %v1473_v2  ;;  %v1478_v7 = vld [vmem:[%s1934_s1 + $0x88] sm:$0xff]   ;;  %v1482_v11 = vld [vmem:[%s1934_s1 + $0x90] sm:$0xff]  }
   0x5   :  { %1344 = vmatpush3.bf16.msra.mxu1 %v1474_v3  ;;  %1281 = vmatprep.subr.bf16.mxu0 %v1475_v4  ;;  %v1483_v12 = vld [vmem:[%s1934_s1 + $0x58] sm:$0xff]   ;;  %v1487_v16 = vld [vmem:[%s1934_s1 + $0x60] sm:$0xff]   ;;  %v1491_v20 = vld [vmem:[%s1934_s1 + $0x68] sm:$0xff]  }
   0x6   :  { %1345 = vmatprep.subr.bf16.mxu1 %v1476_v5  ;;  %v1484_v13 = vld [vmem:[%s1934_s1 + $0xd8] sm:$0xff]   ;;  %v1488_v17 = vld [vmem:[%s1934_s1 + $0xe0] sm:$0xff]   ;;  %v1492_v21 = vld [vmem:[%s1934_s1 + $0xe8] sm:$0xff]  }
   0x7   :  { %v1485_v14 = vld [vmem:[%s1934_s1 + $0x18] sm:$0xff]   ;;  %v1489_v18 = vld [vmem:[%s1934_s1 + $0x20] sm:$0xff]   ;;  %v1493_v22 = vld [vmem:[%s1934_s1 + $0x28] sm:$0xff]  }
   0x8   :  { %1282 = vmatpush3.bf16.msra.mxu0 %v1477_v6  ;;  %v1486_v15 = vld [vmem:[%s1934_s1 + $0x98] sm:$0xff]   ;;  %v1490_v19 = vld [vmem:[%s1934_s1 + $0xa0] sm:$0xff]   ;;  %v1494_v23 = vld [vmem:[%s1934_s1 + $0xa8] sm:$0xff]  }
   0x9   :  { %1346 = vmatpush3.bf16.msra.mxu1 %v1478_v7  ;;  %1283 = vmatprep.subr.bf16.mxu0 %v1479_v8  ;;  %v1495_v24 = vld [vmem:[%s1934_s1 + $0x70] sm:$0xff]   ;;  %v1499_v28 = vld [vmem:[%s1934_s1 + $0x78] sm:$0xff]   ;;  %v1508_v35 = vld [vmem:[%s1935_s0 + $0xc] ss:$20 sps:$4 sm:$0xff]  }
   0xa   :  { %1347 = vmatprep.subr.bf16.mxu1 %v1480_v9  ;;  %v1496_v25 = vld [vmem:[%s1934_s1 + $0xf0] sm:$0xff]   ;;  %v1500_v29 = vld [vmem:[%s1934_s1 + $0xf8] sm:$0xff]   ;;  %v1509_v36 = vld [vmem:[%s1934_s1 + $0x100] sm:$0xff]   ;;  %759 = vmatprep.mubr.bf16.mxu1 %v1508_v35 }
   0xb   :  { %v1497_v26 = vld [vmem:[%s1934_s1 + $0x30] sm:$0xff]   ;;  %v1501_v30 = vld [vmem:[%s1934_s1 + $0x38] sm:$0xff]   ;;  %v1510_v37 = vld [vmem:[%s1935_s0 + $0x2c] ss:$20 sps:$4 sm:$0xff]  }
   0xc   :  { %1284 = vmatpush3.bf16.msra.mxu0 %v1481_v10  ;;  %v1498_v27 = vld [vmem:[%s1934_s1 + $0xb0] sm:$0xff]   ;;  %v1502_v31 = vld [vmem:[%s1934_s1 + $0xb8] sm:$0xff]   ;;  %v1516_v39 = vld [vmem:[%s1934_s1 + $0x108] sm:$0xff]  }
   0xd   :  { %1348 = vmatpush3.bf16.msra.mxu1 %v1482_v11  ;;  %1285 = vmatprep.subr.bf16.mxu0 %v1483_v12  ;;  %v1503_v32 = vld [vmem:[%s1935_s0] ss:$20 sps:$4 sm:$0xff]   ;;  %v1505_v33 = vld [vmem:[%s1935_s0 + $0x4] ss:$20 sps:$4 sm:$0xff]   ;;  %v1506_v34 = vld [vmem:[%s1935_s0 + $0x8] ss:$20 sps:$4 sm:$0xff]  }
   0xe   :  { %1349 = vmatprep.subr.bf16.mxu1 %v1484_v13  ;;  %662 = vmatprep.mubr.bf16.mxu0 %v1505_v33  ;;  %v1512_v38 = vld [vmem:[%s1935_s0 + $0x34] ss:$20 sps:$4 sm:$0xff]   ;;  %v1515_v41 = vld [vmem:[%s1935_s0 + $0x30] ss:$20 sps:$4 sm:$0xff]   ;;  %v1530_v45 = vld [vmem:[%s1934_s1 + $0x118] sm:$0xff]  }
   0xf   :  { %v1514_v40 = vld [vmem:[%s1935_s0 + $0x28] ss:$20 sps:$4 sm:$0xff]   ;;  %v1523_v44 = vld [vmem:[%s1934_s1 + $0x110] sm:$0xff]   ;;  %v1522_v47 = vld [vmem:[%s1935_s0 + $0x58] ss:$20 sps:$4 sm:$0xff]  }
  0x10   :  { %1286 = vmatpush3.bf16.msra.mxu0 %v1485_v14  ;;  %v1517_v42 = vld [vmem:[%s1935_s0 + $0x54] ss:$20 sps:$4 sm:$0xff]   ;;  %v1519_v43 = vld [vmem:[%s1935_s0 + $0x5c] ss:$20 sps:$4 sm:$0xff]   ;;  %v1526_v49 = vld [vmem:[%s1935_s0 + $0x84] ss:$20 sps:$4 sm:$0xff]  }
  0x11   :  { %1350 = vmatpush3.bf16.msra.mxu1 %v1486_v15  ;;  %1287 = vmatprep.subr.bf16.mxu0 %v1487_v16  ;;  %v1521_v46 = vld [vmem:[%s1935_s0 + $0x50] ss:$20 sps:$4 sm:$0xff]   ;;  %v1544_v51 = vld [vmem:[%s1934_s1 + $0x128] sm:$0xff]   ;;  %v1529_v53 = vld [vmem:[%s1935_s0 + $0x80] ss:$20 sps:$4 sm:$0xff]  }
  0x12   :  { %1351 = vmatprep.subr.bf16.mxu1 %v1488_v17  ;;  %v1524_v48 = vld [vmem:[%s1935_s0 + $0x7c] ss:$20 sps:$4 sm:$0xff]   ;;  %v1537_v50 = vld [vmem:[%s1934_s1 + $0x120] sm:$0xff]   ;;  %v1528_v52 = vld [vmem:[%s1935_s0 + $0x78] ss:$20 sps:$4 sm:$0xff]  }
  0x13   :  { %v1531_v54 = vld [vmem:[%s1935_s0 + $0xa4] ss:$20 sps:$4 sm:$0xff]   ;;  %v1551_v55 = vld [vmem:[%s1934_s1 + $0x130] sm:$0xff]   ;;  %v1533_v56 = vld [vmem:[%s1935_s0 + $0xac] ss:$20 sps:$4 sm:$0xff]  }
  0x14   :  { %1288 = vmatpush3.bf16.msra.mxu0 %v1489_v18  ;;  %v1558_v57 = vld [vmem:[%s1934_s1 + $0x138] sm:$0xff]   ;;  %v1535_v58 = vld [vmem:[%s1935_s0 + $0xa0] ss:$20 sps:$4 sm:$0xff]   ;;  %v1543_v63 = vld [vmem:[%s1935_s0 + $0xd0] ss:$20 sps:$4 sm:$0xff]  }
  0x15   :  { %1352 = vmatpush3.bf16.msra.mxu1 %v1490_v19  ;;  %1289 = vmatprep.subr.bf16.mxu0 %v1491_v20  ;;  %v1536_v59 = vld [vmem:[%s1935_s0 + $0xa8] ss:$20 sps:$4 sm:$0xff]   ;;  %v1538_v60 = vld [vmem:[%s1935_s0 + $0xcc] ss:$20 sps:$4 sm:$0xff]   ;;  %v1549_v2 = vld [vmem:[%s1935_s0 + $0xf0] ss:$20 sps:$4 sm:$0xff]  }
  0x16   :  { %1353 = vmatprep.subr.bf16.mxu1 %v1492_v21  ;;  %v1540_v61 = vld [vmem:[%s1935_s0 + $0xd4] ss:$20 sps:$4 sm:$0xff]   ;;  %v1547_v1 = vld [vmem:[%s1935_s0 + $0xfc] ss:$20 sps:$4 sm:$0xff]   ;;  %v1550_v3 = vld [vmem:[%s1935_s0 + $0xf8] ss:$20 sps:$4 sm:$0xff]  }
  0x17   :  { %v1542_v62 = vld [vmem:[%s1935_s0 + $0xc8] ss:$20 sps:$4 sm:$0xff]   ;;  %v1554_v5 = vld [vmem:[%s1935_s0 + $0x124] ss:$20 sps:$4 sm:$0xff]   ;;  %v1557_v7 = vld [vmem:[%s1935_s0 + $0x120] ss:$20 sps:$4 sm:$0xff]  }
  0x18   :  { %1290 = vmatpush3.bf16.msra.mxu0 %v1493_v22  ;;  %v1545_v0 = vld [vmem:[%s1935_s0 + $0xf4] ss:$20 sps:$4 sm:$0xff]   ;;  %v1552_v4 = vld [vmem:[%s1935_s0 + $0x11c] ss:$20 sps:$4 sm:$0xff]   ;;  %v1556_v6 = vld [vmem:[%s1935_s0 + $0x118] ss:$20 sps:$4 sm:$0xff]  }
  0x19   :  { %1354 = vmatpush3.bf16.msra.mxu1 %v1494_v23  ;;  %1291 = vmatprep.subr.bf16.mxu0 %v1495_v24  ;;  %v1559_v8 = vld [vmem:[%s1935_s0 + $0x10] ss:$20 sps:$4 sm:$0xff]   ;;  %v1561_v10 = vld [vmem:[%s1935_s0 + $0x38] ss:$20 sps:$4 sm:$0xff]   ;;  %v1563_v12 = vld [vmem:[%s1935_s0 + $0x60] ss:$20 sps:$4 sm:$0xff]  }
  0x1a   :  { %1355 = vmatprep.subr.bf16.mxu1 %v1496_v25  ;;  %v1560_v9 = vld [vmem:[%s1935_s0 + $0xb0] ss:$20 sps:$4 sm:$0xff]   ;;  %v1562_v11 = vld [vmem:[%s1935_s0 + $0xd8] ss:$20 sps:$4 sm:$0xff]   ;;  %v1564_v13 = vld [vmem:[%s1935_s0 + $0x100] ss:$20 sps:$4 sm:$0xff]  }
  0x1b   :  { %v1565_v14 = vld [vmem:[%s1935_s0 + $0x88] ss:$20 sps:$4 sm:$0xff]  }
  0x1c   :  { %1292 = vmatpush3.bf16.msra.mxu0 %v1497_v26  ;;  %v1566_v15 = vld [vmem:[%s1935_s0 + $0x128] ss:$20 sps:$4 sm:$0xff]  }
  0x1d   :  { %1356 = vmatpush3.bf16.msra.mxu1 %v1498_v27  ;;  %1293 = vmatprep.subr.bf16.mxu0 %v1499_v28 }
  0x1e   :  { %1357 = vmatprep.subr.bf16.mxu1 %v1500_v29 }
  0x20   :  { %1294 = vmatpush3.bf16.msra.mxu0 %v1501_v30 }
  0x21   :  { %1358 = vmatpush3.bf16.msra.mxu1 %v1502_v31  ;;  %1423 = vmatprep.subr.bf16.mxu0 %v1509_v36 }
  0x22   :  { %1455 = vmatprep.subr.bf16.mxu1 %v1509_v36 }
  0x23   :  { %663 = vmatmul.mubr.bf16.vlgmr.msra.gmra.mrb[0].mxu0 %v1503_v32 }
  0x24   :  { %760 = vmatmul.mubr.bf16.vlgmr.msra.gmra.mrb[0].mxu1 %v1506_v34  ;;  %1424 = vmatpush3.bf16.msra.mxu0 %v1509_v36 }
  0x25   :  { %1463 = vmatpush3.bf16.msra.mxu1 %v1509_v36  ;;  %670 = vmatprep.mubr.bf16.mxu0 %v1510_v37 }
  0x26   :  { %767 = vmatprep.mubr.bf16.mxu1 %v1512_v38  ;;  %1425 = vmatprep.subr.bf16.mxu0 %v1516_v39 }
  0x27   :  { %1456 = vmatprep.subr.bf16.mxu1 %v1516_v39 }
  0x28   :  { %1426 = vmatpush3.bf16.msra.mxu0 %v1516_v39 }
  0x29   :  { %1464 = vmatpush3.bf16.msra.mxu1 %v1516_v39  ;;  %1427 = vmatprep.subr.bf16.mxu0 %v1523_v44 }
  0x2a   :  { %1457 = vmatprep.subr.bf16.mxu1 %v1523_v44 }
  0x2b   :  { %671 = vmatmul.mubr.bf16.gmra.mrb[4].mxu0 %v1514_v40 }
  0x2c   :  { %768 = vmatmul.mubr.bf16.gmra.mrb[4].mxu1 %v1515_v41  ;;  %678 = vmatprep.mubr.bf16.mxu0 %v1517_v42 }
  0x2d   :  { %775 = vmatprep.mubr.bf16.mxu1 %v1519_v43  ;;  %1428 = vmatpush3.bf16.msra.mxu0 %v1523_v44 }
  0x2e   :  { %1465 = vmatpush3.bf16.msra.mxu1 %v1523_v44  ;;  %1429 = vmatprep.subr.bf16.mxu0 %v1530_v45 }
  0x2f   :  { %1458 = vmatprep.subr.bf16.mxu1 %v1530_v45 }
  0x31   :  { %1430 = vmatpush3.bf16.msra.mxu0 %v1530_v45 }
  0x32   :  { %1466 = vmatpush3.bf16.msra.mxu1 %v1530_v45  ;;  %1431 = vmatprep.subr.bf16.mxu0 %v1537_v50 }
  0x33   :  { %679 = vmatmul.mubr.bf16.gmra.mrb[8].mxu0 %v1521_v46  ;;  %1459 = vmatprep.subr.bf16.mxu1 %v1537_v50 }
  0x34   :  { %776 = vmatmul.mubr.bf16.gmra.mrb[8].mxu1 %v1522_v47  ;;  %686 = vmatprep.mubr.bf16.mxu0 %v1524_v48 }
  0x35   :  { %783 = vmatprep.mubr.bf16.mxu1 %v1526_v49  ;;  %1432 = vmatpush3.bf16.msra.mxu0 %v1537_v50 }
  0x36   :  { %1467 = vmatpush3.bf16.msra.mxu1 %v1537_v50  ;;  %1433 = vmatprep.subr.bf16.mxu0 %v1544_v51 }
  0x37   :  { %1460 = vmatprep.subr.bf16.mxu1 %v1544_v51 }
  0x39   :  { %1434 = vmatpush3.bf16.msra.mxu0 %v1544_v51 }
  0x3a   :  { %1468 = vmatpush3.bf16.msra.mxu1 %v1544_v51  ;;  %1435 = vmatprep.subr.bf16.mxu0 %v1551_v55 }
  0x3b   :  { %687 = vmatmul.mubr.bf16.gmra.mrb[12].mxu0 %v1528_v52  ;;  %1461 = vmatprep.subr.bf16.mxu1 %v1551_v55 }
  0x3c   :  { %784 = vmatmul.mubr.bf16.gmra.mrb[12].mxu1 %v1529_v53  ;;  %694 = vmatprep.mubr.bf16.mxu0 %v1531_v54 }
  0x3d   :  { %791 = vmatprep.mubr.bf16.mxu1 %v1533_v56  ;;  %1436 = vmatpush3.bf16.msra.mxu0 %v1551_v55 }
  0x3e   :  { %1469 = vmatpush3.bf16.msra.mxu1 %v1551_v55  ;;  %1437 = vmatprep.subr.bf16.mxu0 %v1558_v57 }
  0x3f   :  { %1462 = vmatprep.subr.bf16.mxu1 %v1558_v57 }
  0x41   :  { %1438 = vmatpush3.bf16.msra.mxu0 %v1558_v57 }
  0x42   :  { %1470 = vmatpush3.bf16.msra.mxu1 %v1558_v57 }
  0x43   :  { %695 = vmatmul.mubr.bf16.gmra.mrb[16].mxu0 %v1535_v58 }
  0x44   :  { %792 = vmatmul.mubr.bf16.gmra.mrb[16].mxu1 %v1536_v59  ;;  %702 = vmatprep.mubr.bf16.mxu0 %v1538_v60 }
  0x45   :  { %799 = vmatprep.mubr.bf16.mxu1 %v1540_v61 }
  0x4b   :  { %703 = vmatmul.mubr.bf16.gmra.mrb[20].mxu0 %v1542_v62 }
  0x4c   :  { %800 = vmatmul.mubr.bf16.gmra.mrb[20].mxu1 %v1543_v63  ;;  %710 = vmatprep.mubr.bf16.mxu0 %v1545_v0 }
  0x4d   :  { %807 = vmatprep.mubr.bf16.mxu1 %v1547_v1 }
  0x53   :  { %711 = vmatmul.mubr.bf16.gmra.mrb[24].mxu0 %v1549_v2 }
  0x54   :  { %808 = vmatmul.mubr.bf16.gmra.mrb[24].mxu1 %v1550_v3  ;;  %718 = vmatprep.mubr.bf16.mxu0 %v1552_v4 }
  0x55   :  { %815 = vmatprep.mubr.bf16.mxu1 %v1554_v5 }
  0x5b   :  { %719 = vmatmul.mubr.bf16.gmra.mrb[28].mxu0 %v1556_v6 }
  0x5c   :  { %816 = vmatmul.mubr.bf16.gmra.mrb[28].mxu1 %v1557_v7  ;;  %1439 = vmatprep.mubr.bf16.mxu0 %v1559_v8 }
  0x5d   :  { %1447 = vmatprep.mubr.bf16.mxu1 %v1560_v9 }
  0x63   :  { %1440 = vmatmul.mubr.bf16.vlgmr.msra.gmra.mrb[32].mxu0 %v1561_v10 }
  0x64   :  { %1448 = vmatmul.mubr.bf16.vlgmr.msra.gmra.mrb[32].mxu1 %v1562_v11  ;;  %1443 = vmatprep.mubr.bf16.mxu0 %v1563_v12 }
  0x65   :  { %1451 = vmatprep.mubr.bf16.mxu1 %v1564_v13 }
  0x6b   :  { %1444 = vmatmul.mubr.bf16.gmra.mrb[36].mxu0 %v1565_v14 }
  0x6c   :  { %1452 = vmatmul.mubr.bf16.gmra.mrb[36].mxu1 %v1566_v15 }
  0xf6   :  { %v1295_v16 = vpop.f32.mrb[0].mxu0 }
  0xf7   :  { %v1359_v17 = vpop.f32.mrb[0].mxu1  ;;  %v1296_v18 = vpop.f32.mrb[1].mxu0 }
  0xf8   :  { %v1297_v19 = vadd.f32 %v1296_v18, %v1295_v16  ;;  %v1360_v20 = vpop.f32.mrb[1].mxu1  ;;  %v1298_v21 = vpop.f32.mrb[2].mxu0 }
  0xf9   :  { %v1361_v22 = vadd.f32 %v1360_v20, %v1359_v17  ;;  %v1362_v23 = vpop.f32.mrb[2].mxu1  ;;  %v1299_v24 = vpop.f32.mrb[3].mxu0 }
  0xfa   :  { %v1300_v25 = vadd.f32 %v1299_v24, %v1298_v21  ;;  %v1363_v26 = vpop.f32.mrb[3].mxu1 }
  0xfb   :  { %v1364_v27 = vadd.f32 %v1363_v26, %v1362_v23  ;;  %v1832_v28 = vadd.f32 %v1361_v22, %v1297_v19 }
  0xfd   :  { %v1834_v29 = vadd.f32 %v1364_v27, %v1300_v25 }
  0xfe   :  { %v1301_v30 = vpop.f32.mrb[4].mxu0 }
  0xff   :  { %v1365_v31 = vpop.f32.mrb[4].mxu1  ;;  %v1302_v32 = vpop.f32.mrb[5].mxu0 }
 0x100   :  { %v1303_v33 = vadd.f32 %v1302_v32, %v1301_v30  ;;  %v1366_v34 = vpop.f32.mrb[5].mxu1  ;;  %v1304_v35 = vpop.f32.mrb[6].mxu0 }
 0x101   :  { %v1367_v36 = vadd.f32 %v1366_v34, %v1365_v31  ;;  %v1368_v37 = vpop.f32.mrb[6].mxu1  ;;  %v1305_v38 = vpop.f32.mrb[7].mxu0 }
 0x102   :  { %v1306_v39 = vadd.f32 %v1305_v38, %v1304_v35  ;;  %v1369_v40 = vpop.f32.mrb[7].mxu1 }
 0x103   :  { %v1370_v41 = vadd.f32 %v1369_v40, %v1368_v37  ;;  %v1836_v42 = vadd.f32 %v1367_v36, %v1303_v33 }
 0x105   :  { %v1838_v43 = vadd.f32 %v1370_v41, %v1306_v39 }
 0x106   :  { %v1307_v44 = vpop.f32.mrb[8].mxu0 }
 0x107   :  { %v1371_v45 = vpop.f32.mrb[8].mxu1  ;;  %v1308_v46 = vpop.f32.mrb[9].mxu0 }
 0x108   :  { %v1309_v47 = vadd.f32 %v1308_v46, %v1307_v44  ;;  %v1372_v48 = vpop.f32.mrb[9].mxu1  ;;  %v1310_v49 = vpop.f32.mrb[10].mxu0 }
 0x109   :  { %v1373_v50 = vadd.f32 %v1372_v48, %v1371_v45  ;;  %v1374_v51 = vpop.f32.mrb[10].mxu1  ;;  %v1311_v52 = vpop.f32.mrb[11].mxu0 }
 0x10a   :  { %v1312_v53 = vadd.f32 %v1311_v52, %v1310_v49  ;;  %v1375_v54 = vpop.f32.mrb[11].mxu1 }
 0x10b   :  { %v1376_v55 = vadd.f32 %v1375_v54, %v1374_v51  ;;  %v1840_v56 = vadd.f32 %v1373_v50, %v1309_v47 }
 0x10d   :  { %v1842_v57 = vadd.f32 %v1376_v55, %v1312_v53 }
 0x10e   :  { %v1313_v58 = vpop.f32.mrb[12].mxu0 }
 0x10f   :  { %v1377_v59 = vpop.f32.mrb[12].mxu1  ;;  %v1314_v60 = vpop.f32.mrb[13].mxu0 }
 0x110   :  { %v1315_v61 = vadd.f32 %v1314_v60, %v1313_v58  ;;  %v1378_v62 = vpop.f32.mrb[13].mxu1  ;;  %v1316_v63 = vpop.f32.mrb[14].mxu0 }
 0x111   :  { %v1379_v0 = vadd.f32 %v1378_v62, %v1377_v59  ;;  %v1380_v1 = vpop.f32.mrb[14].mxu1  ;;  %v1317_v2 = vpop.f32.mrb[15].mxu0 }
 0x112   :  { %v1318_v3 = vadd.f32 %v1317_v2, %v1316_v63  ;;  %v1381_v4 = vpop.f32.mrb[15].mxu1 }
 0x113   :  { %v1382_v5 = vadd.f32 %v1381_v4, %v1380_v1  ;;  %v1844_v6 = vadd.f32 %v1379_v0, %v1315_v61 }
 0x115   :  { %v1846_v7 = vadd.f32 %v1382_v5, %v1318_v3 }
 0x116   :  { %v1319_v8 = vpop.f32.mrb[16].mxu0 }
 0x117   :  { %v1383_v9 = vpop.f32.mrb[16].mxu1  ;;  %v1320_v10 = vpop.f32.mrb[17].mxu0 }
 0x118   :  { %v1321_v11 = vadd.f32 %v1320_v10, %v1319_v8  ;;  %v1384_v12 = vpop.f32.mrb[17].mxu1  ;;  %v1322_v13 = vpop.f32.mrb[18].mxu0 }
 0x119   :  { %v1385_v14 = vadd.f32 %v1384_v12, %v1383_v9  ;;  %v1386_v15 = vpop.f32.mrb[18].mxu1  ;;  %v1323_v16 = vpop.f32.mrb[19].mxu0  ;;  %v1859_v9 = vld [vmem:[%s1936_s2] ss:$0 sm:$0xff] }
 0x11a   :  { %v1324_v17 = vadd.f32 %v1323_v16, %v1322_v13  ;;  %v1387_v18 = vpop.f32.mrb[19].mxu1  ;;  %v1865_v13 = vld [vmem:[%s1937_s3] ss:$0 sm:$0xff] }
 0x11b   :  { %v1388_v19 = vadd.f32 %v1387_v18, %v1386_v15  ;;  %v794_v20 = vadd.f32 %v1385_v14, %v1321_v11 }
 0x11d   :  { %v1848_v21 = vadd.f32 %v1388_v19, %v1324_v17 }
 0x11e   :  { %v1325_v22 = vpop.f32.mrb[20].mxu0 }
 0x11f   :  { %v1389_v23 = vpop.f32.mrb[20].mxu1  ;;  %v1326_v24 = vpop.f32.mrb[21].mxu0 }
 0x120   :  { %v1327_v25 = vadd.f32 %v1326_v24, %v1325_v22  ;;  %v1390_v26 = vpop.f32.mrb[21].mxu1  ;;  %v1328_v27 = vpop.f32.mrb[22].mxu0 }
 0x121   :  { %v1391_v30 = vadd.f32 %v1390_v26, %v1389_v23  ;;  %v1392_v31 = vpop.f32.mrb[22].mxu1  ;;  %v1329_v32 = vpop.f32.mrb[23].mxu0 }
 0x122   :  { %v1330_v33 = vadd.f32 %v1329_v32, %v1328_v27  ;;  %v1393_v34 = vpop.f32.mrb[23].mxu1 }
 0x123   :  { %v1394_v35 = vadd.f32 %v1393_v34, %v1392_v31  ;;  %v802_v36 = vadd.f32 %v1391_v30, %v1327_v25 }
 0x125   :  { %v805_v37 = vadd.f32 %v1394_v35, %v1330_v33 }
 0x126   :  { %v1331_v38 = vpop.f32.mrb[24].mxu0 }
 0x127   :  { %v1395_v39 = vpop.f32.mrb[24].mxu1  ;;  %v1332_v40 = vpop.f32.mrb[25].mxu0 }
 0x128   :  { %v1333_v41 = vadd.f32 %v1332_v40, %v1331_v38  ;;  %v1396_v44 = vpop.f32.mrb[25].mxu1  ;;  %v1334_v45 = vpop.f32.mrb[26].mxu0 }
 0x129   :  { %v1397_v46 = vadd.f32 %v1396_v44, %v1395_v39  ;;  %v1398_v47 = vpop.f32.mrb[26].mxu1  ;;  %v1335_v48 = vpop.f32.mrb[27].mxu0 }
 0x12a   :  { %v1336_v49 = vadd.f32 %v1335_v48, %v1334_v45  ;;  %v1399_v50 = vpop.f32.mrb[27].mxu1 }
 0x12b   :  { %v1400_v51 = vadd.f32 %v1399_v50, %v1398_v47  ;;  %v1850_v52 = vadd.f32 %v1397_v46, %v1333_v41 }
 0x12d   :  { %v1852_v53 = vadd.f32 %v1400_v51, %v1336_v49 }
 0x12e   :  { %v1337_v54 = vpop.f32.mrb[28].mxu0 }
 0x12f   :  { %v1401_v55 = vpop.f32.mrb[28].mxu1  ;;  %v1338_v58 = vpop.f32.mrb[29].mxu0 }
 0x130   :  { %v1339_v59 = vadd.f32 %v1338_v58, %v1337_v54  ;;  %v1402_v60 = vpop.f32.mrb[29].mxu1  ;;  %v1340_v61 = vpop.f32.mrb[30].mxu0 }
 0x131   :  { %v1403_v62 = vadd.f32 %v1402_v60, %v1401_v55  ;;  %v1404_v63 = vpop.f32.mrb[30].mxu1  ;;  %v1341_v0 = vpop.f32.mrb[31].mxu0 }
 0x132   :  { %v1342_v1 = vadd.f32 %v1341_v0, %v1340_v61  ;;  %v1405_v2 = vpop.f32.mrb[31].mxu1 }
 0x133   :  { %v1406_v3 = vadd.f32 %v1405_v2, %v1404_v63  ;;  %v818_v4 = vadd.f32 %v1403_v62, %v1339_v59 }
 0x135   :  { %v1854_v5 = vadd.f32 %v1406_v3, %v1342_v1 }
 0x136   :  { %v1441_v8 = vpop.f32.mrb[32].mxu0 }
 0x137   :  { %v867_v10 = vadd.f32 %v1441_v8, %v1836_v42  ;;  %v1449_v11 = vpop.f32.mrb[32].mxu1  ;;  %v858_v12 = vpop.f32.mrb[33].mxu0 }
 0x138   :  { %v899_v14 = vadd.f32 %v1449_v11, %v802_v36  ;;  %v859_v15 = vadd.f32 %v858_v12, %v1832_v28  ;;  %v890_v16 = vpop.f32.mrb[33].mxu1  ;;  %v1442_v17 = vpop.f32.mrb[34].mxu0 }
 0x139   :  { %v981_v18 = vmul.f32 %v1859_v9, %v867_v10  ;;  %v891_v19 = vadd.f32 %v890_v16, %v794_v20  ;;  %v870_v22 = vadd.f32 %v1442_v17, %v1838_v43  ;;  %v1450_v23 = vpop.f32.mrb[34].mxu1  ;;  %v861_v24 = vpop.f32.mrb[35].mxu0 }
 0x13a   :  { %v989_v42 = vmul.f32 %v1859_v9, %v899_v14  ;;  %v979_v25 = vmul.f32 %v1859_v9, %v859_v15  ;;  %v902_v26 = vadd.f32 %v1450_v23, %v805_v37  ;;  %v862_v27 = vadd.f32 %v861_v24, %v1834_v29  ;;  %v893_v30 = vpop.f32.mrb[35].mxu1 }
 0x13b   :  { %v1004_v31 = vadd.f32 %v1865_v13, %v981_v18  ;;  %v987_v28 = vmul.f32 %v1859_v9, %v891_v19  ;;  %v982_v32 = vmul.f32 %v1859_v9, %v870_v22  ;;  %v894_v20 = vadd.f32 %v893_v30, %v1848_v21 }
 0x13c   :  { %v1012_v43 = vadd.f32 %v1865_v13, %v989_v42  ;;  %v1002_v33 = vadd.f32 %v1865_v13, %v979_v25  ;;  %v990_v34 = vmul.f32 %v1859_v9, %v902_v26  ;;  %v980_v35 = vmul.f32 %v1859_v9, %v862_v27 }
 0x13d   :  { %v1020_v36 = vmax.f32 %v1004_v31, 0.0  ;;  %v1010_v29 = vadd.f32 %v1865_v13, %v987_v28  ;;  %v1005_v37 = vadd.f32 %v1865_v13, %v982_v32  ;;  %v988_v38 = vmul.f32 %v1859_v9, %v894_v20 }
 0x13e   :  { %v1028_v39 = vmax.f32 %v1012_v43, 0.0  ;;  %v1018_v40 = vmax.f32 %v1002_v33, 0.0  ;;  %v1013_v41 = vadd.f32 %v1865_v13, %v990_v34  ;;  %v1003_v21 = vadd.f32 %v1865_v13, %v980_v35  ;;  %v1445_v44 = vpop.f32.mrb[36].mxu0 }
 0x13f   :  { %v1026_v45 = vmax.f32 %v1010_v29, 0.0  ;;  %v1021_v46 = vmax.f32 %v1005_v37, 0.0  ;;  %v1011_v47 = vadd.f32 %v1865_v13, %v988_v38  ;;  %v883_v48 = vadd.f32 %v1445_v44, %v1844_v6  ;;  %v1453_v49 = vpop.f32.mrb[36].mxu1  ;;  %v874_v50 = vpop.f32.mrb[37].mxu0 }
 0x140   :  { %v1029_v51 = vmax.f32 %v1013_v41, 0.0  ;;  %v1019_v54 = vmax.f32 %v1003_v21, 0.0  ;;  %v915_v55 = vadd.f32 %v1453_v49, %v818_v4  ;;  %v875_v58 = vadd.f32 %v874_v50, %v1840_v56  ;;  %v906_v59 = vpop.f32.mrb[37].mxu1  ;;  %v1446_v60 = vpop.f32.mrb[38].mxu0 }
 0x141   :  { %v1240_v61 = vpack.c.bf16 %v1021_v46, %v1020_v36  ;;  %v1027_v62 = vmax.f32 %v1011_v47, 0.0  ;;  %v985_v63 = vmul.f32 %v1859_v9, %v883_v48  ;;  %v907_v0 = vadd.f32 %v906_v59, %v1850_v52  ;;  %v1454_v1 = vpop.f32.mrb[38].mxu1  ;;  %v877_v2 = vpop.f32.mrb[39].mxu0 }
 0x142   :  { %v1260_v3 = vpack.c.bf16 %v1029_v51, %v1028_v39  ;;  %v1235_v8 = vpack.c.bf16 %v1019_v54, %v1018_v40  ;;  %v993_v6 = vmul.f32 %v1859_v9, %v915_v55  ;;  %v983_v10 = vmul.f32 %v1859_v9, %v875_v58  ;;  %v909_v11 = vpop.f32.mrb[39].mxu1 }
 0x143   :  { %1272 = vst [vmem:[%s1938_s4 + $0x8] sm:$0xff] %v1240_v61   ;;  %v1255_v56 = vpack.c.bf16 %v1027_v62, %v1026_v45  ;;  %v991_v4 = vmul.f32 %v1859_v9, %v907_v0  ;;  %v886_v12 = vadd.f32 %v1446_v60, %v1846_v7  ;;  %v918_v52 = vadd.f32 %v1454_v1, %v1854_v5 }
 0x144   :  { %1276 = vst [vmem:[%s1938_s4 + $0x28] sm:$0xff] %v1260_v3   ;;  %1236 = vst [vmem:[%s1938_s4] sm:$0xff] %v1235_v8   ;;  %v878_v14 = vadd.f32 %v877_v2, %v1842_v57  ;;  %v1008_v15 = vadd.f32 %v1865_v13, %v985_v63  ;;  %v910_v16 = vadd.f32 %v909_v11, %v1852_v53 }
 0x145   :  { %1275 = vst [vmem:[%s1938_s4 + $0x20] sm:$0xff] %v1255_v56   ;;  %v986_v7 = vmul.f32 %v1859_v9, %v886_v12  ;;  %v1016_v17 = vadd.f32 %v1865_v13, %v993_v6  ;;  %v1006_v18 = vadd.f32 %v1865_v13, %v983_v10  ;;  %v994_v19 = vmul.f32 %v1859_v9, %v918_v52 }
 0x146   :  { %v984_v5 = vmul.f32 %v1859_v9, %v878_v14  ;;  %v1014_v57 = vadd.f32 %v1865_v13, %v991_v4  ;;  %v992_v23 = vmul.f32 %v1859_v9, %v910_v16  ;;  %v1024_v25 = vmax.f32 %v1008_v15, 0.0 }
 0x147   :  { %v1009_v22 = vadd.f32 %v1865_v13, %v986_v7  ;;  %v1017_v24 = vadd.f32 %v1865_v13, %v994_v19  ;;  %v1032_v27 = vmax.f32 %v1016_v17, 0.0  ;;  %v1022_v30 = vmax.f32 %v1006_v18, 0.0 }
 0x148   :  { %v1007_v42 = vadd.f32 %v1865_v13, %v984_v5  ;;  %v1015_v26 = vadd.f32 %v1865_v13, %v992_v23  ;;  %v1030_v32 = vmax.f32 %v1014_v57, 0.0 }
 0x149   :  { %v1025_v53 = vmax.f32 %v1009_v22, 0.0  ;;  %v1033_v31 = vmax.f32 %v1017_v24, 0.0 }
 0x14a   :  { %v1023_v28 = vmax.f32 %v1007_v42, 0.0  ;;  %v1031_v43 = vmax.f32 %v1015_v26, 0.0 }
 0x14b   :  { %v1250_v20 = vpack.c.bf16 %v1025_v53, %v1024_v25  ;;  %v1270_v33 = vpack.c.bf16 %v1033_v31, %v1032_v27 }
 0x14c   :  { %v1245_v34 = vpack.c.bf16 %v1023_v28, %v1022_v30  ;;  %v1265_v9 = vpack.c.bf16 %v1031_v43, %v1030_v32 }
 0x14d   :  { %1274 = vst [vmem:[%s1938_s4 + $0x18] sm:$0xff] %v1250_v20   ;;  %1278 = vst [vmem:[%s1938_s4 + $0x38] sm:$0xff] %v1270_v33  }
 0x14e   :  { %1273 = vst [vmem:[%s1938_s4 + $0x10] sm:$0xff] %v1245_v34   ;;  %1277 = vst [vmem:[%s1938_s4 + $0x30] sm:$0xff] %v1265_v9  }

// kernel: generator_forward.70
= control target key start
LH: loop header
LB: loop body
LE: loop exit
PB: predicated region body
PF: predicated region fallthrough
CT: control target
= control target key end

     0   :  { %s2315_s15 = smov 0   ;;  %s2317_s16 = smov 0   ;;  %s2596_s0 = inlined_call_operand.vmem [shape: bf16[512,384], index: 0, kind: input, shape index: {}]   ;;  %s2597_s1 = inlined_call_operand.vmem [shape: bf16[384,128], index: 1, kind: input, shape index: {}]   ;;  %s2598_s2 = inlined_call_operand.vmem [shape: f32[1,128], index: 2, kind: input, shape index: {}]   ;;  %s2599_s3 = inlined_call_operand.vmem [shape: f32[1,128], index: 3, kind: input, shape index: {}]   ;;  %s2600_s4 = inlined_call_operand.vmem [shape: bf16[512,128], index: 4, kind: output, shape index: {}]  }
   0x1   :  { %s2319_s17 = smov 0  }
   0x2 LB: > { %s33_s18 = sadd.s32 1, %s2284_s16  ;;  %p1713_p0 = scmp.ge.s32.totalorder %s2288_s17, 1  ;;  %s2288_s17 = sphi %s2319_s17, %s14_s17   ;;  %s2284_s16 = sphi %s2317_s16, %s2602_s16   ;;  %s2280_s15 = sphi %s2315_s15, %s2601_s15  }
   0x3   : > { %p35_p1 = scmp.ge.s32.totalorder %s33_s18, 2  ;;  %p224_p2 = scmp.lt.s32.totalorder %s2288_s17, 3 }
   0x5   : > { %s2604_s18 = smov (%p35_p1, %s33_s18), 0  ;;  %p225_p3 = pnand %p1713_p0, %p224_p2 }
   0x6   : > { %v2178_v0 = vld [vmem:[%s2597_s1 + $0x40] sm:$0xff] (!%p225_p3)   ;;  %s1714_s21 = sshll.u32 (!%p225_p3), %s2280_s15, 5  ;;  %v2180_v2 = vld [vmem:[%s2597_s1 + $0x48] sm:$0xff] (!%p225_p3)   ;;  %v2182_v4 = vld [vmem:[%s2597_s1 + $0x50] sm:$0xff] (!%p225_p3)  }
   0x7   : > { %228 = sbr.rel (%p225_p3) target bundleno = 355 (0x163), region = 36  ;;  %v2179_v1 = vld [vmem:[%s2597_s1] sm:$0xff] (!%p225_p3)   ;;  %1953 = vmatprep.subr.bf16.mxu0 (!%p225_p3), %v2178_v0  ;;  %2137 = vmatprep.subr.bf16.mxu1 (!%p225_p3), %v2178_v0  ;;  %p274_p4 = scmp.lt.s32.totalorder (!%p225_p3), %s1714_s21, 63  ;;  %v2181_v3 = vld [vmem:[%s2597_s1 + $0x8] sm:$0xff] (!%p225_p3)   ;;  %v2183_v5 = vld [vmem:[%s2597_s1 + $0x10] sm:$0xff] (!%p225_p3)  }
   0x8   : > { %1954 = vmatpush3.bf16.msra.mxu0 (!%p225_p3), %v2179_v1  ;;  %2145 = vmatpush3.bf16.msra.mxu1 (!%p225_p3), %v2179_v1  ;;  %v2184_v6 = vld [vmem:[%s2597_s1 + $0x58] sm:$0xff] (!%p225_p3)   ;;  %v2186_v8 = vld [vmem:[%s2597_s1 + $0x60] sm:$0xff] (!%p225_p3)   ;;  %v2188_v10 = vld [vmem:[%s2597_s1 + $0x68] sm:$0xff] (!%p225_p3)  }
   0x9   : > { %1955 = vmatprep.subr.bf16.mxu0 (!%p225_p3), %v2180_v2  ;;  %2138 = vmatprep.subr.bf16.mxu1 (!%p225_p3), %v2180_v2  ;;  %v2185_v7 = vld [vmem:[%s2597_s1 + $0x18] sm:$0xff] (!%p225_p3)   ;;  %v2187_v9 = vld [vmem:[%s2597_s1 + $0x20] sm:$0xff] (!%p225_p3)   ;;  %v2189_v13 = vld [vmem:[%s2597_s1 + $0x28] sm:$0xff] (!%p225_p3)  }
   0xa   : > { %v2190_v14 = vld [vmem:[%s2597_s1 + $0x70] sm:$0xff] (!%p225_p3)   ;;  %v2192_v16 = vld [vmem:[%s2597_s1 + $0x78] sm:$0xff] (!%p225_p3)   ;;  %v2200_v18 = vld [vmem:[%s2597_s1 + $0x80] sm:$0xff] (!%p225_p3)  }
   0xb   : > { %v2191_v15 = vld [vmem:[%s2597_s1 + $0x30] sm:$0xff] (!%p225_p3)   ;;  %v2193_v17 = vld [vmem:[%s2597_s1 + $0x38] sm:$0xff] (!%p225_p3)   ;;  %v2201_v22 = vld [vmem:[%s2597_s1 + $0x88] sm:$0xff] (!%p225_p3)  }
   0xc   : > { %1956 = vmatpush3.bf16.msra.mxu0 (!%p225_p3), %v2181_v3  ;;  %2146 = vmatpush3.bf16.msra.mxu1 (!%p225_p3), %v2181_v3  ;;  %v2208_v25 = vld [vmem:[%s2597_s1 + $0x90] sm:$0xff] (!%p225_p3)   ;;  %v2209_v27 = vld [vmem:[%s2597_s1 + $0x98] sm:$0xff] (!%p225_p3)   ;;  %v2216_v30 = vld [vmem:[%s2597_s1 + $0xa0] sm:$0xff] (!%p225_p3)  }
   0xd   : > { %1957 = vmatprep.subr.bf16.mxu0 (!%p225_p3), %v2182_v4  ;;  %2139 = vmatprep.subr.bf16.mxu1 (!%p225_p3), %v2182_v4  ;;  %v2217_v33 = vld [vmem:[%s2597_s1 + $0xa8] sm:$0xff] (!%p225_p3)   ;;  %v2224_v36 = vld [vmem:[%s2597_s1 + $0xb0] sm:$0xff] (!%p225_p3)   ;;  %v2225_v40 = vld [vmem:[%s2597_s1 + $0xb8] sm:$0xff] (!%p225_p3)  }
   0xe   : > { %s2606_s21 = smov (!%p274_p4, %s1714_s21), 63 }
   0xf   : > { %s2153_s8 = smul.u32 12, %s2606_s21  ;;  %s1717_s6 = sshll.u32 %s2606_s21, 2 }
  0x10   : > { %1958 = vmatpush3.bf16.msra.mxu0 %v2183_v5  ;;  %2147 = vmatpush3.bf16.msra.mxu1 %v2183_v5  ;;  %s2499_s9 = scalar_lea.vmem %s2600_s4, %s1717_s6 }
  0x11   : > { %1959 = vmatprep.subr.bf16.mxu0 %v2184_v6  ;;  %2140 = vmatprep.subr.bf16.mxu1 %v2184_v6  ;;  %s2366_s15 = scalar_lea.vmem %s2596_s0, %s2153_s8 }
  0x12   : > { %v2196_v11 = vld [vmem:[%s2366_s15 + $0x4] ss:$12 sps:$4 sm:$0xff]   ;;  %v2194_v19 = vld [vmem:[%s2366_s15] ss:$12 sps:$4 sm:$0xff]   ;;  %v2202_v21 = vld [vmem:[%s2366_s15 + $0x1c] ss:$12 sps:$4 sm:$0xff]  }
  0x13   : > { %v2199_v12 = vld [vmem:[%s2366_s15 + $0x124] ss:$12 sps:$4 sm:$0xff]   ;;  %921 = vmatprep.mubr.bf16.mxu0 %v2196_v11  ;;  %v2197_v20 = vld [vmem:[%s2366_s15 + $0x120] ss:$12 sps:$4 sm:$0xff]   ;;  %v2204_v23 = vld [vmem:[%s2366_s15 + $0x13c] ss:$12 sps:$4 sm:$0xff]  }
  0x14   : > { %1960 = vmatpush3.bf16.msra.mxu0 %v2185_v7  ;;  %2148 = vmatpush3.bf16.msra.mxu1 %v2185_v7  ;;  %v2206_v24 = vld [vmem:[%s2366_s15 + $0x18] ss:$12 sps:$4 sm:$0xff]   ;;  %v2210_v28 = vld [vmem:[%s2366_s15 + $0x34] ss:$12 sps:$4 sm:$0xff]   ;;  %v2214_v31 = vld [vmem:[%s2366_s15 + $0x30] ss:$12 sps:$4 sm:$0xff]  }
  0x15   : > { %1961 = vmatprep.subr.bf16.mxu0 %v2186_v8  ;;  %2141 = vmatprep.subr.bf16.mxu1 %v2186_v8  ;;  %v2207_v26 = vld [vmem:[%s2366_s15 + $0x138] ss:$12 sps:$4 sm:$0xff]   ;;  %v2212_v29 = vld [vmem:[%s2366_s15 + $0x154] ss:$12 sps:$4 sm:$0xff]   ;;  %v2215_v32 = vld [vmem:[%s2366_s15 + $0x150] ss:$12 sps:$4 sm:$0xff]  }
  0x16   : > { %1017 = vmatprep.mubr.bf16.mxu1 %v2199_v12  ;;  %v2218_v34 = vld [vmem:[%s2366_s15 + $0x4c] ss:$12 sps:$4 sm:$0xff]   ;;  %v2222_v37 = vld [vmem:[%s2366_s15 + $0x48] ss:$12 sps:$4 sm:$0xff]   ;;  %v2226_v39 = vld [vmem:[%s2366_s15 + $0x64] ss:$12 sps:$4 sm:$0xff]  }
  0x17   : > { %v2220_v35 = vld [vmem:[%s2366_s15 + $0x16c] ss:$12 sps:$4 sm:$0xff]   ;;  %v2223_v38 = vld [vmem:[%s2366_s15 + $0x168] ss:$12 sps:$4 sm:$0xff]   ;;  %v2235_v47 = vld [vmem:[%s2366_s15 + $0x50] ss:$12 sps:$4 sm:$0xff]  }
  0x18   : > { %1962 = vmatpush3.bf16.msra.mxu0 %v2187_v9  ;;  %2149 = vmatpush3.bf16.msra.mxu1 %v2187_v9  ;;  %v2228_v41 = vld [vmem:[%s2366_s15 + $0x8] ss:$12 sps:$4 sm:$0xff]   ;;  %v2229_v42 = vld [vmem:[%s2366_s15 + $0x60] ss:$12 sps:$4 sm:$0xff]   ;;  %v2233_v45 = vld [vmem:[%s2366_s15 + $0x38] ss:$12 sps:$4 sm:$0xff]  }
  0x19   : > { %1963 = vmatprep.subr.bf16.mxu0 %v2188_v10  ;;  %2142 = vmatprep.subr.bf16.mxu1 %v2188_v10  ;;  %v2230_v43 = vld [vmem:[%s2366_s15 + $0x20] ss:$12 sps:$4 sm:$0xff]   ;;  %v2231_v44 = vld [vmem:[%s2366_s15 + $0x7c] ss:$12 sps:$4 sm:$0xff]   ;;  %v2234_v46 = vld [vmem:[%s2366_s15 + $0x78] ss:$12 sps:$4 sm:$0xff]  }
  0x1a   : > { %v2236_v48 = vld [vmem:[%s2366_s15 + $0x94] ss:$12 sps:$4 sm:$0xff]   ;;  %v2239_v50 = vld [vmem:[%s2366_s15 + $0x90] ss:$12 sps:$4 sm:$0xff]   ;;  %v2241_v52 = vld [vmem:[%s2366_s15 + $0xac] ss:$12 sps:$4 sm:$0xff]  }
  0x1b   : > { %v2238_v49 = vld [vmem:[%s2366_s15 + $0x68] ss:$12 sps:$4 sm:$0xff]   ;;  %v2240_v51 = vld [vmem:[%s2366_s15 + $0x80] ss:$12 sps:$4 sm:$0xff]   ;;  %v2243_v53 = vld [vmem:[%s2366_s15 + $0x98] ss:$12 sps:$4 sm:$0xff]  }
  0x1c   : > { %1964 = vmatpush3.bf16.msra.mxu0 %v2189_v13  ;;  %2150 = vmatpush3.bf16.msra.mxu1 %v2189_v13  ;;  %v2244_v54 = vld [vmem:[%s2366_s15 + $0xa8] ss:$12 sps:$4 sm:$0xff]   ;;  %v2245_v55 = vld [vmem:[%s2366_s15 + $0xb0] ss:$12 sps:$4 sm:$0xff]   ;;  %v2249_v58 = vld [vmem:[%s2366_s15 + $0xc0] ss:$12 sps:$4 sm:$0xff]  }
  0x1d   : > { %1965 = vmatprep.subr.bf16.mxu0 %v2190_v14  ;;  %2143 = vmatprep.subr.bf16.mxu1 %v2190_v14  ;;  %v2246_v56 = vld [vmem:[%s2366_s15 + $0xc4] ss:$12 sps:$4 sm:$0xff]   ;;  %v2248_v57 = vld [vmem:[%s2366_s15 + $0xc8] ss:$12 sps:$4 sm:$0xff]   ;;  %v2250_v59 = vld [vmem:[%s2366_s15 + $0xe0] ss:$12 sps:$4 sm:$0xff]  }
  0x1e   : > { %v2251_v60 = vld [vmem:[%s2366_s15 + $0xdc] ss:$12 sps:$4 sm:$0xff]   ;;  %v2253_v61 = vld [vmem:[%s2366_s15 + $0xf8] ss:$12 sps:$4 sm:$0xff]   ;;  %v2256_v0 = vld [vmem:[%s2366_s15 + $0xf4] ss:$12 sps:$4 sm:$0xff]  }
  0x1f   : > { %v2254_v62 = vld [vmem:[%s2366_s15 + $0xd8] ss:$12 sps:$4 sm:$0xff]   ;;  %v2255_v63 = vld [vmem:[%s2366_s15 + $0x110] ss:$12 sps:$4 sm:$0xff]   ;;  %v2258_v1 = vld [vmem:[%s2366_s15 + $0x128] ss:$12 sps:$4 sm:$0xff]  }
  0x20   : > { %1966 = vmatpush3.bf16.msra.mxu0 %v2191_v15  ;;  %2151 = vmatpush3.bf16.msra.mxu1 %v2191_v15  ;;  %v2259_v2 = vld [vmem:[%s2366_s15 + $0xf0] ss:$12 sps:$4 sm:$0xff]   ;;  %v2260_v3 = vld [vmem:[%s2366_s15 + $0x140] ss:$12 sps:$4 sm:$0xff]   ;;  %v2263_v5 = vld [vmem:[%s2366_s15 + $0x158] ss:$12 sps:$4 sm:$0xff]  }
  0x21   : > { %1967 = vmatprep.subr.bf16.mxu0 %v2192_v16  ;;  %2144 = vmatprep.subr.bf16.mxu1 %v2192_v16  ;;  %v2261_v4 = vld [vmem:[%s2366_s15 + $0x10c] ss:$12 sps:$4 sm:$0xff]   ;;  %v2264_v6 = vld [vmem:[%s2366_s15 + $0x108] ss:$12 sps:$4 sm:$0xff]   ;;  %v2265_v7 = vld [vmem:[%s2366_s15 + $0x170] ss:$12 sps:$4 sm:$0xff]  }
  0x24   : > { %1968 = vmatpush3.bf16.msra.mxu0 %v2193_v17  ;;  %2152 = vmatpush3.bf16.msra.mxu1 %v2193_v17 }
  0x25   : > { %2089 = vmatprep.subr.bf16.mxu1 %v2200_v18 }
  0x27   : > { %922 = vmatmul.mubr.bf16.vlgmr.msra.gmra.mrb[0].mxu0 %v2194_v19  ;;  %1018 = vmatmul.mubr.bf16.vlgmr.msra.gmra.mrb[0].mxu1 %v2197_v20 }
  0x28   : > { %2090 = vmatpush3.bf16.msra.mxu1 %v2200_v18  ;;  %929 = vmatprep.mubr.bf16.mxu0 %v2202_v21 }
  0x29   : > { %2091 = vmatprep.subr.bf16.mxu1 %v2201_v22  ;;  %1025 = vmatprep.mubr.bf16.mxu1 %v2204_v23 }
  0x2c   : > { %2092 = vmatpush3.bf16.msra.mxu1 %v2201_v22 }
  0x2d   : > { %2093 = vmatprep.subr.bf16.mxu1 %v2208_v25 }
  0x2f   : > { %930 = vmatmul.mubr.bf16.gmra.mrb[4].mxu0 %v2206_v24  ;;  %1026 = vmatmul.mubr.bf16.gmra.mrb[4].mxu1 %v2207_v26 }
  0x30   : > { %2094 = vmatpush3.bf16.msra.mxu1 %v2208_v25  ;;  %937 = vmatprep.mubr.bf16.mxu0 %v2210_v28 }
  0x31   : > { %2095 = vmatprep.subr.bf16.mxu1 %v2209_v27  ;;  %1033 = vmatprep.mubr.bf16.mxu1 %v2212_v29 }
  0x34   : > { %2096 = vmatpush3.bf16.msra.mxu1 %v2209_v27 }
  0x35   : > { %2097 = vmatprep.subr.bf16.mxu1 %v2216_v30 }
  0x37   : > { %938 = vmatmul.mubr.bf16.gmra.mrb[8].mxu0 %v2214_v31  ;;  %1034 = vmatmul.mubr.bf16.gmra.mrb[8].mxu1 %v2215_v32 }
  0x38   : > { %2098 = vmatpush3.bf16.msra.mxu1 %v2216_v30  ;;  %945 = vmatprep.mubr.bf16.mxu0 %v2218_v34 }
  0x39   : > { %2099 = vmatprep.subr.bf16.mxu1 %v2217_v33  ;;  %1041 = vmatprep.mubr.bf16.mxu1 %v2220_v35 }
  0x3c   : > { %2100 = vmatpush3.bf16.msra.mxu1 %v2217_v33 }
  0x3d   : > { %2101 = vmatprep.subr.bf16.mxu1 %v2224_v36 }
  0x3f   : > { %946 = vmatmul.mubr.bf16.gmra.mrb[12].mxu0 %v2222_v37  ;;  %1042 = vmatmul.mubr.bf16.gmra.mrb[12].mxu1 %v2223_v38 }
  0x40   : > { %2102 = vmatpush3.bf16.msra.mxu1 %v2224_v36  ;;  %953 = vmatprep.mubr.bf16.mxu0 %v2226_v39 }
  0x41   : > { %2103 = vmatprep.subr.bf16.mxu1 %v2225_v40  ;;  %2105 = vmatprep.mubr.bf16.mxu1 %v2228_v41 }
  0x44   : > { %2104 = vmatpush3.bf16.msra.mxu1 %v2225_v40 }
  0x47   : > { %954 = vmatmul.mubr.bf16.gmra.mrb[16].mxu0 %v2229_v42  ;;  %2106 = vmatmul.mubr.bf16.vlgmr.msra.gmra.mrb[16].mxu1 %v2230_v43 }
  0x48   : > { %961 = vmatprep.mubr.bf16.mxu0 %v2231_v44  ;;  %2109 = vmatprep.mubr.bf16.mxu1 %v2233_v45 }
  0x4f   : > { %962 = vmatmul.mubr.bf16.gmra.mrb[20].mxu0 %v2234_v46  ;;  %2110 = vmatmul.mubr.bf16.gmra.mrb[20].mxu1 %v2235_v47 }
  0x50   : > { %969 = vmatprep.mubr.bf16.mxu0 %v2236_v48  ;;  %2113 = vmatprep.mubr.bf16.mxu1 %v2238_v49 }
  0x57   : > { %970 = vmatmul.mubr.bf16.gmra.mrb[24].mxu0 %v2239_v50  ;;  %2114 = vmatmul.mubr.bf16.gmra.mrb[24].mxu1 %v2240_v51 }
  0x58   : > { %977 = vmatprep.mubr.bf16.mxu0 %v2241_v52  ;;  %2117 = vmatprep.mubr.bf16.mxu1 %v2243_v53 }
  0x5f   : > { %978 = vmatmul.mubr.bf16.gmra.mrb[28].mxu0 %v2244_v54  ;;  %2118 = vmatmul.mubr.bf16.gmra.mrb[28].mxu1 %v2245_v55 }
  0x60   : > { %985 = vmatprep.mubr.bf16.mxu0 %v2246_v56  ;;  %2121 = vmatprep.mubr.bf16.mxu1 %v2248_v57 }
  0x67   : > { %986 = vmatmul.mubr.bf16.gmra.mrb[32].mxu0 %v2249_v58  ;;  %2122 = vmatmul.mubr.bf16.gmra.mrb[32].mxu1 %v2250_v59  ;;  %v2480_v58 = vld [vmem:[%s2598_s2] ss:$0 sm:$0xff] }
  0x68   : > { %993 = vmatprep.mubr.bf16.mxu0 %v2251_v60  ;;  %2125 = vmatprep.mubr.bf16.mxu1 %v2253_v61 }
  0x6f   : > { %994 = vmatmul.mubr.bf16.gmra.mrb[36].mxu0 %v2254_v62  ;;  %2126 = vmatmul.mubr.bf16.gmra.mrb[36].mxu1 %v2255_v63  ;;  %v2485_v62 = vld [vmem:[%s2599_s3] ss:$0 sm:$0xff] }
  0x70   : > { %1001 = vmatprep.mubr.bf16.mxu0 %v2256_v0  ;;  %2129 = vmatprep.mubr.bf16.mxu1 %v2258_v1 }
  0x77   : > { %1002 = vmatmul.mubr.bf16.gmra.mrb[40].mxu0 %v2259_v2  ;;  %2130 = vmatmul.mubr.bf16.gmra.mrb[40].mxu1 %v2260_v3 }
  0x78   : > { %1009 = vmatprep.mubr.bf16.mxu0 %v2261_v4  ;;  %2133 = vmatprep.mubr.bf16.mxu1 %v2263_v5 }
  0x7f   : > { %1010 = vmatmul.mubr.bf16.gmra.mrb[44].mxu0 %v2264_v6  ;;  %2134 = vmatmul.mubr.bf16.gmra.mrb[44].mxu1 %v2265_v7 }
  0xfa   : > { %v1969_v8 = vpop.f32.mrb[0].mxu0  ;;  %v2041_v9 = vpop.f32.mrb[0].mxu1 }
  0xfb   : > { %v1970_v10 = vpop.f32.mrb[1].mxu0  ;;  %v2042_v11 = vpop.f32.mrb[1].mxu1 }
  0xfc   : > { %v1971_v12 = vadd.f32 %v1970_v10, %v1969_v8  ;;  %v2461_v13 = vadd.f32 %v2042_v11, %v2041_v9  ;;  %v1972_v14 = vpop.f32.mrb[2].mxu0  ;;  %v2044_v15 = vpop.f32.mrb[2].mxu1 }
  0xfd   : > { %v1973_v16 = vpop.f32.mrb[3].mxu0  ;;  %v2045_v17 = vpop.f32.mrb[3].mxu1 }
  0xfe   : > { %v1974_v18 = vadd.f32 %v1973_v16, %v1972_v14  ;;  %v2463_v19 = vadd.f32 %v2045_v17, %v2044_v15 }
 0x102   : > { %v1975_v20 = vpop.f32.mrb[4].mxu0  ;;  %v2047_v21 = vpop.f32.mrb[4].mxu1 }
 0x103   : > { %v1976_v22 = vpop.f32.mrb[5].mxu0  ;;  %v2048_v23 = vpop.f32.mrb[5].mxu1 }
 0x104   : > { %v1977_v24 = vadd.f32 %v1976_v22, %v1975_v20  ;;  %v2465_v25 = vadd.f32 %v2048_v23, %v2047_v21  ;;  %v1978_v26 = vpop.f32.mrb[6].mxu0  ;;  %v2050_v27 = vpop.f32.mrb[6].mxu1 }
 0x105   : > { %v1979_v28 = vpop.f32.mrb[7].mxu0  ;;  %v2051_v29 = vpop.f32.mrb[7].mxu1 }
 0x106   : > { %v1980_v30 = vadd.f32 %v1979_v28, %v1978_v26  ;;  %v2467_v31 = vadd.f32 %v2051_v29, %v2050_v27 }
 0x10a   : > { %v1981_v32 = vpop.f32.mrb[8].mxu0  ;;  %v2053_v33 = vpop.f32.mrb[8].mxu1 }
 0x10b   : > { %v1982_v34 = vpop.f32.mrb[9].mxu0  ;;  %v2054_v35 = vpop.f32.mrb[9].mxu1 }
 0x10c   : > { %v1983_v36 = vadd.f32 %v1982_v34, %v1981_v32  ;;  %v2469_v37 = vadd.f32 %v2054_v35, %v2053_v33  ;;  %v1984_v38 = vpop.f32.mrb[10].mxu0  ;;  %v2056_v39 = vpop.f32.mrb[10].mxu1 }
 0x10d   : > { %v1985_v40 = vpop.f32.mrb[11].mxu0  ;;  %v2057_v41 = vpop.f32.mrb[11].mxu1 }
 0x10e   : > { %v1986_v42 = vadd.f32 %v1985_v40, %v1984_v38  ;;  %v2471_v43 = vadd.f32 %v2057_v41, %v2056_v39 }
 0x112   : > { %v1987_v44 = vpop.f32.mrb[12].mxu0  ;;  %v2059_v45 = vpop.f32.mrb[12].mxu1 }
 0x113   : > { %v1988_v46 = vpop.f32.mrb[13].mxu0  ;;  %v2060_v47 = vpop.f32.mrb[13].mxu1 }
 0x114   : > { %v1989_v48 = vadd.f32 %v1988_v46, %v1987_v44  ;;  %v2473_v49 = vadd.f32 %v2060_v47, %v2059_v45  ;;  %v1990_v50 = vpop.f32.mrb[14].mxu0  ;;  %v2062_v51 = vpop.f32.mrb[14].mxu1 }
 0x115   : > { %v1991_v52 = vpop.f32.mrb[15].mxu0  ;;  %v2063_v53 = vpop.f32.mrb[15].mxu1 }
 0x116   : > { %v1992_v54 = vadd.f32 %v1991_v52, %v1990_v50  ;;  %v2475_v55 = vadd.f32 %v2063_v53, %v2062_v51 }
 0x11a   : > { %v1993_v56 = vpop.f32.mrb[16].mxu0  ;;  %v2107_v57 = vpop.f32.mrb[16].mxu1 }
 0x11b   : > { %v1093_v59 = vadd.f32 %v2107_v57, %v1977_v24  ;;  %v1994_v60 = vpop.f32.mrb[17].mxu0  ;;  %v1084_v61 = vpop.f32.mrb[17].mxu1 }
 0x11c   : > { %v1995_v63 = vadd.f32 %v1994_v60, %v1993_v56  ;;  %v1085_v0 = vadd.f32 %v1971_v12, %v1084_v61  ;;  %v1996_v1 = vpop.f32.mrb[18].mxu0  ;;  %v2108_v2 = vpop.f32.mrb[18].mxu1 }
 0x11d   : > { %v1319_v3 = vmul.f32 %v2480_v58, %v1093_v59  ;;  %v1096_v4 = vadd.f32 %v2108_v2, %v1980_v30  ;;  %v1997_v5 = vpop.f32.mrb[19].mxu0  ;;  %v1087_v6 = vpop.f32.mrb[19].mxu1 }
 0x11e   : > { %v1317_v7 = vmul.f32 %v2480_v58, %v1085_v0  ;;  %v1998_v8 = vadd.f32 %v1997_v5, %v1996_v1  ;;  %v1088_v9 = vadd.f32 %v1974_v18, %v1087_v6 }
 0x11f   : > { %v1358_v10 = vadd.f32 %v2485_v62, %v1319_v3  ;;  %v1320_v11 = vmul.f32 %v2480_v58, %v1096_v4 }
 0x120   : > { %v1356_v14 = vadd.f32 %v2485_v62, %v1317_v7  ;;  %v1318_v15 = vmul.f32 %v2480_v58, %v1088_v9 }
 0x121   : > { %v1359_v12 = vadd.f32 %v2485_v62, %v1320_v11  ;;  %v1390_v21 = vmax.f32 %v1358_v10, 0.0 }
 0x122   : > { %v1357_v16 = vadd.f32 %v2485_v62, %v1318_v15  ;;  %v1999_v17 = vpop.f32.mrb[20].mxu0  ;;  %v2111_v20 = vpop.f32.mrb[20].mxu1  ;;  %v1388_v26 = vmax.f32 %v1356_v14, 0.0 }
 0x123   : > { %v1391_v22 = vmax.f32 %v1359_v12, 0.0  ;;  %v1109_v23 = vadd.f32 %v2111_v20, %v1989_v48  ;;  %v2000_v24 = vpop.f32.mrb[21].mxu0  ;;  %v1100_v18 = vpop.f32.mrb[21].mxu1 }
 0x124   : > { %v1389_v27 = vmax.f32 %v1357_v16, 0.0  ;;  %v2001_v28 = vadd.f32 %v2000_v24, %v1999_v17  ;;  %v1101_v29 = vadd.f32 %v1983_v36, %v1100_v18  ;;  %v2002_v30 = vpop.f32.mrb[22].mxu0  ;;  %v2112_v32 = vpop.f32.mrb[22].mxu1 }
 0x125   : > { %v1866_v33 = vpack.c.bf16 %v1391_v22, %v1390_v21  ;;  %v1323_v34 = vmul.f32 %v2480_v58, %v1109_v23  ;;  %v1112_v35 = vadd.f32 %v2112_v32, %v1992_v54  ;;  %v2003_v38 = vpop.f32.mrb[23].mxu0  ;;  %v1103_v39 = vpop.f32.mrb[23].mxu1 }
 0x126   : > { %v1861_v40 = vpack.c.bf16 %v1389_v27, %v1388_v26  ;;  %v1321_v41 = vmul.f32 %v2480_v58, %v1101_v29  ;;  %v2004_v44 = vadd.f32 %v2003_v38, %v2002_v30  ;;  %v1104_v45 = vadd.f32 %v1986_v42, %v1103_v39 }
 0x127   : > { %1938 = vst [vmem:[%s2499_s9 + $0x8] sm:$0xff] %v1866_v33   ;;  %v1362_v46 = vadd.f32 %v2485_v62, %v1323_v34  ;;  %v1324_v47 = vmul.f32 %v2480_v58, %v1112_v35 }
 0x128   : > { %1862 = vst [vmem:[%s2499_s9] sm:$0xff] %v1861_v40   ;;  %v1360_v36 = vadd.f32 %v2485_v62, %v1321_v41  ;;  %v1322_v48 = vmul.f32 %v2480_v58, %v1104_v45 }
 0x129   : > { %v1363_v50 = vadd.f32 %v2485_v62, %v1324_v47  ;;  %v1394_v54 = vmax.f32 %v1362_v46, 0.0 }
 0x12a   : > { %v1361_v51 = vadd.f32 %v2485_v62, %v1322_v48  ;;  %v2005_v52 = vpop.f32.mrb[24].mxu0  ;;  %v2115_v53 = vpop.f32.mrb[24].mxu1  ;;  %v1392_v60 = vmax.f32 %v1360_v36, 0.0 }
 0x12b   : > { %v1395_v56 = vmax.f32 %v1363_v50, 0.0  ;;  %v1125_v57 = vadd.f32 %v2115_v53, %v2001_v28  ;;  %v2006_v42 = vpop.f32.mrb[25].mxu0  ;;  %v1116_v59 = vpop.f32.mrb[25].mxu1 }
 0x12c   : > { %v1393_v61 = vmax.f32 %v1361_v51, 0.0  ;;  %v2007_v0 = vadd.f32 %v2006_v42, %v2005_v52  ;;  %v1117_v1 = vadd.f32 %v1995_v63, %v1116_v59  ;;  %v2008_v2 = vpop.f32.mrb[26].mxu0  ;;  %v2116_v3 = vpop.f32.mrb[26].mxu1 }
 0x12d   : > { %v1876_v4 = vpack.c.bf16 %v1395_v56, %v1394_v54  ;;  %v1327_v5 = vmul.f32 %v2480_v58, %v1125_v57  ;;  %v1128_v6 = vadd.f32 %v2116_v3, %v2004_v44  ;;  %v2009_v7 = vpop.f32.mrb[27].mxu0  ;;  %v1119_v9 = vpop.f32.mrb[27].mxu1 }
 0x12e   : > { %v1871_v10 = vpack.c.bf16 %v1393_v61, %v1392_v60  ;;  %v1325_v11 = vmul.f32 %v2480_v58, %v1117_v1  ;;  %v2010_v14 = vadd.f32 %v2009_v7, %v2008_v2  ;;  %v1120_v15 = vadd.f32 %v1998_v8, %v1119_v9 }
 0x12f   : > { %1940 = vst [vmem:[%s2499_s9 + $0x18] sm:$0xff] %v1876_v4   ;;  %v1366_v12 = vadd.f32 %v2485_v62, %v1327_v5  ;;  %v1328_v16 = vmul.f32 %v2480_v58, %v1128_v6 }
 0x130   : > { %1939 = vst [vmem:[%s2499_s9 + $0x10] sm:$0xff] %v1871_v10   ;;  %v1364_v63 = vadd.f32 %v2485_v62, %v1325_v11  ;;  %v1326_v17 = vmul.f32 %v2480_v58, %v1120_v15 }
 0x131   : > { %v1367_v20 = vadd.f32 %v2485_v62, %v1328_v16  ;;  %v1398_v24 = vmax.f32 %v1366_v12, 0.0 }
 0x132   : > { %v1365_v21 = vadd.f32 %v2485_v62, %v1326_v17  ;;  %v2011_v22 = vpop.f32.mrb[28].mxu0  ;;  %v2119_v23 = vpop.f32.mrb[28].mxu1  ;;  %v1396_v27 = vmax.f32 %v1364_v63, 0.0 }
 0x133   : > { %v1399_v18 = vmax.f32 %v1367_v20, 0.0  ;;  %v2012_v8 = vpop.f32.mrb[29].mxu0  ;;  %v1132_v26 = vpop.f32.mrb[29].mxu1 }
 0x134   : > { %v1397_v28 = vmax.f32 %v1365_v21, 0.0  ;;  %v2013_v29 = vadd.f32 %v2012_v8, %v2011_v22  ;;  %v1133_v30 = vadd.f32 %v2007_v0, %v1132_v26  ;;  %v2014_v32 = vpop.f32.mrb[30].mxu0  ;;  %v2120_v33 = vpop.f32.mrb[30].mxu1 }
 0x135   : > { %v1886_v34 = vpack.c.bf16 %v1399_v18, %v1398_v24  ;;  %v2015_v35 = vpop.f32.mrb[31].mxu0  ;;  %v1135_v38 = vpop.f32.mrb[31].mxu1 }
 0x136   : > { %v1881_v39 = vpack.c.bf16 %v1397_v28, %v1396_v27  ;;  %v1141_v40 = vadd.f32 %v2119_v23, %v2013_v29  ;;  %v1329_v41 = vmul.f32 %v2480_v58, %v1133_v30  ;;  %v2016_v44 = vadd.f32 %v2015_v35, %v2014_v32 }
 0x137   : > { %1942 = vst [vmem:[%s2499_s9 + $0x28] sm:$0xff] %v1886_v34   ;;  %v1136_v45 = vadd.f32 %v2010_v14, %v1135_v38 }
 0x138   : > { %1941 = vst [vmem:[%s2499_s9 + $0x20] sm:$0xff] %v1881_v39   ;;  %v1331_v46 = vmul.f32 %v2480_v58, %v1141_v40  ;;  %v1144_v47 = vadd.f32 %v2120_v33, %v2016_v44  ;;  %v1368_v36 = vadd.f32 %v2485_v62, %v1329_v41 }
 0x139   : > { %v1330_v48 = vmul.f32 %v2480_v58, %v1136_v45 }
 0x13a   : > { %v1370_v50 = vadd.f32 %v2485_v62, %v1331_v46  ;;  %v1332_v51 = vmul.f32 %v2480_v58, %v1144_v47  ;;  %v2017_v52 = vpop.f32.mrb[32].mxu0  ;;  %v2123_v53 = vpop.f32.mrb[32].mxu1  ;;  %v1400_v0 = vmax.f32 %v1368_v36, 0.0 }
 0x13b   : > { %v1369_v54 = vadd.f32 %v2485_v62, %v1330_v48  ;;  %v2018_v56 = vpop.f32.mrb[33].mxu0  ;;  %v1148_v57 = vpop.f32.mrb[33].mxu1 }
 0x13c   : > { %v1371_v42 = vadd.f32 %v2485_v62, %v1332_v51  ;;  %v2019_v59 = vadd.f32 %v2018_v56, %v2017_v52  ;;  %v2020_v60 = vpop.f32.mrb[34].mxu0  ;;  %v2124_v61 = vpop.f32.mrb[34].mxu1  ;;  %v1402_v4 = vmax.f32 %v1370_v50, 0.0 }
 0x13d   : > { %v1401_v1 = vmax.f32 %v1369_v54, 0.0  ;;  %v2021_v2 = vpop.f32.mrb[35].mxu0  ;;  %v1151_v3 = vpop.f32.mrb[35].mxu1 }
 0x13e   : > { %v1403_v5 = vmax.f32 %v1371_v42, 0.0  ;;  %v1149_v6 = vadd.f32 %v2019_v59, %v1148_v57  ;;  %v2022_v7 = vadd.f32 %v2021_v2, %v2020_v60 }
 0x13f   : > { %v1891_v9 = vpack.c.bf16 %v1401_v1, %v1400_v0 }
 0x140   : > { %v1896_v10 = vpack.c.bf16 %v1403_v5, %v1402_v4  ;;  %v1333_v11 = vmul.f32 %v2480_v58, %v1149_v6  ;;  %v1152_v14 = vadd.f32 %v2022_v7, %v1151_v3 }
 0x141   : > { %1943 = vst [vmem:[%s2499_s9 + $0x30] sm:$0xff] %v1891_v9  }
 0x142   : > { %1944 = vst [vmem:[%s2499_s9 + $0x38] sm:$0xff] %v1896_v10   ;;  %v1372_v15 = vadd.f32 %v2485_v62, %v1333_v11  ;;  %v1334_v12 = vmul.f32 %v2480_v58, %v1152_v14  ;;  %v2023_v16 = vpop.f32.mrb[36].mxu0  ;;  %v2536_v63 = vpop.f32.mrb[36].mxu1 }
 0x143   : > { %v2024_v17 = vpop.f32.mrb[37].mxu0  ;;  %v1164_v20 = vpop.f32.mrb[37].mxu1 }
 0x144   : > { %v1373_v21 = vadd.f32 %v2485_v62, %v1334_v12  ;;  %v2025_v22 = vadd.f32 %v2024_v17, %v2023_v16  ;;  %v2026_v23 = vpop.f32.mrb[38].mxu0  ;;  %v2539_v24 = vpop.f32.mrb[38].mxu1  ;;  %v1404_v26 = vmax.f32 %v1372_v15, 0.0 }
 0x145   : > { %v2027_v18 = vpop.f32.mrb[39].mxu0  ;;  %v1167_v8 = vpop.f32.mrb[39].mxu1 }
 0x146   : > { %v1405_v27 = vmax.f32 %v1373_v21, 0.0  ;;  %v1157_v28 = vadd.f32 %v2123_v53, %v2025_v22  ;;  %v2028_v29 = vadd.f32 %v2027_v18, %v2026_v23 }
 0x148   : > { %v1901_v30 = vpack.c.bf16 %v1405_v27, %v1404_v26  ;;  %v1335_v32 = vmul.f32 %v2480_v58, %v1157_v28  ;;  %v1160_v33 = vadd.f32 %v2124_v61, %v2028_v29 }
 0x14a   : > { %1945 = vst [vmem:[%s2499_s9 + $0x40] sm:$0xff] %v1901_v30   ;;  %v1374_v34 = vadd.f32 %v2485_v62, %v1335_v32  ;;  %v1336_v35 = vmul.f32 %v2480_v58, %v1160_v33  ;;  %v2029_v38 = vpop.f32.mrb[40].mxu0  ;;  %v2131_v39 = vpop.f32.mrb[40].mxu1 }
 0x14b   : > { %v1189_v40 = vadd.f32 %v2131_v39, %v2465_v25  ;;  %v2030_v41 = vpop.f32.mrb[41].mxu0  ;;  %v1180_v44 = vpop.f32.mrb[41].mxu1 }
 0x14c   : > { %v1375_v45 = vadd.f32 %v2485_v62, %v1336_v35  ;;  %v2031_v46 = vadd.f32 %v2030_v41, %v2029_v38  ;;  %v1181_v47 = vadd.f32 %v2461_v13, %v1180_v44  ;;  %v2032_v36 = vpop.f32.mrb[42].mxu0  ;;  %v2132_v48 = vpop.f32.mrb[42].mxu1  ;;  %v1406_v50 = vmax.f32 %v1374_v34, 0.0 }
 0x14d   : > { %v1343_v51 = vmul.f32 %v2480_v58, %v1189_v40  ;;  %v1192_v52 = vadd.f32 %v2132_v48, %v2467_v31  ;;  %v2033_v53 = vpop.f32.mrb[43].mxu0  ;;  %v1183_v54 = vpop.f32.mrb[43].mxu1 }
 0x14e   : > { %v1407_v56 = vmax.f32 %v1375_v45, 0.0  ;;  %v1165_v57 = vadd.f32 %v2031_v46, %v1164_v20  ;;  %v1341_v25 = vmul.f32 %v2480_v58, %v1181_v47  ;;  %v2034_v42 = vadd.f32 %v2033_v53, %v2032_v36 }
 0x14f   : > { %v1382_v59 = vadd.f32 %v2485_v62, %v1343_v51  ;;  %v1344_v60 = vmul.f32 %v2480_v58, %v1192_v52  ;;  %v1184_v13 = vadd.f32 %v2463_v19, %v1183_v54 }
 0x150   : > { %v1906_v61 = vpack.c.bf16 %v1407_v56, %v1406_v50  ;;  %v1337_v0 = vmul.f32 %v2480_v58, %v1165_v57  ;;  %v1380_v1 = vadd.f32 %v2485_v62, %v1341_v25  ;;  %v1168_v31 = vadd.f32 %v2034_v42, %v1167_v8 }
 0x151   : > { %v1383_v2 = vadd.f32 %v2485_v62, %v1344_v60  ;;  %v1342_v3 = vmul.f32 %v2480_v58, %v1184_v13  ;;  %v1414_v4 = vmax.f32 %v1382_v59, 0.0 }
 0x152   : > { %1946 = vst [vmem:[%s2499_s9 + $0x48] sm:$0xff] %v1906_v61   ;;  %v1376_v5 = vadd.f32 %v2485_v62, %v1337_v0  ;;  %v1338_v6 = vmul.f32 %v2480_v58, %v1168_v31  ;;  %v2035_v7 = vpop.f32.mrb[44].mxu0  ;;  %v2135_v9 = vpop.f32.mrb[44].mxu1  ;;  %v1412_v10 = vmax.f32 %v1380_v1, 0.0 }
 0x153   : > { %v1415_v19 = vmax.f32 %v1383_v2, 0.0  ;;  %v1381_v11 = vadd.f32 %v2485_v62, %v1342_v3  ;;  %v1205_v14 = vadd.f32 %v2135_v9, %v2473_v49  ;;  %v2036_v15 = vpop.f32.mrb[45].mxu0  ;;  %v1196_v12 = vpop.f32.mrb[45].mxu1 }
 0x154   : > { %v1408_v16 = vmax.f32 %v1376_v5, 0.0  ;;  %v1377_v17 = vadd.f32 %v2485_v62, %v1338_v6  ;;  %v2037_v20 = vadd.f32 %v2036_v15, %v2035_v7  ;;  %v1197_v21 = vadd.f32 %v2469_v37, %v1196_v12  ;;  %v2038_v22 = vpop.f32.mrb[46].mxu0  ;;  %v2136_v23 = vpop.f32.mrb[46].mxu1 }
 0x155   : > { %v1926_v18 = vpack.c.bf16 %v1415_v19, %v1414_v4  ;;  %v1413_v8 = vmax.f32 %v1381_v11, 0.0  ;;  %v1347_v26 = vmul.f32 %v2480_v58, %v1205_v14  ;;  %v1208_v27 = vadd.f32 %v2136_v23, %v2475_v55  ;;  %v2039_v28 = vpop.f32.mrb[47].mxu0  ;;  %v1199_v49 = vpop.f32.mrb[47].mxu1 }
 0x156   : > { %v1409_v29 = vmax.f32 %v1377_v17, 0.0  ;;  %v1173_v30 = vadd.f32 %v2536_v63, %v2037_v20  ;;  %v1345_v32 = vmul.f32 %v2480_v58, %v1197_v21  ;;  %v2040_v33 = vadd.f32 %v2039_v28, %v2038_v22 }
 0x157   : > { %1950 = vst [vmem:[%s2499_s9 + $0x68] sm:$0xff] %v1926_v18   ;;  %v1921_v37 = vpack.c.bf16 %v1413_v8, %v1412_v10  ;;  %v1386_v34 = vadd.f32 %v2485_v62, %v1347_v26  ;;  %v1348_v35 = vmul.f32 %v2480_v58, %v1208_v27  ;;  %v1200_v38 = vadd.f32 %v2471_v43, %v1199_v49 }
 0x158   : > { %v1911_v39 = vpack.c.bf16 %v1409_v29, %v1408_v16  ;;  %v1339_v55 = vmul.f32 %v2480_v58, %v1173_v30  ;;  %v1176_v40 = vadd.f32 %v2539_v24, %v2040_v33  ;;  %v1384_v63 = vadd.f32 %v2485_v62, %v1345_v32 }
 0x159   : > { %1949 = vst [vmem:[%s2499_s9 + $0x60] sm:$0xff] %v1921_v37   ;;  %v1387_v41 = vadd.f32 %v2485_v62, %v1348_v35  ;;  %v1346_v44 = vmul.f32 %v2480_v58, %v1200_v38  ;;  %v1418_v46 = vmax.f32 %v1386_v34, 0.0 }
 0x15a   : > { %1947 = vst [vmem:[%s2499_s9 + $0x50] sm:$0xff] %v1911_v39   ;;  %v1378_v45 = vadd.f32 %v2485_v62, %v1339_v55  ;;  %v1340_v43 = vmul.f32 %v2480_v58, %v1176_v40  ;;  %v1416_v48 = vmax.f32 %v1384_v63, 0.0 }
 0x15b   : > { %v1419_v47 = vmax.f32 %v1387_v41, 0.0  ;;  %v1385_v36 = vadd.f32 %v2485_v62, %v1346_v44 }
 0x15c   : > { %v1379_v24 = vadd.f32 %v2485_v62, %v1340_v43  ;;  %v1410_v52 = vmax.f32 %v1378_v45, 0.0 }
 0x15d   : > { %v1936_v50 = vpack.c.bf16 %v1419_v47, %v1418_v46  ;;  %v1417_v51 = vmax.f32 %v1385_v36, 0.0 }
 0x15e   : > { %v1411_v53 = vmax.f32 %v1379_v24, 0.0 }
 0x15f   : > { %1952 = vst [vmem:[%s2499_s9 + $0x78] sm:$0xff] %v1936_v50   ;;  %v1931_v54 = vpack.c.bf16 %v1417_v51, %v1416_v48 }
 0x160   : > { %v1916_v56 = vpack.c.bf16 %v1411_v53, %v1410_v52 }
 0x161   : > { %1951 = vst [vmem:[%s2499_s9 + $0x70] sm:$0xff] %v1931_v54  }
 0x162   : > { %1948 = vst [vmem:[%s2499_s9 + $0x58] sm:$0xff] %v1916_v56  }
 0x163 PF: > { %s14_s17 = sadd.s32 1, %s2288_s17   ;;  %s2601_s15 = smov %s2284_s16 }
 0x164   : > { %p11_p5 = scmp.ge.s32.totalorder %s14_s17, 4   ;;  %s2602_s16 = smov %s2604_s18 }
 0x166   :  { %13 = sbr.rel (!%p11_p5) target bundleno = 2 (0x2), region = 83 }

// kernel: generator_forward.71
= control target key start
LH: loop header
LB: loop body
LE: loop exit
PB: predicated region body
PF: predicated region fallthrough
CT: control target
= control target key end

     0   :  { %s3784_s15 = smov 0   ;;  %s3786_s16 = smov 0   ;;  %s4440_s0 = inlined_call_operand.vmem [shape: bf16[2048,256], index: 0, kind: input, shape index: {}]   ;;  %s4441_s1 = inlined_call_operand.vmem [shape: bf16[256,128], index: 1, kind: input, shape index: {}]   ;;  %s4442_s2 = inlined_call_operand.vmem [shape: f32[1,128], index: 2, kind: input, shape index: {}]   ;;  %s4443_s3 = inlined_call_operand.vmem [shape: f32[1,128], index: 3, kind: input, shape index: {}]   ;;  %s4444_s4 = inlined_call_operand.vmem [shape: f32[2048,128], index: 4, kind: output, shape index: {}]  }
   0x1   :  { %s3788_s17 = smov 0  }
   0x2 LB: > { %s33_s18 = sadd.s32 1, %s3752_s16  ;;  %p3056_p0 = scmp.ge.s32.totalorder %s3756_s17, 1  ;;  %s3756_s17 = sphi %s3788_s17, %s14_s17   ;;  %s3752_s16 = sphi %s3786_s16, %s4446_s16   ;;  %s3748_s15 = sphi %s3784_s15, %s4445_s15  }
   0x3   : > { %p35_p1 = scmp.ge.s32.totalorder %s33_s18, 2  ;;  %p224_p2 = scmp.lt.s32.totalorder %s3756_s17, 3 }
   0x5   : > { %s4448_s18 = smov (%p35_p1, %s33_s18), 0  ;;  %p225_p3 = pnand %p3056_p0, %p224_p2 }
   0x6   : > { %v3268_v0 = vld [vmem:[%s4441_s1] sm:$0xff] (!%p225_p3)   ;;  %v3758_v1 = vmov (!%p225_p3), 0   ;;  %s3057_s21 = sshll.u32 (!%p225_p3), %s3748_s15, 7  ;;  %v3269_v2 = vld [vmem:[%s4441_s1 + $0x8] sm:$0xff] (!%p225_p3)   ;;  %v3270_v3 = vld [vmem:[%s4441_s1 + $0x10] sm:$0xff] (!%p225_p3)  }
   0x7   : > { %228 = sbr.rel (%p225_p3) target bundleno = 551 (0x227), region = 36  ;;  %1465 = vmatprep.subr.bf16.mxu0 (!%p225_p3), %v3758_v1  ;;  %3211 = vmatprep.subr.bf16.mxu1 (!%p225_p3), %v3758_v1  ;;  %p274_p4 = scmp.lt.s32.totalorder (!%p225_p3), %s3057_s21, 255  ;;  %v3271_v4 = vld [vmem:[%s4441_s1 + $0x18] sm:$0xff] (!%p225_p3)   ;;  %v3272_v5 = vld [vmem:[%s4441_s1 + $0x20] sm:$0xff] (!%p225_p3)   ;;  %v3273_v7 = vld [vmem:[%s4441_s1 + $0x28] sm:$0xff] (!%p225_p3)  }
   0x8   : > { %1466 = vmatpush1.bf16.msra.mxu0 (!%p225_p3), %v3268_v0  ;;  %3227 = vmatpush1.bf16.msra.mxu1 (!%p225_p3), %v3268_v0  ;;  %v3274_v9 = vld [vmem:[%s4441_s1 + $0x30] sm:$0xff] (!%p225_p3)   ;;  %v3275_v10 = vld [vmem:[%s4441_s1 + $0x38] sm:$0xff] (!%p225_p3)   ;;  %v3276_v11 = vld [vmem:[%s4441_s1 + $0x40] sm:$0xff] (!%p225_p3)  }
   0x9   : > { %1467 = vmatprep.subr.bf16.mxu0 (!%p225_p3), %v3758_v1  ;;  %3212 = vmatprep.subr.bf16.mxu1 (!%p225_p3), %v3758_v1  ;;  %v3277_v12 = vld [vmem:[%s4441_s1 + $0x48] sm:$0xff] (!%p225_p3)   ;;  %v3278_v13 = vld [vmem:[%s4441_s1 + $0x50] sm:$0xff] (!%p225_p3)   ;;  %v3279_v14 = vld [vmem:[%s4441_s1 + $0x58] sm:$0xff] (!%p225_p3)  }
   0xa   : > { %v3280_v15 = vld [vmem:[%s4441_s1 + $0x60] sm:$0xff] (!%p225_p3)   ;;  %v3281_v16 = vld [vmem:[%s4441_s1 + $0x68] sm:$0xff] (!%p225_p3)   ;;  %v3282_v17 = vld [vmem:[%s4441_s1 + $0x70] sm:$0xff] (!%p225_p3)  }
   0xb   : > { %v3283_v18 = vld [vmem:[%s4441_s1 + $0x78] sm:$0xff] (!%p225_p3)  }
   0xc   : > { %1468 = vmatpush1.bf16.msra.mxu0 (!%p225_p3), %v3269_v2  ;;  %3228 = vmatpush1.bf16.msra.mxu1 (!%p225_p3), %v3269_v2 }
   0xd   : > { %1469 = vmatprep.subr.bf16.mxu0 (!%p225_p3), %v3758_v1  ;;  %3213 = vmatprep.subr.bf16.mxu1 (!%p225_p3), %v3758_v1 }
   0xe   : > { %s4450_s21 = smov (!%p274_p4, %s3057_s21), 255 }
   0xf   : > { %s3210_s28 = sshll.u32 %s4450_s21, 3 }
  0x10   : > { %1470 = vmatpush1.bf16.msra.mxu0 %v3270_v3  ;;  %3229 = vmatpush1.bf16.msra.mxu1 %v3270_v3  ;;  %s3833_s7 = scalar_lea.vmem %s4440_s0, %s3210_s28  ;;  %s4039_s19 = scalar_lea.vmem %s4444_s4, %s3210_s28 }
  0x11   : > { %1471 = vmatprep.subr.bf16.mxu0 %v3758_v1  ;;  %3214 = vmatprep.subr.bf16.mxu1 %v3758_v1  ;;  %v3286_v6 = vld [vmem:[%s3833_s7 + $0x4] ss:$8 sps:$4 sm:$0xff]   ;;  %v3284_v19 = vld [vmem:[%s3833_s7] ss:$8 sps:$4 sm:$0xff]   ;;  %v3290_v21 = vld [vmem:[%s3833_s7 + $0x14] ss:$8 sps:$4 sm:$0xff]  }
  0x12   : > { %v3289_v8 = vld [vmem:[%s3833_s7 + $0x204] ss:$8 sps:$4 sm:$0xff]   ;;  %1497 = vmatprep.mubr.bf16.mxu0 %v3286_v6  ;;  %v3287_v20 = vld [vmem:[%s3833_s7 + $0x200] ss:$8 sps:$4 sm:$0xff]   ;;  %v3292_v22 = vld [vmem:[%s3833_s7 + $0x214] ss:$8 sps:$4 sm:$0xff]  }
  0x13   : > { %1753 = vmatprep.mubr.bf16.mxu1 %v3289_v8  ;;  %v3294_v23 = vld [vmem:[%s3833_s7 + $0x10] ss:$8 sps:$4 sm:$0xff]   ;;  %v3296_v25 = vld [vmem:[%s3833_s7 + $0x24] ss:$8 sps:$4 sm:$0xff]   ;;  %v3300_v27 = vld [vmem:[%s3833_s7 + $0x20] ss:$8 sps:$4 sm:$0xff]  }
  0x14   : > { %1472 = vmatpush1.bf16.msra.mxu0 %v3271_v4  ;;  %3230 = vmatpush1.bf16.msra.mxu1 %v3271_v4  ;;  %v3295_v24 = vld [vmem:[%s3833_s7 + $0x210] ss:$8 sps:$4 sm:$0xff]   ;;  %v3298_v26 = vld [vmem:[%s3833_s7 + $0x224] ss:$8 sps:$4 sm:$0xff]   ;;  %v3301_v28 = vld [vmem:[%s3833_s7 + $0x220] ss:$8 sps:$4 sm:$0xff]  }
  0x15   : > { %1473 = vmatprep.subr.bf16.mxu0 %v3758_v1  ;;  %3215 = vmatprep.subr.bf16.mxu1 %v3758_v1  ;;  %v3302_v29 = vld [vmem:[%s3833_s7 + $0x34] ss:$8 sps:$4 sm:$0xff]   ;;  %v3306_v31 = vld [vmem:[%s3833_s7 + $0x30] ss:$8 sps:$4 sm:$0xff]   ;;  %v3308_v33 = vld [vmem:[%s3833_s7 + $0x44] ss:$8 sps:$4 sm:$0xff]  }
  0x16   : > { %v3304_v30 = vld [vmem:[%s3833_s7 + $0x234] ss:$8 sps:$4 sm:$0xff]   ;;  %v3307_v32 = vld [vmem:[%s3833_s7 + $0x230] ss:$8 sps:$4 sm:$0xff]   ;;  %v3310_v34 = vld [vmem:[%s3833_s7 + $0x244] ss:$8 sps:$4 sm:$0xff]  }
  0x17   : > { %v3312_v35 = vld [vmem:[%s3833_s7 + $0x40] ss:$8 sps:$4 sm:$0xff]   ;;  %v3314_v37 = vld [vmem:[%s3833_s7 + $0x54] ss:$8 sps:$4 sm:$0xff]   ;;  %v3318_v39 = vld [vmem:[%s3833_s7 + $0x50] ss:$8 sps:$4 sm:$0xff]  }
  0x18   : > { %1474 = vmatpush1.bf16.msra.mxu0 %v3272_v5  ;;  %3231 = vmatpush1.bf16.msra.mxu1 %v3272_v5  ;;  %v3313_v36 = vld [vmem:[%s3833_s7 + $0x240] ss:$8 sps:$4 sm:$0xff]   ;;  %v3316_v38 = vld [vmem:[%s3833_s7 + $0x254] ss:$8 sps:$4 sm:$0xff]   ;;  %v3319_v40 = vld [vmem:[%s3833_s7 + $0x250] ss:$8 sps:$4 sm:$0xff]  }
  0x19   : > { %1475 = vmatprep.subr.bf16.mxu0 %v3758_v1  ;;  %3216 = vmatprep.subr.bf16.mxu1 %v3758_v1  ;;  %v3320_v41 = vld [vmem:[%s3833_s7 + $0x64] ss:$8 sps:$4 sm:$0xff]   ;;  %v3324_v43 = vld [vmem:[%s3833_s7 + $0x60] ss:$8 sps:$4 sm:$0xff]   ;;  %v3326_v45 = vld [vmem:[%s3833_s7 + $0x74] ss:$8 sps:$4 sm:$0xff]  }
  0x1a   : > { %v3322_v42 = vld [vmem:[%s3833_s7 + $0x264] ss:$8 sps:$4 sm:$0xff]   ;;  %v3325_v44 = vld [vmem:[%s3833_s7 + $0x260] ss:$8 sps:$4 sm:$0xff]   ;;  %v3328_v46 = vld [vmem:[%s3833_s7 + $0x274] ss:$8 sps:$4 sm:$0xff]  }
  0x1b   : > { %v3330_v47 = vld [vmem:[%s3833_s7 + $0x70] ss:$8 sps:$4 sm:$0xff]   ;;  %v3332_v49 = vld [vmem:[%s3833_s7 + $0x84] ss:$8 sps:$4 sm:$0xff]   ;;  %v3336_v51 = vld [vmem:[%s3833_s7 + $0x80] ss:$8 sps:$4 sm:$0xff]  }
  0x1c   : > { %1476 = vmatpush1.bf16.msra.mxu0 %v3273_v7  ;;  %3232 = vmatpush1.bf16.msra.mxu1 %v3273_v7  ;;  %v3331_v48 = vld [vmem:[%s3833_s7 + $0x270] ss:$8 sps:$4 sm:$0xff]   ;;  %v3334_v50 = vld [vmem:[%s3833_s7 + $0x284] ss:$8 sps:$4 sm:$0xff]   ;;  %v3337_v52 = vld [vmem:[%s3833_s7 + $0x280] ss:$8 sps:$4 sm:$0xff]  }
  0x1d   : > { %1477 = vmatprep.subr.bf16.mxu0 %v3758_v1  ;;  %3217 = vmatprep.subr.bf16.mxu1 %v3758_v1  ;;  %v3338_v53 = vld [vmem:[%s3833_s7 + $0x94] ss:$8 sps:$4 sm:$0xff]   ;;  %v3342_v55 = vld [vmem:[%s3833_s7 + $0x90] ss:$8 sps:$4 sm:$0xff]   ;;  %v3344_v57 = vld [vmem:[%s3833_s7 + $0xa4] ss:$8 sps:$4 sm:$0xff]  }
  0x1e   : > { %v3340_v54 = vld [vmem:[%s3833_s7 + $0x294] ss:$8 sps:$4 sm:$0xff]   ;;  %v3343_v56 = vld [vmem:[%s3833_s7 + $0x290] ss:$8 sps:$4 sm:$0xff]   ;;  %v3346_v58 = vld [vmem:[%s3833_s7 + $0x2a4] ss:$8 sps:$4 sm:$0xff]  }
  0x1f   : > { %v3348_v59 = vld [vmem:[%s3833_s7 + $0xa0] ss:$8 sps:$4 sm:$0xff]   ;;  %v3350_v61 = vld [vmem:[%s3833_s7 + $0xb4] ss:$8 sps:$4 sm:$0xff]   ;;  %v3354_v63 = vld [vmem:[%s3833_s7 + $0xb0] ss:$8 sps:$4 sm:$0xff]  }
  0x20   : > { %1478 = vmatpush1.bf16.msra.mxu0 %v3274_v9  ;;  %3233 = vmatpush1.bf16.msra.mxu1 %v3274_v9  ;;  %v3349_v60 = vld [vmem:[%s3833_s7 + $0x2a0] ss:$8 sps:$4 sm:$0xff]   ;;  %v3352_v62 = vld [vmem:[%s3833_s7 + $0x2b4] ss:$8 sps:$4 sm:$0xff]   ;;  %v3355_v0 = vld [vmem:[%s3833_s7 + $0x2b0] ss:$8 sps:$4 sm:$0xff]  }
  0x21   : > { %1479 = vmatprep.subr.bf16.mxu0 %v3758_v1  ;;  %3218 = vmatprep.subr.bf16.mxu1 %v3758_v1  ;;  %v3358_v2 = vld [vmem:[%s3833_s7 + $0x2c4] ss:$8 sps:$4 sm:$0xff]   ;;  %v3360_v3 = vld [vmem:[%s3833_s7 + $0xc0] ss:$8 sps:$4 sm:$0xff]   ;;  %v3362_v5 = vld [vmem:[%s3833_s7 + $0xd4] ss:$8 sps:$4 sm:$0xff]  }
  0x22   : > { %v3361_v4 = vld [vmem:[%s3833_s7 + $0x2c0] ss:$8 sps:$4 sm:$0xff]   ;;  %v3364_v6 = vld [vmem:[%s3833_s7 + $0x2d4] ss:$8 sps:$4 sm:$0xff]   ;;  %v3366_v7 = vld [vmem:[%s3833_s7 + $0xd0] ss:$8 sps:$4 sm:$0xff]  }
  0x23   : > { %v3367_v8 = vld [vmem:[%s3833_s7 + $0x2d0] ss:$8 sps:$4 sm:$0xff]   ;;  %v3368_v9 = vld [vmem:[%s3833_s7 + $0xe4] ss:$8 sps:$4 sm:$0xff]  }
  0x24   : > { %1480 = vmatpush1.bf16.msra.mxu0 %v3275_v10  ;;  %3234 = vmatpush1.bf16.msra.mxu1 %v3275_v10  ;;  %v3370_v10 = vld [vmem:[%s3833_s7 + $0x2e4] ss:$8 sps:$4 sm:$0xff]  }
  0x25   : > { %1481 = vmatprep.subr.bf16.mxu0 %v3758_v1  ;;  %3219 = vmatprep.subr.bf16.mxu1 %v3758_v1 }
  0x28   : > { %1482 = vmatpush1.bf16.msra.mxu0 %v3276_v11  ;;  %3235 = vmatpush1.bf16.msra.mxu1 %v3276_v11  ;;  %v3372_v11 = vld [vmem:[%s3833_s7 + $0xe0] ss:$8 sps:$4 sm:$0xff]  }
  0x29   : > { %1483 = vmatprep.subr.bf16.mxu0 %v3758_v1  ;;  %3220 = vmatprep.subr.bf16.mxu1 %v3758_v1 }
  0x2c   : > { %1484 = vmatpush1.bf16.msra.mxu0 %v3277_v12  ;;  %3236 = vmatpush1.bf16.msra.mxu1 %v3277_v12  ;;  %v3373_v12 = vld [vmem:[%s3833_s7 + $0x2e0] ss:$8 sps:$4 sm:$0xff]  }
  0x2d   : > { %1485 = vmatprep.subr.bf16.mxu0 %v3758_v1  ;;  %3221 = vmatprep.subr.bf16.mxu1 %v3758_v1 }
  0x30   : > { %1486 = vmatpush1.bf16.msra.mxu0 %v3278_v13  ;;  %3237 = vmatpush1.bf16.msra.mxu1 %v3278_v13  ;;  %v3374_v13 = vld [vmem:[%s3833_s7 + $0xf4] ss:$8 sps:$4 sm:$0xff]  }
  0x31   : > { %1487 = vmatprep.subr.bf16.mxu0 %v3758_v1  ;;  %3222 = vmatprep.subr.bf16.mxu1 %v3758_v1 }
  0x34   : > { %1488 = vmatpush1.bf16.msra.mxu0 %v3279_v14  ;;  %3238 = vmatpush1.bf16.msra.mxu1 %v3279_v14  ;;  %v3376_v14 = vld [vmem:[%s3833_s7 + $0x2f4] ss:$8 sps:$4 sm:$0xff]  }
  0x35   : > { %1489 = vmatprep.subr.bf16.mxu0 %v3758_v1  ;;  %3223 = vmatprep.subr.bf16.mxu1 %v3758_v1 }
  0x38   : > { %1490 = vmatpush1.bf16.msra.mxu0 %v3280_v15  ;;  %3239 = vmatpush1.bf16.msra.mxu1 %v3280_v15  ;;  %v3378_v15 = vld [vmem:[%s3833_s7 + $0xf0] ss:$8 sps:$4 sm:$0xff]  }
  0x39   : > { %1491 = vmatprep.subr.bf16.mxu0 %v3758_v1  ;;  %3224 = vmatprep.subr.bf16.mxu1 %v3758_v1 }
  0x3c   : > { %1492 = vmatpush1.bf16.msra.mxu0 %v3281_v16  ;;  %3240 = vmatpush1.bf16.msra.mxu1 %v3281_v16  ;;  %v3379_v16 = vld [vmem:[%s3833_s7 + $0x2f0] ss:$8 sps:$4 sm:$0xff]  }
  0x3d   : > { %1493 = vmatprep.subr.bf16.mxu0 %v3758_v1  ;;  %3225 = vmatprep.subr.bf16.mxu1 %v3758_v1 }
  0x40   : > { %1494 = vmatpush1.bf16.msra.mxu0 %v3282_v17  ;;  %3241 = vmatpush1.bf16.msra.mxu1 %v3282_v17  ;;  %v3380_v17 = vld [vmem:[%s3833_s7 + $0x104] ss:$8 sps:$4 sm:$0xff]  }
  0x41   : > { %1495 = vmatprep.subr.bf16.mxu0 %v3758_v1  ;;  %3226 = vmatprep.subr.bf16.mxu1 %v3758_v1  ;;  %v3356_v1 = vld [vmem:[%s3833_s7 + $0xc4] ss:$8 sps:$4 sm:$0xff]  }
  0x44   : > { %1496 = vmatpush1.bf16.msra.mxu0 %v3283_v18  ;;  %3242 = vmatpush1.bf16.msra.mxu1 %v3283_v18  ;;  %v3382_v18 = vld [vmem:[%s3833_s7 + $0x304] ss:$8 sps:$4 sm:$0xff]  }
  0x47   : > { %1498 = vmatmul.mubr.bf16.vlgmr.msra.gmra.mrb[0].mxu0 %v3284_v19  ;;  %1754 = vmatmul.mubr.bf16.vlgmr.msra.gmra.mrb[0].mxu1 %v3287_v20  ;;  %v3384_v19 = vld [vmem:[%s3833_s7 + $0x100] ss:$8 sps:$4 sm:$0xff]  }
  0x48   : > { %1505 = vmatprep.mubr.bf16.mxu0 %v3290_v21  ;;  %1761 = vmatprep.mubr.bf16.mxu1 %v3292_v22  ;;  %v3385_v20 = vld [vmem:[%s3833_s7 + $0x300] ss:$8 sps:$4 sm:$0xff]   ;;  %v3386_v21 = vld [vmem:[%s3833_s7 + $0x114] ss:$8 sps:$4 sm:$0xff]  }
  0x49   : > { %v3388_v22 = vld [vmem:[%s3833_s7 + $0x314] ss:$8 sps:$4 sm:$0xff]  }
  0x4f   : > { %1506 = vmatmul.mubr.bf16.gmra.mrb[4].mxu0 %v3294_v23  ;;  %1762 = vmatmul.mubr.bf16.gmra.mrb[4].mxu1 %v3295_v24  ;;  %v3390_v23 = vld [vmem:[%s3833_s7 + $0x110] ss:$8 sps:$4 sm:$0xff]  }
  0x50   : > { %1513 = vmatprep.mubr.bf16.mxu0 %v3296_v25  ;;  %1769 = vmatprep.mubr.bf16.mxu1 %v3298_v26  ;;  %v3391_v24 = vld [vmem:[%s3833_s7 + $0x310] ss:$8 sps:$4 sm:$0xff]   ;;  %v3392_v25 = vld [vmem:[%s3833_s7 + $0x124] ss:$8 sps:$4 sm:$0xff]  }
  0x51   : > { %v3394_v26 = vld [vmem:[%s3833_s7 + $0x324] ss:$8 sps:$4 sm:$0xff]  }
  0x57   : > { %1514 = vmatmul.mubr.bf16.gmra.mrb[8].mxu0 %v3300_v27  ;;  %1770 = vmatmul.mubr.bf16.gmra.mrb[8].mxu1 %v3301_v28  ;;  %v3396_v27 = vld [vmem:[%s3833_s7 + $0x120] ss:$8 sps:$4 sm:$0xff]  }
  0x58   : > { %1521 = vmatprep.mubr.bf16.mxu0 %v3302_v29  ;;  %1777 = vmatprep.mubr.bf16.mxu1 %v3304_v30  ;;  %v3397_v28 = vld [vmem:[%s3833_s7 + $0x320] ss:$8 sps:$4 sm:$0xff]   ;;  %v3398_v29 = vld [vmem:[%s3833_s7 + $0x134] ss:$8 sps:$4 sm:$0xff]  }
  0x59   : > { %v3400_v30 = vld [vmem:[%s3833_s7 + $0x334] ss:$8 sps:$4 sm:$0xff]  }
  0x5f   : > { %1522 = vmatmul.mubr.bf16.gmra.mrb[12].mxu0 %v3306_v31  ;;  %1778 = vmatmul.mubr.bf16.gmra.mrb[12].mxu1 %v3307_v32  ;;  %v3402_v31 = vld [vmem:[%s3833_s7 + $0x130] ss:$8 sps:$4 sm:$0xff]  }
  0x60   : > { %1529 = vmatprep.mubr.bf16.mxu0 %v3308_v33  ;;  %1785 = vmatprep.mubr.bf16.mxu1 %v3310_v34  ;;  %v3403_v32 = vld [vmem:[%s3833_s7 + $0x330] ss:$8 sps:$4 sm:$0xff]   ;;  %v3404_v33 = vld [vmem:[%s3833_s7 + $0x144] ss:$8 sps:$4 sm:$0xff]  }
  0x61   : > { %v3406_v34 = vld [vmem:[%s3833_s7 + $0x344] ss:$8 sps:$4 sm:$0xff]  }
  0x67   : > { %1530 = vmatmul.mubr.bf16.gmra.mrb[16].mxu0 %v3312_v35  ;;  %1786 = vmatmul.mubr.bf16.gmra.mrb[16].mxu1 %v3313_v36  ;;  %v3408_v35 = vld [vmem:[%s3833_s7 + $0x140] ss:$8 sps:$4 sm:$0xff]  }
  0x68   : > { %1537 = vmatprep.mubr.bf16.mxu0 %v3314_v37  ;;  %1793 = vmatprep.mubr.bf16.mxu1 %v3316_v38  ;;  %v3409_v36 = vld [vmem:[%s3833_s7 + $0x340] ss:$8 sps:$4 sm:$0xff]   ;;  %v3410_v37 = vld [vmem:[%s3833_s7 + $0x154] ss:$8 sps:$4 sm:$0xff]  }
  0x69   : > { %v3412_v38 = vld [vmem:[%s3833_s7 + $0x354] ss:$8 sps:$4 sm:$0xff]  }
  0x6f   : > { %1538 = vmatmul.mubr.bf16.gmra.mrb[20].mxu0 %v3318_v39  ;;  %1794 = vmatmul.mubr.bf16.gmra.mrb[20].mxu1 %v3319_v40  ;;  %v3414_v39 = vld [vmem:[%s3833_s7 + $0x150] ss:$8 sps:$4 sm:$0xff]  }
  0x70   : > { %1545 = vmatprep.mubr.bf16.mxu0 %v3320_v41  ;;  %1801 = vmatprep.mubr.bf16.mxu1 %v3322_v42  ;;  %v3415_v40 = vld [vmem:[%s3833_s7 + $0x350] ss:$8 sps:$4 sm:$0xff]   ;;  %v3416_v41 = vld [vmem:[%s3833_s7 + $0x164] ss:$8 sps:$4 sm:$0xff]  }
  0x71   : > { %v3418_v42 = vld [vmem:[%s3833_s7 + $0x364] ss:$8 sps:$4 sm:$0xff]  }
  0x77   : > { %1546 = vmatmul.mubr.bf16.gmra.mrb[24].mxu0 %v3324_v43  ;;  %1802 = vmatmul.mubr.bf16.gmra.mrb[24].mxu1 %v3325_v44  ;;  %v3420_v43 = vld [vmem:[%s3833_s7 + $0x160] ss:$8 sps:$4 sm:$0xff]  }
  0x78   : > { %1553 = vmatprep.mubr.bf16.mxu0 %v3326_v45  ;;  %1809 = vmatprep.mubr.bf16.mxu1 %v3328_v46  ;;  %v3421_v44 = vld [vmem:[%s3833_s7 + $0x360] ss:$8 sps:$4 sm:$0xff]   ;;  %v3422_v45 = vld [vmem:[%s3833_s7 + $0x174] ss:$8 sps:$4 sm:$0xff]  }
  0x79   : > { %v3424_v46 = vld [vmem:[%s3833_s7 + $0x374] ss:$8 sps:$4 sm:$0xff]  }
  0x7f   : > { %1554 = vmatmul.mubr.bf16.gmra.mrb[28].mxu0 %v3330_v47  ;;  %1810 = vmatmul.mubr.bf16.gmra.mrb[28].mxu1 %v3331_v48  ;;  %v3426_v47 = vld [vmem:[%s3833_s7 + $0x170] ss:$8 sps:$4 sm:$0xff]  }
  0x80   : > { %1561 = vmatprep.mubr.bf16.mxu0 %v3332_v49  ;;  %1817 = vmatprep.mubr.bf16.mxu1 %v3334_v50  ;;  %v3427_v48 = vld [vmem:[%s3833_s7 + $0x370] ss:$8 sps:$4 sm:$0xff]   ;;  %v3428_v49 = vld [vmem:[%s3833_s7 + $0x184] ss:$8 sps:$4 sm:$0xff]  }
  0x81   : > { %v3430_v50 = vld [vmem:[%s3833_s7 + $0x384] ss:$8 sps:$4 sm:$0xff]  }
  0x87   : > { %1562 = vmatmul.mubr.bf16.gmra.mrb[32].mxu0 %v3336_v51  ;;  %1818 = vmatmul.mubr.bf16.gmra.mrb[32].mxu1 %v3337_v52  ;;  %v3432_v51 = vld [vmem:[%s3833_s7 + $0x180] ss:$8 sps:$4 sm:$0xff]  }
  0x88   : > { %1569 = vmatprep.mubr.bf16.mxu0 %v3338_v53  ;;  %1825 = vmatprep.mubr.bf16.mxu1 %v3340_v54  ;;  %v3433_v52 = vld [vmem:[%s3833_s7 + $0x380] ss:$8 sps:$4 sm:$0xff]   ;;  %v3434_v53 = vld [vmem:[%s3833_s7 + $0x194] ss:$8 sps:$4 sm:$0xff]  }
  0x89   : > { %v3436_v54 = vld [vmem:[%s3833_s7 + $0x394] ss:$8 sps:$4 sm:$0xff]  }
  0x8f   : > { %1570 = vmatmul.mubr.bf16.gmra.mrb[36].mxu0 %v3342_v55  ;;  %1826 = vmatmul.mubr.bf16.gmra.mrb[36].mxu1 %v3343_v56  ;;  %v3438_v55 = vld [vmem:[%s3833_s7 + $0x190] ss:$8 sps:$4 sm:$0xff]  }
  0x90   : > { %1577 = vmatprep.mubr.bf16.mxu0 %v3344_v57  ;;  %1833 = vmatprep.mubr.bf16.mxu1 %v3346_v58  ;;  %v3439_v56 = vld [vmem:[%s3833_s7 + $0x390] ss:$8 sps:$4 sm:$0xff]   ;;  %v3440_v57 = vld [vmem:[%s3833_s7 + $0x1a4] ss:$8 sps:$4 sm:$0xff]  }
  0x91   : > { %v3442_v58 = vld [vmem:[%s3833_s7 + $0x3a4] ss:$8 sps:$4 sm:$0xff]  }
  0x97   : > { %1578 = vmatmul.mubr.bf16.gmra.mrb[40].mxu0 %v3348_v59  ;;  %1834 = vmatmul.mubr.bf16.gmra.mrb[40].mxu1 %v3349_v60  ;;  %v3444_v59 = vld [vmem:[%s3833_s7 + $0x1a0] ss:$8 sps:$4 sm:$0xff]  }
  0x98   : > { %1585 = vmatprep.mubr.bf16.mxu0 %v3350_v61  ;;  %1841 = vmatprep.mubr.bf16.mxu1 %v3352_v62  ;;  %v3445_v60 = vld [vmem:[%s3833_s7 + $0x3a0] ss:$8 sps:$4 sm:$0xff]   ;;  %v3446_v61 = vld [vmem:[%s3833_s7 + $0x1b4] ss:$8 sps:$4 sm:$0xff]  }
  0x99   : > { %v3448_v62 = vld [vmem:[%s3833_s7 + $0x3b4] ss:$8 sps:$4 sm:$0xff]  }
  0x9f   : > { %1586 = vmatmul.mubr.bf16.gmra.mrb[44].mxu0 %v3354_v63  ;;  %1842 = vmatmul.mubr.bf16.gmra.mrb[44].mxu1 %v3355_v0  ;;  %v4005_v63 = vld [vmem:[%s4442_s2] ss:$0 sm:$0xff] }
  0xa0   : > { %1593 = vmatprep.mubr.bf16.mxu0 %v3356_v1  ;;  %1849 = vmatprep.mubr.bf16.mxu1 %v3358_v2  ;;  %v4010_v1 = vld [vmem:[%s4443_s3] ss:$0 sm:$0xff] }
  0xa7   : > { %1594 = vmatmul.mubr.bf16.gmra.mrb[48].mxu0 %v3360_v3  ;;  %1850 = vmatmul.mubr.bf16.gmra.mrb[48].mxu1 %v3361_v4 }
  0xa8   : > { %1601 = vmatprep.mubr.bf16.mxu0 %v3362_v5  ;;  %1857 = vmatprep.mubr.bf16.mxu1 %v3364_v6 }
  0xaf   : > { %1602 = vmatmul.mubr.bf16.gmra.mrb[52].mxu0 %v3366_v7  ;;  %1858 = vmatmul.mubr.bf16.gmra.mrb[52].mxu1 %v3367_v8  ;;  %v3450_v7 = vld [vmem:[%s3833_s7 + $0x1b0] ss:$8 sps:$4 sm:$0xff]  }
  0xb0   : > { %1609 = vmatprep.mubr.bf16.mxu0 %v3368_v9  ;;  %1865 = vmatprep.mubr.bf16.mxu1 %v3370_v10  ;;  %v3451_v8 = vld [vmem:[%s3833_s7 + $0x3b0] ss:$8 sps:$4 sm:$0xff]  }
  0xb7   : > { %1610 = vmatmul.mubr.bf16.gmra.mrb[56].mxu0 %v3372_v11  ;;  %1866 = vmatmul.mubr.bf16.gmra.mrb[56].mxu1 %v3373_v12  ;;  %v3452_v11 = vld [vmem:[%s3833_s7 + $0x1c4] ss:$8 sps:$4 sm:$0xff]  }
  0xb8   : > { %1617 = vmatprep.mubr.bf16.mxu0 %v3374_v13  ;;  %1873 = vmatprep.mubr.bf16.mxu1 %v3376_v14  ;;  %v3454_v12 = vld [vmem:[%s3833_s7 + $0x3c4] ss:$8 sps:$4 sm:$0xff]  }
  0xbf   : > { %1618 = vmatmul.mubr.bf16.gmra.mrb[60].mxu0 %v3378_v15  ;;  %1874 = vmatmul.mubr.bf16.gmra.mrb[60].mxu1 %v3379_v16 }
  0xc0   : > { %1625 = vmatprep.mubr.bf16.mxu0 %v3380_v17  ;;  %1881 = vmatprep.mubr.bf16.mxu1 %v3382_v18 }
  0xc7   : > { %1626 = vmatmul.mubr.bf16.gmra.mrb[64].mxu0 %v3384_v19  ;;  %1882 = vmatmul.mubr.bf16.gmra.mrb[64].mxu1 %v3385_v20 }
  0xc8   : > { %1633 = vmatprep.mubr.bf16.mxu0 %v3386_v21  ;;  %1889 = vmatprep.mubr.bf16.mxu1 %v3388_v22 }
  0xcf   : > { %1634 = vmatmul.mubr.bf16.gmra.mrb[68].mxu0 %v3390_v23  ;;  %1890 = vmatmul.mubr.bf16.gmra.mrb[68].mxu1 %v3391_v24 }
  0xd0   : > { %1641 = vmatprep.mubr.bf16.mxu0 %v3392_v25  ;;  %1897 = vmatprep.mubr.bf16.mxu1 %v3394_v26 }
  0xd7   : > { %1642 = vmatmul.mubr.bf16.gmra.mrb[72].mxu0 %v3396_v27  ;;  %1898 = vmatmul.mubr.bf16.gmra.mrb[72].mxu1 %v3397_v28  ;;  %v3456_v27 = vld [vmem:[%s3833_s7 + $0x1c0] ss:$8 sps:$4 sm:$0xff]  }
  0xd8   : > { %1649 = vmatprep.mubr.bf16.mxu0 %v3398_v29  ;;  %1905 = vmatprep.mubr.bf16.mxu1 %v3400_v30  ;;  %v3457_v28 = vld [vmem:[%s3833_s7 + $0x3c0] ss:$8 sps:$4 sm:$0xff]  }
  0xdf   : > { %1650 = vmatmul.mubr.bf16.gmra.mrb[76].mxu0 %v3402_v31  ;;  %1906 = vmatmul.mubr.bf16.gmra.mrb[76].mxu1 %v3403_v32  ;;  %v3458_v31 = vld [vmem:[%s3833_s7 + $0x1d4] ss:$8 sps:$4 sm:$0xff]  }
  0xe0   : > { %1657 = vmatprep.mubr.bf16.mxu0 %v3404_v33  ;;  %1913 = vmatprep.mubr.bf16.mxu1 %v3406_v34  ;;  %v3460_v32 = vld [vmem:[%s3833_s7 + $0x3d4] ss:$8 sps:$4 sm:$0xff]  }
  0xe7   : > { %1658 = vmatmul.mubr.bf16.gmra.mrb[80].mxu0 %v3408_v35  ;;  %1914 = vmatmul.mubr.bf16.gmra.mrb[80].mxu1 %v3409_v36 }
  0xe8   : > { %1665 = vmatprep.mubr.bf16.mxu0 %v3410_v37  ;;  %1921 = vmatprep.mubr.bf16.mxu1 %v3412_v38 }
  0xef   : > { %1666 = vmatmul.mubr.bf16.gmra.mrb[84].mxu0 %v3414_v39  ;;  %1922 = vmatmul.mubr.bf16.gmra.mrb[84].mxu1 %v3415_v40 }
  0xf0   : > { %1673 = vmatprep.mubr.bf16.mxu0 %v3416_v41  ;;  %1929 = vmatprep.mubr.bf16.mxu1 %v3418_v42 }
  0xf7   : > { %1674 = vmatmul.mubr.bf16.gmra.mrb[88].mxu0 %v3420_v43  ;;  %1930 = vmatmul.mubr.bf16.gmra.mrb[88].mxu1 %v3421_v44 }
  0xf8   : > { %1681 = vmatprep.mubr.bf16.mxu0 %v3422_v45  ;;  %1937 = vmatprep.mubr.bf16.mxu1 %v3424_v46 }
  0xff   : > { %1682 = vmatmul.mubr.bf16.gmra.mrb[92].mxu0 %v3426_v47  ;;  %1938 = vmatmul.mubr.bf16.gmra.mrb[92].mxu1 %v3427_v48 }
 0x100   : > { %1689 = vmatprep.mubr.bf16.mxu0 %v3428_v49  ;;  %1945 = vmatprep.mubr.bf16.mxu1 %v3430_v50  ;;  %v3462_v50 = vld [vmem:[%s3833_s7 + $0x1d0] ss:$8 sps:$4 sm:$0xff]  }
 0x107   : > { %1690 = vmatmul.mubr.bf16.gmra.mrb[96].mxu0 %v3432_v51  ;;  %1946 = vmatmul.mubr.bf16.gmra.mrb[96].mxu1 %v3433_v52  ;;  %v3463_v51 = vld [vmem:[%s3833_s7 + $0x3d0] ss:$8 sps:$4 sm:$0xff]  }
 0x108   : > { %1697 = vmatprep.mubr.bf16.mxu0 %v3434_v53  ;;  %1953 = vmatprep.mubr.bf16.mxu1 %v3436_v54 }
 0x10f   : > { %1698 = vmatmul.mubr.bf16.gmra.mrb[100].mxu0 %v3438_v55  ;;  %1954 = vmatmul.mubr.bf16.gmra.mrb[100].mxu1 %v3439_v56  ;;  %v3464_v55 = vld [vmem:[%s3833_s7 + $0x1e4] ss:$8 sps:$4 sm:$0xff]  }
 0x110   : > { %1705 = vmatprep.mubr.bf16.mxu0 %v3440_v57  ;;  %1961 = vmatprep.mubr.bf16.mxu1 %v3442_v58  ;;  %v3466_v56 = vld [vmem:[%s3833_s7 + $0x3e4] ss:$8 sps:$4 sm:$0xff]  }
 0x117   : > { %1706 = vmatmul.mubr.bf16.gmra.mrb[104].mxu0 %v3444_v59  ;;  %1962 = vmatmul.mubr.bf16.gmra.mrb[104].mxu1 %v3445_v60 }
 0x118   : > { %1713 = vmatprep.mubr.bf16.mxu0 %v3446_v61  ;;  %1969 = vmatprep.mubr.bf16.mxu1 %v3448_v62 }
 0x11a   : > { %v1499_v0 = vpop.f32.mrb[0].mxu0  ;;  %v1755_v2 = vpop.f32.mrb[0].mxu1 }
 0x11b   : > { %v2404_v3 = vmul.f32 %v4005_v63, %v1499_v0  ;;  %v2468_v4 = vmul.f32 %v4005_v63, %v1755_v2  ;;  %v1501_v5 = vpop.f32.mrb[1].mxu0  ;;  %v1757_v6 = vpop.f32.mrb[1].mxu1 }
 0x11c   : > { %v1502_v9 = vpop.f32.mrb[2].mxu0  ;;  %v1758_v10 = vpop.f32.mrb[2].mxu1 }
 0x11d   : > { %v2539_v13 = vadd.f32 %v4010_v1, %v2404_v3  ;;  %v2603_v14 = vadd.f32 %v4010_v1, %v2468_v4  ;;  %v2405_v15 = vmul.f32 %v4005_v63, %v1502_v9  ;;  %v2469_v16 = vmul.f32 %v4005_v63, %v1758_v10  ;;  %v1504_v17 = vpop.f32.mrb[3].mxu0  ;;  %v1760_v18 = vpop.f32.mrb[3].mxu1 }
 0x11e   : > { %v3470_v17 = vld [vmem:[%s3833_s7 + $0x1f4] ss:$8 sps:$4 sm:$0xff]  }
 0x11f   : > { %3476 = vtanh.f32 %v2539_v13  ;;  %v2540_v19 = vadd.f32 %v4010_v1, %v2405_v15  ;;  %v2604_v20 = vadd.f32 %v4010_v1, %v2469_v16  ;;  %1714 = vmatmul.mubr.bf16.gmra.mrb[108].mxu0 %v3450_v7  ;;  %1970 = vmatmul.mubr.bf16.gmra.mrb[108].mxu1 %v3451_v8  ;;  %v3469_v13 = vld [vmem:[%s3833_s7 + $0x3e0] ss:$8 sps:$4 sm:$0xff]   ;;  %v3472_v18 = vld [vmem:[%s3833_s7 + $0x3f4] ss:$8 sps:$4 sm:$0xff]  }
 0x120   : > { %3478 = vtanh.f32 %v2603_v14  ;;  %1721 = vmatprep.mubr.bf16.mxu0 %v3452_v11  ;;  %1977 = vmatprep.mubr.bf16.mxu1 %v3454_v12  ;;  %v3468_v12 = vld [vmem:[%s3833_s7 + $0x1e0] ss:$8 sps:$4 sm:$0xff]  }
 0x121   : > { %3480 = vtanh.f32 %v2540_v19 }
 0x122   : > { %3482 = vtanh.f32 %v2604_v20  ;;  %v1507_v21 = vpop.f32.mrb[4].mxu0  ;;  %v1763_v22 = vpop.f32.mrb[4].mxu1 }
 0x123   : > { %v2406_v23 = vmul.f32 %v4005_v63, %v1507_v21  ;;  %v2470_v24 = vmul.f32 %v4005_v63, %v1763_v22  ;;  %v1509_v25 = vpop.f32.mrb[5].mxu0  ;;  %v1765_v26 = vpop.f32.mrb[5].mxu1 }
 0x124   : > { %v1510_v29 = vpop.f32.mrb[6].mxu0  ;;  %v1766_v30 = vpop.f32.mrb[6].mxu1 }
 0x125   : > { %v2541_v33 = vadd.f32 %v4010_v1, %v2406_v23  ;;  %v2605_v34 = vadd.f32 %v4010_v1, %v2470_v24  ;;  %v2407_v35 = vmul.f32 %v4005_v63, %v1510_v29  ;;  %v2471_v36 = vmul.f32 %v4005_v63, %v1766_v30  ;;  %v1512_v37 = vpop.f32.mrb[7].mxu0  ;;  %v1768_v38 = vpop.f32.mrb[7].mxu1 }
 0x126   : > { %v3475_v37 = vld [vmem:[%s3833_s7 + $0x3f0] ss:$8 sps:$4 sm:$0xff]  }
 0x127   : > { %3484 = vtanh.f32 %v2541_v33  ;;  %v2542_v39 = vadd.f32 %v4010_v1, %v2407_v35  ;;  %v2606_v40 = vadd.f32 %v4010_v1, %v2471_v36  ;;  %1722 = vmatmul.mubr.bf16.gmra.mrb[112].mxu0 %v3456_v27  ;;  %1978 = vmatmul.mubr.bf16.gmra.mrb[112].mxu1 %v3457_v28  ;;  %v3474_v36 = vld [vmem:[%s3833_s7 + $0x1f0] ss:$8 sps:$4 sm:$0xff]  }
 0x128   : > { %3486 = vtanh.f32 %v2605_v34  ;;  %1729 = vmatprep.mubr.bf16.mxu0 %v3458_v31  ;;  %1985 = vmatprep.mubr.bf16.mxu1 %v3460_v32 }
 0x129   : > { %v3477_v41 = vpop.eup %3476  ;;  %3488 = vtanh.f32 %v2542_v39 }
 0x12a   : > { %v3479_v42 = vpop.eup %3478  ;;  %2795 = vst [vmem:[%s4039_s19] sm:$0xff] %v3477_v41  ;;  %3490 = vtanh.f32 %v2606_v40  ;;  %v1515_v43 = vpop.f32.mrb[8].mxu0 }
 0x12b   : > { %v1771_v44 = vpop.f32.mrb[8].mxu1  ;;  %v3481_v45 = vpop.eup %3480  ;;  %2859 = vst [vmem:[%s4039_s19 + $0x200] sm:$0xff] %v3479_v42  ;;  %v2408_v46 = vmul.f32 %v4005_v63, %v1515_v43 }
 0x12c   : > { %v2472_v47 = vmul.f32 %v4005_v63, %v1771_v44  ;;  %v1517_v48 = vpop.f32.mrb[9].mxu0  ;;  %v1773_v49 = vpop.f32.mrb[9].mxu1  ;;  %2796 = vst [vmem:[%s4039_s19 + $0x8] sm:$0xff] %v3481_v45 }
 0x12d   : > { %v3483_v52 = vpop.eup %3482  ;;  %v1518_v53 = vpop.f32.mrb[10].mxu0  ;;  %v2543_v57 = vadd.f32 %v4010_v1, %v2408_v46 }
 0x12e   : > { %v1774_v54 = vpop.f32.mrb[10].mxu1  ;;  %2860 = vst [vmem:[%s4039_s19 + $0x208] sm:$0xff] %v3483_v52  ;;  %v2607_v58 = vadd.f32 %v4010_v1, %v2472_v47  ;;  %v2409_v59 = vmul.f32 %v4005_v63, %v1518_v53  ;;  %v1520_v61 = vpop.f32.mrb[11].mxu0 }
 0x12f   : > { %v2473_v60 = vmul.f32 %v4005_v63, %v1774_v54  ;;  %v1776_v62 = vpop.f32.mrb[11].mxu1  ;;  %3492 = vtanh.f32 %v2543_v57  ;;  %1730 = vmatmul.mubr.bf16.gmra.mrb[116].mxu0 %v3462_v50  ;;  %1986 = vmatmul.mubr.bf16.gmra.mrb[116].mxu1 %v3463_v51 }
 0x130   : > { %v2544_v0 = vadd.f32 %v4010_v1, %v2409_v59  ;;  %3494 = vtanh.f32 %v2607_v58  ;;  %1737 = vmatprep.mubr.bf16.mxu0 %v3464_v55  ;;  %1993 = vmatprep.mubr.bf16.mxu1 %v3466_v56 }
 0x131   : > { %v2608_v2 = vadd.f32 %v4010_v1, %v2473_v60  ;;  %v3485_v3 = vpop.eup %3484 }
 0x132   : > { %3496 = vtanh.f32 %v2544_v0  ;;  %v3487_v4 = vpop.eup %3486  ;;  %2797 = vst [vmem:[%s4039_s19 + $0x10] sm:$0xff] %v3485_v3  ;;  %v1523_v5 = vpop.f32.mrb[12].mxu0 }
 0x133   : > { %3498 = vtanh.f32 %v2608_v2  ;;  %v1779_v6 = vpop.f32.mrb[12].mxu1  ;;  %v3489_v7 = vpop.eup %3488  ;;  %2861 = vst [vmem:[%s4039_s19 + $0x210] sm:$0xff] %v3487_v4  ;;  %v2410_v8 = vmul.f32 %v4005_v63, %v1523_v5 }
 0x134   : > { %v2474_v9 = vmul.f32 %v4005_v63, %v1779_v6  ;;  %v1525_v10 = vpop.f32.mrb[13].mxu0  ;;  %v1781_v11 = vpop.f32.mrb[13].mxu1  ;;  %2798 = vst [vmem:[%s4039_s19 + $0x18] sm:$0xff] %v3489_v7 }
 0x135   : > { %v3491_v14 = vpop.eup %3490  ;;  %v1526_v15 = vpop.f32.mrb[14].mxu0  ;;  %v2545_v19 = vadd.f32 %v4010_v1, %v2410_v8 }
 0x136   : > { %v1782_v16 = vpop.f32.mrb[14].mxu1  ;;  %2862 = vst [vmem:[%s4039_s19 + $0x218] sm:$0xff] %v3491_v14  ;;  %v2609_v20 = vadd.f32 %v4010_v1, %v2474_v9  ;;  %v2411_v21 = vmul.f32 %v4005_v63, %v1526_v15  ;;  %v1528_v23 = vpop.f32.mrb[15].mxu0 }
 0x137   : > { %v2475_v22 = vmul.f32 %v4005_v63, %v1782_v16  ;;  %v1784_v24 = vpop.f32.mrb[15].mxu1  ;;  %3500 = vtanh.f32 %v2545_v19  ;;  %1738 = vmatmul.mubr.bf16.gmra.mrb[120].mxu0 %v3468_v12  ;;  %1994 = vmatmul.mubr.bf16.gmra.mrb[120].mxu1 %v3469_v13 }
 0x138   : > { %v2546_v25 = vadd.f32 %v4010_v1, %v2411_v21  ;;  %3502 = vtanh.f32 %v2609_v20  ;;  %1745 = vmatprep.mubr.bf16.mxu0 %v3470_v17  ;;  %2001 = vmatprep.mubr.bf16.mxu1 %v3472_v18 }
 0x139   : > { %v2610_v26 = vadd.f32 %v4010_v1, %v2475_v22  ;;  %v3493_v27 = vpop.eup %3492 }
 0x13a   : > { %3504 = vtanh.f32 %v2546_v25  ;;  %v3495_v28 = vpop.eup %3494  ;;  %2799 = vst [vmem:[%s4039_s19 + $0x20] sm:$0xff] %v3493_v27  ;;  %v1531_v29 = vpop.f32.mrb[16].mxu0 }
 0x13b   : > { %3506 = vtanh.f32 %v2610_v26  ;;  %v1787_v30 = vpop.f32.mrb[16].mxu1  ;;  %2863 = vst [vmem:[%s4039_s19 + $0x220] sm:$0xff] %v3495_v28  ;;  %v2412_v32 = vmul.f32 %v4005_v63, %v1531_v29  ;;  %v1533_v34 = vpop.f32.mrb[17].mxu0 }
 0x13c   : > { %v3497_v31 = vpop.eup %3496  ;;  %v2476_v33 = vmul.f32 %v4005_v63, %v1787_v30  ;;  %v1789_v35 = vpop.f32.mrb[17].mxu1 }
 0x13d   : > { %v3499_v38 = vpop.eup %3498  ;;  %2800 = vst [vmem:[%s4039_s19 + $0x28] sm:$0xff] %v3497_v31  ;;  %v1534_v39 = vpop.f32.mrb[18].mxu0  ;;  %v2547_v41 = vadd.f32 %v4010_v1, %v2412_v32 }
 0x13e   : > { %v1790_v40 = vpop.f32.mrb[18].mxu1  ;;  %2864 = vst [vmem:[%s4039_s19 + $0x228] sm:$0xff] %v3499_v38  ;;  %v2611_v42 = vadd.f32 %v4010_v1, %v2476_v33  ;;  %v2413_v43 = vmul.f32 %v4005_v63, %v1534_v39  ;;  %v1536_v45 = vpop.f32.mrb[19].mxu0 }
 0x13f   : > { %v2477_v44 = vmul.f32 %v4005_v63, %v1790_v40  ;;  %v1792_v46 = vpop.f32.mrb[19].mxu1  ;;  %3508 = vtanh.f32 %v2547_v41  ;;  %1746 = vmatmul.mubr.bf16.gmra.mrb[124].mxu0 %v3474_v36  ;;  %2002 = vmatmul.mubr.bf16.gmra.mrb[124].mxu1 %v3475_v37 }
 0x140   : > { %v2548_v47 = vadd.f32 %v4010_v1, %v2413_v43  ;;  %3510 = vtanh.f32 %v2611_v42 }
 0x141   : > { %v2612_v48 = vadd.f32 %v4010_v1, %v2477_v44  ;;  %v3501_v49 = vpop.eup %3500 }
 0x142   : > { %3512 = vtanh.f32 %v2548_v47  ;;  %v3503_v50 = vpop.eup %3502  ;;  %2801 = vst [vmem:[%s4039_s19 + $0x30] sm:$0xff] %v3501_v49  ;;  %v1539_v51 = vpop.f32.mrb[20].mxu0 }
 0x143   : > { %3514 = vtanh.f32 %v2612_v48  ;;  %v1795_v52 = vpop.f32.mrb[20].mxu1  ;;  %2865 = vst [vmem:[%s4039_s19 + $0x230] sm:$0xff] %v3503_v50  ;;  %v2414_v54 = vmul.f32 %v4005_v63, %v1539_v51  ;;  %v1541_v56 = vpop.f32.mrb[21].mxu0 }
 0x144   : > { %v3505_v53 = vpop.eup %3504  ;;  %v2478_v55 = vmul.f32 %v4005_v63, %v1795_v52  ;;  %v1797_v57 = vpop.f32.mrb[21].mxu1 }
 0x145   : > { %v3507_v58 = vpop.eup %3506  ;;  %2802 = vst [vmem:[%s4039_s19 + $0x38] sm:$0xff] %v3505_v53  ;;  %v1542_v59 = vpop.f32.mrb[22].mxu0  ;;  %v2549_v61 = vadd.f32 %v4010_v1, %v2414_v54 }
 0x146   : > { %v1798_v60 = vpop.f32.mrb[22].mxu1  ;;  %2866 = vst [vmem:[%s4039_s19 + $0x238] sm:$0xff] %v3507_v58  ;;  %v2613_v62 = vadd.f32 %v4010_v1, %v2478_v55  ;;  %v2415_v0 = vmul.f32 %v4005_v63, %v1542_v59  ;;  %v1544_v3 = vpop.f32.mrb[23].mxu0 }
 0x147   : > { %v2479_v2 = vmul.f32 %v4005_v63, %v1798_v60  ;;  %v1800_v4 = vpop.f32.mrb[23].mxu1  ;;  %3516 = vtanh.f32 %v2549_v61 }
 0x148   : > { %v2550_v5 = vadd.f32 %v4010_v1, %v2415_v0  ;;  %3518 = vtanh.f32 %v2613_v62 }
 0x149   : > { %v2614_v6 = vadd.f32 %v4010_v1, %v2479_v2  ;;  %v3509_v7 = vpop.eup %3508 }
 0x14a   : > { %3520 = vtanh.f32 %v2550_v5  ;;  %v3511_v8 = vpop.eup %3510  ;;  %2803 = vst [vmem:[%s4039_s19 + $0x40] sm:$0xff] %v3509_v7  ;;  %v1547_v9 = vpop.f32.mrb[24].mxu0 }
 0x14b   : > { %3522 = vtanh.f32 %v2614_v6  ;;  %v1803_v10 = vpop.f32.mrb[24].mxu1  ;;  %2867 = vst [vmem:[%s4039_s19 + $0x240] sm:$0xff] %v3511_v8  ;;  %v2416_v12 = vmul.f32 %v4005_v63, %v1547_v9  ;;  %v1549_v14 = vpop.f32.mrb[25].mxu0 }
 0x14c   : > { %v3513_v11 = vpop.eup %3512  ;;  %v2480_v13 = vmul.f32 %v4005_v63, %v1803_v10  ;;  %v1805_v15 = vpop.f32.mrb[25].mxu1 }
 0x14d   : > { %v3515_v16 = vpop.eup %3514  ;;  %2804 = vst [vmem:[%s4039_s19 + $0x48] sm:$0xff] %v3513_v11  ;;  %v1550_v17 = vpop.f32.mrb[26].mxu0  ;;  %v2551_v19 = vadd.f32 %v4010_v1, %v2416_v12 }
 0x14e   : > { %v1806_v18 = vpop.f32.mrb[26].mxu1  ;;  %2868 = vst [vmem:[%s4039_s19 + $0x248] sm:$0xff] %v3515_v16  ;;  %v2615_v20 = vadd.f32 %v4010_v1, %v2480_v13  ;;  %v2417_v21 = vmul.f32 %v4005_v63, %v1550_v17  ;;  %v1552_v23 = vpop.f32.mrb[27].mxu0 }
 0x14f   : > { %v2481_v22 = vmul.f32 %v4005_v63, %v1806_v18  ;;  %v1808_v24 = vpop.f32.mrb[27].mxu1  ;;  %3524 = vtanh.f32 %v2551_v19 }
 0x150   : > { %v2552_v25 = vadd.f32 %v4010_v1, %v2417_v21  ;;  %3526 = vtanh.f32 %v2615_v20 }
 0x151   : > { %v2616_v26 = vadd.f32 %v4010_v1, %v2481_v22  ;;  %v3517_v27 = vpop.eup %3516 }
 0x152   : > { %3528 = vtanh.f32 %v2552_v25  ;;  %v3519_v28 = vpop.eup %3518  ;;  %2805 = vst [vmem:[%s4039_s19 + $0x50] sm:$0xff] %v3517_v27  ;;  %v1555_v29 = vpop.f32.mrb[28].mxu0 }
 0x153   : > { %3530 = vtanh.f32 %v2616_v26  ;;  %v1811_v30 = vpop.f32.mrb[28].mxu1  ;;  %2869 = vst [vmem:[%s4039_s19 + $0x250] sm:$0xff] %v3519_v28  ;;  %v2418_v32 = vmul.f32 %v4005_v63, %v1555_v29  ;;  %v1557_v34 = vpop.f32.mrb[29].mxu0 }
 0x154   : > { %v3521_v31 = vpop.eup %3520  ;;  %v2482_v33 = vmul.f32 %v4005_v63, %v1811_v30  ;;  %v1813_v35 = vpop.f32.mrb[29].mxu1 }
 0x155   : > { %v3523_v36 = vpop.eup %3522  ;;  %2806 = vst [vmem:[%s4039_s19 + $0x58] sm:$0xff] %v3521_v31  ;;  %v1558_v37 = vpop.f32.mrb[30].mxu0  ;;  %v2553_v39 = vadd.f32 %v4010_v1, %v2418_v32 }
 0x156   : > { %v1814_v38 = vpop.f32.mrb[30].mxu1  ;;  %2870 = vst [vmem:[%s4039_s19 + $0x258] sm:$0xff] %v3523_v36  ;;  %v2617_v40 = vadd.f32 %v4010_v1, %v2482_v33  ;;  %v2419_v41 = vmul.f32 %v4005_v63, %v1558_v37  ;;  %v1560_v43 = vpop.f32.mrb[31].mxu0 }
 0x157   : > { %v2483_v42 = vmul.f32 %v4005_v63, %v1814_v38  ;;  %v1816_v44 = vpop.f32.mrb[31].mxu1  ;;  %3532 = vtanh.f32 %v2553_v39 }
 0x158   : > { %v2554_v45 = vadd.f32 %v4010_v1, %v2419_v41  ;;  %3534 = vtanh.f32 %v2617_v40 }
 0x159   : > { %v2618_v46 = vadd.f32 %v4010_v1, %v2483_v42  ;;  %v3525_v47 = vpop.eup %3524 }
 0x15a   : > { %3536 = vtanh.f32 %v2554_v45  ;;  %v3527_v48 = vpop.eup %3526  ;;  %2807 = vst [vmem:[%s4039_s19 + $0x60] sm:$0xff] %v3525_v47  ;;  %v1563_v49 = vpop.f32.mrb[32].mxu0 }
 0x15b   : > { %3538 = vtanh.f32 %v2618_v46  ;;  %v1819_v50 = vpop.f32.mrb[32].mxu1  ;;  %2871 = vst [vmem:[%s4039_s19 + $0x260] sm:$0xff] %v3527_v48  ;;  %v2420_v52 = vmul.f32 %v4005_v63, %v1563_v49  ;;  %v1565_v54 = vpop.f32.mrb[33].mxu0 }
 0x15c   : > { %v3529_v51 = vpop.eup %3528  ;;  %v2484_v53 = vmul.f32 %v4005_v63, %v1819_v50  ;;  %v1821_v55 = vpop.f32.mrb[33].mxu1 }
 0x15d   : > { %v3531_v56 = vpop.eup %3530  ;;  %2808 = vst [vmem:[%s4039_s19 + $0x68] sm:$0xff] %v3529_v51  ;;  %v1566_v57 = vpop.f32.mrb[34].mxu0  ;;  %v2555_v59 = vadd.f32 %v4010_v1, %v2420_v52 }
 0x15e   : > { %v1822_v58 = vpop.f32.mrb[34].mxu1  ;;  %2872 = vst [vmem:[%s4039_s19 + $0x268] sm:$0xff] %v3531_v56  ;;  %v2619_v60 = vadd.f32 %v4010_v1, %v2484_v53  ;;  %v2421_v61 = vmul.f32 %v4005_v63, %v1566_v57  ;;  %v1568_v0 = vpop.f32.mrb[35].mxu0 }
 0x15f   : > { %v2485_v62 = vmul.f32 %v4005_v63, %v1822_v58  ;;  %v1824_v2 = vpop.f32.mrb[35].mxu1  ;;  %3540 = vtanh.f32 %v2555_v59 }
 0x160   : > { %v2556_v3 = vadd.f32 %v4010_v1, %v2421_v61  ;;  %3542 = vtanh.f32 %v2619_v60 }
 0x161   : > { %v2620_v4 = vadd.f32 %v4010_v1, %v2485_v62  ;;  %v3533_v5 = vpop.eup %3532 }
 0x162   : > { %3544 = vtanh.f32 %v2556_v3  ;;  %v3535_v6 = vpop.eup %3534  ;;  %2809 = vst [vmem:[%s4039_s19 + $0x70] sm:$0xff] %v3533_v5  ;;  %v1571_v7 = vpop.f32.mrb[36].mxu0 }
 0x163   : > { %3546 = vtanh.f32 %v2620_v4  ;;  %v1827_v8 = vpop.f32.mrb[36].mxu1  ;;  %2873 = vst [vmem:[%s4039_s19 + $0x270] sm:$0xff] %v3535_v6  ;;  %v2422_v10 = vmul.f32 %v4005_v63, %v1571_v7  ;;  %v1573_v12 = vpop.f32.mrb[37].mxu0 }
 0x164   : > { %v3537_v9 = vpop.eup %3536  ;;  %v2486_v11 = vmul.f32 %v4005_v63, %v1827_v8  ;;  %v1829_v13 = vpop.f32.mrb[37].mxu1 }
 0x165   : > { %v3539_v14 = vpop.eup %3538  ;;  %2810 = vst [vmem:[%s4039_s19 + $0x78] sm:$0xff] %v3537_v9  ;;  %v1574_v15 = vpop.f32.mrb[38].mxu0  ;;  %v2557_v17 = vadd.f32 %v4010_v1, %v2422_v10 }
 0x166   : > { %v1830_v16 = vpop.f32.mrb[38].mxu1  ;;  %2874 = vst [vmem:[%s4039_s19 + $0x278] sm:$0xff] %v3539_v14  ;;  %v2621_v18 = vadd.f32 %v4010_v1, %v2486_v11  ;;  %v2423_v19 = vmul.f32 %v4005_v63, %v1574_v15  ;;  %v1576_v21 = vpop.f32.mrb[39].mxu0 }
 0x167   : > { %v2487_v20 = vmul.f32 %v4005_v63, %v1830_v16  ;;  %v1832_v22 = vpop.f32.mrb[39].mxu1  ;;  %3548 = vtanh.f32 %v2557_v17 }
 0x168   : > { %v2558_v23 = vadd.f32 %v4010_v1, %v2423_v19  ;;  %3550 = vtanh.f32 %v2621_v18 }
 0x169   : > { %v2622_v24 = vadd.f32 %v4010_v1, %v2487_v20  ;;  %v3541_v25 = vpop.eup %3540 }
 0x16a   : > { %3552 = vtanh.f32 %v2558_v23  ;;  %v3543_v26 = vpop.eup %3542  ;;  %2811 = vst [vmem:[%s4039_s19 + $0x80] sm:$0xff] %v3541_v25  ;;  %v1579_v27 = vpop.f32.mrb[40].mxu0 }
 0x16b   : > { %3554 = vtanh.f32 %v2622_v24  ;;  %v1835_v28 = vpop.f32.mrb[40].mxu1  ;;  %2875 = vst [vmem:[%s4039_s19 + $0x280] sm:$0xff] %v3543_v26  ;;  %v2424_v30 = vmul.f32 %v4005_v63, %v1579_v27  ;;  %v1581_v32 = vpop.f32.mrb[41].mxu0 }
 0x16c   : > { %v3545_v29 = vpop.eup %3544  ;;  %v2488_v31 = vmul.f32 %v4005_v63, %v1835_v28  ;;  %v1837_v33 = vpop.f32.mrb[41].mxu1 }
 0x16d   : > { %v3547_v34 = vpop.eup %3546  ;;  %2812 = vst [vmem:[%s4039_s19 + $0x88] sm:$0xff] %v3545_v29  ;;  %v1582_v35 = vpop.f32.mrb[42].mxu0  ;;  %v2559_v37 = vadd.f32 %v4010_v1, %v2424_v30 }
 0x16e   : > { %v1838_v36 = vpop.f32.mrb[42].mxu1  ;;  %2876 = vst [vmem:[%s4039_s19 + $0x288] sm:$0xff] %v3547_v34  ;;  %v2623_v38 = vadd.f32 %v4010_v1, %v2488_v31  ;;  %v2425_v39 = vmul.f32 %v4005_v63, %v1582_v35  ;;  %v1584_v41 = vpop.f32.mrb[43].mxu0 }
 0x16f   : > { %v2489_v40 = vmul.f32 %v4005_v63, %v1838_v36  ;;  %v1840_v42 = vpop.f32.mrb[43].mxu1  ;;  %3556 = vtanh.f32 %v2559_v37 }
 0x170   : > { %v2560_v43 = vadd.f32 %v4010_v1, %v2425_v39  ;;  %3558 = vtanh.f32 %v2623_v38 }
 0x171   : > { %v2624_v44 = vadd.f32 %v4010_v1, %v2489_v40  ;;  %v3549_v45 = vpop.eup %3548 }
 0x172   : > { %3560 = vtanh.f32 %v2560_v43  ;;  %v3551_v46 = vpop.eup %3550  ;;  %2813 = vst [vmem:[%s4039_s19 + $0x90] sm:$0xff] %v3549_v45  ;;  %v1587_v47 = vpop.f32.mrb[44].mxu0 }
 0x173   : > { %3562 = vtanh.f32 %v2624_v44  ;;  %v1843_v48 = vpop.f32.mrb[44].mxu1  ;;  %2877 = vst [vmem:[%s4039_s19 + $0x290] sm:$0xff] %v3551_v46  ;;  %v2426_v50 = vmul.f32 %v4005_v63, %v1587_v47  ;;  %v1589_v52 = vpop.f32.mrb[45].mxu0 }
 0x174   : > { %v3553_v49 = vpop.eup %3552  ;;  %v2490_v51 = vmul.f32 %v4005_v63, %v1843_v48  ;;  %v1845_v53 = vpop.f32.mrb[45].mxu1 }
 0x175   : > { %v3555_v54 = vpop.eup %3554  ;;  %2814 = vst [vmem:[%s4039_s19 + $0x98] sm:$0xff] %v3553_v49  ;;  %v1590_v55 = vpop.f32.mrb[46].mxu0  ;;  %v2561_v57 = vadd.f32 %v4010_v1, %v2426_v50 }
 0x176   : > { %v1846_v56 = vpop.f32.mrb[46].mxu1  ;;  %2878 = vst [vmem:[%s4039_s19 + $0x298] sm:$0xff] %v3555_v54  ;;  %v2625_v58 = vadd.f32 %v4010_v1, %v2490_v51  ;;  %v2427_v59 = vmul.f32 %v4005_v63, %v1590_v55  ;;  %v1592_v61 = vpop.f32.mrb[47].mxu0 }
 0x177   : > { %v2491_v60 = vmul.f32 %v4005_v63, %v1846_v56  ;;  %v1848_v62 = vpop.f32.mrb[47].mxu1  ;;  %3564 = vtanh.f32 %v2561_v57 }
 0x178   : > { %v2562_v0 = vadd.f32 %v4010_v1, %v2427_v59  ;;  %3566 = vtanh.f32 %v2625_v58 }
 0x179   : > { %v2626_v2 = vadd.f32 %v4010_v1, %v2491_v60  ;;  %v3557_v3 = vpop.eup %3556 }
 0x17a   : > { %3568 = vtanh.f32 %v2562_v0  ;;  %v3559_v4 = vpop.eup %3558  ;;  %2815 = vst [vmem:[%s4039_s19 + $0xa0] sm:$0xff] %v3557_v3  ;;  %v1595_v5 = vpop.f32.mrb[48].mxu0 }
 0x17b   : > { %3570 = vtanh.f32 %v2626_v2  ;;  %v1851_v6 = vpop.f32.mrb[48].mxu1  ;;  %2879 = vst [vmem:[%s4039_s19 + $0x2a0] sm:$0xff] %v3559_v4  ;;  %v2428_v8 = vmul.f32 %v4005_v63, %v1595_v5  ;;  %v1597_v10 = vpop.f32.mrb[49].mxu0 }
 0x17c   : > { %v3561_v7 = vpop.eup %3560  ;;  %v2492_v9 = vmul.f32 %v4005_v63, %v1851_v6  ;;  %v1853_v11 = vpop.f32.mrb[49].mxu1 }
 0x17d   : > { %v3563_v12 = vpop.eup %3562  ;;  %2816 = vst [vmem:[%s4039_s19 + $0xa8] sm:$0xff] %v3561_v7  ;;  %v1598_v13 = vpop.f32.mrb[50].mxu0  ;;  %v2563_v15 = vadd.f32 %v4010_v1, %v2428_v8 }
 0x17e   : > { %v1854_v14 = vpop.f32.mrb[50].mxu1  ;;  %2880 = vst [vmem:[%s4039_s19 + $0x2a8] sm:$0xff] %v3563_v12  ;;  %v2627_v16 = vadd.f32 %v4010_v1, %v2492_v9  ;;  %v2429_v17 = vmul.f32 %v4005_v63, %v1598_v13  ;;  %v1600_v19 = vpop.f32.mrb[51].mxu0 }
 0x17f   : > { %v2493_v18 = vmul.f32 %v4005_v63, %v1854_v14  ;;  %v1856_v20 = vpop.f32.mrb[51].mxu1  ;;  %3572 = vtanh.f32 %v2563_v15 }
 0x180   : > { %v2564_v21 = vadd.f32 %v4010_v1, %v2429_v17  ;;  %3574 = vtanh.f32 %v2627_v16 }
 0x181   : > { %v2628_v22 = vadd.f32 %v4010_v1, %v2493_v18  ;;  %v3565_v23 = vpop.eup %3564 }
 0x182   : > { %3576 = vtanh.f32 %v2564_v21  ;;  %v3567_v24 = vpop.eup %3566  ;;  %2817 = vst [vmem:[%s4039_s19 + $0xb0] sm:$0xff] %v3565_v23  ;;  %v1603_v25 = vpop.f32.mrb[52].mxu0 }
 0x183   : > { %3578 = vtanh.f32 %v2628_v22  ;;  %v1859_v26 = vpop.f32.mrb[52].mxu1  ;;  %2881 = vst [vmem:[%s4039_s19 + $0x2b0] sm:$0xff] %v3567_v24  ;;  %v2430_v28 = vmul.f32 %v4005_v63, %v1603_v25  ;;  %v1605_v30 = vpop.f32.mrb[53].mxu0 }
 0x184   : > { %v3569_v27 = vpop.eup %3568  ;;  %v2494_v29 = vmul.f32 %v4005_v63, %v1859_v26  ;;  %v1861_v31 = vpop.f32.mrb[53].mxu1 }
 0x185   : > { %v3571_v32 = vpop.eup %3570  ;;  %2818 = vst [vmem:[%s4039_s19 + $0xb8] sm:$0xff] %v3569_v27  ;;  %v1606_v33 = vpop.f32.mrb[54].mxu0  ;;  %v2565_v35 = vadd.f32 %v4010_v1, %v2430_v28 }
 0x186   : > { %v1862_v34 = vpop.f32.mrb[54].mxu1  ;;  %2882 = vst [vmem:[%s4039_s19 + $0x2b8] sm:$0xff] %v3571_v32  ;;  %v2629_v36 = vadd.f32 %v4010_v1, %v2494_v29  ;;  %v2431_v37 = vmul.f32 %v4005_v63, %v1606_v33  ;;  %v1608_v39 = vpop.f32.mrb[55].mxu0 }
 0x187   : > { %v2495_v38 = vmul.f32 %v4005_v63, %v1862_v34  ;;  %v1864_v40 = vpop.f32.mrb[55].mxu1  ;;  %3580 = vtanh.f32 %v2565_v35 }
 0x188   : > { %v2566_v41 = vadd.f32 %v4010_v1, %v2431_v37  ;;  %3582 = vtanh.f32 %v2629_v36 }
 0x189   : > { %v2630_v42 = vadd.f32 %v4010_v1, %v2495_v38  ;;  %v3573_v43 = vpop.eup %3572 }
 0x18a   : > { %3584 = vtanh.f32 %v2566_v41  ;;  %v3575_v44 = vpop.eup %3574  ;;  %2819 = vst [vmem:[%s4039_s19 + $0xc0] sm:$0xff] %v3573_v43  ;;  %v1611_v45 = vpop.f32.mrb[56].mxu0 }
 0x18b   : > { %3586 = vtanh.f32 %v2630_v42  ;;  %v1867_v46 = vpop.f32.mrb[56].mxu1  ;;  %2883 = vst [vmem:[%s4039_s19 + $0x2c0] sm:$0xff] %v3575_v44  ;;  %v2432_v48 = vmul.f32 %v4005_v63, %v1611_v45  ;;  %v1613_v50 = vpop.f32.mrb[57].mxu0 }
 0x18c   : > { %v3577_v47 = vpop.eup %3576  ;;  %v2496_v49 = vmul.f32 %v4005_v63, %v1867_v46  ;;  %v1869_v51 = vpop.f32.mrb[57].mxu1 }
 0x18d   : > { %v3579_v52 = vpop.eup %3578  ;;  %2820 = vst [vmem:[%s4039_s19 + $0xc8] sm:$0xff] %v3577_v47  ;;  %v1614_v53 = vpop.f32.mrb[58].mxu0  ;;  %v2567_v55 = vadd.f32 %v4010_v1, %v2432_v48 }
 0x18e   : > { %v1870_v54 = vpop.f32.mrb[58].mxu1  ;;  %2884 = vst [vmem:[%s4039_s19 + $0x2c8] sm:$0xff] %v3579_v52  ;;  %v2631_v56 = vadd.f32 %v4010_v1, %v2496_v49  ;;  %v2433_v57 = vmul.f32 %v4005_v63, %v1614_v53  ;;  %v1616_v59 = vpop.f32.mrb[59].mxu0  ;;  %v4242_v52 = vld [vmem:[%s4443_s3] ss:$0 sm:$0xff] }
 0x18f   : > { %v2497_v58 = vmul.f32 %v4005_v63, %v1870_v54  ;;  %v1872_v60 = vpop.f32.mrb[59].mxu1  ;;  %3588 = vtanh.f32 %v2567_v55 }
 0x190   : > { %v2568_v61 = vadd.f32 %v4010_v1, %v2433_v57  ;;  %3590 = vtanh.f32 %v2631_v56 }
 0x191   : > { %v2632_v62 = vadd.f32 %v4010_v1, %v2497_v58  ;;  %v3581_v0 = vpop.eup %3580 }
 0x192   : > { %3592 = vtanh.f32 %v2568_v61  ;;  %v3583_v2 = vpop.eup %3582  ;;  %2821 = vst [vmem:[%s4039_s19 + $0xd0] sm:$0xff] %v3581_v0  ;;  %v1619_v3 = vpop.f32.mrb[60].mxu0 }
 0x193   : > { %3594 = vtanh.f32 %v2632_v62  ;;  %v1875_v4 = vpop.f32.mrb[60].mxu1  ;;  %2885 = vst [vmem:[%s4039_s19 + $0x2d0] sm:$0xff] %v3583_v2  ;;  %v2434_v6 = vmul.f32 %v4005_v63, %v1619_v3  ;;  %v1621_v8 = vpop.f32.mrb[61].mxu0 }
 0x194   : > { %v3585_v5 = vpop.eup %3584  ;;  %v2498_v7 = vmul.f32 %v4005_v63, %v1875_v4  ;;  %v1877_v9 = vpop.f32.mrb[61].mxu1 }
 0x195   : > { %v3587_v10 = vpop.eup %3586  ;;  %2822 = vst [vmem:[%s4039_s19 + $0xd8] sm:$0xff] %v3585_v5  ;;  %v1622_v11 = vpop.f32.mrb[62].mxu0  ;;  %v2569_v13 = vadd.f32 %v4010_v1, %v2434_v6 }
 0x196   : > { %v1878_v12 = vpop.f32.mrb[62].mxu1  ;;  %2886 = vst [vmem:[%s4039_s19 + $0x2d8] sm:$0xff] %v3587_v10  ;;  %v2633_v14 = vadd.f32 %v4010_v1, %v2498_v7  ;;  %v2435_v15 = vmul.f32 %v4005_v63, %v1622_v11  ;;  %v1624_v17 = vpop.f32.mrb[63].mxu0 }
 0x197   : > { %v2499_v16 = vmul.f32 %v4005_v63, %v1878_v12  ;;  %v1880_v18 = vpop.f32.mrb[63].mxu1  ;;  %3596 = vtanh.f32 %v2569_v13 }
 0x198   : > { %v2570_v19 = vadd.f32 %v4010_v1, %v2435_v15  ;;  %3598 = vtanh.f32 %v2633_v14 }
 0x199   : > { %v2634_v20 = vadd.f32 %v4010_v1, %v2499_v16  ;;  %v3589_v21 = vpop.eup %3588 }
 0x19a   : > { %3600 = vtanh.f32 %v2570_v19  ;;  %v3591_v22 = vpop.eup %3590  ;;  %2823 = vst [vmem:[%s4039_s19 + $0xe0] sm:$0xff] %v3589_v21  ;;  %v1627_v23 = vpop.f32.mrb[64].mxu0 }
 0x19b   : > { %3602 = vtanh.f32 %v2634_v20  ;;  %v1883_v24 = vpop.f32.mrb[64].mxu1  ;;  %2887 = vst [vmem:[%s4039_s19 + $0x2e0] sm:$0xff] %v3591_v22  ;;  %v2436_v26 = vmul.f32 %v4005_v63, %v1627_v23  ;;  %v1629_v28 = vpop.f32.mrb[65].mxu0 }
 0x19c   : > { %v3593_v25 = vpop.eup %3592  ;;  %v2500_v27 = vmul.f32 %v4005_v63, %v1883_v24  ;;  %v1885_v29 = vpop.f32.mrb[65].mxu1 }
 0x19d   : > { %v3595_v30 = vpop.eup %3594  ;;  %2824 = vst [vmem:[%s4039_s19 + $0xe8] sm:$0xff] %v3593_v25  ;;  %v1630_v31 = vpop.f32.mrb[66].mxu0  ;;  %v2571_v33 = vadd.f32 %v4010_v1, %v2436_v26 }
 0x19e   : > { %v1886_v32 = vpop.f32.mrb[66].mxu1  ;;  %2888 = vst [vmem:[%s4039_s19 + $0x2e8] sm:$0xff] %v3595_v30  ;;  %v2635_v34 = vadd.f32 %v4010_v1, %v2500_v27  ;;  %v2437_v35 = vmul.f32 %v4005_v63, %v1630_v31  ;;  %v1632_v37 = vpop.f32.mrb[67].mxu0 }
 0x19f   : > { %v2501_v36 = vmul.f32 %v4005_v63, %v1886_v32  ;;  %v1888_v38 = vpop.f32.mrb[67].mxu1  ;;  %3604 = vtanh.f32 %v2571_v33 }
 0x1a0   : > { %v2572_v39 = vadd.f32 %v4010_v1, %v2437_v35  ;;  %3606 = vtanh.f32 %v2635_v34 }
 0x1a1   : > { %v2636_v40 = vadd.f32 %v4010_v1, %v2501_v36  ;;  %v3597_v41 = vpop.eup %3596 }
 0x1a2   : > { %3608 = vtanh.f32 %v2572_v39  ;;  %v3599_v42 = vpop.eup %3598  ;;  %2825 = vst [vmem:[%s4039_s19 + $0xf0] sm:$0xff] %v3597_v41  ;;  %v1635_v43 = vpop.f32.mrb[68].mxu0 }
 0x1a3   : > { %3610 = vtanh.f32 %v2636_v40  ;;  %v1891_v44 = vpop.f32.mrb[68].mxu1  ;;  %2889 = vst [vmem:[%s4039_s19 + $0x2f0] sm:$0xff] %v3599_v42  ;;  %v2438_v46 = vmul.f32 %v4005_v63, %v1635_v43  ;;  %v1637_v48 = vpop.f32.mrb[69].mxu0 }
 0x1a4   : > { %v3601_v45 = vpop.eup %3600  ;;  %v2502_v47 = vmul.f32 %v4005_v63, %v1891_v44  ;;  %v1893_v49 = vpop.f32.mrb[69].mxu1  ;;  %v4249_v63 = vld [vmem:[%s4442_s2] ss:$0 sm:$0xff] }
 0x1a5   : > { %v3603_v50 = vpop.eup %3602  ;;  %2826 = vst [vmem:[%s4039_s19 + $0xf8] sm:$0xff] %v3601_v45  ;;  %v1638_v1 = vpop.f32.mrb[70].mxu0  ;;  %v2573_v53 = vadd.f32 %v4242_v52, %v2438_v46 }
 0x1a6   : > { %v1894_v51 = vpop.f32.mrb[70].mxu1  ;;  %2890 = vst [vmem:[%s4039_s19 + $0x2f8] sm:$0xff] %v3603_v50  ;;  %v2637_v54 = vadd.f32 %v4242_v52, %v2502_v47  ;;  %v2439_v55 = vmul.f32 %v4249_v63, %v1638_v1  ;;  %v1640_v57 = vpop.f32.mrb[71].mxu0 }
 0x1a7   : > { %v2503_v56 = vmul.f32 %v4249_v63, %v1894_v51  ;;  %v1896_v58 = vpop.f32.mrb[71].mxu1  ;;  %3612 = vtanh.f32 %v2573_v53 }
 0x1a8   : > { %v2574_v59 = vadd.f32 %v4242_v52, %v2439_v55  ;;  %3614 = vtanh.f32 %v2637_v54 }
 0x1a9   : > { %v2638_v60 = vadd.f32 %v4242_v52, %v2503_v56  ;;  %v3605_v61 = vpop.eup %3604 }
 0x1aa   : > { %3616 = vtanh.f32 %v2574_v59  ;;  %v3607_v62 = vpop.eup %3606  ;;  %2827 = vst [vmem:[%s4039_s19 + $0x100] sm:$0xff] %v3605_v61  ;;  %v1643_v0 = vpop.f32.mrb[72].mxu0 }
 0x1ab   : > { %3618 = vtanh.f32 %v2638_v60  ;;  %v1899_v2 = vpop.f32.mrb[72].mxu1  ;;  %2891 = vst [vmem:[%s4039_s19 + $0x300] sm:$0xff] %v3607_v62  ;;  %v2440_v4 = vmul.f32 %v4249_v63, %v1643_v0  ;;  %v1645_v6 = vpop.f32.mrb[73].mxu0 }
 0x1ac   : > { %v3609_v3 = vpop.eup %3608  ;;  %v2504_v5 = vmul.f32 %v4249_v63, %v1899_v2  ;;  %v1901_v7 = vpop.f32.mrb[73].mxu1 }
 0x1ad   : > { %v3611_v8 = vpop.eup %3610  ;;  %2828 = vst [vmem:[%s4039_s19 + $0x108] sm:$0xff] %v3609_v3  ;;  %v1646_v9 = vpop.f32.mrb[74].mxu0  ;;  %v2575_v11 = vadd.f32 %v4242_v52, %v2440_v4 }
 0x1ae   : > { %v1902_v10 = vpop.f32.mrb[74].mxu1  ;;  %2892 = vst [vmem:[%s4039_s19 + $0x308] sm:$0xff] %v3611_v8  ;;  %v2639_v12 = vadd.f32 %v4242_v52, %v2504_v5  ;;  %v2441_v13 = vmul.f32 %v4249_v63, %v1646_v9  ;;  %v1648_v15 = vpop.f32.mrb[75].mxu0 }
 0x1af   : > { %v2505_v14 = vmul.f32 %v4249_v63, %v1902_v10  ;;  %v1904_v16 = vpop.f32.mrb[75].mxu1  ;;  %3620 = vtanh.f32 %v2575_v11 }
 0x1b0   : > { %v2576_v17 = vadd.f32 %v4242_v52, %v2441_v13  ;;  %3622 = vtanh.f32 %v2639_v12 }
 0x1b1   : > { %v2640_v18 = vadd.f32 %v4242_v52, %v2505_v14  ;;  %v3613_v19 = vpop.eup %3612 }
 0x1b2   : > { %3624 = vtanh.f32 %v2576_v17  ;;  %v3615_v20 = vpop.eup %3614  ;;  %2829 = vst [vmem:[%s4039_s19 + $0x110] sm:$0xff] %v3613_v19  ;;  %v1651_v21 = vpop.f32.mrb[76].mxu0 }
 0x1b3   : > { %3626 = vtanh.f32 %v2640_v18  ;;  %v1907_v22 = vpop.f32.mrb[76].mxu1  ;;  %2893 = vst [vmem:[%s4039_s19 + $0x310] sm:$0xff] %v3615_v20  ;;  %v2442_v24 = vmul.f32 %v4249_v63, %v1651_v21  ;;  %v1653_v26 = vpop.f32.mrb[77].mxu0 }
 0x1b4   : > { %v3617_v23 = vpop.eup %3616  ;;  %v2506_v25 = vmul.f32 %v4249_v63, %v1907_v22  ;;  %v1909_v27 = vpop.f32.mrb[77].mxu1 }
 0x1b5   : > { %v3619_v28 = vpop.eup %3618  ;;  %2830 = vst [vmem:[%s4039_s19 + $0x118] sm:$0xff] %v3617_v23  ;;  %v1654_v29 = vpop.f32.mrb[78].mxu0  ;;  %v2577_v31 = vadd.f32 %v4242_v52, %v2442_v24 }
 0x1b6   : > { %v1910_v30 = vpop.f32.mrb[78].mxu1  ;;  %2894 = vst [vmem:[%s4039_s19 + $0x318] sm:$0xff] %v3619_v28  ;;  %v2641_v32 = vadd.f32 %v4242_v52, %v2506_v25  ;;  %v2443_v33 = vmul.f32 %v4249_v63, %v1654_v29  ;;  %v1656_v35 = vpop.f32.mrb[79].mxu0 }
 0x1b7   : > { %v2507_v34 = vmul.f32 %v4249_v63, %v1910_v30  ;;  %v1912_v36 = vpop.f32.mrb[79].mxu1  ;;  %3628 = vtanh.f32 %v2577_v31 }
 0x1b8   : > { %v2578_v37 = vadd.f32 %v4242_v52, %v2443_v33  ;;  %3630 = vtanh.f32 %v2641_v32 }
 0x1b9   : > { %v2642_v38 = vadd.f32 %v4242_v52, %v2507_v34  ;;  %v3621_v39 = vpop.eup %3620 }
 0x1ba   : > { %3632 = vtanh.f32 %v2578_v37  ;;  %v3623_v40 = vpop.eup %3622  ;;  %2831 = vst [vmem:[%s4039_s19 + $0x120] sm:$0xff] %v3621_v39  ;;  %v1659_v41 = vpop.f32.mrb[80].mxu0 }
 0x1bb   : > { %3634 = vtanh.f32 %v2642_v38  ;;  %v1915_v42 = vpop.f32.mrb[80].mxu1  ;;  %2895 = vst [vmem:[%s4039_s19 + $0x320] sm:$0xff] %v3623_v40  ;;  %v2444_v44 = vmul.f32 %v4249_v63, %v1659_v41  ;;  %v1661_v46 = vpop.f32.mrb[81].mxu0 }
 0x1bc   : > { %v3625_v43 = vpop.eup %3624  ;;  %v2508_v45 = vmul.f32 %v4249_v63, %v1915_v42  ;;  %v1917_v47 = vpop.f32.mrb[81].mxu1 }
 0x1bd   : > { %v3627_v48 = vpop.eup %3626  ;;  %2832 = vst [vmem:[%s4039_s19 + $0x128] sm:$0xff] %v3625_v43  ;;  %v1662_v49 = vpop.f32.mrb[82].mxu0  ;;  %v2579_v1 = vadd.f32 %v4242_v52, %v2444_v44 }
 0x1be   : > { %v1918_v50 = vpop.f32.mrb[82].mxu1  ;;  %2896 = vst [vmem:[%s4039_s19 + $0x328] sm:$0xff] %v3627_v48  ;;  %v2643_v51 = vadd.f32 %v4242_v52, %v2508_v45  ;;  %v2445_v53 = vmul.f32 %v4249_v63, %v1662_v49  ;;  %v1664_v55 = vpop.f32.mrb[83].mxu0 }
 0x1bf   : > { %v2509_v54 = vmul.f32 %v4249_v63, %v1918_v50  ;;  %v1920_v56 = vpop.f32.mrb[83].mxu1  ;;  %3636 = vtanh.f32 %v2579_v1 }
 0x1c0   : > { %v2580_v57 = vadd.f32 %v4242_v52, %v2445_v53  ;;  %3638 = vtanh.f32 %v2643_v51 }
 0x1c1   : > { %v2644_v58 = vadd.f32 %v4242_v52, %v2509_v54  ;;  %v3629_v59 = vpop.eup %3628 }
 0x1c2   : > { %3640 = vtanh.f32 %v2580_v57  ;;  %v3631_v60 = vpop.eup %3630  ;;  %2833 = vst [vmem:[%s4039_s19 + $0x130] sm:$0xff] %v3629_v59  ;;  %v1667_v61 = vpop.f32.mrb[84].mxu0 }
 0x1c3   : > { %3642 = vtanh.f32 %v2644_v58  ;;  %v1923_v62 = vpop.f32.mrb[84].mxu1  ;;  %2897 = vst [vmem:[%s4039_s19 + $0x330] sm:$0xff] %v3631_v60  ;;  %v2446_v2 = vmul.f32 %v4249_v63, %v1667_v61  ;;  %v1669_v4 = vpop.f32.mrb[85].mxu0 }
 0x1c4   : > { %v3633_v0 = vpop.eup %3632  ;;  %v2510_v3 = vmul.f32 %v4249_v63, %v1923_v62  ;;  %v1925_v5 = vpop.f32.mrb[85].mxu1 }
 0x1c5   : > { %v3635_v6 = vpop.eup %3634  ;;  %2834 = vst [vmem:[%s4039_s19 + $0x138] sm:$0xff] %v3633_v0  ;;  %v1670_v7 = vpop.f32.mrb[86].mxu0  ;;  %v2581_v9 = vadd.f32 %v4242_v52, %v2446_v2 }
 0x1c6   : > { %v1926_v8 = vpop.f32.mrb[86].mxu1  ;;  %2898 = vst [vmem:[%s4039_s19 + $0x338] sm:$0xff] %v3635_v6  ;;  %v2645_v10 = vadd.f32 %v4242_v52, %v2510_v3  ;;  %v2447_v11 = vmul.f32 %v4249_v63, %v1670_v7  ;;  %v1672_v13 = vpop.f32.mrb[87].mxu0 }
 0x1c7   : > { %v2511_v12 = vmul.f32 %v4249_v63, %v1926_v8  ;;  %v1928_v14 = vpop.f32.mrb[87].mxu1  ;;  %3644 = vtanh.f32 %v2581_v9 }
 0x1c8   : > { %v2582_v15 = vadd.f32 %v4242_v52, %v2447_v11  ;;  %3646 = vtanh.f32 %v2645_v10 }
 0x1c9   : > { %v2646_v16 = vadd.f32 %v4242_v52, %v2511_v12  ;;  %v3637_v17 = vpop.eup %3636 }
 0x1ca   : > { %3648 = vtanh.f32 %v2582_v15  ;;  %v3639_v18 = vpop.eup %3638  ;;  %2835 = vst [vmem:[%s4039_s19 + $0x140] sm:$0xff] %v3637_v17  ;;  %v1675_v19 = vpop.f32.mrb[88].mxu0 }
 0x1cb   : > { %3650 = vtanh.f32 %v2646_v16  ;;  %v1931_v20 = vpop.f32.mrb[88].mxu1  ;;  %2899 = vst [vmem:[%s4039_s19 + $0x340] sm:$0xff] %v3639_v18  ;;  %v2448_v22 = vmul.f32 %v4249_v63, %v1675_v19  ;;  %v1677_v24 = vpop.f32.mrb[89].mxu0 }
 0x1cc   : > { %v3641_v21 = vpop.eup %3640  ;;  %v2512_v23 = vmul.f32 %v4249_v63, %v1931_v20  ;;  %v1933_v25 = vpop.f32.mrb[89].mxu1 }
 0x1cd   : > { %v3643_v26 = vpop.eup %3642  ;;  %2836 = vst [vmem:[%s4039_s19 + $0x148] sm:$0xff] %v3641_v21  ;;  %v1678_v27 = vpop.f32.mrb[90].mxu0  ;;  %v2583_v29 = vadd.f32 %v4242_v52, %v2448_v22 }
 0x1ce   : > { %v1934_v28 = vpop.f32.mrb[90].mxu1  ;;  %2900 = vst [vmem:[%s4039_s19 + $0x348] sm:$0xff] %v3643_v26  ;;  %v2647_v30 = vadd.f32 %v4242_v52, %v2512_v23  ;;  %v2449_v31 = vmul.f32 %v4249_v63, %v1678_v27  ;;  %v1680_v33 = vpop.f32.mrb[91].mxu0 }
 0x1cf   : > { %v2513_v32 = vmul.f32 %v4249_v63, %v1934_v28  ;;  %v1936_v34 = vpop.f32.mrb[91].mxu1  ;;  %3652 = vtanh.f32 %v2583_v29 }
 0x1d0   : > { %v2584_v35 = vadd.f32 %v4242_v52, %v2449_v31  ;;  %3654 = vtanh.f32 %v2647_v30 }
 0x1d1   : > { %v2648_v36 = vadd.f32 %v4242_v52, %v2513_v32  ;;  %v3645_v37 = vpop.eup %3644 }
 0x1d2   : > { %3656 = vtanh.f32 %v2584_v35  ;;  %v3647_v38 = vpop.eup %3646  ;;  %2837 = vst [vmem:[%s4039_s19 + $0x150] sm:$0xff] %v3645_v37  ;;  %v1683_v39 = vpop.f32.mrb[92].mxu0 }
 0x1d3   : > { %3658 = vtanh.f32 %v2648_v36  ;;  %v1939_v40 = vpop.f32.mrb[92].mxu1  ;;  %2901 = vst [vmem:[%s4039_s19 + $0x350] sm:$0xff] %v3647_v38  ;;  %v2450_v42 = vmul.f32 %v4249_v63, %v1683_v39  ;;  %v1685_v44 = vpop.f32.mrb[93].mxu0 }
 0x1d4   : > { %v3649_v41 = vpop.eup %3648  ;;  %v2514_v43 = vmul.f32 %v4249_v63, %v1939_v40  ;;  %v1941_v45 = vpop.f32.mrb[93].mxu1 }
 0x1d5   : > { %v3651_v46 = vpop.eup %3650  ;;  %2838 = vst [vmem:[%s4039_s19 + $0x158] sm:$0xff] %v3649_v41  ;;  %v1686_v47 = vpop.f32.mrb[94].mxu0  ;;  %v2585_v49 = vadd.f32 %v4242_v52, %v2450_v42 }
 0x1d6   : > { %v1942_v48 = vpop.f32.mrb[94].mxu1  ;;  %2902 = vst [vmem:[%s4039_s19 + $0x358] sm:$0xff] %v3651_v46  ;;  %v2649_v50 = vadd.f32 %v4242_v52, %v2514_v43  ;;  %v2451_v1 = vmul.f32 %v4249_v63, %v1686_v47  ;;  %v1688_v53 = vpop.f32.mrb[95].mxu0 }
 0x1d7   : > { %v2515_v51 = vmul.f32 %v4249_v63, %v1942_v48  ;;  %v1944_v54 = vpop.f32.mrb[95].mxu1  ;;  %3660 = vtanh.f32 %v2585_v49 }
 0x1d8   : > { %v2586_v55 = vadd.f32 %v4242_v52, %v2451_v1  ;;  %3662 = vtanh.f32 %v2649_v50 }
 0x1d9   : > { %v2650_v56 = vadd.f32 %v4242_v52, %v2515_v51  ;;  %v3653_v57 = vpop.eup %3652 }
 0x1da   : > { %3664 = vtanh.f32 %v2586_v55  ;;  %v3655_v58 = vpop.eup %3654  ;;  %2839 = vst [vmem:[%s4039_s19 + $0x160] sm:$0xff] %v3653_v57  ;;  %v1691_v59 = vpop.f32.mrb[96].mxu0 }
 0x1db   : > { %3666 = vtanh.f32 %v2650_v56  ;;  %v1947_v60 = vpop.f32.mrb[96].mxu1  ;;  %2903 = vst [vmem:[%s4039_s19 + $0x360] sm:$0xff] %v3655_v58  ;;  %v2452_v62 = vmul.f32 %v4249_v63, %v1691_v59  ;;  %v1693_v2 = vpop.f32.mrb[97].mxu0 }
 0x1dc   : > { %v3657_v61 = vpop.eup %3656  ;;  %v2516_v0 = vmul.f32 %v4249_v63, %v1947_v60  ;;  %v1949_v3 = vpop.f32.mrb[97].mxu1 }
 0x1dd   : > { %v3659_v4 = vpop.eup %3658  ;;  %2840 = vst [vmem:[%s4039_s19 + $0x168] sm:$0xff] %v3657_v61  ;;  %v1694_v5 = vpop.f32.mrb[98].mxu0  ;;  %v2587_v7 = vadd.f32 %v4242_v52, %v2452_v62 }
 0x1de   : > { %v1950_v6 = vpop.f32.mrb[98].mxu1  ;;  %2904 = vst [vmem:[%s4039_s19 + $0x368] sm:$0xff] %v3659_v4  ;;  %v2651_v8 = vadd.f32 %v4242_v52, %v2516_v0  ;;  %v2453_v9 = vmul.f32 %v4249_v63, %v1694_v5  ;;  %v1696_v11 = vpop.f32.mrb[99].mxu0 }
 0x1df   : > { %v2517_v10 = vmul.f32 %v4249_v63, %v1950_v6  ;;  %v1952_v12 = vpop.f32.mrb[99].mxu1  ;;  %3668 = vtanh.f32 %v2587_v7 }
 0x1e0   : > { %v2588_v13 = vadd.f32 %v4242_v52, %v2453_v9  ;;  %3670 = vtanh.f32 %v2651_v8 }
 0x1e1   : > { %v2652_v14 = vadd.f32 %v4242_v52, %v2517_v10  ;;  %v3661_v15 = vpop.eup %3660 }
 0x1e2   : > { %3672 = vtanh.f32 %v2588_v13  ;;  %v3663_v16 = vpop.eup %3662  ;;  %2841 = vst [vmem:[%s4039_s19 + $0x170] sm:$0xff] %v3661_v15  ;;  %v1699_v17 = vpop.f32.mrb[100].mxu0 }
 0x1e3   : > { %3674 = vtanh.f32 %v2652_v14  ;;  %v1955_v18 = vpop.f32.mrb[100].mxu1  ;;  %2905 = vst [vmem:[%s4039_s19 + $0x370] sm:$0xff] %v3663_v16  ;;  %v2454_v20 = vmul.f32 %v4249_v63, %v1699_v17  ;;  %v1701_v22 = vpop.f32.mrb[101].mxu0 }
 0x1e4   : > { %v3665_v19 = vpop.eup %3664  ;;  %v2518_v21 = vmul.f32 %v4249_v63, %v1955_v18  ;;  %v1957_v23 = vpop.f32.mrb[101].mxu1 }
 0x1e5   : > { %v3667_v24 = vpop.eup %3666  ;;  %2842 = vst [vmem:[%s4039_s19 + $0x178] sm:$0xff] %v3665_v19  ;;  %v1702_v25 = vpop.f32.mrb[102].mxu0  ;;  %v2589_v27 = vadd.f32 %v4242_v52, %v2454_v20 }
 0x1e6   : > { %v1958_v26 = vpop.f32.mrb[102].mxu1  ;;  %2906 = vst [vmem:[%s4039_s19 + $0x378] sm:$0xff] %v3667_v24  ;;  %v2653_v28 = vadd.f32 %v4242_v52, %v2518_v21  ;;  %v2455_v29 = vmul.f32 %v4249_v63, %v1702_v25  ;;  %v1704_v31 = vpop.f32.mrb[103].mxu0 }
 0x1e7   : > { %v2519_v30 = vmul.f32 %v4249_v63, %v1958_v26  ;;  %v1960_v32 = vpop.f32.mrb[103].mxu1  ;;  %3676 = vtanh.f32 %v2589_v27 }
 0x1e8   : > { %v2590_v33 = vadd.f32 %v4242_v52, %v2455_v29  ;;  %3678 = vtanh.f32 %v2653_v28 }
 0x1e9   : > { %v2654_v34 = vadd.f32 %v4242_v52, %v2519_v30  ;;  %v3669_v35 = vpop.eup %3668 }
 0x1ea   : > { %3680 = vtanh.f32 %v2590_v33  ;;  %v3671_v36 = vpop.eup %3670  ;;  %2843 = vst [vmem:[%s4039_s19 + $0x180] sm:$0xff] %v3669_v35  ;;  %v1707_v37 = vpop.f32.mrb[104].mxu0 }
 0x1eb   : > { %3682 = vtanh.f32 %v2654_v34  ;;  %v1963_v38 = vpop.f32.mrb[104].mxu1  ;;  %2907 = vst [vmem:[%s4039_s19 + $0x380] sm:$0xff] %v3671_v36  ;;  %v2456_v40 = vmul.f32 %v4249_v63, %v1707_v37  ;;  %v1709_v42 = vpop.f32.mrb[105].mxu0 }
 0x1ec   : > { %v3673_v39 = vpop.eup %3672  ;;  %v2520_v41 = vmul.f32 %v4249_v63, %v1963_v38  ;;  %v1965_v43 = vpop.f32.mrb[105].mxu1 }
 0x1ed   : > { %v3675_v44 = vpop.eup %3674  ;;  %2844 = vst [vmem:[%s4039_s19 + $0x188] sm:$0xff] %v3673_v39  ;;  %v1710_v45 = vpop.f32.mrb[106].mxu0  ;;  %v2591_v47 = vadd.f32 %v4242_v52, %v2456_v40 }
 0x1ee   : > { %v1966_v46 = vpop.f32.mrb[106].mxu1  ;;  %2908 = vst [vmem:[%s4039_s19 + $0x388] sm:$0xff] %v3675_v44  ;;  %v2655_v48 = vadd.f32 %v4242_v52, %v2520_v41  ;;  %v2457_v49 = vmul.f32 %v4249_v63, %v1710_v45  ;;  %v1712_v1 = vpop.f32.mrb[107].mxu0 }
 0x1ef   : > { %v2521_v50 = vmul.f32 %v4249_v63, %v1966_v46  ;;  %v1968_v51 = vpop.f32.mrb[107].mxu1  ;;  %3684 = vtanh.f32 %v2591_v47 }
 0x1f0   : > { %v2592_v53 = vadd.f32 %v4242_v52, %v2457_v49  ;;  %3686 = vtanh.f32 %v2655_v48 }
 0x1f1   : > { %v2656_v54 = vadd.f32 %v4242_v52, %v2521_v50  ;;  %v3677_v55 = vpop.eup %3676 }
 0x1f2   : > { %3688 = vtanh.f32 %v2592_v53  ;;  %v3679_v56 = vpop.eup %3678  ;;  %2845 = vst [vmem:[%s4039_s19 + $0x190] sm:$0xff] %v3677_v55  ;;  %v1715_v57 = vpop.f32.mrb[108].mxu0 }
 0x1f3   : > { %3690 = vtanh.f32 %v2656_v54  ;;  %v1971_v58 = vpop.f32.mrb[108].mxu1  ;;  %2909 = vst [vmem:[%s4039_s19 + $0x390] sm:$0xff] %v3679_v56  ;;  %v2458_v60 = vmul.f32 %v4249_v63, %v1715_v57  ;;  %v1717_v62 = vpop.f32.mrb[109].mxu0 }
 0x1f4   : > { %v3681_v59 = vpop.eup %3680  ;;  %v2522_v61 = vmul.f32 %v4249_v63, %v1971_v58  ;;  %v1973_v0 = vpop.f32.mrb[109].mxu1 }
 0x1f5   : > { %v3683_v2 = vpop.eup %3682  ;;  %2846 = vst [vmem:[%s4039_s19 + $0x198] sm:$0xff] %v3681_v59  ;;  %v1718_v3 = vpop.f32.mrb[110].mxu0  ;;  %v2593_v5 = vadd.f32 %v4242_v52, %v2458_v60 }
 0x1f6   : > { %v1974_v4 = vpop.f32.mrb[110].mxu1  ;;  %2910 = vst [vmem:[%s4039_s19 + $0x398] sm:$0xff] %v3683_v2  ;;  %v2657_v6 = vadd.f32 %v4242_v52, %v2522_v61  ;;  %v2459_v7 = vmul.f32 %v4249_v63, %v1718_v3  ;;  %v1720_v9 = vpop.f32.mrb[111].mxu0 }
 0x1f7   : > { %v2523_v8 = vmul.f32 %v4249_v63, %v1974_v4  ;;  %v1976_v10 = vpop.f32.mrb[111].mxu1  ;;  %3692 = vtanh.f32 %v2593_v5 }
 0x1f8   : > { %v2594_v11 = vadd.f32 %v4242_v52, %v2459_v7  ;;  %3694 = vtanh.f32 %v2657_v6 }
 0x1f9   : > { %v2658_v12 = vadd.f32 %v4242_v52, %v2523_v8  ;;  %v3685_v13 = vpop.eup %3684 }
 0x1fa   : > { %3696 = vtanh.f32 %v2594_v11  ;;  %v3687_v14 = vpop.eup %3686  ;;  %2847 = vst [vmem:[%s4039_s19 + $0x1a0] sm:$0xff] %v3685_v13  ;;  %v1723_v15 = vpop.f32.mrb[112].mxu0 }
 0x1fb   : > { %3698 = vtanh.f32 %v2658_v12  ;;  %v1979_v16 = vpop.f32.mrb[112].mxu1  ;;  %2911 = vst [vmem:[%s4039_s19 + $0x3a0] sm:$0xff] %v3687_v14  ;;  %v2460_v18 = vmul.f32 %v4249_v63, %v1723_v15  ;;  %v1725_v20 = vpop.f32.mrb[113].mxu0 }
 0x1fc   : > { %v3689_v17 = vpop.eup %3688  ;;  %v2524_v19 = vmul.f32 %v4249_v63, %v1979_v16  ;;  %v1981_v21 = vpop.f32.mrb[113].mxu1 }
 0x1fd   : > { %v3691_v22 = vpop.eup %3690  ;;  %2848 = vst [vmem:[%s4039_s19 + $0x1a8] sm:$0xff] %v3689_v17  ;;  %v1726_v23 = vpop.f32.mrb[114].mxu0  ;;  %v2595_v25 = vadd.f32 %v4242_v52, %v2460_v18 }
 0x1fe   : > { %v1982_v24 = vpop.f32.mrb[114].mxu1  ;;  %2912 = vst [vmem:[%s4039_s19 + $0x3a8] sm:$0xff] %v3691_v22  ;;  %v2659_v26 = vadd.f32 %v4242_v52, %v2524_v19  ;;  %v2461_v27 = vmul.f32 %v4249_v63, %v1726_v23  ;;  %v1728_v29 = vpop.f32.mrb[115].mxu0 }
 0x1ff   : > { %v2525_v28 = vmul.f32 %v4249_v63, %v1982_v24  ;;  %v1984_v30 = vpop.f32.mrb[115].mxu1  ;;  %3700 = vtanh.f32 %v2595_v25 }
 0x200   : > { %v2596_v31 = vadd.f32 %v4242_v52, %v2461_v27  ;;  %3702 = vtanh.f32 %v2659_v26 }
 0x201   : > { %v2660_v32 = vadd.f32 %v4242_v52, %v2525_v28  ;;  %v3693_v33 = vpop.eup %3692 }
 0x202   : > { %3704 = vtanh.f32 %v2596_v31  ;;  %v3695_v34 = vpop.eup %3694  ;;  %2849 = vst [vmem:[%s4039_s19 + $0x1b0] sm:$0xff] %v3693_v33  ;;  %v1731_v35 = vpop.f32.mrb[116].mxu0 }
 0x203   : > { %3706 = vtanh.f32 %v2660_v32  ;;  %v1987_v36 = vpop.f32.mrb[116].mxu1  ;;  %2913 = vst [vmem:[%s4039_s19 + $0x3b0] sm:$0xff] %v3695_v34  ;;  %v2462_v38 = vmul.f32 %v4249_v63, %v1731_v35  ;;  %v1733_v40 = vpop.f32.mrb[117].mxu0 }
 0x204   : > { %v3697_v37 = vpop.eup %3696  ;;  %v2526_v39 = vmul.f32 %v4249_v63, %v1987_v36  ;;  %v1989_v41 = vpop.f32.mrb[117].mxu1 }
 0x205   : > { %v3699_v42 = vpop.eup %3698  ;;  %2850 = vst [vmem:[%s4039_s19 + $0x1b8] sm:$0xff] %v3697_v37  ;;  %v1734_v43 = vpop.f32.mrb[118].mxu0  ;;  %v2597_v45 = vadd.f32 %v4242_v52, %v2462_v38 }
 0x206   : > { %v1990_v44 = vpop.f32.mrb[118].mxu1  ;;  %2914 = vst [vmem:[%s4039_s19 + $0x3b8] sm:$0xff] %v3699_v42  ;;  %v2661_v46 = vadd.f32 %v4242_v52, %v2526_v39  ;;  %v2463_v47 = vmul.f32 %v4249_v63, %v1734_v43  ;;  %v1736_v49 = vpop.f32.mrb[119].mxu0 }
 0x207   : > { %v2527_v48 = vmul.f32 %v4249_v63, %v1990_v44  ;;  %v1992_v50 = vpop.f32.mrb[119].mxu1  ;;  %3708 = vtanh.f32 %v2597_v45 }
 0x208   : > { %v2598_v1 = vadd.f32 %v4242_v52, %v2463_v47  ;;  %3710 = vtanh.f32 %v2661_v46 }
 0x209   : > { %v2662_v51 = vadd.f32 %v4242_v52, %v2527_v48  ;;  %v3701_v53 = vpop.eup %3700 }
 0x20a   : > { %3712 = vtanh.f32 %v2598_v1  ;;  %v3703_v54 = vpop.eup %3702  ;;  %2851 = vst [vmem:[%s4039_s19 + $0x1c0] sm:$0xff] %v3701_v53  ;;  %v1739_v55 = vpop.f32.mrb[120].mxu0 }
 0x20b   : > { %3714 = vtanh.f32 %v2662_v51  ;;  %v1995_v56 = vpop.f32.mrb[120].mxu1  ;;  %2915 = vst [vmem:[%s4039_s19 + $0x3c0] sm:$0xff] %v3703_v54  ;;  %v2464_v58 = vmul.f32 %v4249_v63, %v1739_v55  ;;  %v1741_v60 = vpop.f32.mrb[121].mxu0 }
 0x20c   : > { %v3705_v57 = vpop.eup %3704  ;;  %v2528_v59 = vmul.f32 %v4249_v63, %v1995_v56  ;;  %v1997_v61 = vpop.f32.mrb[121].mxu1 }
 0x20d   : > { %v3707_v62 = vpop.eup %3706  ;;  %2852 = vst [vmem:[%s4039_s19 + $0x1c8] sm:$0xff] %v3705_v57  ;;  %v1742_v0 = vpop.f32.mrb[122].mxu0  ;;  %v2599_v3 = vadd.f32 %v4242_v52, %v2464_v58 }
 0x20e   : > { %v1998_v2 = vpop.f32.mrb[122].mxu1  ;;  %2916 = vst [vmem:[%s4039_s19 + $0x3c8] sm:$0xff] %v3707_v62  ;;  %v2663_v4 = vadd.f32 %v4242_v52, %v2528_v59  ;;  %v2465_v5 = vmul.f32 %v4249_v63, %v1742_v0  ;;  %v1744_v7 = vpop.f32.mrb[123].mxu0 }
 0x20f   : > { %v2529_v6 = vmul.f32 %v4249_v63, %v1998_v2  ;;  %v2000_v8 = vpop.f32.mrb[123].mxu1  ;;  %3716 = vtanh.f32 %v2599_v3 }
 0x210   : > { %v2600_v9 = vadd.f32 %v4242_v52, %v2465_v5  ;;  %3718 = vtanh.f32 %v2663_v4 }
 0x211   : > { %v2664_v10 = vadd.f32 %v4242_v52, %v2529_v6  ;;  %v3709_v11 = vpop.eup %3708 }
 0x212   : > { %3720 = vtanh.f32 %v2600_v9  ;;  %v3711_v12 = vpop.eup %3710  ;;  %2853 = vst [vmem:[%s4039_s19 + $0x1d0] sm:$0xff] %v3709_v11  ;;  %v1747_v13 = vpop.f32.mrb[124].mxu0 }
 0x213   : > { %3722 = vtanh.f32 %v2664_v10  ;;  %v2003_v14 = vpop.f32.mrb[124].mxu1  ;;  %2917 = vst [vmem:[%s4039_s19 + $0x3d0] sm:$0xff] %v3711_v12  ;;  %v2466_v16 = vmul.f32 %v4249_v63, %v1747_v13  ;;  %v1749_v18 = vpop.f32.mrb[125].mxu0 }
 0x214   : > { %v3713_v15 = vpop.eup %3712  ;;  %v2530_v17 = vmul.f32 %v4249_v63, %v2003_v14  ;;  %v2005_v19 = vpop.f32.mrb[125].mxu1 }
 0x215   : > { %v3715_v20 = vpop.eup %3714  ;;  %2854 = vst [vmem:[%s4039_s19 + $0x1d8] sm:$0xff] %v3713_v15  ;;  %v1750_v21 = vpop.f32.mrb[126].mxu0  ;;  %v2601_v23 = vadd.f32 %v4242_v52, %v2466_v16 }
 0x216   : > { %v2006_v22 = vpop.f32.mrb[126].mxu1  ;;  %2918 = vst [vmem:[%s4039_s19 + $0x3d8] sm:$0xff] %v3715_v20  ;;  %v2665_v24 = vadd.f32 %v4242_v52, %v2530_v17  ;;  %v2467_v25 = vmul.f32 %v4249_v63, %v1750_v21  ;;  %v1752_v27 = vpop.f32.mrb[127].mxu0 }
 0x217   : > { %v2531_v26 = vmul.f32 %v4249_v63, %v2006_v22  ;;  %v2008_v28 = vpop.f32.mrb[127].mxu1  ;;  %3724 = vtanh.f32 %v2601_v23 }
 0x218   : > { %v2602_v29 = vadd.f32 %v4242_v52, %v2467_v25  ;;  %3726 = vtanh.f32 %v2665_v24 }
 0x219   : > { %v2666_v30 = vadd.f32 %v4242_v52, %v2531_v26  ;;  %v3717_v31 = vpop.eup %3716 }
 0x21a   : > { %3728 = vtanh.f32 %v2602_v29  ;;  %v3719_v32 = vpop.eup %3718  ;;  %2855 = vst [vmem:[%s4039_s19 + $0x1e0] sm:$0xff] %v3717_v31 }
 0x21b   : > { %3730 = vtanh.f32 %v2666_v30  ;;  %2919 = vst [vmem:[%s4039_s19 + $0x3e0] sm:$0xff] %v3719_v32 }
 0x21c   : > { %v3721_v33 = vpop.eup %3720 }
 0x21d   : > { %v3723_v63 = vpop.eup %3722  ;;  %2856 = vst [vmem:[%s4039_s19 + $0x1e8] sm:$0xff] %v3721_v33 }
 0x21e   : > { %2920 = vst [vmem:[%s4039_s19 + $0x3e8] sm:$0xff] %v3723_v63 }
 0x221   : > { %v3725_v34 = vpop.eup %3724 }
 0x222   : > { %v3727_v35 = vpop.eup %3726  ;;  %2857 = vst [vmem:[%s4039_s19 + $0x1f0] sm:$0xff] %v3725_v34 }
 0x223   : > { %2921 = vst [vmem:[%s4039_s19 + $0x3f0] sm:$0xff] %v3727_v35 }
 0x224   : > { %v3729_v36 = vpop.eup %3728 }
 0x225   : > { %v3731_v52 = vpop.eup %3730  ;;  %2858 = vst [vmem:[%s4039_s19 + $0x1f8] sm:$0xff] %v3729_v36 }
 0x226   : > { %2922 = vst [vmem:[%s4039_s19 + $0x3f8] sm:$0xff] %v3731_v52 }
 0x227 PF: > { %s14_s17 = sadd.s32 1, %s3756_s17   ;;  %s4445_s15 = smov %s3752_s16 }
 0x228   : > { %p11_p5 = scmp.ge.s32.totalorder %s14_s17, 4   ;;  %s4446_s16 = smov %s4448_s18 }
 0x22a   :  { %13 = sbr.rel (!%p11_p5) target bundleno = 2 (0x2), region = 83 }

</bundles_post_ra>
